<compile_context>
chip_gen: v6e
topology: v6e:2x2x1
jax: 0.10.0
libtpu: 0.0.40
codegen_flags: <defaults>
</compile_context>

<pallas_src>
import numpy as np
import jax
import jax.numpy as jnp
from jax import lax
from jax.experimental import pallas as pl
from jax.experimental.pallas import tpu as pltpu

jax.config.update("jax_default_matmul_precision", "highest")

# ---------------- configuration (small shapes consistent with the module) ---
NH = 4                    # ca_num_heads
CC = 4                    # conv_channels = decode_channels // ca_num_heads
C = NH * CC               # decode_channels = 16
B = 2                     # batch
H = W = 16                # spatial size of s3_out / s2_out
H2, W2 = H // 2, W // 2   # spatial size of s4_out
HO, WO = 8 * H, 8 * W     # output spatial size (8x bilinear upsample)
BN_EPS = 1e-5


# =========================== the fused Pallas kernel ========================
def _preaux_kernel(s4_ref, s3_ref, s2_ref, u2h_ref, aw2_ref, shm_ref, m3_ref,
                   b3_ref, m1_ref, b1_ref, u8h_ref, mw8_ref, out_ref):
    f32 = jnp.float32
    # ---- stage A: 2x bilinear upsample of s4 (two matmuls) + skip adds -----
    # width upsample first (cheap 8-row tensor), then height upsample.
    xw = jnp.dot(s4_ref[0], aw2_ref[...], preferred_element_type=f32)   # (H2, W*C)
    x = jnp.dot(u2h_ref[...], xw, preferred_element_type=f32)           # (H, W*C)
    x = x + s3_ref[0] + s2_ref[0]
    # ---- stage B: per-head (grouped) 3x3 conv + folded BN + ReLU -----------
    # y = relu( sum_dh (SH_dh @ x) @ M_dh + b3 ); width taps & zero padding
    # are folded into the block-structured M_dh operators.
    acc = jnp.dot(x, m3_ref[1], preferred_element_type=f32)             # dh = 0
    for k in (0, 2):                                                    # dh = -1, +1
        xs = jnp.dot(shm_ref[k], x, preferred_element_type=f32)
        acc = acc + jnp.dot(xs, m3_ref[k], preferred_element_type=f32)
    y = jnp.maximum(acc + b3_ref[...], 0.0)                             # (H, W*C)
    # ---- stage C: per-head 1x1 conv to 1 channel (+ bias) ------------------
    z = jnp.dot(y, m1_ref[...], preferred_element_type=f32) + b1_ref[...]  # (H, W*NH)
    # ---- stage D: 8x bilinear upsample, channel-major (NCHW) output --------
    # width upsample + head-major reorder on the small 16-row tensor FIRST,
    # then the 8x height expansion (saves ~2.7M MACs vs. height-first).
    zw = jnp.dot(z, mw8_ref[...], preferred_element_type=f32)           # (H, NH*WO)
    ow = jnp.dot(u8h_ref[...], zw, preferred_element_type=f32)          # (HO, NH*WO)
    for n in range(NH):
        out_ref[0, n] = ow[:, n * WO:(n + 1) * WO]                      # (HO, WO)


def _const_spec(shape):
    nd = len(shape)
    return pl.BlockSpec(shape, lambda b, _nd=nd: (0,) * _nd)


def preaux_forward(s4, s3, s2, ops):
    """s4: (B,C,H/2,W/2), s3/s2: (B,C,H,W) NCHW -> (B,NH,8H,8W) NCHW."""
    s4w = jnp.transpose(s4, (0, 2, 3, 1)).reshape(B, H2, W2 * C)
    s3w = jnp.transpose(s3, (0, 2, 3, 1)).reshape(B, H, W * C)
    s2w = jnp.transpose(s2, (0, 2, 3, 1)).reshape(B, H, W * C)
    return pl.pallas_call(
        _preaux_kernel,
        out_shape=jax.ShapeDtypeStruct((B, NH, HO, WO), jnp.float32),
        grid=(B,),
        in_specs=[
            pl.BlockSpec((1, H2, W2 * C), lambda b: (b, 0, 0)),
            pl.BlockSpec((1, H, W * C), lambda b: (b, 0, 0)),
            pl.BlockSpec((1, H, W * C), lambda b: (b, 0, 0)),
            _const_spec((H, H2)),                 # u2h
            _const_spec((W2 * C, W * C)),         # aw2
            _const_spec((3, H, H)),               # shm
            _const_spec((3, W * C, W * C)),       # m3
            _const_spec((1, W * C)),              # b3row
            _const_spec((W * C, W * NH)),         # m1
            _const_spec((1, W * NH)),             # b1row
            _const_spec((HO, H)),                 # u8h
            _const_spec((W * NH, NH * WO)),       # mw8
        ],
        out_specs=pl.BlockSpec((1, NH, HO, WO), lambda b: (b, 0, 0, 0)),
        compiler_params=pltpu.CompilerParams(dimension_semantics=("parallel",)),
    )(s4w, s3w, s2w, ops["u2h"], ops["aw2"], ops["shm"], ops["m3"],
      ops["b3row"], ops["m1"], ops["b1row"], ops["u8h"], ops["mw8"])


# =========================== operator construction (host) ===================
def _upsample_matrix(in_size, scale):
    """1D PyTorch bilinear (align_corners=False) upsample as a dense matrix."""
    out_size = in_size * scale
    u = np.zeros((out_size, in_size), np.float64)
    for o in range(out_size):
        src = max((o + 0.5) / scale - 0.5, 0.0)
        i0 = min(int(np.floor(src)), in_size - 1)
        i1 = i0 + 1 if i0 < in_size - 1 else i0
        lam = src - i0
        u[o, i0] += 1.0 - lam
        u[o, i1] += lam
    return u.astype(np.float32)


def build_operators(raw):
    w3 = np.asarray(raw["w3"])                              # (NH, CC, CC, 3, 3)
    gamma, beta = np.asarray(raw["gamma"]), np.asarray(raw["beta"])
    mean, var = np.asarray(raw["mean"]), np.asarray(raw["var"])
    w1, b1 = np.asarray(raw["w1"]), np.asarray(raw["b1"])   # (NH, CC), (NH,)

    scale = gamma / np.sqrt(var + BN_EPS)                   # eval-mode BN fold
    w3f = w3 * scale[:, :, None, None, None]
    b3f = (beta - mean * scale).astype(np.float32)          # (NH, CC)

    # per-tap block-diagonal channel mixers K3[kh, kw][i_global, o_global]
    k3 = np.zeros((3, 3, C, C), np.float32)
    for n in range(NH):
        for kh in range(3):
            for kw in range(3):
                k3[kh, kw, n * CC:(n + 1) * CC, n * CC:(n + 1) * CC] = \
                    w3f[n, :, :, kh, kw].T
    # width taps (+ width zero padding) folded into one operator per dh
    m3 = np.zeros((3, W * C, W * C), np.float32)
    for k, dh in enumerate((-1, 0, 1)):
        for w_dst in range(W):
            for dw in (-1, 0, 1):
                w_src = w_dst + dw
                if 0 <= w_src < W:
                    m3[k, w_src * C:(w_src + 1) * C,
                       w_dst * C:(w_dst + 1) * C] = k3[dh + 1, dw + 1]
    # height shift matrices (zero fill = conv zero padding in height)
    shm = np.zeros((3, H, H), np.float32)
    for k, dh in enumerate((-1, 0, 1)):
        for h in range(H):
            if 0 <= h + dh < H:
                shm[k, h, h + dh] = 1.0
    # per-head 1x1 projection operator (block over width)
    m1 = np.zeros((W * C, W * NH), np.float32)
    for w in range(W):
        for n in range(NH):
            m1[w * C + n * CC: w * C + (n + 1) * CC, w * NH + n] = w1[n]
    # biases tiled over width
    b3row = np.tile(b3f.reshape(-1), W)[None, :].astype(np.float32)   # (1, W*C)
    b1row = np.tile(b1.astype(np.float32), W)[None, :]                # (1, W*NH)
    # bilinear interpolation operators
    u2h = _upsample_matrix(H2, 2)                                     # (H, H2)
    u2w = _upsample_matrix(W2, 2)                                     # (W, W2)
    aw2 = np.kron(u2w.T, np.eye(C, dtype=np.float32))                 # (W2*C, W*C)
    u8h = _upsample_matrix(H, 8)                                      # (HO, H)
    u8w = _upsample_matrix(W, 8)                                      # (WO, W)
    mw8 = np.zeros((W * NH, NH * WO), np.float32)                     # -> NCHW lanes
    for w in range(W):
        for n in range(NH):
            mw8[w * NH + n, n * WO:(n + 1) * WO] = u8w[:, w]
    ops = dict(u2h=u2h, aw2=aw2, shm=shm, m3=m3, b3row=b3row, m1=m1,
               b1row=b1row, u8h=u8h, mw8=mw8)
    return {k: jnp.asarray(v) for k, v in ops.items()}


# =========================== raw module parameters ==========================
def make_params(key):
    ks = jax.random.split(key, 7)
    w3 = 0.15 * jax.random.normal(ks[0], (NH, CC, CC, 3, 3), jnp.float32)
    gamma = 1.0 + 0.1 * jax.random.normal(ks[1], (NH, CC), jnp.float32)
    beta = 0.1 * jax.random.normal(ks[2], (NH, CC), jnp.float32)
    mean = 0.1 * jax.random.normal(ks[3], (NH, CC), jnp.float32)
    var = jnp.abs(0.2 * jax.random.normal(ks[4], (NH, CC), jnp.float32)) + 0.5
    w1 = 0.25 * jax.random.normal(ks[5], (NH, CC), jnp.float32)
    b1 = 0.1 * jax.random.normal(ks[6], (NH,), jnp.float32)
    return dict(w3=w3, gamma=gamma, beta=beta, mean=mean, var=var, w1=w1, b1=b1)


# =========================== pure-JAX reference =============================
def ref_upsample_bilinear(x, scale):
    _, _, hin, win = x.shape

    def idx(in_size):
        out_size = in_size * scale
        o = jnp.arange(out_size, dtype=jnp.float32)
        src = jnp.maximum((o + 0.5) * (in_size / out_size) - 0.5, 0.0)
        i0 = jnp.clip(jnp.floor(src).astype(jnp.int32), 0, in_size - 1)
        i1 = jnp.minimum(i0 + 1, in_size - 1)
        lam = src - i0.astype(jnp.float32)
        return i0, i1, lam

    h0, h1, lh = idx(hin)
    w0, w1, lw = idx(win)
    xh = (x[:, :, h0, :] * (1.0 - lh)[None, None, :, None]
          + x[:, :, h1, :] * lh[None, None, :, None])
    return (xh[:, :, :, w0] * (1.0 - lw)[None, None, None, :]
            + xh[:, :, :, w1] * lw[None, None, None, :])


def ref_forward(s4, s3, s2, raw):
    x = ref_upsample_bilinear(s4, 2) + s3 + s2
    outs = []
    for n in range(NH):
        xc = x[:, n * CC:(n + 1) * CC]
        y = lax.conv_general_dilated(
            xc, raw["w3"][n], (1, 1), [(1, 1), (1, 1)],
            dimension_numbers=("NCHW", "OIHW", "NCHW"),
            precision=lax.Precision.HIGHEST)
        sc = raw["gamma"][n] / jnp.sqrt(raw["var"][n] + BN_EPS)
        y = ((y - raw["mean"][n][None, :, None, None]) * sc[None, :, None, None]
             + raw["beta"][n][None, :, None, None])
        y = jnp.maximum(y, 0.0)
        s = jnp.einsum("bchw,c->bhw", y, raw["w1"][n],
                       precision=lax.Precision.HIGHEST) + raw["b1"][n]
        outs.append(s[:, None])
    s_out = jnp.concatenate(outs, axis=1)                   # (B, NH, H, W)
    return ref_upsample_bilinear(s_out, 8)


# =========================== main ===========================================
if __name__ == "__main__":
    key = jax.random.PRNGKey(0)
    k4, k3, k2, kp = jax.random.split(key, 4)
    s4 = jax.random.normal(k4, (B, C, H2, W2), dtype=jnp.float32)
    s3 = jax.random.normal(k3, (B, C, H, W), dtype=jnp.float32)
    s2 = jax.random.normal(k2, (B, C, H, W), dtype=jnp.float32)
    raw = make_params(kp)
    ops = build_operators(raw)

    out = jax.block_until_ready(preaux_forward(s4, s3, s2, ops))
    assert out.shape == (B, NH, HO, WO), out.shape

    ref = jax.block_until_ready(ref_forward(s4, s3, s2, raw))
    err = float(jnp.max(jnp.abs(out - ref)))
    if err < 2e-3:
        print("KERNEL_OK")
    else:
        print("MISMATCH max_abs_err=", err)
</pallas_src>

<mosaic_0001>
module attributes {stable_mosaic.version = 11 : i64} {
  func.func @_preaux_kernel(%arg0: i32, %arg1: memref<1x8x128xf32, #tpu.memory_space<vmem>>, %arg2: memref<1x16x256xf32, #tpu.memory_space<vmem>>, %arg3: memref<1x16x256xf32, #tpu.memory_space<vmem>>, %arg4: memref<16x8xf32, #tpu.memory_space<vmem>>, %arg5: memref<128x256xf32, #tpu.memory_space<vmem>>, %arg6: memref<3x16x16xf32, #tpu.memory_space<vmem>>, %arg7: memref<3x256x256xf32, #tpu.memory_space<vmem>>, %arg8: memref<1x256xf32, #tpu.memory_space<vmem>>, %arg9: memref<256x64xf32, #tpu.memory_space<vmem>>, %arg10: memref<1x64xf32, #tpu.memory_space<vmem>>, %arg11: memref<128x16xf32, #tpu.memory_space<vmem>>, %arg12: memref<64x512xf32, #tpu.memory_space<vmem>>, %arg13: memref<1x4x128x128xf32, #tpu.memory_space<vmem>>) attributes {dimension_semantics = [#tpu.dimension_semantics<parallel>], iteration_bounds = array<i64: 2>, scalar_prefetch = 0 : i64, scratch_operands = 0 : i64, tpu.core_type = #tpu.core_type<tc>, window_params = [{transform_indices = @transform_0, window_bounds = array<i64: 1, 8, 128>}, {transform_indices = @transform_1, window_bounds = array<i64: 1, 16, 256>}, {transform_indices = @transform_2, window_bounds = array<i64: 1, 16, 256>}, {pipeline_mode = #tpu.pipeline_mode<synchronous>, transform_indices = @transform_3, window_bounds = array<i64: 16, 8>}, {pipeline_mode = #tpu.pipeline_mode<synchronous>, transform_indices = @transform_4, window_bounds = array<i64: 128, 256>}, {pipeline_mode = #tpu.pipeline_mode<synchronous>, transform_indices = @transform_5, window_bounds = array<i64: 3, 16, 16>}, {pipeline_mode = #tpu.pipeline_mode<synchronous>, transform_indices = @transform_6, window_bounds = array<i64: 3, 256, 256>}, {pipeline_mode = #tpu.pipeline_mode<synchronous>, transform_indices = @transform_7, window_bounds = array<i64: 1, 256>}, {pipeline_mode = #tpu.pipeline_mode<synchronous>, transform_indices = @transform_8, window_bounds = array<i64: 256, 64>}, {pipeline_mode = #tpu.pipeline_mode<synchronous>, transform_indices = @transform_9, window_bounds = array<i64: 1, 64>}, {pipeline_mode = #tpu.pipeline_mode<synchronous>, transform_indices = @transform_10, window_bounds = array<i64: 128, 16>}, {pipeline_mode = #tpu.pipeline_mode<synchronous>, transform_indices = @transform_11, window_bounds = array<i64: 64, 512>}, {transform_indices = @transform_12, window_bounds = array<i64: 1, 4, 128, 128>}]} {
    %c0 = arith.constant 0 : index
    %c0_0 = arith.constant 0 : index
    %c0_1 = arith.constant 0 : index
    %0 = vector.load %arg1[%c0, %c0_0, %c0_1] : memref<1x8x128xf32, #tpu.memory_space<vmem>>, vector<1x8x128xf32>
    %1 = vector.shape_cast %0 : vector<1x8x128xf32> to vector<8x128xf32>
    %c0_2 = arith.constant 0 : index
    %c0_3 = arith.constant 0 : index
    %2 = vector.load %arg5[%c0_2, %c0_3] : memref<128x256xf32, #tpu.memory_space<vmem>>, vector<128x256xf32>
    %cst = arith.constant dense<0.000000e+00> : vector<8x256xf32>
    %3 = tpu.matmul %1, %2, %cst {dimension_numbers = #tpu.dot_dimension_numbers<[1], [0], [0], [1], [0, 0, 1, 1], [], []>, precision = #tpu.contract_precision<fp32>} : vector<8x128xf32>, vector<128x256xf32>, vector<8x256xf32> -> vector<8x256xf32>
    %c0_4 = arith.constant 0 : index
    %c0_5 = arith.constant 0 : index
    %4 = vector.load %arg4[%c0_4, %c0_5] : memref<16x8xf32, #tpu.memory_space<vmem>>, vector<16x8xf32>
    %cst_6 = arith.constant dense<0.000000e+00> : vector<16x256xf32>
    %5 = tpu.matmul %4, %3, %cst_6 {dimension_numbers = #tpu.dot_dimension_numbers<[1], [0], [0], [1], [0, 0, 1, 1], [], []>, precision = #tpu.contract_precision<fp32>} : vector<16x8xf32>, vector<8x256xf32>, vector<16x256xf32> -> vector<16x256xf32>
    %c0_7 = arith.constant 0 : index
    %c0_8 = arith.constant 0 : index
    %c0_9 = arith.constant 0 : index
    %6 = vector.load %arg2[%c0_7, %c0_8, %c0_9] : memref<1x16x256xf32, #tpu.memory_space<vmem>>, vector<1x16x256xf32>
    %7 = vector.shape_cast %6 : vector<1x16x256xf32> to vector<16x256xf32>
    %8 = arith.addf %5, %7 : vector<16x256xf32>
    %c0_10 = arith.constant 0 : index
    %c0_11 = arith.constant 0 : index
    %c0_12 = arith.constant 0 : index
    %9 = vector.load %arg3[%c0_10, %c0_11, %c0_12] : memref<1x16x256xf32, #tpu.memory_space<vmem>>, vector<1x16x256xf32>
    %10 = vector.shape_cast %9 : vector<1x16x256xf32> to vector<16x256xf32>
    %11 = arith.addf %8, %10 : vector<16x256xf32>
    %c1 = arith.constant 1 : index
    %c0_13 = arith.constant 0 : index
    %c0_14 = arith.constant 0 : index
    %12 = vector.load %arg7[%c1, %c0_13, %c0_14] : memref<3x256x256xf32, #tpu.memory_space<vmem>>, vector<1x256x256xf32>
    %13 = vector.shape_cast %12 : vector<1x256x256xf32> to vector<256x256xf32>
    %cst_15 = arith.constant dense<0.000000e+00> : vector<16x256xf32>
    %14 = tpu.matmul %11, %13, %cst_15 {dimension_numbers = #tpu.dot_dimension_numbers<[1], [0], [0], [1], [0, 0, 1, 1], [], []>, precision = #tpu.contract_precision<fp32>} : vector<16x256xf32>, vector<256x256xf32>, vector<16x256xf32> -> vector<16x256xf32>
    %c0_16 = arith.constant 0 : index
    %c0_17 = arith.constant 0 : index
    %c0_18 = arith.constant 0 : index
    %15 = vector.load %arg6[%c0_16, %c0_17, %c0_18] : memref<3x16x16xf32, #tpu.memory_space<vmem>>, vector<1x16x16xf32>
    %16 = vector.shape_cast %15 : vector<1x16x16xf32> to vector<16x16xf32>
    %cst_19 = arith.constant dense<0.000000e+00> : vector<16x256xf32>
    %17 = tpu.matmul %16, %11, %cst_19 {dimension_numbers = #tpu.dot_dimension_numbers<[1], [0], [0], [1], [0, 0, 1, 1], [], []>, precision = #tpu.contract_precision<fp32>} : vector<16x16xf32>, vector<16x256xf32>, vector<16x256xf32> -> vector<16x256xf32>
    %c0_20 = arith.constant 0 : index
    %c0_21 = arith.constant 0 : index
    %c0_22 = arith.constant 0 : index
    %18 = vector.load %arg7[%c0_20, %c0_21, %c0_22] : memref<3x256x256xf32, #tpu.memory_space<vmem>>, vector<1x256x256xf32>
    %19 = vector.shape_cast %18 : vector<1x256x256xf32> to vector<256x256xf32>
    %cst_23 = arith.constant dense<0.000000e+00> : vector<16x256xf32>
    %20 = tpu.matmul %17, %19, %cst_23 {dimension_numbers = #tpu.dot_dimension_numbers<[1], [0], [0], [1], [0, 0, 1, 1], [], []>, precision = #tpu.contract_precision<fp32>} : vector<16x256xf32>, vector<256x256xf32>, vector<16x256xf32> -> vector<16x256xf32>
    %21 = arith.addf %14, %20 : vector<16x256xf32>
    %c2 = arith.constant 2 : index
    %c0_24 = arith.constant 0 : index
    %c0_25 = arith.constant 0 : index
    %22 = vector.load %arg6[%c2, %c0_24, %c0_25] : memref<3x16x16xf32, #tpu.memory_space<vmem>>, vector<1x16x16xf32>
    %23 = vector.shape_cast %22 : vector<1x16x16xf32> to vector<16x16xf32>
    %cst_26 = arith.constant dense<0.000000e+00> : vector<16x256xf32>
    %24 = tpu.matmul %23, %11, %cst_26 {dimension_numbers = #tpu.dot_dimension_numbers<[1], [0], [0], [1], [0, 0, 1, 1], [], []>, precision = #tpu.contract_precision<fp32>} : vector<16x16xf32>, vector<16x256xf32>, vector<16x256xf32> -> vector<16x256xf32>
    %c2_27 = arith.constant 2 : index
    %c0_28 = arith.constant 0 : index
    %c0_29 = arith.constant 0 : index
    %25 = vector.load %arg7[%c2_27, %c0_28, %c0_29] : memref<3x256x256xf32, #tpu.memory_space<vmem>>, vector<1x256x256xf32>
    %26 = vector.shape_cast %25 : vector<1x256x256xf32> to vector<256x256xf32>
    %cst_30 = arith.constant dense<0.000000e+00> : vector<16x256xf32>
    %27 = tpu.matmul %24, %26, %cst_30 {dimension_numbers = #tpu.dot_dimension_numbers<[1], [0], [0], [1], [0, 0, 1, 1], [], []>, precision = #tpu.contract_precision<fp32>} : vector<16x256xf32>, vector<256x256xf32>, vector<16x256xf32> -> vector<16x256xf32>
    %28 = arith.addf %21, %27 : vector<16x256xf32>
    %c0_31 = arith.constant 0 : index
    %c0_32 = arith.constant 0 : index
    %29 = vector.load %arg8[%c0_31, %c0_32] : memref<1x256xf32, #tpu.memory_space<vmem>>, vector<1x256xf32>
    %30 = vector.broadcast %29 : vector<1x256xf32> to vector<16x256xf32>
    %31 = arith.addf %28, %30 : vector<16x256xf32>
    %cst_33 = arith.constant 0.000000e+00 : f32
    %32 = vector.broadcast %cst_33 : f32 to vector<16x256xf32>
    %33 = arith.maximumf %31, %32 : vector<16x256xf32>
    %c0_34 = arith.constant 0 : index
    %c0_35 = arith.constant 0 : index
    %34 = vector.load %arg9[%c0_34, %c0_35] : memref<256x64xf32, #tpu.memory_space<vmem>>, vector<256x64xf32>
    %cst_36 = arith.constant dense<0.000000e+00> : vector<16x64xf32>
    %35 = tpu.matmul %33, %34, %cst_36 {dimension_numbers = #tpu.dot_dimension_numbers<[1], [0], [0], [1], [0, 0, 1, 1], [], []>, precision = #tpu.contract_precision<fp32>} : vector<16x256xf32>, vector<256x64xf32>, vector<16x64xf32> -> vector<16x64xf32>
    %c0_37 = arith.constant 0 : index
    %c0_38 = arith.constant 0 : index
    %36 = vector.load %arg10[%c0_37, %c0_38] : memref<1x64xf32, #tpu.memory_space<vmem>>, vector<1x64xf32>
    %37 = vector.broadcast %36 : vector<1x64xf32> to vector<16x64xf32>
    %38 = arith.addf %35, %37 : vector<16x64xf32>
    %c0_39 = arith.constant 0 : index
    %c0_40 = arith.constant 0 : index
    %39 = vector.load %arg12[%c0_39, %c0_40] : memref<64x512xf32, #tpu.memory_space<vmem>>, vector<64x512xf32>
    %cst_41 = arith.constant dense<0.000000e+00> : vector<16x512xf32>
    %40 = tpu.matmul %38, %39, %cst_41 {dimension_numbers = #tpu.dot_dimension_numbers<[1], [0], [0], [1], [0, 0, 1, 1], [], []>, precision = #tpu.contract_precision<fp32>} : vector<16x64xf32>, vector<64x512xf32>, vector<16x512xf32> -> vector<16x512xf32>
    %c0_42 = arith.constant 0 : index
    %c0_43 = arith.constant 0 : index
    %41 = vector.load %arg11[%c0_42, %c0_43] : memref<128x16xf32, #tpu.memory_space<vmem>>, vector<128x16xf32>
    %cst_44 = arith.constant dense<0.000000e+00> : vector<128x512xf32>
    %42 = tpu.matmul %41, %40, %cst_44 {dimension_numbers = #tpu.dot_dimension_numbers<[1], [0], [0], [1], [0, 0, 1, 1], [], []>, precision = #tpu.contract_precision<fp32>} : vector<128x16xf32>, vector<16x512xf32>, vector<128x512xf32> -> vector<128x512xf32>
    %43 = vector.extract_strided_slice %42 {offsets = [0, 0], sizes = [128, 128], strides = [1, 1]} : vector<128x512xf32> to vector<128x128xf32>
    %c0_45 = arith.constant 0 : index
    %c0_46 = arith.constant 0 : index
    %c0_47 = arith.constant 0 : index
    %c0_48 = arith.constant 0 : index
    %44 = vector.load %arg13[%c0_45, %c0_46, %c0_47, %c0_48] : memref<1x4x128x128xf32, #tpu.memory_space<vmem>>, vector<1x1x128x128xf32>
    %45 = vector.shape_cast %44 : vector<1x1x128x128xf32> to vector<128x128xf32>
    %46 = vector.shape_cast %43 : vector<128x128xf32> to vector<1x1x128x128xf32>
    tpu.vector_store %arg13[%c0_45, %c0_46, %c0_47, %c0_48], %46 {strides = array<i32>} : memref<1x4x128x128xf32, #tpu.memory_space<vmem>>, vector<1x1x128x128xf32>,
    %47 = vector.extract_strided_slice %42 {offsets = [0, 128], sizes = [128, 128], strides = [1, 1]} : vector<128x512xf32> to vector<128x128xf32>
    %c0_49 = arith.constant 0 : index
    %c1_50 = arith.constant 1 : index
    %c0_51 = arith.constant 0 : index
    %c0_52 = arith.constant 0 : index
    %48 = vector.load %arg13[%c0_49, %c1_50, %c0_51, %c0_52] : memref<1x4x128x128xf32, #tpu.memory_space<vmem>>, vector<1x1x128x128xf32>
    %49 = vector.shape_cast %48 : vector<1x1x128x128xf32> to vector<128x128xf32>
    %50 = vector.shape_cast %47 : vector<128x128xf32> to vector<1x1x128x128xf32>
    tpu.vector_store %arg13[%c0_49, %c1_50, %c0_51, %c0_52], %50 {strides = array<i32>} : memref<1x4x128x128xf32, #tpu.memory_space<vmem>>, vector<1x1x128x128xf32>,
    %51 = vector.extract_strided_slice %42 {offsets = [0, 256], sizes = [128, 128], strides = [1, 1]} : vector<128x512xf32> to vector<128x128xf32>
    %c0_53 = arith.constant 0 : index
    %c2_54 = arith.constant 2 : index
    %c0_55 = arith.constant 0 : index
    %c0_56 = arith.constant 0 : index
    %52 = vector.load %arg13[%c0_53, %c2_54, %c0_55, %c0_56] : memref<1x4x128x128xf32, #tpu.memory_space<vmem>>, vector<1x1x128x128xf32>
    %53 = vector.shape_cast %52 : vector<1x1x128x128xf32> to vector<128x128xf32>
    %54 = vector.shape_cast %51 : vector<128x128xf32> to vector<1x1x128x128xf32>
    tpu.vector_store %arg13[%c0_53, %c2_54, %c0_55, %c0_56], %54 {strides = array<i32>} : memref<1x4x128x128xf32, #tpu.memory_space<vmem>>, vector<1x1x128x128xf32>,
    %55 = vector.extract_strided_slice %42 {offsets = [0, 384], sizes = [128, 128], strides = [1, 1]} : vector<128x512xf32> to vector<128x128xf32>
    %c0_57 = arith.constant 0 : index
    %c3 = arith.constant 3 : index
    %c0_58 = arith.constant 0 : index
    %c0_59 = arith.constant 0 : index
    %56 = vector.load %arg13[%c0_57, %c3, %c0_58, %c0_59] : memref<1x4x128x128xf32, #tpu.memory_space<vmem>>, vector<1x1x128x128xf32>
    %57 = vector.shape_cast %56 : vector<1x1x128x128xf32> to vector<128x128xf32>
    %58 = vector.shape_cast %55 : vector<128x128xf32> to vector<1x1x128x128xf32>
    tpu.vector_store %arg13[%c0_57, %c3, %c0_58, %c0_59], %58 {strides = array<i32>} : memref<1x4x128x128xf32, #tpu.memory_space<vmem>>, vector<1x1x128x128xf32>,
    return
  }
  func.func @transform_0(%arg0: i32) -> (i32, i32, i32) {
    %c0_i32 = arith.constant 0 : i32
    %c0_i32_0 = arith.constant 0 : i32
    %c0_i32_1 = arith.constant 0 : i32
    return %arg0, %c0_i32, %c0_i32_0 : i32, i32, i32
  }
  func.func @transform_1(%arg0: i32) -> (i32, i32, i32) {
    %c0_i32 = arith.constant 0 : i32
    %c0_i32_0 = arith.constant 0 : i32
    %c0_i32_1 = arith.constant 0 : i32
    return %arg0, %c0_i32, %c0_i32_0 : i32, i32, i32
  }
  func.func @transform_2(%arg0: i32) -> (i32, i32, i32) {
    %c0_i32 = arith.constant 0 : i32
    %c0_i32_0 = arith.constant 0 : i32
    %c0_i32_1 = arith.constant 0 : i32
    return %arg0, %c0_i32, %c0_i32_0 : i32, i32, i32
  }
  func.func @transform_3(%arg0: i32) -> (i32, i32) {
    %c0_i32 = arith.constant 0 : i32
    %c0_i32_0 = arith.constant 0 : i32
    %c0_i32_1 = arith.constant 0 : i32
    return %c0_i32, %c0_i32_0 : i32, i32
  }
  func.func @transform_4(%arg0: i32) -> (i32, i32) {
    %c0_i32 = arith.constant 0 : i32
    %c0_i32_0 = arith.constant 0 : i32
    %c0_i32_1 = arith.constant 0 : i32
    return %c0_i32, %c0_i32_0 : i32, i32
  }
  func.func @transform_5(%arg0: i32) -> (i32, i32, i32) {
    %c0_i32 = arith.constant 0 : i32
    %c0_i32_0 = arith.constant 0 : i32
    %c0_i32_1 = arith.constant 0 : i32
    %c0_i32_2 = arith.constant 0 : i32
    return %c0_i32, %c0_i32_0, %c0_i32_1 : i32, i32, i32
  }
  func.func @transform_6(%arg0: i32) -> (i32, i32, i32) {
    %c0_i32 = arith.constant 0 : i32
    %c0_i32_0 = arith.constant 0 : i32
    %c0_i32_1 = arith.constant 0 : i32
    %c0_i32_2 = arith.constant 0 : i32
    return %c0_i32, %c0_i32_0, %c0_i32_1 : i32, i32, i32
  }
  func.func @transform_7(%arg0: i32) -> (i32, i32) {
    %c0_i32 = arith.constant 0 : i32
    %c0_i32_0 = arith.constant 0 : i32
    %c0_i32_1 = arith.constant 0 : i32
    return %c0_i32, %c0_i32_0 : i32, i32
  }
  func.func @transform_8(%arg0: i32) -> (i32, i32) {
    %c0_i32 = arith.constant 0 : i32
    %c0_i32_0 = arith.constant 0 : i32
    %c0_i32_1 = arith.constant 0 : i32
    return %c0_i32, %c0_i32_0 : i32, i32
  }
  func.func @transform_9(%arg0: i32) -> (i32, i32) {
    %c0_i32 = arith.constant 0 : i32
    %c0_i32_0 = arith.constant 0 : i32
    %c0_i32_1 = arith.constant 0 : i32
    return %c0_i32, %c0_i32_0 : i32, i32
  }
  func.func @transform_10(%arg0: i32) -> (i32, i32) {
    %c0_i32 = arith.constant 0 : i32
    %c0_i32_0 = arith.constant 0 : i32
    %c0_i32_1 = arith.constant 0 : i32
    return %c0_i32, %c0_i32_0 : i32, i32
  }
  func.func @transform_11(%arg0: i32) -> (i32, i32) {
    %c0_i32 = arith.constant 0 : i32
    %c0_i32_0 = arith.constant 0 : i32
    %c0_i32_1 = arith.constant 0 : i32
    return %c0_i32, %c0_i32_0 : i32, i32
  }
  func.func @transform_12(%arg0: i32) -> (i32, i32, i32, i32) {
    %c0_i32 = arith.constant 0 : i32
    %c0_i32_0 = arith.constant 0 : i32
    %c0_i32_1 = arith.constant 0 : i32
    %c0_i32_2 = arith.constant 0 : i32
    return %arg0, %c0_i32, %c0_i32_0, %c0_i32_1 : i32, i32, i32, i32
  }
}

</mosaic_0001>

<bundles_post_ra>
// kernel: tpu_custom_call.1
= control target key start
LH: loop header
LB: loop body
LE: loop exit
PB: predicated region body
PF: predicated region fallthrough
CT: control target
= control target key end

     0   :  { %s20336_s0 = inlined_call_operand.vmem [shape: f32[2,8,128], index: 0, kind: input, shape index: {}]   ;;  %s20337_s1 = inlined_call_operand.hbm [shape: f32[2,16,256], index: 1, kind: input, shape index: {}]   ;;  %s20338_s2 = inlined_call_operand.hbm [shape: f32[2,16,256], index: 2, kind: input, shape index: {}]   ;;  %s20339_s3 = inlined_call_operand.vmem [shape: f32[16,8], index: 3, kind: input, shape index: {}]   ;;  %s20340_s4 = inlined_call_operand.vmem [shape: f32[128,256], index: 4, kind: input, shape index: {}]   ;;  %s20341_s5 = inlined_call_operand.hbm [shape: f32[3,16,16], index: 5, kind: input, shape index: {}]   ;;  %s20342_s6 = inlined_call_operand.hbm [shape: f32[3,256,256], index: 6, kind: input, shape index: {}]   ;;  %s20343_s7 = inlined_call_operand.vmem [shape: f32[1,256], index: 7, kind: input, shape index: {}]   ;;  %s20344_s8 = inlined_call_operand.vmem [shape: f32[256,64], index: 8, kind: input, shape index: {}]   ;;  %s20345_s9 = inlined_call_operand.vmem [shape: f32[1,64], index: 9, kind: input, shape index: {}]   ;;  %s20346_s10 = inlined_call_operand.vmem [shape: f32[128,16], index: 10, kind: input, shape index: {}]   ;;  %s20347_s11 = inlined_call_operand.vmem [shape: f32[64,512], index: 11, kind: input, shape index: {}]   ;;  %s20348_s12 = inlined_call_operand.hbm [shape: f32[2,4,128,128], index: 12, kind: output, shape index: {}]  }
   0x1   :  { %21346 = sst [smem:[#allocation147_spill]] %s20337_s1 }
   0x2   :  { %21347 = sst [smem:[#allocation148_spill]] %s20341_s5 }
   0x3   :  { %21348 = sst [smem:[#allocation149_spill]] %s20342_s6 }
   0x4   :  { %21349 = sst [smem:[#allocation150_spill]] %s20348_s12 }
   0x5   :  { %17 = vsyncpa [#allocation3], 0 }
   0x6   :  { %19 = vsyncpa [#allocation3 + $0x1], 0 }
   0x7   :  { %20 = vsyncpa [#allocation6], 0 }
   0x8   :  { %22 = vsyncpa [#allocation6 + $0x1], 0 }
   0x9   :  { %23 = vsyncpa [#allocation9], 0 }
   0xa   :  { %24 = vsyncpa [#allocation4], 0 }
   0xb   :  { %26 = vsyncpa [#allocation4 + $0x1], 0  ;;  %s13052_s21 = smov 0   ;;  %s13054_s22 = smov 0  }
   0xc   :  { %s13056_s23 = smov 0   ;;  %s13058_s24 = smov 0  }
   0xd LB: > { %21350 = sst [smem:[#allocation16_spill]] %s12961_s21  ;;  %s13073_s25 = sadd.s32 4294967295, %s12973_s24   ;;  %s12973_s24 = sphi %s13058_s24, %s23134_s24   ;;  %s12969_s23 = sphi %s13056_s23, %s23136_s23   ;;  %s12965_s22 = sphi %s13054_s22, %s23138_s22   ;;  %s12961_s21 = sphi %s13052_s21, %s23137_s21  }
   0xe   : > { %21351 = sst [smem:[#allocation17_spill]] %s12969_s23  ;;  %s12407_s26 = sadd.s32 4294967294, %s12973_s24  }
   0xf   : > { %p78_p0 = scmp.ne.s32.totalorder %s12965_s22, %s12961_s21  ;;  %p20349_p1 = scmp.eq.s32.totalorder %s13073_s25, 0 }
  0x10   : > { %p323_p3 = scmp.eq.s32.totalorder %s12407_s26, 1  ;;  %p12408_p5 = scmp.ge.s32.totalorder %s12973_s24, 1 }
  0x11   : > { %p13082_p4 = por %p20349_p1, %p78_p0  ;;  %p330_p7 = scmp.lt.s32.totalorder %s12973_s24, 3 }
  0x12   : > { %p13087_p6 = por %p323_p3, %p78_p0  ;;  %s12975_s30 = smov [#allocation7]  }
  0x13   : > { %s21352_s27 = scalar_select %p13082_p4, 1, 0 }
  0x14   : > { %s21353_s28 = scalar_select %p13087_p6, 1, 0 }
  0x15   : > { %p13092_p8 = pnand %p12408_p5, %p330_p7  ;;  %s348_s13 = sshll.u32 %s12975_s30, 4  ;;  %s349_s13 = int_to_ptr.vmem [resolvable:$true] %s348_s13 }
  0x16   : > { %21354 = sst [smem:[#allocation18_spill]] %s21353_s28  ;;  %s12976_s15 = smov [#allocation8]  }
  0x17   : > { %p12724_p9 = pneg %p13092_p8  ;;  %s361_s16 = sshll.u32 %s12976_s15, 4  ;;  %s362_s16 = int_to_ptr.vmem [resolvable:$true] %s361_s16 }
  0x18   : > { %s12800_s17 = scalar_lea.vmem %s349_s13, 768  ;;  %p12808_p5 = scmp.lt.s32.totalorder %s349_s13, %s349_s13 }
  0x19   : > { %p13101_p11 = pnand %p12724_p9, %p20349_p1  ;;  %p12801_p13 = scmp.ne.s32.totalorder %s349_s13, %s12800_s17 }
  0x1a   : > { %p12809_p7 = scmp.lt.s32.totalorder %s12800_s17, %s12800_s17 }
  0x1b   : > { %p12791_p12 = pneg %p13101_p11 }
  0x1c   : > { %p12810_p10 = por %p12809_p7, %p12808_p5 }
  0x1d   : > { %p12803_p0 = pnand %p12801_p13, %p12791_p12 }
  0x1f   : > { %p12804_p3 = pneg %p12803_p0 }
  0x21   : > { %p12811_p9 = pnand %p12810_p10, %p12804_p3 }
  0x23   : > { %12814 = shalt.err (!%p12811_p9)
}
  0x24   : > { %s12977_s18 = smov 128   ;;  %s12978_s19 = smov 8  }
  0x25   : > { %s21357_s5 = sld [smem:[#allocation148_spill]]  ;;  %s12826_s30 = scalar_lea.vmem %s362_s16, 24576 }
  0x26   : > { %p12827_p1 = scmp.ne.s32.totalorder %s362_s16, %s12826_s30  ;;  %p12834_p2 = scmp.lt.s32.totalorder %s362_s16, %s362_s16 }
  0x27   : > { %p12835_p6 = scmp.lt.s32.totalorder %s12826_s30, %s12826_s30 }
  0x28   : > { %p12829_p13 = pnand %p12827_p1, %p12791_p12 }
  0x29   : > { %p12836_p5 = por %p12835_p6, %p12834_p2 }
  0x2a   : > { %p12830_p0 = pneg %p12829_p13 }
  0x2b   : > { %12727 = dma.hbm_to_vmem [thread:$0]  (!%p13101_p11), %s21357_s5, 768, %s349_s13, [#allocation6], %s12977_s18, %s12977_s18, %s12978_s19  }
  0x2c   : > { %p12837_p10 = pnand %p12836_p5, %p12830_p0 }
  0x2e   : > { %12840 = shalt.err (!%p12837_p10)
}
  0x2f   : > { %s20350_s15 = smov 256   ;;  %s20352_s13 = smov 16  }
  0x30   : > { %s21358_s6 = sld [smem:[#allocation149_spill]]  ;;  %s13127_s19 = sadd.s32 1, %s12973_s24  }
  0x31   : > { %21359 = sst [smem:[#allocation19_spill]] %s13127_s19  ;;  %s62_s20 = ssub.s32 %s12973_s24, %s13127_s19 }
  0x32   : > { %p63_p1 = scmp.eq.s32.totalorder %s62_s20, 0  ;;  %s65_s26 = sadd.s32 1, %s12969_s23 }
  0x33   : > { %p72_p2 = scmp.ne.s32.totalorder %s12969_s23, %s12965_s22  ;;  %p73_p6 = scmp.eq.s32.totalorder %s12973_s24, 0 }
  0x34   : > { %s13136_s30 = scalar_select %p63_p1, %s12969_s23, %s65_s26  }
  0x35   : > { %p74_p12 = por %p73_p6, %p72_p2  ;;  %p21361_p3 = scmp.eq.s32.totalorder %s13073_s25, 1 }
  0x36   : > { %12730 = dma.hbm_to_vmem [thread:$0]  (!%p13101_p11), %s21358_s6, 24576, %s362_s16, [#allocation9], %s20350_s15, %s20350_s15, %s20352_s13  }
  0x37   : > { %21360 = sst [smem:[#allocation20_spill]] %s13136_s30  ;;  %p13140_p7 = por %p21361_p3, %p72_p2 }
  0x38   : > { %p12744_p9 = scmp.lt.s32.totalorder %s12973_s24, 2  ;;  %s397_s5 = sand.u32 1, %s12969_s23  }
  0x39   : > { %s21362_s14 = scalar_select %p13140_p7, 1, 0 }
  0x3a   : > { %s12412_s17 = sshll.u32 %s397_s5, 5  ;;  %s12479_s16 = sshll.u32 %s12973_s24, 9 }
  0x3b   : > { %s21363_s1 = sld [smem:[#allocation147_spill]]  ;;  %s401_s20 = scalar_lea.vmem [#allocation2], %s12412_s17 }
  0x3c   : > { %s408_s26 = sshll.u32 %s401_s20, 4  ;;  %p13154_p11 = pnand %p12744_p9, %p74_p12  ;;  %s13152_s26 = int_to_ptr.vmem [resolvable:$true] %s408_s26 }
  0x3d   : > { %s13161_s19 = scalar_lea.hbm %s20338_s2, %s12479_s16  ;;  %s422_s15 = scalar_lea.vmem [#allocation5], %s12412_s17 }
  0x3e   : > { %s13163_s18 = sshll.u32 %s422_s15, 4  ;;  %s13165_s28 = scalar_lea.sflag [#allocation3], %s397_s5  ;;  %s13196_s18 = int_to_ptr.vmem [resolvable:$true] %s13163_s18 }
  0x3f   : > { %p12843_p0 = pneg %p13154_p11 }
  0x41   : > { %s13150_s13 = scalar_lea.hbm %s21363_s1, %s12479_s16  ;;  %s12846_s23 = scalar_lea.hbm %s21363_s1, 1024 }
  0x42   : > { %s12841_s21 = scalar_lea.hbm %s13150_s13, 512  ;;  %p12847_p1 = scmp.lt.s32.totalorder %s13150_s13, %s21363_s1 }
  0x43   : > { %p12842_p13 = scmp.ne.s32.totalorder %s13150_s13, %s12841_s21  ;;  %p12848_p2 = scmp.lt.s32.totalorder %s12846_s23, %s12841_s21 }
  0x45   : > { %p12844_p5 = pnand %p12843_p0, %p12842_p13  ;;  %p12849_p6 = por %p12848_p2, %p12847_p1 }
  0x47   : > { %p12845_p10 = pneg %p12844_p5 }
  0x49   : > { %p12850_p12 = pnand %p12849_p6, %p12845_p10 }
  0x4b   : > { %12853 = shalt.err (!%p12850_p12)
}
  0x4c   : > { %s12854_s5 = scalar_lea.vmem %s13152_s26, 512  ;;  %s12981_s12 = smov [#allocation2]  }
  0x4d   : > { %p12855_p3 = scmp.ne.s32.totalorder %s13152_s26, %s12854_s5  ;;  %s12859_s17 = sshll.u32 %s12981_s12, 4  ;;  %s12860_s17 = int_to_ptr.vmem [resolvable:$false] %s12859_s17 }
  0x4e   : > { %s12861_s15 = scalar_lea.vmem %s12860_s17, 1024  ;;  %p12862_p5 = scmp.lt.s32.totalorder %s13152_s26, %s12860_s17 }
  0x4f   : > { %p12857_p9 = pnand %p12855_p3, %p12843_p0  ;;  %p12863_p7 = scmp.lt.s32.totalorder %s12861_s15, %s12854_s5 }
  0x51   : > { %p12858_p13 = pneg %p12857_p9  ;;  %p12864_p4 = por %p12863_p7, %p12862_p5 }
  0x53   : > { %p12865_p1 = pnand %p12864_p4, %p12858_p13 }
  0x55   : > { %12868 = shalt.err (!%p12865_p1)
}
  0x56   : > { %s21365_s21 = smov 16   ;;  %s21366_s20 = smov 256  }
  0x57   : > { %12734 = dma.hbm_to_vmem [thread:$0]  (!%p13154_p11), %s13150_s13, 512, %s13152_s26, %s13165_s28, %s21366_s20, %s21366_s20, %s21365_s21  }
  0x58   : > { %s418_s23 = sand.u32 1, %s12973_s24   ;;  %s12869_s16 = scalar_lea.hbm %s13161_s19, 512 }
  0x59   : > { %s419_s30 = scalar_lea.sflag [#allocation6], %s418_s23  ;;  %p12870_p4 = scmp.ne.s32.totalorder %s13161_s19, %s12869_s16 }
  0x5a   : > { %s12874_s17 = scalar_lea.hbm %s20338_s2, 1024  ;;  %p12875_p2 = scmp.lt.s32.totalorder %s13161_s19, %s20338_s2 }
  0x5b   : > { %p12872_p7 = pnand %p12870_p4, %p12843_p0  ;;  %p12876_p6 = scmp.lt.s32.totalorder %s12874_s17, %s12869_s16 }
  0x5d   : > { %p12873_p10 = pneg %p12872_p7  ;;  %p12877_p12 = por %p12876_p6, %p12875_p2 }
  0x5f   : > { %p12878_p3 = pnand %p12877_p12, %p12873_p10 }
  0x61   : > { %12881 = shalt.err (!%p12878_p3)
}
  0x62   : > { %s12882_s28 = scalar_lea.vmem %s13196_s18, 512  ;;  %s12982_s13 = smov [#allocation5]  }
  0x63   : > { %p12883_p9 = scmp.ne.s32.totalorder %s13196_s18, %s12882_s28  ;;  %s12887_s26 = sshll.u32 %s12982_s13, 4  ;;  %s12888_s26 = int_to_ptr.vmem [resolvable:$false] %s12887_s26 }
  0x64   : > { %s12889_s23 = scalar_lea.vmem %s12888_s26, 1024  ;;  %p12890_p1 = scmp.lt.s32.totalorder %s13196_s18, %s12888_s26 }
  0x65   : > { %p12885_p13 = pnand %p12883_p9, %p12843_p0  ;;  %p12891_p4 = scmp.lt.s32.totalorder %s12889_s23, %s12882_s28 }
  0x67   : > { %p12886_p5 = pneg %p12885_p13  ;;  %p12892_p7 = por %p12891_p4, %p12890_p1 }
  0x69   : > { %p12893_p2 = pnand %p12892_p7, %p12886_p5 }
  0x6b   : > { %12896 = shalt.err (!%p12893_p2)
}
  0x6c   : > { %12737 = dma.hbm_to_vmem [thread:$0]  (!%p13154_p11), %s13161_s19, 512, %s13196_s18, %s419_s30, %s21366_s20, %s21366_s20, %s21365_s21  }
  0x6d   : > { %441 = sbr.rel (%p13092_p8) target bundleno = 2972 (0xb9c), region = 68 }
  0x72   : > { %s13227_s1 = sand.u32 1, %s12965_s22   ;;  %p21367_p0 = scmp.ne.s32.totalorder %s21352_s27, 0 }
  0x73   : > { %s12419_s16 = sshll.u32 %s13227_s1, 5  ;;  %s444_s5 = scalar_lea.sflag [#allocation3], %s13227_s1 }
  0x74   : > { %s13231_s12 = scalar_lea.vmem [#allocation2], %s12419_s16 }
  0x75   : > { %12940 = dma.done.wait (%p21367_p0), %s444_s5, 512  }
  0x76   : > { %12942 = vsyncadd (%p21367_p0), %s444_s5, 4294966784  ;;  %s452_s6 = sand.u32 1, %s13073_s25   ;;  %s13238_s19 = scalar_lea.vmem [#allocation5], %s12419_s16 }
  0x77   : > { %s453_s29 = scalar_lea.sflag [#allocation6], %s452_s6 }
  0x78   : > { %12944 = dma.done.wait (%p21367_p0), %s453_s29, 512  }
  0x79   : > { %12946 = vsyncadd (%p21367_p0), %s453_s29, 4294966784  ;;  %p21368_p8 = scmp.eq.s32.totalorder %s13073_s25, 0 }
  0x7b   : > { %12948 = dma.done.wait (%p21368_p8), [#allocation6], 768   ;;  %p21369_p11 = pmov %p21368_p8 }
  0x7c   : > { %p21370_p10 = pmov %p21368_p8 }
  0x7d   : > { %12950 = vsyncadd (%p21369_p11), [#allocation6], 4294966528 }
  0x7e   : > { %12952 = dma.done.wait (%p21370_p10), [#allocation9], 24576   ;;  %p21371_p6 = pmov %p21368_p8 }
  0x7f   : > { %v20376_v0 = vmov 0.0   ;;  %v550_v1 = vld [vmem:[%s20340_s4 + $0xf8] sm:$0xff]  ;;  %v549_v2 = vld [vmem:[%s20340_s4 + $0xf0] sm:$0xff]  ;;  %v548_v3 = vld [vmem:[%s20340_s4 + $0xe8] sm:$0xff]  ;;  %p514_p12 = scmp.lt.s32.totalorder %s13073_s25, 1  ;;  %vm1412_vm0 = vcmask 64512  }
  0x80   : > { %12954 = vsyncadd (%p21371_p6), [#allocation9], 4294942720  ;;  %647 = vmatprep.mubr.f32.mxu0 %v20376_v0  ;;  %883 = vmatprep.mubr.f32.mxu1 %v20376_v0  ;;  %v13263_v4 = vand.u32 4294901760, %v550_v1  ;;  %v13265_v5 = vand.u32 4294901760, %v549_v2  ;;  %v13267_v6 = vand.u32 4294901760, %v548_v3  ;;  %v547_v7 = vld [vmem:[%s20340_s4 + $0xe0] sm:$0xff] }
  0x81   : > { %v546_v8 = vld [vmem:[%s20340_s4 + $0xd8] sm:$0xff]  ;;  %v545_v9 = vld [vmem:[%s20340_s4 + $0xd0] sm:$0xff]  ;;  %v13278_v10 = vand.u32 4294901760, %v547_v7  ;;  %v544_v13 = vld [vmem:[%s20340_s4 + $0xc8] sm:$0xff]  ;;  %s13548_s28 = scalar_select %p514_p12, %s13073_s25, 1  ;;  %vm2008_vm1 = vcmask 130048  }
  0x82   : > { %v13280_v11 = vand.u32 4294901760, %v546_v8  ;;  %v13282_v12 = vand.u32 4294901760, %v545_v9  ;;  %v543_v14 = vld [vmem:[%s20340_s4 + $0xc0] sm:$0xff]  ;;  %v542_v15 = vld [vmem:[%s20340_s4 + $0xb8] sm:$0xff]  ;;  %552 = vmatprep.subr.mxu0 %v13263_v4  ;;  %v13294_v16 = vand.u32 4294901760, %v544_v13  ;;  %v13301_v19 = vsub.f32 %v550_v1, %v13263_v4  ;;  %v13306_v20 = vld [vmem:[%s20340_s4 + $0xb0] sm:$0xff] }
  0x83   : > { %v13296_v17 = vand.u32 4294901760, %v543_v14  ;;  %v13298_v18 = vand.u32 4294901760, %v542_v15  ;;  %v13311_v21 = vld [vmem:[%s20340_s4 + $0xa8] sm:$0xff]  ;;  %v13316_v22 = vld [vmem:[%s20340_s4 + $0xa0] sm:$0xff]  ;;  %554 = vmatpush1.msra.mxu0 %v13265_v5  ;;  %v13320_v23 = vand.u32 4294901760, %v13306_v20  ;;  %v13323_v24 = vsub.f32 %v549_v2, %v13265_v5  ;;  %v13334_v27 = vld [vmem:[%s20340_s4 + $0x98] sm:$0xff] }
  0x84   : > { %v13326_v25 = vand.u32 4294901760, %v13311_v21  ;;  %v13329_v26 = vsub.f32 %v548_v3, %v13267_v6  ;;  %v13339_v28 = vld [vmem:[%s20340_s4 + $0x90] sm:$0xff]  ;;  %v13344_v29 = vld [vmem:[%s20340_s4 + $0x88] sm:$0xff]  ;;  %556 = vmatprep.subr.mxu0 %v13267_v6  ;;  %v20375_v30 = vand.u32 4294901760, %v13301_v19  ;;  %v13349_v31 = vand.u32 4294901760, %v13316_v22  ;;  %v13369_v38 = vld [vmem:[%s20340_s4 + $0x80] sm:$0xff] }
  0x85   : > { %v13352_v32 = vsub.f32 %v547_v7, %v13278_v10  ;;  %v13355_v33 = vand.u32 4294901760, %v13334_v27  ;;  %558 = vmatpush1.msra.mxu0 %v13278_v10  ;;  %v20374_v34 = vand.u32 4294901760, %v13323_v24  ;;  %v13361_v36 = vsub.f32 %v546_v8, %v13280_v11  ;;  %v13396_v47 = vld [vmem:[%s20340_s4 + $0x78] sm:$0xff]  ;;  %v13409_v52 = vld [vmem:[%s20340_s4 + $0x70] sm:$0xff]  ;;  %v13419_v57 = vld [vmem:[%s20340_s4 + $0x68] sm:$0xff]  ;;  %s12424_s29 = sshll.u32 %s13548_s28, 3 }
  0x86   : > { %21372 = vst [vmem:[#allocation21_spill] sm:$0xff] %v13349_v31  ;;  %v20372_v35 = vand.u32 4294901760, %v13329_v26  ;;  %v13364_v37 = vand.u32 4294901760, %v13339_v28  ;;  %560 = vmatprep.subr.mxu0 %v13280_v11  ;;  %v662_v39 = vsub.f32 %v13301_v19, %v20375_v30  ;;  %v13377_v41 = vsub.f32 %v545_v9, %v13282_v12  ;;  %v13434_v62 = vld [vmem:[%s20340_s4 + $0x60] sm:$0xff]  ;;  %v13449_v7 = vld [vmem:[%s20340_s4 + $0x58] sm:$0xff]  ;;  %s517_s15 = scalar_lea.vmem %s20336_s0, %s12424_s29  ;;  %s12423_s28 = sshll.u32 %s13227_s1, 9 }
  0x87   : > { %21373 = vst [vmem:[#allocation22_spill] sm:$0xff] %v13355_v33  ;;  %v20370_v40 = vand.u32 4294901760, %v13352_v32  ;;  %v13380_v42 = vand.u32 4294901760, %v13344_v29  ;;  %562 = vmatpush1.msra.mxu0 %v13282_v12  ;;  %v668_v43 = vsub.f32 %v13323_v24, %v20374_v34  ;;  %v20368_v45 = vand.u32 4294901760, %v13361_v36  ;;  %v13591_v30 = vld [vmem:[%s20340_s4 + $0x18] sm:$0xff]  ;;  %s19796_s13 = scalar_lea.vmem [#allocation10], %s12423_s28 }
  0x88   : > { %21374 = vst [vmem:[#allocation23_spill] sm:$0xff] %v13364_v37  ;;  %v674_v44 = vsub.f32 %v13329_v26, %v20372_v35  ;;  %v13391_v46 = vsub.f32 %v544_v13, %v13294_v16  ;;  %564 = vmatprep.subr.mxu0 %v13294_v16  ;;  %v663_v48 = vand.u32 4294901760, %v662_v39  ;;  %v20367_v50 = vand.u32 4294901760, %v13377_v41  ;;  %s12481_s26 = sshll.u32 %s13073_s25, 13  ;;  %s12280_s23 = sshll.u32 %s19796_s13, 4  ;;  %s20291_s23 = int_to_ptr.vmem [resolvable:$true] %s12280_s23 }
  0x89   : > { %21375 = vst [vmem:[#allocation24_spill] sm:$0xff] %v13380_v42  ;;  %v680_v49 = vsub.f32 %v13352_v32, %v20370_v40  ;;  %v13404_v51 = vand.u32 4294901760, %v13369_v38  ;;  %566 = vmatpush1.msra.mxu0 %v13296_v17  ;;  %v669_v53 = vand.u32 4294901760, %v668_v43  ;;  %v686_v55 = vsub.f32 %v13361_v36, %v20368_v45  ;;  %v13543_v45 = vld [vmem:[%s20340_s4 + $0x30] sm:$0xff]  ;;  %v13564_v40 = vld [vmem:[%s20340_s4 + $0x28] sm:$0xff]  ;;  %s12267_s25 = scalar_lea.sflag [#allocation4], %s13227_s1 }
  0x8a   : > { %v675_v54 = vand.u32 4294901760, %v674_v44  ;;  %v20365_v56 = vand.u32 4294901760, %v13391_v46  ;;  %568 = vmatprep.subr.mxu0 %v13298_v18  ;;  %664 = vmatprep.subr.mxu1 %v663_v48  ;;  %v692_v59 = vsub.f32 %v13377_v41, %v20367_v50  ;;  %v13426_v60 = vsub.f32 %v543_v14, %v13296_v17  ;;  %s12897_s6 = scalar_lea.vmem %s20291_s23, 8192  ;;  %p23129_p9 = scmp.ne.s32.totalorder %s21362_s14, 0 }
  0x8b   : > { %21376 = vst [vmem:[#allocation25_spill] sm:$0xff] %v13404_v51  ;;  %v681_v58 = vand.u32 4294901760, %v680_v49  ;;  %v13429_v61 = vand.u32 4294901760, %v13396_v47  ;;  %570 = vmatpush1.msra.mxu0 %v13320_v23  ;;  %670 = vmatpush1.msra.mxu1 %v669_v53  ;;  %v687_v63 = vand.u32 4294901760, %v686_v55  ;;  %v13441_v2 = vsub.f32 %v542_v15, %v13298_v18  ;;  %v13463_v15 = vld [vmem:[%s20340_s4 + $0x50] sm:$0xff]  ;;  %p12898_p3 = scmp.ne.s32.totalorder %s20291_s23, %s12897_s6  ;;  %s12984_s29 = smov [#allocation10]  }
  0x8c   : > { %v698_v1 = vsub.f32 %v13391_v46, %v20365_v56  ;;  %v13444_v3 = vand.u32 4294901760, %v13409_v52  ;;  %572 = vmatprep.subr.mxu0 %v13326_v25  ;;  %676 = vmatprep.subr.mxu1 %v675_v54  ;;  %v693_v8 = vand.u32 4294901760, %v692_v59  ;;  %v20364_v9 = vand.u32 4294901760, %v13426_v60  ;;  %s12901_s18 = sshll.u32 %s12984_s29, 4  ;;  %s12902_s18 = int_to_ptr.vmem [resolvable:$false] %s12901_s18 }
  0x8d   : > { %21377 = vst [vmem:[#allocation26_spill] sm:$0xff] %v13429_v61  ;;  %v13455_v13 = vsub.f32 %v13306_v20, %v13320_v23  ;;  %v13458_v14 = vand.u32 4294901760, %v13419_v57  ;;  %574 = vmatpush1.msra.mxu0 %v13349_v31  ;;  %682 = vmatpush1.msra.mxu1 %v681_v58  ;;  %v20362_v43 = vand.u32 4294901760, %v13441_v2  ;;  %v13469_v44 = vsub.f32 %v13311_v21, %v13326_v25  ;;  %v13489_v21 = vld [vmem:[%s20340_s4 + $0x48] sm:$0xff]  ;;  %p12899_p13 = pnand %p12898_p3, %p23129_p9  ;;  %s12903_s27 = scalar_lea.vmem %s12902_s18, 16384 }
  0x8e   : > { %21378 = vst [vmem:[#allocation27_spill] sm:$0xff] %v13444_v3  ;;  %v699_v39 = vand.u32 4294901760, %v698_v1  ;;  %v13472_v20 = vand.u32 4294901760, %v13434_v62  ;;  %576 = vmatprep.subr.mxu0 %v13355_v33  ;;  %688 = vmatprep.subr.mxu1 %v687_v63  ;;  %v704_v48 = vsub.f32 %v13426_v60, %v20364_v9  ;;  %v13481_v53 = vsub.f32 %v13316_v22, %v13349_v31  ;;  %p12904_p1 = scmp.lt.s32.totalorder %s20291_s23, %s12902_s18  ;;  %p12905_p4 = scmp.lt.s32.totalorder %s12903_s27, %s12897_s6 }
  0x8f   : > { %21379 = vst [vmem:[#allocation28_spill] sm:$0xff] %v13458_v14  ;;  %v20363_v49 = vand.u32 4294901760, %v13455_v13  ;;  %v13484_v54 = vand.u32 4294901760, %v13449_v7  ;;  %578 = vmatpush1.msra.mxu0 %v13364_v37  ;;  %694 = vmatpush1.msra.mxu1 %v693_v8  ;;  %v710_v55 = vsub.f32 %v13441_v2, %v20362_v43  ;;  %v20366_v58 = vand.u32 4294901760, %v13469_v44  ;;  %p12900_p5 = pneg %p12899_p13 }
  0x90   : > { %21380 = vst [vmem:[#allocation29_spill] sm:$0xff] %v13472_v20  ;;  %v13499_v22 = vsub.f32 %v13334_v27, %v13355_v33  ;;  %v13502_v59 = vand.u32 4294901760, %v13463_v15  ;;  %580 = vmatprep.subr.mxu0 %v13380_v42  ;;  %700 = vmatprep.subr.mxu1 %v699_v39  ;;  %v705_v63 = vand.u32 4294901760, %v704_v48  ;;  %v20369_v8 = vand.u32 4294901760, %v13481_v53  ;;  %v13516_v27 = vld [vmem:[%s20340_s4 + $0x40] sm:$0xff]  ;;  %p12906_p7 = por %p12905_p4, %p12904_p1 }
  0x91   : > { %21381 = vst [vmem:[#allocation30_spill] sm:$0xff] %v13484_v54  ;;  %v716_v1 = vsub.f32 %v13455_v13, %v20363_v49  ;;  %v13511_v43 = vsub.f32 %v13339_v28, %v13364_v37  ;;  %582 = vmatpush1.msra.mxu0 %v13404_v51  ;;  %v711_v39 = vand.u32 4294901760, %v710_v55  ;;  %v722_v48 = vsub.f32 %v13469_v44, %v20366_v58  ;;  %v13529_v28 = vld [vmem:[%s20340_s4 + $0x38] sm:$0xff]  ;;  %v518_v33 = vld [vmem:[%s517_s15] sm:$0xff] }
  0x92   : > { %21382 = vst [vmem:[#allocation31_spill] sm:$0xff] %v13502_v59  ;;  %v20371_v49 = vand.u32 4294901760, %v13499_v22  ;;  %v13524_v9 = vand.u32 4294901760, %v13489_v21  ;;  %706 = vmatpush1.msra.mxu1 %v705_v63  ;;  %584 = vmatprep.subr.mxu0 %v13429_v61  ;;  %v728_v55 = vsub.f32 %v13481_v53, %v20369_v8  ;;  %v13538_v50 = vsub.f32 %v13344_v29, %v13380_v42  ;;  %p12907_p2 = pnand %p12906_p7, %p12900_p5 }
  0x93   : > { %v717_v56 = vand.u32 4294901760, %v716_v1  ;;  %v20373_v58 = vand.u32 4294901760, %v13511_v43  ;;  %712 = vmatprep.subr.mxu1 %v711_v39  ;;  %586 = vmatpush1.msra.mxu0 %v13444_v3  ;;  %v723_v63 = vand.u32 4294901760, %v722_v48  ;;  %v13555_v8 = vand.u32 4294901760, %v13516_v27 }
  0x94   : > { %21383 = vst [vmem:[#allocation32_spill] sm:$0xff] %v13524_v9  ;;  %v734_v1 = vsub.f32 %v13499_v22, %v20371_v49  ;;  %v13559_v29 = vsub.f32 %v13369_v38, %v13404_v51  ;;  %588 = vmatprep.subr.mxu0 %v13458_v14  ;;  %v729_v39 = vand.u32 4294901760, %v728_v55  ;;  %v20378_v49 = vand.u32 4294901760, %v13538_v50  ;;  %v13577_v38 = vld [vmem:[%s20340_s4 + $0x20] sm:$0xff] }
  0x95   : > { %21384 = vst [vmem:[#allocation33_spill] sm:$0xff] %v13555_v8  ;;  %718 = vmatpush1.msra.mxu1 %v717_v56  ;;  %v740_v48 = vsub.f32 %v13511_v43, %v20373_v58  ;;  %v13572_v35 = vand.u32 4294901760, %v13529_v28  ;;  %590 = vmatpush1.msra.mxu0 %v13472_v20  ;;  %v13583_v58 = vsub.f32 %v13396_v47, %v13429_v61  ;;  %v13586_v34 = vand.u32 4294901760, %v13543_v45 }
  0x96   : > { %724 = vmatprep.subr.mxu1 %v723_v63  ;;  %v735_v56 = vand.u32 4294901760, %v734_v1  ;;  %v20381_v55 = vand.u32 4294901760, %v13559_v29  ;;  %592 = vmatprep.subr.mxu0 %v13484_v54  ;;  %v746_v1 = vsub.f32 %v13538_v50, %v20378_v49  ;;  %v13599_v47 = vsub.f32 %v13409_v52, %v13444_v3  ;;  %v13620_v3 = vld [vmem:[%s20340_s4 + $0x10] sm:$0xff] }
  0x97   : > { %21385 = vst [vmem:[#allocation34_spill] sm:$0xff] %v13586_v34  ;;  %730 = vmatpush1.msra.mxu1 %v729_v39  ;;  %v741_v63 = vand.u32 4294901760, %v740_v48  ;;  %v13602_v0 = vand.u32 4294901760, %v13564_v40  ;;  %594 = vmatpush1.msra.mxu0 %v13502_v59  ;;  %v13612_v49 = vsub.f32 %v13419_v57, %v13458_v14  ;;  %v13615_v52 = vand.u32 4294901760, %v13577_v38  ;;  %v13634_v14 = vld [vmem:[%s20340_s4 + $0x8] sm:$0xff] }
  0x98   : > { %736 = vmatprep.subr.mxu1 %v735_v56  ;;  %v752_v39 = vsub.f32 %v13559_v29, %v20381_v55  ;;  %596 = vmatprep.subr.mxu0 %v13524_v9  ;;  %v747_v56 = vand.u32 4294901760, %v746_v1  ;;  %v13626_v48 = vsub.f32 %v13434_v62, %v13472_v20  ;;  %v13629_v57 = vand.u32 4294901760, %v13591_v30  ;;  %v13663_v55 = vld [vmem:[%s20340_s4] sm:$0xff] }
  0x99   : > { %21386 = vst [vmem:[#allocation35_spill] sm:$0xff] %v13602_v0  ;;  %21387 = vst [vmem:[#allocation36_spill] sm:$0xff] %v13615_v52  ;;  %742 = vmatpush1.msra.mxu1 %v741_v63  ;;  %598 = vmatpush1.msra.mxu0 %v13555_v8  ;;  %v21388_v61 = vand.u32 4294901760, %v13583_v58  ;;  %v13643_v62 = vsub.f32 %v13449_v7, %v13484_v54  ;;  %v21389_v20 = vand.u32 4294901760, %v13599_v47  ;;  %v13671_v42 = vand.u32 4294901760, %v13634_v14 }
  0x9a   : > { %v753_v63 = vand.u32 4294901760, %v752_v39  ;;  %748 = vmatprep.subr.mxu1 %v747_v56  ;;  %600 = vmatprep.subr.mxu0 %v13572_v35  ;;  %v13658_v7 = vsub.f32 %v13463_v15, %v13502_v59  ;;  %v21392_v59 = vand.u32 4294901760, %v13626_v48  ;;  %v13687_v31 = vand.u32 4294901760, %v13663_v55 }
  0x9b   : > { %v758_v1 = vsub.f32 %v13583_v58, %v21388_v61  ;;  %v764_v39 = vsub.f32 %v13599_v47, %v21389_v20  ;;  %v13654_v61 = vand.u32 4294901760, %v13620_v3  ;;  %602 = vmatpush1.msra.mxu0 %v13586_v34  ;;  %v21391_v20 = vand.u32 4294901760, %v13612_v49 }
  0x9c   : > { %754 = vmatpush1.msra.mxu1 %v753_v63  ;;  %v20402_v54 = vand.u32 4294901760, %v13643_v62  ;;  %604 = vmatprep.subr.mxu0 %v13602_v0  ;;  %v776_v37 = vsub.f32 %v13626_v48, %v21392_v59  ;;  %v13691_v59 = vsub.f32 %v13516_v27, %v13555_v8  ;;  %vm8284_vm2 = vcmask 523264  }
  0x9d   : > { %21390 = vst [vmem:[#allocation37_spill] sm:$0xff] %v13654_v61  ;;  %v759_v56 = vand.u32 4294901760, %v758_v1  ;;  %v770_v51 = vsub.f32 %v13612_v49, %v21391_v20  ;;  %v765_v15 = vand.u32 4294901760, %v764_v39  ;;  %v13680_v1 = vsub.f32 %v13489_v21, %v13524_v9  ;;  %606 = vmatpush1.msra.mxu0 %v13615_v52 }
  0x9e   : > { %v782_v39 = vsub.f32 %v13643_v62, %v20402_v54  ;;  %v777_v63 = vand.u32 4294901760, %v776_v37  ;;  %608 = vmatprep.subr.mxu0 %v13629_v57  ;;  %v21393_v21 = vand.u32 4294901760, %v13658_v7  ;;  %v13700_v54 = vsub.f32 %v13529_v28, %v13572_v35 }
  0x9f   : > { %760 = vmatprep.subr.mxu1 %v759_v56  ;;  %v771_v20 = vand.u32 4294901760, %v770_v51  ;;  %v20405_v56 = vand.u32 4294901760, %v13680_v1  ;;  %610 = vmatpush1.msra.mxu0 %v13654_v61  ;;  %v20408_v27 = vand.u32 4294901760, %v13691_v59  ;;  %v13708_v37 = vsub.f32 %v13543_v45, %v13586_v34 }
  0xa0   : > { %766 = vmatpush1.msra.mxu1 %v765_v15  ;;  %v788_v51 = vsub.f32 %v13658_v7, %v21393_v21  ;;  %v783_v9 = vand.u32 4294901760, %v782_v39  ;;  %v13704_v15 = vand.u32 4294901760, %v518_v33  ;;  %612 = vmatprep.subr.mxu0 %v13671_v42  ;;  %v13717_v39 = vsub.f32 %v13564_v40, %v13602_v0 }
  0xa1   : > { %772 = vmatprep.subr.mxu1 %v771_v20  ;;  %v794_v28 = vsub.f32 %v13680_v1, %v20405_v56  ;;  %614 = vmatpush1.msra.mxu0 %v13687_v31  ;;  %v800_v45 = vsub.f32 %v13691_v59, %v20408_v27  ;;  %v13729_v56 = vsub.f32 %v13577_v38, %v13615_v52  ;;  %v21395_v40 = vand.u32 4294901760, %v13700_v54 }
  0xa2   : > { %21394 = vst [vmem:[#allocation38_spill] sm:$0xff] %v13704_v15  ;;  %778 = vmatpush1.msra.mxu1 %v777_v63  ;;  %v789_v21 = vand.u32 4294901760, %v788_v51  ;;  %v13724_v63 = vsub.f32 %v518_v33, %v13704_v15  ;;  %893 = vmatprep.subr.mxu0 %v13301_v19  ;;  %v20413_v0 = vand.u32 4294901760, %v13717_v39  ;;  %v13738_v33 = vsub.f32 %v13591_v30, %v13629_v57 }
  0xa3   : > { %784 = vmatprep.subr.mxu1 %v783_v9  ;;  %v795_v20 = vand.u32 4294901760, %v794_v28  ;;  %v806_v9 = vsub.f32 %v13700_v54, %v21395_v40  ;;  %v801_v27 = vand.u32 4294901760, %v800_v45  ;;  %v21396_v38 = vand.u32 4294901760, %v13708_v37 }
  0xa4   : > { %790 = vmatpush1.msra.mxu1 %v789_v21  ;;  %v20414_v51 = vand.u32 4294901760, %v13724_v63  ;;  %v20417_v28 = vand.u32 4294901760, %v13729_v56  ;;  %v818_v40 = vsub.f32 %v13717_v39, %v20413_v0  ;;  %v20421_v34 = vand.u32 4294901760, %v13738_v33 }
  0xa5   : > { %v812_v21 = vsub.f32 %v13708_v37, %v21396_v38  ;;  %796 = vmatprep.subr.mxu1 %v795_v20  ;;  %v807_v52 = vand.u32 4294901760, %v806_v9  ;;  %v13751_v30 = vsub.f32 %v13620_v3, %v13654_v61  ;;  %v13761_v9 = vsub.f32 %v13634_v14, %v13671_v42 }
  0xa6   : > { %802 = vmatpush1.msra.mxu1 %v801_v27  ;;  %v651_v45 = vsub.f32 %v13724_v63, %v20414_v51  ;;  %v824_v20 = vsub.f32 %v13729_v56, %v20417_v28  ;;  %v819_v0 = vand.u32 4294901760, %v818_v40  ;;  %v830_v3 = vsub.f32 %v13738_v33, %v20421_v34 }
  0xa7   : > { %21397 = vst [vmem:[#allocation39_spill] sm:$0xff] %v13751_v30  ;;  %v813_v38 = vand.u32 4294901760, %v812_v21  ;;  %808 = vmatprep.subr.mxu1 %v807_v52  ;;  %v20420_v27 = vand.u32 4294901760, %v13751_v30  ;;  %v13769_v51 = vsub.f32 %v13663_v55, %v13687_v31  ;;  %v20419_v28 = vand.u32 4294901760, %v13761_v9 }
  0xa8   : > { %v652_v21 = vand.u32 4294901760, %v651_v45  ;;  %v825_v61 = vand.u32 4294901760, %v824_v20  ;;  %v831_v14 = vand.u32 4294901760, %v830_v3  ;;  %v21399_v20 = vmov 0.0   ;;  %v21400_v3 = vld [vmem:[#allocation21_spill] sm:$0xff] }
  0xa9   : > { %21398 = vst [vmem:[#allocation40_spill] sm:$0xff] %v13769_v51  ;;  %814 = vmatpush1.msra.mxu1 %v813_v38  ;;  %v836_v52 = vsub.f32 %v13751_v30, %v20420_v27  ;;  %v20418_v40 = vand.u32 4294901760, %v13769_v51  ;;  %v842_v55 = vsub.f32 %v13761_v9, %v20419_v28  ;;  %v21410_v28 = vld [vmem:[#allocation31_spill] sm:$0xff]  ;;  %v21411_v27 = vld [vmem:[#allocation32_spill] sm:$0xff]  ;;  %v21412_v34 = vand.u32 4294901760, %v13301_v19 }
  0xaa   : > { %820 = vmatprep.subr.mxu1 %v819_v0  ;;  %653 = vmatmul.mubr.f32.vlgmr.msra.gmra.mxu0 %v652_v21  ;;  %v21401_v21 = vld [vmem:[#allocation22_spill] sm:$0xff]  ;;  %v21419_v19 = vand.u32 4294901760, %v13361_v36 }
  0xab   : > { %826 = vmatpush1.msra.mxu1 %v825_v61  ;;  %896 = vmatpush1.msra.mxu0 %v13323_v24  ;;  %v837_v45 = vand.u32 4294901760, %v836_v52  ;;  %v848_v0 = vsub.f32 %v13769_v51, %v20418_v40  ;;  %v843_v38 = vand.u32 4294901760, %v842_v55  ;;  %v21403_v52 = vld [vmem:[#allocation24_spill] sm:$0xff]  ;;  %v21404_v55 = vld [vmem:[#allocation25_spill] sm:$0xff]  ;;  %v21409_v40 = vld [vmem:[#allocation30_spill] sm:$0xff] }
  0xac   : > { %832 = vmatprep.subr.mxu1 %v831_v14  ;;  %899 = vmatprep.subr.mxu0 %v13329_v26  ;;  %v21402_v14 = vld [vmem:[#allocation23_spill] sm:$0xff] }
  0xad   : > { %1019 = vmatprep.mubr.f32.mxu0 %v21399_v20  ;;  %902 = vmatpush1.msra.mxu0 %v13352_v32  ;;  %v849_v61 = vand.u32 4294901760, %v848_v0  ;;  %v21406_v0 = vld [vmem:[#allocation27_spill] sm:$0xff] }
  0xae   : > { %838 = vmatpush1.msra.mxu1 %v837_v45  ;;  %905 = vmatprep.subr.mxu0 %v13361_v36  ;;  %v21405_v45 = vld [vmem:[#allocation26_spill] sm:$0xff]  ;;  %v21424_v36 = vand.u32 4294901760, %v13724_v63 }
  0xaf   : > { %844 = vmatprep.subr.mxu1 %v843_v38  ;;  %908 = vmatpush1.msra.mxu0 %v13377_v41  ;;  %v21407_v38 = vld [vmem:[#allocation28_spill] sm:$0xff] }
  0xb0   : > { %850 = vmatpush1.msra.mxu1 %v849_v61  ;;  %911 = vmatprep.subr.mxu0 %v13391_v46  ;;  %v21408_v61 = vld [vmem:[#allocation29_spill] sm:$0xff] }
  0xb1   : > { %885 = vmatmul.mubr.f32.vlgmr.msra.gmra.mxu1 %v13704_v15  ;;  %914 = vmatpush1.msra.mxu0 %v13426_v60  ;;  %v21413_v15 = vld [vmem:[#allocation34_spill] sm:$0xff] }
  0xb2   : > { %1029 = vmatprep.subr.mxu1 %v13263_v4  ;;  %917 = vmatprep.subr.mxu0 %v13441_v2 }
  0xb3   : > { %1031 = vmatpush1.msra.mxu1 %v13265_v5  ;;  %920 = vmatpush1.msra.mxu0 %v13455_v13 }
  0xb4   : > { %1033 = vmatprep.subr.mxu1 %v13267_v6  ;;  %923 = vmatprep.subr.mxu0 %v13469_v44 }
  0xb5   : > { %1035 = vmatpush1.msra.mxu1 %v13278_v10  ;;  %926 = vmatpush1.msra.mxu0 %v13481_v53 }
  0xb6   : > { %1037 = vmatprep.subr.mxu1 %v13280_v11  ;;  %929 = vmatprep.subr.mxu0 %v13499_v22 }
  0xb7   : > { %1039 = vmatpush1.msra.mxu1 %v13282_v12  ;;  %932 = vmatpush1.msra.mxu0 %v13511_v43 }
  0xb8   : > { %1041 = vmatprep.subr.mxu1 %v13294_v16  ;;  %935 = vmatprep.subr.mxu0 %v13538_v50 }
  0xb9   : > { %1043 = vmatpush1.msra.mxu1 %v13296_v17  ;;  %938 = vmatpush1.msra.mxu0 %v13559_v29 }
  0xba   : > { %1045 = vmatprep.subr.mxu1 %v13298_v18  ;;  %941 = vmatprep.subr.mxu0 %v13583_v58 }
  0xbb   : > { %1047 = vmatpush1.msra.mxu1 %v13320_v23  ;;  %944 = vmatpush1.msra.mxu0 %v13599_v47 }
  0xbc   : > { %1049 = vmatprep.subr.mxu1 %v13326_v25  ;;  %947 = vmatprep.subr.mxu0 %v13612_v49 }
  0xbd   : > { %1051 = vmatpush1.msra.mxu1 %v21400_v3  ;;  %950 = vmatpush1.msra.mxu0 %v13626_v48 }
  0xbe   : > { %1053 = vmatprep.subr.mxu1 %v21401_v21  ;;  %953 = vmatprep.subr.mxu0 %v13643_v62 }
  0xbf   : > { %1055 = vmatpush1.msra.mxu1 %v21402_v14  ;;  %956 = vmatpush1.msra.mxu0 %v13658_v7 }
  0xc0   : > { %1057 = vmatprep.subr.mxu1 %v21403_v52  ;;  %959 = vmatprep.subr.mxu0 %v13680_v1 }
  0xc1   : > { %1059 = vmatpush1.msra.mxu1 %v21404_v55  ;;  %962 = vmatpush1.msra.mxu0 %v13691_v59 }
  0xc2   : > { %1061 = vmatprep.subr.mxu1 %v21405_v45  ;;  %965 = vmatprep.subr.mxu0 %v13700_v54 }
  0xc3   : > { %1063 = vmatpush1.msra.mxu1 %v21406_v0  ;;  %968 = vmatpush1.msra.mxu0 %v13708_v37 }
  0xc4   : > { %1065 = vmatprep.subr.mxu1 %v21407_v38  ;;  %971 = vmatprep.subr.mxu0 %v13717_v39 }
  0xc5   : > { %1067 = vmatpush1.msra.mxu1 %v21408_v61  ;;  %974 = vmatpush1.msra.mxu0 %v13729_v56 }
  0xc6   : > { %1069 = vmatprep.subr.mxu1 %v21409_v40  ;;  %977 = vmatprep.subr.mxu0 %v13738_v33 }
  0xc7   : > { %1071 = vmatpush1.msra.mxu1 %v21410_v28  ;;  %980 = vmatpush1.msra.mxu0 %v13751_v30  ;;  %v21414_v28 = vand.u32 4294901760, %v13323_v24  ;;  %v21415_v30 = vld [vmem:[#allocation35_spill] sm:$0xff]  ;;  %v21421_v24 = vand.u32 4294901760, %v13377_v41  ;;  %v21426_v41 = vand.u32 4294901760, %v13455_v13  ;;  %v21442_v13 = vand.u32 4294901760, %v13708_v37 }
  0xc8   : > { %1073 = vmatprep.subr.mxu1 %v21411_v27  ;;  %983 = vmatprep.subr.mxu0 %v13761_v9  ;;  %v21416_v27 = vand.u32 4294901760, %v13329_v26  ;;  %v21422_v26 = vand.u32 4294901760, %v13391_v46  ;;  %v21427_v46 = vand.u32 4294901760, %v13469_v44  ;;  %v21444_v44 = vand.u32 4294901760, %v13729_v56 }
  0xc9   : > { %1075 = vmatpush1.msra.mxu1 %v13555_v8  ;;  %986 = vmatpush1.msra.mxu0 %v13769_v51  ;;  %v21417_v8 = vld [vmem:[#allocation36_spill] sm:$0xff]  ;;  %v21418_v51 = vand.u32 4294901760, %v13352_v32  ;;  %v21423_v32 = vand.u32 4294901760, %v13426_v60  ;;  %v21428_v60 = vand.u32 4294901760, %v13481_v53  ;;  %v21446_v53 = vld [vmem:[#allocation39_spill] sm:$0xff] }
  0xca   : > { %1077 = vmatprep.subr.mxu1 %v13572_v35  ;;  %1022 = vmatmul.mubr.f32.vlgmr.msra.gmra.mxu0 %v13724_v63 }
  0xcb   : > { %1137 = vmatprep.subr.mxu0 %v21412_v34  ;;  %1079 = vmatpush1.msra.mxu1 %v21413_v15  ;;  %v21420_v34 = vld [vmem:[#allocation37_spill] sm:$0xff] }
  0xcc   : > { %1141 = vmatpush1.msra.mxu0 %v21414_v28  ;;  %1081 = vmatprep.subr.mxu1 %v21415_v30 }
  0xcd   : > { %1145 = vmatprep.subr.mxu0 %v21416_v27  ;;  %1083 = vmatpush1.msra.mxu1 %v21417_v8 }
  0xce   : > { %1149 = vmatpush1.msra.mxu0 %v21418_v51  ;;  %1085 = vmatprep.subr.mxu1 %v13629_v57  ;;  %v21425_v51 = vand.u32 4294901760, %v13441_v2  ;;  %v21429_v2 = vand.u32 4294901760, %v13499_v22  ;;  %v21449_v22 = vand.u32 4294901760, %v13761_v9 }
  0xcf   : > { %1153 = vmatprep.subr.mxu0 %v21419_v19  ;;  %1087 = vmatpush1.msra.mxu1 %v21420_v34 }
  0xd0   : > { %1157 = vmatpush1.msra.mxu0 %v21421_v24  ;;  %1089 = vmatprep.subr.mxu1 %v13671_v42 }
  0xd1   : > { %1161 = vmatprep.subr.mxu0 %v21422_v26  ;;  %1091 = vmatpush1.msra.mxu1 %v13687_v31 }
  0xd2   : > { %1124 = vmatprep.mubr.f32.mxu1 %v21399_v20  ;;  %1165 = vmatpush1.msra.mxu0 %v21423_v32 }
  0xd3   : > { %1128 = vmatmul.mubr.f32.vlgmr.msra.gmra.mxu1 %v21424_v36  ;;  %1169 = vmatprep.subr.mxu0 %v21425_v51 }
  0xd4   : > { %1303 = vmatprep.subr.mxu1 %v13263_v4  ;;  %1173 = vmatpush1.msra.mxu0 %v21426_v41  ;;  %v21430_v4 = vand.u32 4294901760, %v13511_v43  ;;  %v21443_v43 = vand.u32 4294901760, %v13717_v39 }
  0xd5   : > { %1305 = vmatpush1.msra.mxu1 %v13265_v5  ;;  %1177 = vmatprep.subr.mxu0 %v21427_v46  ;;  %v21431_v5 = vand.u32 4294901760, %v13538_v50  ;;  %v21441_v50 = vand.u32 4294901760, %v13700_v54  ;;  %v21447_v54 = vand.u32 4294901760, %v21446_v53  ;;  %v1409_v53 = vld [vmem:[%s13231_s12 + $0x8] sm:$0xff] }
  0xd6   : > { %1307 = vmatprep.subr.mxu1 %v13267_v6  ;;  %1181 = vmatpush1.msra.mxu0 %v21428_v60  ;;  %v21432_v6 = vand.u32 4294901760, %v13559_v29  ;;  %v21450_v29 = vld [vmem:[#allocation32_spill] sm:$0xff] }
  0xd7   : > { %1309 = vmatpush1.msra.mxu1 %v13278_v10  ;;  %1185 = vmatprep.subr.mxu0 %v21429_v2  ;;  %v21433_v10 = vand.u32 4294901760, %v13583_v58  ;;  %v21448_v58 = vld [vmem:[#allocation31_spill] sm:$0xff] }
  0xd8   : > { %1311 = vmatprep.subr.mxu1 %v13280_v11  ;;  %1189 = vmatpush1.msra.mxu0 %v21430_v4  ;;  %v21434_v11 = vand.u32 4294901760, %v13599_v47  ;;  %v21451_v47 = vld [vmem:[#allocation40_spill] sm:$0xff] }
  0xd9   : > { %1313 = vmatpush1.msra.mxu1 %v13282_v12  ;;  %1193 = vmatprep.subr.mxu0 %v21431_v5  ;;  %v21435_v12 = vand.u32 4294901760, %v13612_v49  ;;  %v21445_v49 = vand.u32 4294901760, %v13738_v33 }
  0xda   : > { %1315 = vmatprep.subr.mxu1 %v13294_v16  ;;  %1197 = vmatpush1.msra.mxu0 %v21432_v6  ;;  %v21436_v16 = vand.u32 4294901760, %v13626_v48  ;;  %v21452_v48 = vand.u32 4294901760, %v21451_v47 }
  0xdb   : > { %1317 = vmatpush1.msra.mxu1 %v13296_v17  ;;  %1201 = vmatprep.subr.mxu0 %v21433_v10  ;;  %v21437_v17 = vand.u32 4294901760, %v13643_v62  ;;  %v21453_v62 = vld [vmem:[#allocation33_spill] sm:$0xff] }
  0xdc   : > { %1319 = vmatprep.subr.mxu1 %v13298_v18  ;;  %1205 = vmatpush1.msra.mxu0 %v21434_v11  ;;  %v21438_v18 = vand.u32 4294901760, %v13658_v7  ;;  %v21454_v7 = vld [vmem:[#allocation38_spill] sm:$0xff] }
  0xdd   : > { %1321 = vmatpush1.msra.mxu1 %v13320_v23  ;;  %1209 = vmatprep.subr.mxu0 %v21435_v12  ;;  %v21439_v23 = vand.u32 4294901760, %v13680_v1  ;;  %v1406_v1 = vld [vmem:[%s20339_s3] sm:$0xff] }
  0xde   : > { %1323 = vmatprep.subr.mxu1 %v13326_v25  ;;  %1213 = vmatpush1.msra.mxu0 %v21436_v16  ;;  %v21440_v25 = vand.u32 4294901760, %v13691_v59  ;;  %v1414_v56 = vsel %vm1412_vm0, %v1406_v1, 0 }
  0xdf   : > { %1325 = vmatpush1.msra.mxu1 %v21400_v3  ;;  %1217 = vmatprep.subr.mxu0 %v21437_v17 }
  0xe0   : > { %1327 = vmatprep.subr.mxu1 %v21401_v21  ;;  %1221 = vmatpush1.msra.mxu0 %v21438_v18 }
  0xe1   : > { %1329 = vmatpush1.msra.mxu1 %v21402_v14  ;;  %1225 = vmatprep.subr.mxu0 %v21439_v23 }
  0xe2   : > { %1331 = vmatprep.subr.mxu1 %v21403_v52  ;;  %1229 = vmatpush1.msra.mxu0 %v21440_v25 }
  0xe3   : > { %1333 = vmatpush1.msra.mxu1 %v21404_v55  ;;  %1233 = vmatprep.subr.mxu0 %v21441_v50  ;;  %v1408_v50 = vld [vmem:[%s13231_s12] sm:$0xff] }
  0xe4   : > { %1335 = vmatprep.subr.mxu1 %v21405_v45  ;;  %1237 = vmatpush1.msra.mxu0 %v21442_v13 }
  0xe5   : > { %1337 = vmatpush1.msra.mxu1 %v21406_v0  ;;  %1241 = vmatprep.subr.mxu0 %v21443_v43 }
  0xe6   : > { %1339 = vmatprep.subr.mxu1 %v21407_v38  ;;  %1245 = vmatpush1.msra.mxu0 %v21444_v44 }
  0xe7   : > { %1341 = vmatpush1.msra.mxu1 %v21408_v61  ;;  %1249 = vmatprep.subr.mxu0 %v21445_v49 }
  0xe8   : > { %1343 = vmatprep.subr.mxu1 %v21409_v40  ;;  %1253 = vmatpush1.msra.mxu0 %v21447_v54  ;;  %v1410_v54 = vld [vmem:[%s13231_s12 + $0x10] sm:$0xff] }
  0xe9   : > { %1345 = vmatpush1.msra.mxu1 %v21448_v58  ;;  %1257 = vmatprep.subr.mxu0 %v21449_v22 }
  0xea   : > { %1347 = vmatprep.subr.mxu1 %v21450_v29  ;;  %1261 = vmatpush1.msra.mxu0 %v21452_v48 }
  0xeb   : > { %1294 = vmatprep.mubr.f32.mxu0 %v21399_v20  ;;  %1349 = vmatpush1.msra.mxu1 %v21453_v62 }
  0xec   : > { %1296 = vmatmul.mubr.f32.vlgmr.msra.gmra.mxu0 %v21454_v7  ;;  %1351 = vmatprep.subr.mxu1 %v13572_v35 }
  0xed   : > { %1398 = vmatprep.mubr.f32.mxu1 %v21399_v20  ;;  %1353 = vmatpush1.msra.mxu1 %v21413_v15  ;;  %v13959_v15 = vand.u32 4294901760, %v1414_v56 }
  0xee   : > { %1485 = vmatprep.mubr.f32.mxu0 %v21399_v20  ;;  %1355 = vmatprep.subr.mxu1 %v21415_v30 }
  0xef   : > { %1357 = vmatpush1.msra.mxu1 %v21417_v8  ;;  %v1487_v28 = vsub.f32 %v1414_v56, %v13959_v15 }
  0xf0   : > { %1359 = vmatprep.subr.mxu1 %v13629_v57  ;;  %v1407_v57 = vld [vmem:[%s20339_s3 + $0x8] sm:$0xff] }
  0xf1   : > { %1361 = vmatpush1.msra.mxu1 %v21420_v34  ;;  %v1417_v37 = vsel %vm1412_vm0, %v1407_v57, 0  ;;  %v1488_v52 = vand.u32 4294901760, %v1487_v28 }
  0xf2   : > { %1363 = vmatprep.subr.mxu1 %v13671_v42  ;;  %v13962_v30 = vand.u32 4294901760, %v1417_v37 }
  0xf3   : > { %1365 = vmatpush1.msra.mxu1 %v13687_v31  ;;  %v1489_v24 = vsub.f32 %v1487_v28, %v1488_v52 }
  0xf4   : > { %1400 = vmatmul.mubr.f32.vlgmr.msra.gmra.mxu1 %v21454_v7  ;;  %v1498_v55 = vsub.f32 %v1417_v37, %v13962_v30 }
  0xf5   : > { %1582 = vmatprep.mubr.f32.mxu1 %v21399_v20  ;;  %v1490_v60 = vand.u32 4294901760, %v1489_v24 }
  0xf6   : > { %v1499_v26 = vand.u32 4294901760, %v1498_v55 }
  0xf8   : > { %v1500_v2 = vsub.f32 %v1498_v55, %v1499_v26 }
  0xfa   : > { %v1501_v10 = vand.u32 4294901760, %v1500_v2 }
 0x16a   : > { %v654_v35 = vpop.f32.mrf.mxu0 }
 0x16c   : > { %v656_v59 = vpop.f32.mrf.mxu0 }
 0x171   : > { %v886_v8 = vpop.f32.mrf.mxu1 }
 0x172   : > { %v887_v33 = vadd.f32 %v886_v8, %v654_v35  ;;  %v1411_v35 = vld [vmem:[%s13231_s12 + $0x18] sm:$0xff]  ;;  %v2006_v8 = vld [vmem:[#allocation7] sm:$0xff]  ;;  %s23128_s12 = sld [smem:[#allocation150_spill]] }
 0x173   : > { %v888_v31 = vpop.f32.mrf.mxu1 }
 0x174   : > { %v889_v27 = vadd.f32 %v888_v31, %v656_v59 }
 0x18a   : > { %v1023_v42 = vpop.f32.mrf.mxu0 }
 0x18b   : > { %v1024_v40 = vadd.f32 %v1023_v42, %v887_v33 }
 0x18c   : > { %v1025_v39 = vpop.f32.mrf.mxu0 }
 0x18d   : > { %v1026_v21 = vadd.f32 %v1025_v39, %v889_v27  ;;  %v2010_v39 = vsel %vm2008_vm1, %v2006_v8, 0  ;;  %v2007_v27 = vld [vmem:[#allocation7 + $0x8] sm:$0xff] }
 0x193   : > { %v1129_v63 = vpop.f32.mrf.mxu1 }
 0x194   : > { %v1130_v14 = vadd.f32 %v1129_v63, %v1024_v40 }
 0x195   : > { %v1131_v3 = vpop.f32.mrf.mxu1 }
 0x196   : > { %v1132_v0 = vadd.f32 %v1131_v3, %v1026_v21  ;;  %v13988_v3 = vand.u32 4294901760, %v2010_v39 }
 0x198   : > { %v13993_v24 = vsub.f32 %v2010_v39, %v13988_v3 }
 0x1ac   : > { %v1297_v9 = vpop.f32.mrf.mxu0 }
 0x1ad   : > { %v1298_v38 = vadd.f32 %v1297_v9, %v1130_v14 }
 0x1ae   : > { %v1299_v45 = vpop.f32.mrf.mxu0 }
 0x1af   : > { %v1300_v19 = vadd.f32 %v1299_v45, %v1132_v0  ;;  %v2013_v45 = vsel %vm2008_vm1, %v2007_v27, 0 }
 0x1b4   : > { %v1401_v61 = vpop.f32.mrf.mxu1 }
 0x1b5   : > { %v1402_v34 = vadd.f32 %v1401_v61, %v1298_v38 }
 0x1b6   : > { %v1403_v32 = vpop.f32.mrf.mxu1 }
 0x1b7   : > { %v1451_v36 = vand.u32 4294901760, %v1402_v34  ;;  %v1404_v51 = vadd.f32 %v1403_v32, %v1300_v19 }
 0x1b9   : > { %v1545_v41 = vsub.f32 %v1402_v34, %v1451_v36  ;;  %v1449_v46 = vand.u32 4294901760, %v1404_v51  ;;  %v1933_v34 = vld [vmem:[%s13238_s19] sm:$0xff] }
 0x1bb   : > { %v1546_v4 = vand.u32 4294901760, %v1545_v41  ;;  %v1539_v5 = vsub.f32 %v1404_v51, %v1449_v46  ;;  %1450 = vmatprep.subr.mxu0 %v1449_v46  ;;  %v13995_v51 = vand.u32 4294901760, %v2013_v45 }
 0x1bc   : > { %1452 = vmatpush1.msra.mxu0 %v1451_v36 }
 0x1bd   : > { %1491 = vmatmul.mubr.f32.vlgmr.msra.gmra.mxu0 %v1490_v60  ;;  %1629 = vmatprep.subr.mxu0 %v1539_v5  ;;  %v1540_v6 = vand.u32 4294901760, %v1539_v5  ;;  %v1547_v11 = vsub.f32 %v1545_v41, %v1546_v4  ;;  %v1934_v60 = vld [vmem:[%s13238_s19 + $0x8] sm:$0xff] }
 0x1be   : > { %1632 = vmatpush1.msra.mxu0 %v1545_v41  ;;  %1496 = vmatprep.mubr.f32.mxu0 %v21399_v20 }
 0x1bf   : > { %1800 = vmatprep.subr.mxu0 %v1540_v6  ;;  %v1541_v12 = vsub.f32 %v1539_v5, %v1540_v6  ;;  %v1548_v17 = vand.u32 4294901760, %v1547_v11  ;;  %v20433_v11 = vand.u32 4294901760, %v13993_v24 }
 0x1c1   : > { %1502 = vmatmul.mubr.f32.gmra.mxu0 %v1501_v10  ;;  %v1542_v16 = vand.u32 4294901760, %v1541_v12  ;;  %v1935_v10 = vld [vmem:[%s13238_s19 + $0x10] sm:$0xff] }
 0x1c2   : > { %1665 = vmatprep.mubr.f32.mxu0 %v21399_v20 }
 0x1c3   : > { %1543 = vmatprep.subr.mxu1 %v1542_v16 }
 0x1c4   : > { %1549 = vmatpush1.msra.mxu1 %v1548_v17 }
 0x1c5   : > { %1584 = vmatmul.mubr.f32.vlgmr.msra.gmra.mxu1 %v13959_v15  ;;  %1668 = vmatmul.mubr.f32.vlgmr.msra.gmra.mxu0 %v1487_v28 }
 0x1c6   : > { %1713 = vmatprep.subr.mxu1 %v1449_v46  ;;  %1804 = vmatpush1.msra.mxu0 %v1546_v4 }
 0x1c7   : > { %1715 = vmatpush1.msra.mxu1 %v1451_v36  ;;  %1589 = vmatprep.mubr.f32.mxu1 %v21399_v20 }
 0x1c8   : > { %1883 = vmatprep.subr.mxu1 %v1449_v46  ;;  %1673 = vmatprep.mubr.f32.mxu0 %v21399_v20 }
 0x1c9   : > { %1591 = vmatmul.mubr.f32.gmra.mxu1 %v13962_v30  ;;  %1676 = vmatmul.mubr.f32.gmra.mxu0 %v1498_v55 }
 0x1ca   : > { %1748 = vmatprep.mubr.f32.mxu1 %v21399_v20  ;;  %1837 = vmatprep.mubr.f32.mxu0 %v21399_v20 }
 0x1cd   : > { %1752 = vmatmul.mubr.f32.vlgmr.msra.gmra.mxu1 %v1488_v52  ;;  %1839 = vmatmul.mubr.f32.vlgmr.msra.gmra.mxu0 %v13959_v15 }
 0x1ce   : > { %1885 = vmatpush1.msra.mxu1 %v1451_v36  ;;  %1757 = vmatprep.mubr.f32.mxu1 %v21399_v20 }
 0x1cf   : > { %1844 = vmatprep.mubr.f32.mxu0 %v21399_v20 }
 0x1d1   : > { %1761 = vmatmul.mubr.f32.gmra.mxu1 %v1499_v26  ;;  %1846 = vmatmul.mubr.f32.gmra.mxu0 %v13962_v30 }
 0x1d2   : > { %1918 = vmatprep.mubr.f32.mxu1 %v21399_v20  ;;  %2083 = vmatprep.mubr.f32.mxu0 %v21399_v20 }
 0x1d5   : > { %1920 = vmatmul.mubr.f32.vlgmr.msra.gmra.mxu1 %v13959_v15 }
 0x1d6   : > { %1925 = vmatprep.mubr.f32.mxu1 %v21399_v20 }
 0x1d9   : > { %1927 = vmatmul.mubr.f32.gmra.mxu1 %v13962_v30 }
 0x1da   : > { %2190 = vmatprep.mubr.f32.mxu1 %v21399_v20 }
 0x27d   : > { %v1492_v18 = vpop.f32.mrf.mxu0 }
 0x27e   : > { %v1493_v49 = vadd.f32 %v1492_v18, %v1408_v50  ;;  %v14001_v18 = vsub.f32 %v2013_v45, %v13995_v51  ;;  %v1936_v50 = vld [vmem:[%s13238_s19 + $0x18] sm:$0xff]  ;;  %s20289_s19 = scalar_lea.hbm %s23128_s12, %s12481_s26 }
 0x27f   : > { %v1494_v23 = vpop.f32.mrf.mxu0 }
 0x280   : > { %v1495_v48 = vadd.f32 %v1494_v23, %v1409_v53 }
 0x281   : > { %v1503_v25 = vpop.f32.mrf.mxu0 }
 0x282   : > { %v1504_v62 = vadd.f32 %v1503_v25, %v1410_v54 }
 0x283   : > { %v1505_v13 = vpop.f32.mrf.mxu0 }
 0x284   : > { %v1506_v15 = vadd.f32 %v1505_v13, %v1411_v35 }
 0x285   : > { %v1585_v43 = vpop.f32.mrf.mxu1  ;;  %v1669_v44 = vpop.f32.mrf.mxu0 }
 0x286   : > { %v1586_v7 = vadd.f32 %v1585_v43, %v1493_v49  ;;  %v2087_v49 = vsub.f32 %v13993_v24, %v20433_v11 }
 0x287   : > { %v1587_v58 = vpop.f32.mrf.mxu1  ;;  %v1671_v22 = vpop.f32.mrf.mxu0 }
 0x288   : > { %v1588_v56 = vadd.f32 %v1587_v58, %v1495_v48  ;;  %v1670_v31 = vadd.f32 %v1669_v44, %v1586_v7 }
 0x289   : > { %v1592_v29 = vpop.f32.mrf.mxu1  ;;  %v1677_v47 = vpop.f32.mrf.mxu0 }
 0x28a   : > { %v1593_v37 = vadd.f32 %v1592_v29, %v1504_v62  ;;  %v1672_v28 = vadd.f32 %v1671_v22, %v1588_v56  ;;  %v20431_v22 = vand.u32 4294901760, %v14001_v18  ;;  %v2088_v62 = vand.u32 4294901760, %v2087_v49 }
 0x28b   : > { %v1594_v1 = vpop.f32.mrf.mxu1  ;;  %v1679_v59 = vpop.f32.mrf.mxu0 }
 0x28c   : > { %v1595_v30 = vadd.f32 %v1594_v1, %v1506_v15  ;;  %v1678_v21 = vadd.f32 %v1677_v47, %v1593_v37  ;;  %v2098_v35 = vsub.f32 %v14001_v18, %v20431_v22  ;;  %v2584_v15 = vld [vmem:[#allocation8 + $0xe8] sm:$0xff]  ;;  %v2583_v37 = vld [vmem:[#allocation8 + $0xe0] sm:$0xff] }
 0x28d   : > { %v1753_v57 = vpop.f32.mrf.mxu1  ;;  %v1840_v42 = vpop.f32.mrf.mxu0 }
 0x28e   : > { %v1754_v9 = vadd.f32 %v1753_v57, %v1670_v31  ;;  %v1680_v0 = vadd.f32 %v1679_v59, %v1595_v30  ;;  %v2586_v57 = vld [vmem:[#allocation8 + $0xf8] sm:$0xff]  ;;  %v2099_v39 = vand.u32 4294901760, %v2098_v35  ;;  %v2581_v30 = vld [vmem:[#allocation8 + $0xd0] sm:$0xff] }
 0x28f   : > { %v1755_v63 = vpop.f32.mrf.mxu1  ;;  %v1842_v33 = vpop.f32.mrf.mxu0  ;;  %v14058_v27 = vand.u32 4294901760, %v2586_v57 }
 0x290   : > { %v1756_v14 = vadd.f32 %v1755_v63, %v1672_v28  ;;  %v1841_v38 = vadd.f32 %v1840_v42, %v1754_v9  ;;  %v2585_v42 = vld [vmem:[#allocation8 + $0xf0] sm:$0xff]  ;;  %v2582_v28 = vld [vmem:[#allocation8 + $0xd8] sm:$0xff] }
 0x291   : > { %v1762_v40 = vpop.f32.mrf.mxu1  ;;  %v1847_v55 = vpop.f32.mrf.mxu0  ;;  %21467 = vst [vmem:[#allocation36_spill] sm:$0xff] %v14058_v27  ;;  %v14072_v45 = vand.u32 4294901760, %v2582_v28 }
 0x292   : > { %v1763_v61 = vadd.f32 %v1762_v40, %v1678_v21  ;;  %v1843_v26 = vadd.f32 %v1842_v33, %v1756_v14  ;;  %v14060_v40 = vand.u32 4294901760, %v2585_v42  ;;  %v14062_v21 = vand.u32 4294901760, %v2584_v15 }
 0x293   : > { %v1764_v52 = vpop.f32.mrf.mxu1  ;;  %v1849_v41 = vpop.f32.mrf.mxu0 }
 0x294   : > { %v1765_v32 = vadd.f32 %v1764_v52, %v1680_v0  ;;  %v1848_v2 = vadd.f32 %v1847_v55, %v1763_v61  ;;  %v14067_v52 = vand.u32 4294901760, %v2583_v37  ;;  %v14074_v0 = vand.u32 4294901760, %v2581_v30 }
 0x295   : > { %v1921_v19 = vpop.f32.mrf.mxu1 }
 0x296   : > { %v1922_v36 = vadd.f32 %v1921_v19, %v1841_v38  ;;  %v1850_v12 = vadd.f32 %v1849_v41, %v1765_v32  ;;  %v2580_v38 = vld [vmem:[#allocation8 + $0xc8] sm:$0xff]  ;;  %v14090_v32 = vsub.f32 %v2584_v15, %v14062_v21  ;;  %v14095_v41 = vsub.f32 %v2583_v37, %v14067_v52 }
 0x297   : > { %v1923_v46 = vpop.f32.mrf.mxu1 }
 0x298   : > { %v1937_v4 = vadd.f32 %v1933_v34, %v1922_v36  ;;  %v1924_v5 = vadd.f32 %v1923_v46, %v1843_v26  ;;  %v14084_v34 = vsub.f32 %v2586_v57, %v14058_v27  ;;  %v14087_v26 = vsub.f32 %v2585_v42, %v14060_v40  ;;  %v2579_v36 = vld [vmem:[#allocation8 + $0xc0] sm:$0xff] }
 0x299   : > { %v1928_v6 = vpop.f32.mrf.mxu1  ;;  %v14097_v46 = vand.u32 4294901760, %v2580_v38 }
 0x29a   : > { %v1938_v16 = vadd.f32 %v1934_v60, %v1924_v5  ;;  %v1929_v17 = vadd.f32 %v1928_v6, %v1848_v2  ;;  %v14003_v23 = vand.u32 4294901760, %v1937_v4  ;;  %21472 = vst [vmem:[#allocation40_spill] sm:$0xff] %v14084_v34  ;;  %v14101_v60 = vsub.f32 %v2582_v28, %v14072_v45  ;;  %v2577_v5 = vld [vmem:[#allocation8 + $0xb0] sm:$0xff] }
 0x29b   : > { %v1930_v25 = vpop.f32.mrf.mxu1  ;;  %v14104_v2 = vsub.f32 %v2581_v30, %v14074_v0  ;;  %v14108_v6 = vand.u32 4294901760, %v2579_v36 }
 0x29c   : > { %21455 = vst [vmem:[#allocation21_spill] sm:$0xff] %v14003_v23  ;;  %v14006_v13 = vand.u32 4294901760, %v1938_v16  ;;  %v1939_v43 = vadd.f32 %v1935_v10, %v1929_v17  ;;  %v1931_v44 = vadd.f32 %v1930_v25, %v1850_v12  ;;  %v14018_v29 = vsub.f32 %v1937_v4, %v14003_v23  ;;  %21473 = vst [vmem:[#allocation33_spill] sm:$0xff] %v14101_v60  ;;  %v2578_v4 = vld [vmem:[#allocation8 + $0xb8] sm:$0xff]  ;;  %v2576_v10 = vld [vmem:[#allocation8 + $0xa8] sm:$0xff] }
 0x29d   : > { %21474 = vst [vmem:[#allocation38_spill] sm:$0xff] %v14104_v2  ;;  %v20429_v12 = vand.u32 4294901760, %v14084_v34  ;;  %v20428_v17 = vand.u32 4294901760, %v14090_v32  ;;  %v2575_v25 = vld [vmem:[#allocation8 + $0xa0] sm:$0xff]  ;;  %v14121_v49 = vand.u32 4294901760, %v2578_v4  ;;  %v20432_v35 = vand.u32 4294901760, %v14101_v60 }
 0x29e   : > { %21456 = vst [vmem:[#allocation22_spill] sm:$0xff] %v14006_v13  ;;  %v14012_v53 = vsub.f32 %v1938_v16, %v14006_v13  ;;  %v14014_v54 = vand.u32 4294901760, %v1939_v43  ;;  %v1940_v58 = vadd.f32 %v1936_v50, %v1931_v44  ;;  %21459 = vst [vmem:[#allocation25_spill] sm:$0xff] %v14018_v29  ;;  %v14040_v8 = vand.u32 4294901760, %v14018_v29  ;;  %v2574_v50 = vld [vmem:[#allocation8 + $0x98] sm:$0xff] }
 0x29f   : > { %v20427_v16 = vand.u32 4294901760, %v14087_v26  ;;  %v14119_v44 = vsub.f32 %v2580_v38, %v14097_v46  ;;  %v20434_v57 = vand.u32 4294901760, %v14104_v2  ;;  %v14129_v42 = vand.u32 4294901760, %v2576_v10 }
 0x2a0   : > { %21457 = vst [vmem:[#allocation23_spill] sm:$0xff] %v14012_v53  ;;  %21458 = vst [vmem:[#allocation24_spill] sm:$0xff] %v14014_v54  ;;  %v14021_v47 = vsub.f32 %v1939_v43, %v14014_v54  ;;  %v14023_v48 = vand.u32 4294901760, %v1940_v58  ;;  %v14036_v59 = vand.u32 4294901760, %v14012_v53  ;;  %v2155_v9 = vsub.f32 %v14018_v29, %v14040_v8 }
 0x2a1   : > { %21465 = vst [vmem:[#allocation34_spill] sm:$0xff] %v14040_v8  ;;  %v20430_v43 = vand.u32 4294901760, %v14095_v41  ;;  %21475 = vst [vmem:[#allocation41_spill] sm:$0xff] %v14119_v44  ;;  %v14134_v15 = vsub.f32 %v2579_v36, %v14108_v6  ;;  %v14138_v37 = vand.u32 4294901760, %v2574_v50  ;;  %v14153_v28 = vsub.f32 %v14090_v32, %v20428_v17 }
 0x2a2   : > { %21460 = vst [vmem:[#allocation26_spill] sm:$0xff] %v14021_v47  ;;  %21461 = vst [vmem:[#allocation27_spill] sm:$0xff] %v14023_v48  ;;  %v14026_v7 = vsub.f32 %v1940_v58, %v14023_v48  ;;  %2044 = vmatprep.subr.mxu0 %v14023_v48  ;;  %v14033_v1 = vand.u32 4294901760, %v14021_v47  ;;  %v2149_v33 = vsub.f32 %v14012_v53, %v14036_v59  ;;  %v14081_v19 = vand.u32 4294901760, %v2155_v9  ;;  %v2571_v9 = vld [vmem:[#allocation8 + $0x80] sm:$0xff] }
 0x2a3   : > { %21464 = vst [vmem:[#allocation30_spill] sm:$0xff] %v14036_v59  ;;  %2046 = vmatpush1.msra.mxu0 %v14014_v54  ;;  %v14123_v58 = vand.u32 4294901760, %v2577_v5  ;;  %21476 = vst [vmem:[#allocation42_spill] sm:$0xff] %v14134_v15  ;;  %v14162_v38 = vsub.f32 %v14095_v41, %v20430_v43  ;;  %v14180_v43 = vsub.f32 %v14104_v2, %v20434_v57  ;;  %v14196_v11 = vand.u32 4294901760, %v2571_v9 }
 0x2a4   : > { %21462 = vst [vmem:[#allocation28_spill] sm:$0xff] %v14026_v7  ;;  %21463 = vst [vmem:[#allocation29_spill] sm:$0xff] %v14033_v1  ;;  %2048 = vmatprep.subr.mxu0 %v14006_v13  ;;  %v14044_v56 = vand.u32 4294901760, %v14026_v7  ;;  %v2143_v31 = vsub.f32 %v14021_v47, %v14033_v1  ;;  %v14077_v61 = vand.u32 4294901760, %v2149_v33  ;;  %v14148_v33 = vsub.f32 %v14087_v26, %v20427_v16 }
 0x2a5   : > { %2050 = vmatpush1.msra.mxu0 %v14003_v23  ;;  %21471 = vst [vmem:[#allocation32_spill] sm:$0xff] %v14081_v19  ;;  %21478 = vst [vmem:[#allocation44_spill] sm:$0xff] %v14138_v37  ;;  %v14166_v16 = vsub.f32 %v2578_v4, %v14121_v49  ;;  %v14169_v17 = vsub.f32 %v2577_v5, %v14123_v58  ;;  %v14184_v4 = vsub.f32 %v2576_v10, %v14129_v42  ;;  %v2570_v5 = vld [vmem:[#allocation8 + $0x78] sm:$0xff] }
 0x2a6   : > { %21466 = vst [vmem:[#allocation35_spill] sm:$0xff] %v14044_v56  ;;  %2089 = vmatmul.mubr.f32.vlgmr.msra.gmra.mxu0 %v2088_v62  ;;  %2235 = vmatprep.subr.mxu0 %v14026_v7  ;;  %v2137_v63 = vsub.f32 %v14026_v7, %v14044_v56  ;;  %v14070_v55 = vand.u32 4294901760, %v2143_v31  ;;  %21470 = vst [vmem:[#allocation31_spill] sm:$0xff] %v14077_v61  ;;  %v2573_v62 = vld [vmem:[#allocation8 + $0x90] sm:$0xff]  ;;  %v14136_v31 = vand.u32 4294901760, %v2575_v25  ;;  %v21485_v57 = vand.u32 4294901760, %v13993_v24 }
 0x2a7   : > { %2238 = vmatpush1.msra.mxu0 %v14021_v47  ;;  %2094 = vmatprep.mubr.f32.mxu0 %v21399_v20  ;;  %v14155_v30 = vand.u32 4294901760, %v2573_v62  ;;  %21479 = vst [vmem:[#allocation45_spill] sm:$0xff] %v14166_v16  ;;  %21480 = vst [vmem:[#allocation46_spill] sm:$0xff] %v14169_v17  ;;  %v2790_v10 = vand.u32 4294901760, %v14148_v33  ;;  %v2569_v33 = vld [vmem:[#allocation8 + $0x70] sm:$0xff]  ;;  %v2568_v7 = vld [vmem:[#allocation8 + $0x68] sm:$0xff] }
 0x2a8   : > { %2241 = vmatprep.subr.mxu0 %v14012_v53  ;;  %v14065_v14 = vand.u32 4294901760, %v2137_v63  ;;  %21469 = vst [vmem:[#allocation39_spill] sm:$0xff] %v14070_v55  ;;  %21477 = vst [vmem:[#allocation43_spill] sm:$0xff] %v14136_v31  ;;  %v2783_v63 = vsub.f32 %v14084_v34, %v20429_v12  ;;  %v14175_v12 = vsub.f32 %v14101_v60, %v20432_v35  ;;  %v2565_v53 = vld [vmem:[#allocation8 + $0x50] sm:$0xff] }
 0x2a9   : > { %2244 = vmatpush1.msra.mxu0 %v14018_v29  ;;  %21481 = vst [vmem:[#allocation47_spill] sm:$0xff] %v14184_v4  ;;  %v14191_v36 = vsub.f32 %v2575_v25, %v14136_v31  ;;  %v14194_v35 = vsub.f32 %v2574_v50, %v14138_v37  ;;  %21484 = vst [vmem:[#allocation50_spill] sm:$0xff] %v14196_v11  ;;  %v14203_v29 = vsub.f32 %v2573_v62, %v14155_v30 }
 0x2aa   : > { %21468 = vst [vmem:[#allocation37_spill] sm:$0xff] %v14065_v14  ;;  %2100 = vmatmul.mubr.f32.gmra.mxu0 %v2099_v39  ;;  %2139 = vmatprep.subr.mxu1 %v14065_v14  ;;  %v2572_v39 = vld [vmem:[#allocation8 + $0x88] sm:$0xff]  ;;  %v2784_v47 = vand.u32 4294901760, %v2783_v63  ;;  %v21487_v50 = vand.u32 4294901760, %v14119_v44  ;;  %v14230_v62 = vand.u32 4294901760, %v2570_v5  ;;  %v21490_v25 = vand.u32 4294901760, %v14001_v18 }
 0x2ab   : > { %2412 = vmatprep.subr.mxu0 %v14044_v56  ;;  %2145 = vmatpush1.msra.mxu1 %v14070_v55  ;;  %v14186_v22 = vand.u32 4294901760, %v2572_v39  ;;  %21482 = vst [vmem:[#allocation48_spill] sm:$0xff] %v14191_v36  ;;  %21483 = vst [vmem:[#allocation49_spill] sm:$0xff] %v14194_v35  ;;  %v14240_v14 = vand.u32 4294901760, %v2569_v33 }
 0x2ac   : > { %2151 = vmatprep.subr.mxu1 %v14077_v61  ;;  %2277 = vmatprep.mubr.f32.mxu0 %v21399_v20  ;;  %21486 = vst [vmem:[#allocation51_spill] sm:$0xff] %v14203_v29  ;;  %v21496_v61 = vand.u32 4294901760, %v14194_v35 }
 0x2ad   : > { %2157 = vmatpush1.msra.mxu1 %v14081_v19  ;;  %v14221_v56 = vsub.f32 %v2572_v39, %v14186_v22  ;;  %v21491_v39 = vand.u32 4294901760, %v14134_v15  ;;  %v21492_v19 = vand.u32 4294901760, %v14166_v16 }
 0x2ae   : > { %2192 = vmatmul.mubr.f32.vlgmr.msra.gmra.mxu1 %v13988_v3  ;;  %2280 = vmatmul.mubr.f32.vlgmr.msra.gmra.mxu0 %v13993_v24  ;;  %v14211_v24 = vsub.f32 %v14119_v44, %v21487_v50  ;;  %v2567_v50 = vld [vmem:[#allocation8 + $0x60] sm:$0xff] }
 0x2af   : > { %2323 = vmatprep.subr.mxu1 %v14023_v48  ;;  %2416 = vmatpush1.msra.mxu0 %v14033_v1  ;;  %21488 = vst [vmem:[#allocation52_spill] sm:$0xff] %v14221_v56  ;;  %v2566_v1 = vld [vmem:[#allocation8 + $0x58] sm:$0xff]  ;;  %v14237_v55 = vsub.f32 %v14134_v15, %v21491_v39  ;;  %v14257_v39 = vand.u32 4294901760, %v2567_v50 }
 0x2b0   : > { %2325 = vmatpush1.msra.mxu1 %v14014_v54  ;;  %2420 = vmatprep.subr.mxu0 %v14036_v59  ;;  %v14267_v59 = vand.u32 4294901760, %v2566_v1 }
 0x2b1   : > { %2327 = vmatprep.subr.mxu1 %v14006_v13  ;;  %2424 = vmatpush1.msra.mxu0 %v14040_v8  ;;  %v14228_v8 = vsub.f32 %v2571_v9, %v14196_v11  ;;  %v2820_v9 = vand.u32 4294901760, %v14211_v24  ;;  %v21494_v24 = vand.u32 4294901760, %v14184_v4 }
 0x2b2   : > { %2197 = vmatprep.mubr.f32.mxu1 %v21399_v20  ;;  %2329 = vmatpush1.msra.mxu1 %v14003_v23 }
 0x2b3   : > { %2199 = vmatmul.mubr.f32.gmra.mxu1 %v13995_v51  ;;  %2501 = vmatprep.subr.mxu1 %v14023_v48  ;;  %21489 = vst [vmem:[#allocation53_spill] sm:$0xff] %v14228_v8  ;;  %v14264_v63 = vsub.f32 %v14184_v4, %v21494_v24  ;;  %v2564_v48 = vld [vmem:[#allocation8 + $0x48] sm:$0xff]  ;;  %v2826_v4 = vand.u32 4294901760, %v14237_v55  ;;  %v2563_v24 = vld [vmem:[#allocation8 + $0x40] sm:$0xff] }
 0x2b4   : > { %2285 = vmatprep.mubr.f32.mxu0 %v21399_v20  ;;  %2362 = vmatprep.mubr.f32.mxu1 %v21399_v20 }
 0x2b5   : > { %2288 = vmatmul.mubr.f32.gmra.mxu0 %v14001_v18  ;;  %2620 = vmatprep.subr.mxu0 %v14058_v27  ;;  %v14249_v18 = vsub.f32 %v14166_v16, %v21492_v19  ;;  %v14284_v19 = vsub.f32 %v2570_v5, %v14230_v62  ;;  %v14304_v5 = vsub.f32 %v2567_v50, %v14257_v39 }
 0x2b6   : > { %2457 = vmatprep.mubr.f32.mxu0 %v21399_v20 }
 0x2b7   : > { %2366 = vmatmul.mubr.f32.vlgmr.msra.gmra.mxu1 %v21485_v57  ;;  %v14242_v57 = vand.u32 4294901760, %v2568_v7  ;;  %21497 = vst [vmem:[#allocation54_spill] sm:$0xff] %v14284_v19  ;;  %21501 = vst [vmem:[#allocation57_spill] sm:$0xff] %v14304_v5 }
 0x2b8   : > { %2503 = vmatpush1.msra.mxu1 %v14014_v54  ;;  %2371 = vmatprep.mubr.f32.mxu1 %v21399_v20  ;;  %v14269_v54 = vand.u32 4294901760, %v2565_v53 }
 0x2b9   : > { %2505 = vmatprep.subr.mxu1 %v14006_v13  ;;  %2459 = vmatmul.mubr.f32.vlgmr.msra.gmra.mxu0 %v13988_v3  ;;  %v14280_v13 = vsub.f32 %v14194_v35, %v21496_v61  ;;  %v14298_v61 = vsub.f32 %v2568_v7, %v14242_v57  ;;  %v14306_v35 = vand.u32 4294901760, %v2564_v48  ;;  %v2844_v7 = vand.u32 4294901760, %v14264_v63 }
 0x2ba   : > { %2507 = vmatpush1.msra.mxu1 %v14003_v23  ;;  %2464 = vmatprep.mubr.f32.mxu0 %v21399_v20  ;;  %v14321_v50 = vsub.f32 %v2565_v53, %v14269_v54  ;;  %v21507_v63 = vand.u32 4294901760, %v14228_v8  ;;  %v21508_v53 = vand.u32 4294901760, %v14175_v12 }
 0x2bb   : > { %2375 = vmatmul.mubr.f32.gmra.mxu1 %v21490_v25  ;;  %2785 = vmatprep.subr.mxu1 %v2784_v47  ;;  %v21493_v47 = vand.u32 4294901760, %v14169_v17  ;;  %21500 = vst [vmem:[#allocation56_spill] sm:$0xff] %v14298_v61  ;;  %v14349_v12 = vsub.f32 %v2564_v48, %v14306_v35  ;;  %v21511_v48 = vand.u32 4294901760, %v14284_v19 }
 0x2bc   : > { %2540 = vmatprep.mubr.f32.mxu1 %v21399_v20  ;;  %2622 = vmatpush1.msra.mxu0 %v14060_v40  ;;  %21505 = vst [vmem:[#allocation59_spill] sm:$0xff] %v14321_v50 }
 0x2bd   : > { %v14255_v25 = vsub.f32 %v14169_v17, %v21493_v47  ;;  %2466 = vmatmul.mubr.f32.gmra.mxu0 %v13995_v51  ;;  %2624 = vmatprep.subr.mxu0 %v14062_v21  ;;  %v21495_v47 = vand.u32 4294901760, %v14191_v36  ;;  %v21498_v17 = vand.u32 4294901760, %v14203_v29  ;;  %21510 = vst [vmem:[#allocation60_spill] sm:$0xff] %v14349_v12  ;;  %v2879_v15 = vsub.f32 %v14284_v19, %v21511_v48 }
 0x2be   : > { %2626 = vmatpush1.msra.mxu0 %v14067_v52 }
 0x2bf   : > { %v14275_v23 = vsub.f32 %v14191_v36, %v21495_v47  ;;  %2542 = vmatmul.mubr.f32.vlgmr.msra.gmra.mxu1 %v13988_v3  ;;  %2628 = vmatprep.subr.mxu0 %v14072_v45  ;;  %v14292_v47 = vsub.f32 %v14203_v29, %v21498_v17  ;;  %v14295_v36 = vsub.f32 %v2569_v33, %v14240_v14  ;;  %v2832_v3 = vand.u32 4294901760, %v14249_v18  ;;  %v2562_v17 = vld [vmem:[#allocation8 + $0x38] sm:$0xff] }
 0x2c0   : > { %2547 = vmatprep.mubr.f32.mxu1 %v21399_v20  ;;  %2791 = vmatpush1.msra.mxu1 %v2790_v10  ;;  %v2838_v55 = vand.u32 4294901760, %v14255_v25  ;;  %v21502_v33 = vand.u32 4294901760, %v14153_v28  ;;  %v21503_v20 = vand.u32 4294901760, %v14221_v56  ;;  %v14318_v18 = vsub.f32 %v2566_v1, %v14267_v59  ;;  %v2561_v25 = vld [vmem:[#allocation8 + $0x30] sm:$0xff] }
 0x2c1   : > { %21499 = vst [vmem:[#allocation55_spill] sm:$0xff] %v14295_v36  ;;  %2630 = vmatpush1.msra.mxu0 %v14074_v0  ;;  %v21506_v29 = vand.u32 4294901760, %v14162_v38  ;;  %v2850_v28 = vand.u32 4294901760, %v14275_v23  ;;  %v14333_v1 = vand.u32 4294901760, %v2563_v24  ;;  %v14341_v16 = vand.u32 4294901760, %v2562_v17  ;;  %v2557_v23 = vld [vmem:[#allocation8 + $0x10] sm:$0xff] }
 0x2c2   : > { %2797 = vmatprep.subr.mxu1 %v21502_v33  ;;  %v14315_v10 = vsub.f32 %v14221_v56, %v21503_v20  ;;  %21504 = vst [vmem:[#allocation58_spill] sm:$0xff] %v14318_v18  ;;  %2632 = vmatprep.subr.mxu0 %v14097_v46  ;;  %v14330_v33 = vsub.f32 %v14228_v8, %v21507_v63  ;;  %v2560_v56 = vld [vmem:[#allocation8 + $0x28] sm:$0xff]  ;;  %v2559_v63 = vld [vmem:[#allocation8 + $0x20] sm:$0xff]  ;;  %v21509_v8 = vand.u32 4294901760, %v14180_v43  ;;  %v2862_v20 = vand.u32 4294901760, %v14292_v47 }
 0x2c3   : > { %2803 = vmatpush1.msra.mxu1 %v21506_v29  ;;  %v2856_v29 = vand.u32 4294901760, %v14280_v13  ;;  %2634 = vmatpush1.msra.mxu0 %v14108_v6  ;;  %v14351_v13 = vand.u32 4294901760, %v2561_v25  ;;  %v14357_v47 = vand.u32 4294901760, %v2560_v56  ;;  %v2556_v43 = vld [vmem:[#allocation8 + $0x8] sm:$0xff]  ;;  %v14377_v48 = vsub.f32 %v2562_v17, %v14341_v16 }
 0x2c4   : > { %2549 = vmatmul.mubr.f32.gmra.mxu1 %v13995_v51  ;;  %2809 = vmatprep.subr.mxu1 %v21508_v53  ;;  %v2558_v53 = vld [vmem:[#allocation8 + $0x18] sm:$0xff]  ;;  %v2868_v38 = vand.u32 4294901760, %v14315_v10  ;;  %v2874_v51 = vand.u32 4294901760, %v14330_v33  ;;  %v14367_v10 = vand.u32 4294901760, %v2559_v63  ;;  %v14389_v60 = vand.u32 4294901760, %v2557_v23 }
 0x2c5   : > { %2815 = vmatpush1.msra.mxu1 %v21509_v8  ;;  %2636 = vmatprep.subr.mxu0 %v14121_v49  ;;  %v21513_v8 = vand.u32 4294901760, %v14295_v36  ;;  %21515 = vst [vmem:[#allocation62_spill] sm:$0xff] %v14377_v48  ;;  %v14379_v19 = vand.u32 4294901760, %v2558_v53  ;;  %v21519_v17 = vand.u32 4294901760, %v14318_v18 }
 0x2c6   : > { %2821 = vmatprep.subr.mxu1 %v2820_v9  ;;  %2638 = vmatpush1.msra.mxu0 %v14123_v58  ;;  %v14365_v9 = vsub.f32 %v2563_v24, %v14333_v1  ;;  %v2555_v24 = vld [vmem:[#allocation8] sm:$0xff]  ;;  %21518 = vst [vmem:[#allocation64_spill] sm:$0xff] %v14389_v60 }
 0x2c7   : > { %2827 = vmatpush1.msra.mxu1 %v2826_v4  ;;  %v2885_v44 = vsub.f32 %v14295_v36, %v21513_v8  ;;  %2640 = vmatprep.subr.mxu0 %v14129_v42  ;;  %v21514_v4 = vand.u32 4294901760, %v14298_v61  ;;  %v14387_v36 = vsub.f32 %v2561_v25, %v14351_v13  ;;  %v14403_v25 = vand.u32 4294901760, %v2556_v43  ;;  %v2617_v8 = vld [vmem:[#allocation8 + $0x1f0] sm:$0xff] }
 0x2c8   : > { %21512 = vst [vmem:[#allocation61_spill] sm:$0xff] %v14365_v9  ;;  %2833 = vmatprep.subr.mxu1 %v2832_v3  ;;  %2642 = vmatpush1.msra.mxu0 %v14136_v31  ;;  %v21516_v3 = vand.u32 4294901760, %v14304_v5 }
 0x2c9   : > { %v2891_v33 = vsub.f32 %v14298_v61, %v21514_v4  ;;  %2839 = vmatpush1.msra.mxu1 %v2838_v55  ;;  %21517 = vst [vmem:[#allocation63_spill] sm:$0xff] %v14387_v36  ;;  %v2618_v4 = vld [vmem:[#allocation8 + $0x1f8] sm:$0xff]  ;;  %2644 = vmatprep.subr.mxu0 %v14138_v37  ;;  %v2903_v55 = vsub.f32 %v14318_v18, %v21519_v17  ;;  %v21520_v61 = vand.u32 4294901760, %v14321_v50  ;;  %21522 = vst [vmem:[#allocation66_spill] sm:$0xff] %v14403_v25  ;;  %v2616_v18 = vld [vmem:[#allocation8 + $0x1e8] sm:$0xff] }
 0x2ca   : > { %v2897_v2 = vsub.f32 %v14304_v5, %v21516_v3  ;;  %2845 = vmatprep.subr.mxu1 %v2844_v7  ;;  %v14401_v3 = vsub.f32 %v2560_v56, %v14357_v47  ;;  %v2880_v5 = vand.u32 4294901760, %v2879_v15  ;;  %2646 = vmatpush1.msra.mxu0 %v14155_v30  ;;  %v14408_v37 = vsub.f32 %v2559_v63, %v14367_v10 }
 0x2cb   : > { %v14398_v31 = vsub.f32 %v14321_v50, %v21520_v61  ;;  %2851 = vmatpush1.msra.mxu1 %v2850_v28  ;;  %v14410_v17 = vand.u32 4294901760, %v2555_v24  ;;  %v2886_v61 = vand.u32 4294901760, %v2885_v44  ;;  %2648 = vmatprep.subr.mxu0 %v14186_v22  ;;  %v14415_v50 = vsub.f32 %v2558_v53, %v14379_v19 }
 0x2cc   : > { %21521 = vst [vmem:[#allocation65_spill] sm:$0xff] %v14401_v3  ;;  %21523 = vst [vmem:[#allocation67_spill] sm:$0xff] %v14408_v37  ;;  %2857 = vmatprep.subr.mxu1 %v2856_v29  ;;  %v14417_v15 = vand.u32 4294901760, %v2618_v4  ;;  %v2892_v28 = vand.u32 4294901760, %v2891_v33  ;;  %2650 = vmatpush1.msra.mxu0 %v14196_v11  ;;  %v14422_v7 = vsub.f32 %v2557_v23, %v14389_v60  ;;  %v14424_v29 = vand.u32 4294901760, %v2617_v8 }
 0x2cd   : > { %21524 = vst [vmem:[#allocation68_spill] sm:$0xff] %v14410_v17  ;;  %21525 = vst [vmem:[#allocation69_spill] sm:$0xff] %v14415_v50  ;;  %2863 = vmatpush1.msra.mxu1 %v2862_v20  ;;  %v21529_v44 = vand.u32 4294901760, %v14349_v12  ;;  %2652 = vmatprep.subr.mxu0 %v14230_v62  ;;  %v14432_v20 = vsub.f32 %v2556_v43, %v14403_v25  ;;  %v14434_v33 = vand.u32 4294901760, %v2616_v18  ;;  %v2898_v63 = vand.u32 4294901760, %v2897_v2 }
 0x2ce   : > { %21526 = vst [vmem:[#allocation70_spill] sm:$0xff] %v14417_v15  ;;  %21527 = vst [vmem:[#allocation71_spill] sm:$0xff] %v14422_v7  ;;  %2869 = vmatprep.subr.mxu1 %v2868_v38  ;;  %v21532_v23 = vand.u32 4294901760, %v14365_v9  ;;  %2654 = vmatpush1.msra.mxu0 %v14240_v14  ;;  %v2904_v53 = vand.u32 4294901760, %v2903_v55  ;;  %v21534_v43 = vand.u32 4294901760, %v14377_v48  ;;  %v21536_v38 = vand.u32 4294901760, %v14387_v36 }
 0x2cf   : > { %21528 = vst [vmem:[#allocation72_spill] sm:$0xff] %v14424_v29  ;;  %v2915_v56 = vsub.f32 %v14349_v12, %v21529_v44  ;;  %21530 = vst [vmem:[#allocation73_spill] sm:$0xff] %v14432_v20  ;;  %2875 = vmatpush1.msra.mxu1 %v2874_v51  ;;  %v14442_v44 = vsub.f32 %v2555_v24, %v14410_v17  ;;  %2656 = vmatprep.subr.mxu0 %v14242_v57  ;;  %v21538_v2 = vand.u32 4294901760, %v14401_v3 }
 0x2d0   : > { %21531 = vst [vmem:[#allocation74_spill] sm:$0xff] %v14434_v33  ;;  %v2921_v11 = vsub.f32 %v14365_v9, %v21532_v23  ;;  %2881 = vmatprep.subr.mxu1 %v2880_v5  ;;  %v2927_v12 = vsub.f32 %v14377_v48, %v21534_v43  ;;  %v14450_v51 = vsub.f32 %v2618_v4, %v14417_v15  ;;  %v2910_v23 = vand.u32 4294901760, %v14398_v31 }
 0x2d1   : > { %21533 = vst [vmem:[#allocation75_spill] sm:$0xff] %v14442_v44  ;;  %2887 = vmatpush1.msra.mxu1 %v2886_v61  ;;  %v2933_v24 = vsub.f32 %v14387_v36, %v21536_v38  ;;  %2658 = vmatpush1.msra.mxu0 %v14257_v39  ;;  %v14459_v55 = vsub.f32 %v2617_v8, %v14424_v29  ;;  %v2916_v43 = vand.u32 4294901760, %v2915_v56  ;;  %v20514_v31 = vand.u32 4294901760, %v14432_v20 }
 0x2d2   : > { %21535 = vst [vmem:[#allocation76_spill] sm:$0xff] %v14450_v51  ;;  %2893 = vmatprep.subr.mxu1 %v2892_v28  ;;  %v2939_v4 = vsub.f32 %v14401_v3, %v21538_v2  ;;  %2660 = vmatprep.subr.mxu0 %v14267_v59  ;;  %v14467_v61 = vsub.f32 %v2616_v18, %v14434_v33  ;;  %v2922_v38 = vand.u32 4294901760, %v2921_v11  ;;  %v21540_v5 = vand.u32 4294901760, %v14408_v37 }
 0x2d3   : > { %21537 = vst [vmem:[#allocation77_spill] sm:$0xff] %v14459_v55  ;;  %2899 = vmatpush1.msra.mxu1 %v2898_v63  ;;  %2662 = vmatpush1.msra.mxu0 %v14269_v54  ;;  %v2928_v28 = vand.u32 4294901760, %v2927_v12  ;;  %v21541_v2 = vand.u32 4294901760, %v14415_v50  ;;  %v20516_v18 = vand.u32 4294901760, %v14450_v51  ;;  %v2934_v11 = vand.u32 4294901760, %v2933_v24 }
 0x2d4   : > { %21539 = vst [vmem:[#allocation78_spill] sm:$0xff] %v14467_v61  ;;  %v2945_v8 = vsub.f32 %v14408_v37, %v21540_v5  ;;  %2905 = vmatprep.subr.mxu1 %v2904_v53  ;;  %2664 = vmatprep.subr.mxu0 %v14306_v35  ;;  %v21542_v63 = vand.u32 4294901760, %v14422_v7  ;;  %v2940_v12 = vand.u32 4294901760, %v2939_v4  ;;  %v2963_v53 = vsub.f32 %v14432_v20, %v20514_v31 }
 0x2d5   : > { %v2951_v3 = vsub.f32 %v14415_v50, %v21541_v2  ;;  %2911 = vmatpush1.msra.mxu1 %v2910_v23  ;;  %2666 = vmatpush1.msra.mxu0 %v14333_v1  ;;  %v20515_v2 = vand.u32 4294901760, %v14467_v61  ;;  %v21543_v24 = vand.u32 4294901760, %v14442_v44  ;;  %v21544_v31 = vand.u32 4294901760, %v14459_v55 }
 0x2d6   : > { %v2957_v5 = vsub.f32 %v14422_v7, %v21542_v63  ;;  %2917 = vmatprep.subr.mxu1 %v2916_v43  ;;  %2668 = vmatprep.subr.mxu0 %v14341_v16  ;;  %v2946_v23 = vand.u32 4294901760, %v2945_v8  ;;  %v2975_v43 = vsub.f32 %v14450_v51, %v20516_v18  ;;  %v2964_v8 = vand.u32 4294901760, %v2963_v53  ;;  %v2614_v53 = vld [vmem:[#allocation8 + $0x1d8] sm:$0xff]  ;;  %v2609_v18 = vld [vmem:[#allocation8 + $0x1b0] sm:$0xff] }
 0x2d7   : > { %2923 = vmatpush1.msra.mxu1 %v2922_v38  ;;  %v2969_v63 = vsub.f32 %v14442_v44, %v21543_v24  ;;  %2670 = vmatpush1.msra.mxu0 %v14351_v13  ;;  %v2952_v56 = vand.u32 4294901760, %v2951_v3  ;;  %v2981_v38 = vsub.f32 %v14459_v55, %v21544_v31  ;;  %v2987_v3 = vsub.f32 %v14467_v61, %v20515_v2  ;;  %v2613_v24 = vld [vmem:[#allocation8 + $0x1d0] sm:$0xff]  ;;  %v2607_v61 = vld [vmem:[#allocation8 + $0x1a0] sm:$0xff] }
 0x2d8   : > { %2929 = vmatprep.subr.mxu1 %v2928_v28  ;;  %2672 = vmatprep.subr.mxu0 %v14357_v47  ;;  %v2958_v4 = vand.u32 4294901760, %v2957_v5  ;;  %v14548_v51 = vand.u32 4294901760, %v2609_v18 }
 0x2d9   : > { %2935 = vmatpush1.msra.mxu1 %v2934_v11  ;;  %2674 = vmatpush1.msra.mxu0 %v14367_v10  ;;  %v2970_v28 = vand.u32 4294901760, %v2969_v63  ;;  %v2976_v11 = vand.u32 4294901760, %v2975_v43  ;;  %v2982_v31 = vand.u32 4294901760, %v2981_v38  ;;  %v2988_v5 = vand.u32 4294901760, %v2987_v3  ;;  %v2611_v3 = vld [vmem:[#allocation8 + $0x1c0] sm:$0xff] }
 0x2da   : > { %2941 = vmatprep.subr.mxu1 %v2940_v12  ;;  %2676 = vmatprep.subr.mxu0 %v14379_v19  ;;  %v2615_v12 = vld [vmem:[#allocation8 + $0x1e0] sm:$0xff]  ;;  %v14518_v43 = vand.u32 4294901760, %v2613_v24  ;;  %21556 = vst [vmem:[#allocation90_spill] sm:$0xff] %v14548_v51  ;;  %v14566_v7 = vsub.f32 %v2609_v18, %v14548_v51 }
 0x2db   : > { %2947 = vmatpush1.msra.mxu1 %v2946_v23  ;;  %2678 = vmatpush1.msra.mxu0 %v14389_v60  ;;  %v14513_v23 = vand.u32 4294901760, %v2614_v53 }
 0x2dc   : > { %2953 = vmatprep.subr.mxu1 %v2952_v56  ;;  %2680 = vmatprep.subr.mxu0 %v14403_v25  ;;  %v14511_v56 = vand.u32 4294901760, %v2615_v12  ;;  %21548 = vst [vmem:[#allocation82_spill] sm:$0xff] %v14518_v43  ;;  %21561 = vst [vmem:[#allocation93_spill] sm:$0xff] %v14566_v7 }
 0x2dd   : > { %2959 = vmatpush1.msra.mxu1 %v2958_v4  ;;  %2682 = vmatpush1.msra.mxu0 %v14410_v17  ;;  %21546 = vst [vmem:[#allocation80_spill] sm:$0xff] %v14513_v23  ;;  %v2612_v4 = vld [vmem:[#allocation8 + $0x1c8] sm:$0xff]  ;;  %v14522_v38 = vsub.f32 %v2614_v53, %v14513_v23 }
 0x2de   : > { %2965 = vmatprep.subr.mxu1 %v2964_v8  ;;  %2684 = vmatprep.subr.mxu0 %v14417_v15  ;;  %21545 = vst [vmem:[#allocation79_spill] sm:$0xff] %v14511_v56  ;;  %v14516_v63 = vsub.f32 %v2615_v12, %v14511_v56  ;;  %v14524_v8 = vand.u32 4294901760, %v2612_v4  ;;  %v2608_v12 = vld [vmem:[#allocation8 + $0x1a8] sm:$0xff] }
 0x2df   : > { %2971 = vmatpush1.msra.mxu1 %v2970_v28  ;;  %2686 = vmatpush2.msra.mxu0 %v14424_v29  ;;  %21549 = vst [vmem:[#allocation83_spill] sm:$0xff] %v14522_v38 }
 0x2e0   : > { %2977 = vmatprep.subr.mxu1 %v2976_v11  ;;  %2688 = vmatprep.subr.mxu0 %v14434_v33  ;;  %21547 = vst [vmem:[#allocation81_spill] sm:$0xff] %v14516_v63  ;;  %21550 = vst [vmem:[#allocation84_spill] sm:$0xff] %v14524_v8  ;;  %v20529_v28 = vand.u32 4294901760, %v14516_v63  ;;  %v14529_v11 = vsub.f32 %v2613_v24, %v14518_v43  ;;  %v14536_v53 = vsub.f32 %v2612_v4, %v14524_v8 }
 0x2e1   : > { %2983 = vmatpush2.msra.mxu1 %v2982_v31  ;;  %2690 = vmatpush2.msra.mxu0 %v14511_v56  ;;  %v14531_v31 = vand.u32 4294901760, %v2611_v3  ;;  %v21557_v4 = vand.u32 4294901760, %v14522_v38 }
 0x2e2   : > { %2989 = vmatprep.subr.mxu1 %v2988_v5  ;;  %2692 = vmatprep.subr.mxu0 %v14513_v23  ;;  %21551 = vst [vmem:[#allocation85_spill] sm:$0xff] %v14529_v11  ;;  %v2610_v5 = vld [vmem:[#allocation8 + $0x1b8] sm:$0xff]  ;;  %21553 = vst [vmem:[#allocation87_spill] sm:$0xff] %v14536_v53  ;;  %v2993_v24 = vsub.f32 %v14516_v63, %v20529_v28  ;;  %v14558_v28 = vand.u32 4294901760, %v2608_v12  ;;  %v21560_v63 = vand.u32 4294901760, %v14529_v11  ;;  %v2605_v23 = vld [vmem:[#allocation8 + $0x190] sm:$0xff] }
 0x2e3   : > { %21552 = vst [vmem:[#allocation86_spill] sm:$0xff] %v14531_v31  ;;  %2694 = vmatpush2.msra.mxu0 %v14518_v43  ;;  %v14538_v2 = vand.u32 4294901760, %v2610_v5  ;;  %v14546_v55 = vsub.f32 %v2611_v3, %v14531_v31  ;;  %v2999_v44 = vsub.f32 %v14522_v38, %v21557_v4  ;;  %v2606_v4 = vld [vmem:[#allocation8 + $0x198] sm:$0xff] }
 0x2e4   : > { %2696 = vmatprep.subr.mxu0 %v14524_v8  ;;  %v20548_v8 = vand.u32 4294901760, %v14536_v53  ;;  %21559 = vst [vmem:[#allocation92_spill] sm:$0xff] %v14558_v28  ;;  %v2994_v3 = vand.u32 4294901760, %v2993_v24  ;;  %v3005_v43 = vsub.f32 %v14529_v11, %v21560_v63  ;;  %v14574_v24 = vsub.f32 %v2608_v12, %v14558_v28 }
 0x2e5   : > { %21554 = vst [vmem:[#allocation88_spill] sm:$0xff] %v14538_v2  ;;  %21555 = vst [vmem:[#allocation89_spill] sm:$0xff] %v14546_v55  ;;  %2698 = vmatpush2.msra.mxu0 %v14531_v31  ;;  %v14556_v20 = vsub.f32 %v2610_v5, %v14538_v2  ;;  %v20553_v31 = vand.u32 4294901760, %v14546_v55  ;;  %v3000_v5 = vand.u32 4294901760, %v2999_v44  ;;  %v20559_v44 = vand.u32 4294901760, %v14566_v7 }
 0x2e6   : > { %2700 = vmatprep.subr.mxu0 %v14538_v2  ;;  %v3011_v38 = vsub.f32 %v14536_v53, %v20548_v8  ;;  %21562 = vst [vmem:[#allocation94_spill] sm:$0xff] %v14574_v24  ;;  %2995 = vmatpush2.msra.mxu1 %v2994_v3  ;;  %v3006_v63 = vand.u32 4294901760, %v3005_v43  ;;  %v14581_v11 = vand.u32 4294901760, %v2607_v61  ;;  %v20564_v53 = vand.u32 4294901760, %v14574_v24  ;;  %v2603_v43 = vld [vmem:[#allocation8 + $0x180] sm:$0xff] }
 0x2e7   : > { %21558 = vst [vmem:[#allocation91_spill] sm:$0xff] %v14556_v20  ;;  %2702 = vmatpush2.msra.mxu0 %v14548_v51  ;;  %v20556_v2 = vand.u32 4294901760, %v14556_v20  ;;  %v3017_v18 = vsub.f32 %v14546_v55, %v20553_v31  ;;  %v2604_v51 = vld [vmem:[#allocation8 + $0x188] sm:$0xff]  ;;  %3001 = vmatprep.subr.mxu1 %v3000_v5  ;;  %v3029_v31 = vsub.f32 %v14566_v7, %v20559_v44  ;;  %v14595_v5 = vand.u32 4294901760, %v2605_v23  ;;  %v2601_v44 = vld [vmem:[#allocation8 + $0x170] sm:$0xff] }
 0x2e8   : > { %2704 = vmatprep.subr.mxu0 %v14558_v28  ;;  %21563 = vst [vmem:[#allocation95_spill] sm:$0xff] %v14581_v11  ;;  %v3012_v8 = vand.u32 4294901760, %v3011_v38  ;;  %v14587_v28 = vand.u32 4294901760, %v2606_v4  ;;  %3007 = vmatpush2.msra.mxu1 %v3006_v63  ;;  %v14593_v55 = vsub.f32 %v2607_v61, %v14581_v11  ;;  %v2602_v38 = vld [vmem:[#allocation8 + $0x178] sm:$0xff] }
 0x2e9   : > { %v3023_v12 = vsub.f32 %v14556_v20, %v20556_v2  ;;  %v3018_v3 = vand.u32 4294901760, %v3017_v18  ;;  %21566 = vst [vmem:[#allocation98_spill] sm:$0xff] %v14595_v5  ;;  %2706 = vmatpush2.msra.mxu0 %v14581_v11  ;;  %v3035_v20 = vsub.f32 %v14574_v24, %v20564_v53  ;;  %v14604_v18 = vand.u32 4294901760, %v2604_v51 }
 0x2ea   : > { %21564 = vst [vmem:[#allocation96_spill] sm:$0xff] %v14587_v28  ;;  %21565 = vst [vmem:[#allocation97_spill] sm:$0xff] %v14593_v55  ;;  %3013 = vmatprep.subr.mxu1 %v3012_v8  ;;  %v14602_v63 = vsub.f32 %v2606_v4, %v14587_v28  ;;  %2708 = vmatprep.subr.mxu0 %v14587_v28  ;;  %v3030_v61 = vand.u32 4294901760, %v3029_v31  ;;  %v20569_v7 = vand.u32 4294901760, %v14593_v55  ;;  %v14611_v8 = vand.u32 4294901760, %v2603_v43  ;;  %v2599_v31 = vld [vmem:[#allocation8 + $0x160] sm:$0xff] }
 0x2eb   : > { %v3024_v2 = vand.u32 4294901760, %v3023_v12  ;;  %21568 = vst [vmem:[#allocation100_spill] sm:$0xff] %v14604_v18  ;;  %3019 = vmatpush2.msra.mxu1 %v3018_v3  ;;  %v14609_v11 = vsub.f32 %v2605_v23, %v14595_v5  ;;  %v2600_v12 = vld [vmem:[#allocation8 + $0x168] sm:$0xff]  ;;  %2710 = vmatpush2.msra.mxu0 %v14595_v5  ;;  %v3036_v4 = vand.u32 4294901760, %v3035_v20  ;;  %v14616_v24 = vsub.f32 %v2604_v51, %v14604_v18  ;;  %v2597_v5 = vld [vmem:[#allocation8 + $0x150] sm:$0xff] }
 0x2ec   : > { %21567 = vst [vmem:[#allocation99_spill] sm:$0xff] %v14602_v63  ;;  %21570 = vst [vmem:[#allocation102_spill] sm:$0xff] %v14611_v8  ;;  %v20576_v53 = vand.u32 4294901760, %v14602_v63  ;;  %v14618_v28 = vand.u32 4294901760, %v2602_v38  ;;  %2712 = vmatprep.subr.mxu0 %v14604_v18  ;;  %v3041_v23 = vsub.f32 %v14593_v55, %v20569_v7  ;;  %v14626_v3 = vsub.f32 %v2603_v43, %v14611_v8 }
 0x2ed   : > { %21569 = vst [vmem:[#allocation101_spill] sm:$0xff] %v14609_v11  ;;  %3025 = vmatprep.subr.mxu1 %v3024_v2  ;;  %21571 = vst [vmem:[#allocation103_spill] sm:$0xff] %v14616_v24  ;;  %v14628_v20 = vand.u32 4294901760, %v2601_v44  ;;  %2714 = vmatpush2.msra.mxu0 %v14611_v8  ;;  %v20587_v2 = vand.u32 4294901760, %v14616_v24  ;;  %v14638_v7 = vand.u32 4294901760, %v2600_v12  ;;  %v21577_v55 = vand.u32 4294901760, %v14609_v11 }
 0x2ee   : > { %21572 = vst [vmem:[#allocation104_spill] sm:$0xff] %v14618_v28  ;;  %3031 = vmatpush2.msra.mxu1 %v3030_v61  ;;  %21573 = vst [vmem:[#allocation105_spill] sm:$0xff] %v14626_v3  ;;  %v3047_v51 = vsub.f32 %v14602_v63, %v20576_v53  ;;  %v14636_v61 = vsub.f32 %v2602_v38, %v14618_v28  ;;  %2716 = vmatprep.subr.mxu0 %v14618_v28  ;;  %v3042_v43 = vand.u32 4294901760, %v3041_v23  ;;  %v2598_v53 = vld [vmem:[#allocation8 + $0x158] sm:$0xff] }
 0x2ef   : > { %21574 = vst [vmem:[#allocation106_spill] sm:$0xff] %v14628_v20  ;;  %3037 = vmatprep.subr.mxu1 %v3036_v4  ;;  %21576 = vst [vmem:[#allocation108_spill] sm:$0xff] %v14638_v7  ;;  %v3053_v8 = vsub.f32 %v14609_v11, %v21577_v55  ;;  %v20592_v4 = vand.u32 4294901760, %v14626_v3  ;;  %v14646_v18 = vsub.f32 %v2601_v44, %v14628_v20  ;;  %2718 = vmatpush2.msra.mxu0 %v14628_v20  ;;  %v2596_v20 = vld [vmem:[#allocation8 + $0x148] sm:$0xff] }
 0x2f0   : > { %21575 = vst [vmem:[#allocation107_spill] sm:$0xff] %v14636_v61  ;;  %v3048_v38 = vand.u32 4294901760, %v3047_v51  ;;  %v3059_v63 = vsub.f32 %v14616_v24, %v20587_v2  ;;  %v20595_v28 = vand.u32 4294901760, %v14636_v61  ;;  %v14654_v23 = vsub.f32 %v2600_v12, %v14638_v7  ;;  %2720 = vmatprep.subr.mxu0 %v14638_v7  ;;  %3043 = vmatpush2.msra.mxu1 %v3042_v43 }
 0x2f1   : > { %21578 = vst [vmem:[#allocation109_spill] sm:$0xff] %v14646_v18  ;;  %v3054_v55 = vand.u32 4294901760, %v3053_v8  ;;  %v3065_v44 = vsub.f32 %v14626_v3, %v20592_v4  ;;  %v20598_v51 = vand.u32 4294901760, %v14646_v18  ;;  %v14661_v11 = vand.u32 4294901760, %v2599_v31  ;;  %v2595_v8 = vld [vmem:[#allocation8 + $0x140] sm:$0xff] }
 0x2f2   : > { %21579 = vst [vmem:[#allocation110_spill] sm:$0xff] %v14654_v23  ;;  %3049 = vmatprep.subr.mxu1 %v3048_v38  ;;  %v3060_v2 = vand.u32 4294901760, %v3059_v63  ;;  %v3071_v12 = vsub.f32 %v14636_v61, %v20595_v28  ;;  %v20603_v24 = vand.u32 4294901760, %v14654_v23  ;;  %v14667_v7 = vand.u32 4294901760, %v2598_v53  ;;  %v2594_v63 = vld [vmem:[#allocation8 + $0x138] sm:$0xff] }
 0x2f3   : > { %21580 = vst [vmem:[#allocation111_spill] sm:$0xff] %v14661_v11  ;;  %3055 = vmatpush2.msra.mxu1 %v3054_v55  ;;  %v3066_v43 = vand.u32 4294901760, %v3065_v44  ;;  %v3077_v4 = vsub.f32 %v14646_v18, %v20598_v51  ;;  %v14673_v3 = vsub.f32 %v2599_v31, %v14661_v11  ;;  %v14675_v38 = vand.u32 4294901760, %v2597_v5  ;;  %2722 = vmatpush2.msra.mxu0 %v14661_v11  ;;  %v2593_v51 = vld [vmem:[#allocation8 + $0x130] sm:$0xff] }
 0x2f4   : > { %21581 = vst [vmem:[#allocation112_spill] sm:$0xff] %v14667_v7  ;;  %3061 = vmatprep.subr.mxu1 %v3060_v2  ;;  %v3072_v28 = vand.u32 4294901760, %v3071_v12  ;;  %v3083_v61 = vsub.f32 %v14654_v23, %v20603_v24  ;;  %v14682_v55 = vsub.f32 %v2598_v53, %v14667_v7  ;;  %v14684_v44 = vand.u32 4294901760, %v2596_v20  ;;  %2724 = vmatprep.subr.mxu0 %v14667_v7  ;;  %v2592_v12 = vld [vmem:[#allocation8 + $0x128] sm:$0xff] }
 0x2f5   : > { %21582 = vst [vmem:[#allocation113_spill] sm:$0xff] %v14673_v3  ;;  %21583 = vst [vmem:[#allocation114_spill] sm:$0xff] %v14675_v38  ;;  %3067 = vmatpush2.msra.mxu1 %v3066_v43  ;;  %v3078_v31 = vand.u32 4294901760, %v3077_v4  ;;  %v20608_v18 = vand.u32 4294901760, %v14673_v3  ;;  %v14689_v11 = vsub.f32 %v2597_v5, %v14675_v38  ;;  %v14691_v2 = vand.u32 4294901760, %v2595_v8  ;;  %2726 = vmatpush2.msra.mxu0 %v14675_v38  ;;  %v2591_v4 = vld [vmem:[#allocation8 + $0x120] sm:$0xff] }
 0x2f6   : > { %21584 = vst [vmem:[#allocation115_spill] sm:$0xff] %v14682_v55  ;;  %21585 = vst [vmem:[#allocation116_spill] sm:$0xff] %v14684_v44  ;;  %3073 = vmatprep.subr.mxu1 %v3072_v28  ;;  %v3084_v53 = vand.u32 4294901760, %v3083_v61  ;;  %v20615_v24 = vand.u32 4294901760, %v14682_v55  ;;  %v14696_v23 = vsub.f32 %v2596_v20, %v14684_v44  ;;  %v14698_v7 = vand.u32 4294901760, %v2594_v63  ;;  %2728 = vmatprep.subr.mxu0 %v14684_v44  ;;  %v2589_v38 = vld [vmem:[#allocation8 + $0x110] sm:$0xff] }
 0x2f7   : > { %21586 = vst [vmem:[#allocation117_spill] sm:$0xff] %v14689_v11  ;;  %21587 = vst [vmem:[#allocation118_spill] sm:$0xff] %v14691_v2  ;;  %3079 = vmatpush2.msra.mxu1 %v3078_v31  ;;  %v3089_v5 = vsub.f32 %v14673_v3, %v20608_v18  ;;  %v14706_v43 = vsub.f32 %v2595_v8, %v14691_v2  ;;  %v14708_v28 = vand.u32 4294901760, %v2593_v51  ;;  %2730 = vmatpush2.msra.mxu0 %v14691_v2 }
 0x2f8   : > { %21588 = vst [vmem:[#allocation119_spill] sm:$0xff] %v14696_v23  ;;  %21589 = vst [vmem:[#allocation120_spill] sm:$0xff] %v14698_v7  ;;  %3085 = vmatprep.subr.mxu1 %v3084_v53  ;;  %v3095_v20 = vsub.f32 %v14682_v55, %v20615_v24  ;;  %v20626_v61 = vand.u32 4294901760, %v14696_v23  ;;  %v14716_v31 = vsub.f32 %v2594_v63, %v14698_v7  ;;  %v14718_v18 = vand.u32 4294901760, %v2592_v12  ;;  %v2590_v24 = vld [vmem:[#allocation8 + $0x118] sm:$0xff] }
 0x2f9   : > { %21590 = vst [vmem:[#allocation121_spill] sm:$0xff] %v14706_v43  ;;  %21591 = vst [vmem:[#allocation122_spill] sm:$0xff] %v14708_v28  ;;  %2732 = vmatprep.subr.mxu0 %v14698_v7  ;;  %v3090_v8 = vand.u32 4294901760, %v3089_v5  ;;  %v21594_v3 = vand.u32 4294901760, %v14689_v11  ;;  %v20631_v53 = vand.u32 4294901760, %v14706_v43  ;;  %v14726_v44 = vsub.f32 %v2593_v51, %v14708_v28 }
 0x2fa   : > { %21592 = vst [vmem:[#allocation123_spill] sm:$0xff] %v14716_v31  ;;  %21593 = vst [vmem:[#allocation124_spill] sm:$0xff] %v14718_v18  ;;  %2734 = vmatpush2.msra.mxu0 %v14708_v28  ;;  %v3096_v63 = vand.u32 4294901760, %v3095_v20  ;;  %v3107_v55 = vsub.f32 %v14696_v23, %v20626_v61  ;;  %v20634_v7 = vand.u32 4294901760, %v14716_v31  ;;  %v14734_v5 = vsub.f32 %v2592_v12, %v14718_v18  ;;  %v2588_v28 = vld [vmem:[#allocation8 + $0x108] sm:$0xff] }
 0x2fb   : > { %v3101_v2 = vsub.f32 %v14689_v11, %v21594_v3  ;;  %21595 = vst [vmem:[#allocation125_spill] sm:$0xff] %v14726_v44  ;;  %2736 = vmatprep.subr.mxu0 %v14718_v18  ;;  %3091 = vmatpush2.msra.mxu1 %v3090_v8  ;;  %v3113_v51 = vsub.f32 %v14706_v43, %v20631_v53  ;;  %v20635_v20 = vand.u32 4294901760, %v14726_v44  ;;  %v14741_v11 = vand.u32 4294901760, %v2591_v4 }
 0x2fc   : > { %21596 = vst [vmem:[#allocation126_spill] sm:$0xff] %v14734_v5  ;;  %3097 = vmatprep.subr.mxu1 %v3096_v63  ;;  %v3108_v61 = vand.u32 4294901760, %v3107_v55  ;;  %v3119_v12 = vsub.f32 %v14716_v31, %v20634_v7  ;;  %v20638_v23 = vand.u32 4294901760, %v14734_v5  ;;  %v14747_v18 = vand.u32 4294901760, %v2590_v24 }
 0x2fd   : > { %v3102_v3 = vand.u32 4294901760, %v3101_v2  ;;  %21597 = vst [vmem:[#allocation127_spill] sm:$0xff] %v14741_v11  ;;  %v2587_v2 = vld [vmem:[#allocation8 + $0x100] sm:$0xff]  ;;  %v3114_v8 = vand.u32 4294901760, %v3113_v51  ;;  %v3125_v53 = vsub.f32 %v14726_v44, %v20635_v20  ;;  %v14753_v43 = vsub.f32 %v2591_v4, %v14741_v11  ;;  %2738 = vmatpush2.msra.mxu0 %v14741_v11 }
 0x2fe   : > { %21598 = vst [vmem:[#allocation128_spill] sm:$0xff] %v14747_v18  ;;  %v14755_v63 = vand.u32 4294901760, %v2589_v38  ;;  %v3120_v55 = vand.u32 4294901760, %v3119_v12  ;;  %v3131_v7 = vsub.f32 %v14734_v5, %v20638_v23  ;;  %v14764_v51 = vand.u32 4294901760, %v2588_v28  ;;  %2740 = vmatprep.subr.mxu0 %v14747_v18 }
 0x2ff   : > { %3103 = vmatpush2.msra.mxu1 %v3102_v3  ;;  %21599 = vst [vmem:[#allocation129_spill] sm:$0xff] %v14753_v43  ;;  %v14762_v3 = vsub.f32 %v2590_v24, %v14747_v18  ;;  %v3126_v4 = vand.u32 4294901760, %v3125_v53  ;;  %v20639_v20 = vand.u32 4294901760, %v14753_v43 }
 0x300   : > { %21600 = vst [vmem:[#allocation130_spill] sm:$0xff] %v14755_v63  ;;  %3109 = vmatprep.subr.mxu1 %v3108_v61  ;;  %21602 = vst [vmem:[#allocation132_spill] sm:$0xff] %v14764_v51  ;;  %v14769_v44 = vsub.f32 %v2589_v38, %v14755_v63  ;;  %v14771_v61 = vand.u32 4294901760, %v2587_v2  ;;  %2742 = vmatpush2.msra.mxu0 %v14755_v63  ;;  %v3132_v12 = vand.u32 4294901760, %v3131_v7 }
 0x301   : > { %21601 = vst [vmem:[#allocation131_spill] sm:$0xff] %v14762_v3  ;;  %3115 = vmatpush2.msra.mxu1 %v3114_v8  ;;  %v20642_v24 = vand.u32 4294901760, %v14762_v3  ;;  %v14776_v23 = vsub.f32 %v2588_v28, %v14764_v51  ;;  %2744 = vmatprep.subr.mxu0 %v14764_v51  ;;  %v3137_v53 = vsub.f32 %v14753_v43, %v20639_v20 }
 0x302   : > { %21603 = vst [vmem:[#allocation133_spill] sm:$0xff] %v14769_v44  ;;  %21604 = vst [vmem:[#allocation134_spill] sm:$0xff] %v14771_v61  ;;  %3121 = vmatprep.subr.mxu1 %v3120_v55  ;;  %v20644_v38 = vand.u32 4294901760, %v14769_v44  ;;  %v14784_v8 = vsub.f32 %v2587_v2, %v14771_v61  ;;  %2746 = vmatpush2.msra.mxu0 %v14771_v61 }
 0x303   : > { %21605 = vst [vmem:[#allocation135_spill] sm:$0xff] %v14776_v23  ;;  %3127 = vmatpush2.msra.mxu1 %v3126_v4  ;;  %v3143_v7 = vsub.f32 %v14762_v3, %v20642_v24  ;;  %v20651_v28 = vand.u32 4294901760, %v14776_v23  ;;  %3183 = vmatprep.subr.mxu0 %v14084_v34  ;;  %v3138_v55 = vand.u32 4294901760, %v3137_v53 }
 0x304   : > { %21606 = vst [vmem:[#allocation136_spill] sm:$0xff] %v14784_v8  ;;  %3133 = vmatprep.subr.mxu1 %v3132_v12  ;;  %v3149_v4 = vsub.f32 %v14769_v44, %v20644_v38  ;;  %v20658_v20 = vand.u32 4294901760, %v14784_v8 }
 0x305   : > { %v3144_v2 = vand.u32 4294901760, %v3143_v7  ;;  %v3155_v12 = vsub.f32 %v14776_v23, %v20651_v28  ;;  %3139 = vmatpush2.msra.mxu1 %v3138_v55 }
 0x306   : > { %v3150_v43 = vand.u32 4294901760, %v3149_v4  ;;  %v3161_v24 = vsub.f32 %v14784_v8, %v20658_v20 }
 0x307   : > { %3145 = vmatprep.subr.mxu1 %v3144_v2  ;;  %v3156_v34 = vand.u32 4294901760, %v3155_v12 }
 0x308   : > { %3151 = vmatpush2.msra.mxu1 %v3150_v43  ;;  %v3162_v53 = vand.u32 4294901760, %v3161_v24 }
 0x309   : > { %3157 = vmatprep.subr.mxu1 %v3156_v34 }
 0x30a   : > { %3163 = vmatpush2.msra.mxu1 %v3162_v53 }
 0x30b   : > { %3395 = vmatprep.subr.mxu1 %v14058_v27 }
 0x366   : > { %v2090_v38 = vpop.f32.mrf.mxu0 }
 0x368   : > { %v2092_v7 = vpop.f32.mrf.mxu0 }
 0x36a   : > { %v2101_v44 = vpop.f32.mrf.mxu0 }
 0x36c   : > { %v2103_v3 = vpop.f32.mrf.mxu0 }
 0x36e   : > { %v2193_v5 = vpop.f32.mrf.mxu1  ;;  %v2281_v28 = vpop.f32.mrf.mxu0 }
 0x36f   : > { %v2194_v31 = vadd.f32 %v2193_v5, %v2090_v38 }
 0x370   : > { %v2195_v55 = vpop.f32.mrf.mxu1  ;;  %v2283_v4 = vpop.f32.mrf.mxu0 }
 0x371   : > { %v2196_v2 = vadd.f32 %v2195_v55, %v2092_v7  ;;  %v2282_v24 = vadd.f32 %v2281_v28, %v2194_v31 }
 0x373   : > { %v2200_v23 = vpop.f32.mrf.mxu1  ;;  %v2284_v27 = vadd.f32 %v2283_v4, %v2196_v2 }
 0x374   : > { %v2201_v34 = vadd.f32 %v2200_v23, %v2101_v44 }
 0x375   : > { %v2202_v61 = vpop.f32.mrf.mxu1  ;;  %v2289_v20 = vpop.f32.mrf.mxu0 }
 0x376   : > { %v2203_v51 = vadd.f32 %v2202_v61, %v2103_v3  ;;  %v2290_v50 = vadd.f32 %v2289_v20, %v2201_v34 }
 0x377   : > { %v2291_v12 = vpop.f32.mrf.mxu0  ;;  %v2367_v43 = vpop.f32.mrf.mxu1 }
 0x378   : > { %v2368_v63 = vadd.f32 %v2367_v43, %v2282_v24  ;;  %v2292_v29 = vadd.f32 %v2291_v12, %v2203_v51 }
 0x379   : > { %v2369_v53 = vpop.f32.mrf.mxu1  ;;  %v2460_v8 = vpop.f32.mrf.mxu0 }
 0x37a   : > { %v2370_v56 = vadd.f32 %v2369_v53, %v2284_v27  ;;  %v2461_v5 = vadd.f32 %v2460_v8, %v2368_v63 }
 0x37b   : > { %v2376_v18 = vpop.f32.mrf.mxu1  ;;  %v2462_v11 = vpop.f32.mrf.mxu0 }
 0x37c   : > { %v2377_v38 = vadd.f32 %v2376_v18, %v2290_v50  ;;  %v2463_v7 = vadd.f32 %v2462_v11, %v2370_v56 }
 0x37d   : > { %v2378_v37 = vpop.f32.mrf.mxu1  ;;  %v2467_v33 = vpop.f32.mrf.mxu0 }
 0x37e   : > { %v2379_v55 = vadd.f32 %v2378_v37, %v2292_v29  ;;  %v2468_v44 = vadd.f32 %v2467_v33, %v2377_v38  ;;  %v21610_v38 = vld [vmem:[#allocation43_spill] sm:$0xff] }
 0x37f   : > { %v2543_v36 = vpop.f32.mrf.mxu1  ;;  %v2469_v31 = vpop.f32.mrf.mxu0 }
 0x380   : > { %v2544_v15 = vadd.f32 %v2543_v36, %v2461_v5  ;;  %v2470_v4 = vadd.f32 %v2469_v31, %v2379_v55  ;;  %v21611_v55 = vld [vmem:[#allocation33_spill] sm:$0xff]  ;;  %v21612_v31 = vld [vmem:[#allocation44_spill] sm:$0xff] }
 0x381   : > { %v2545_v23 = vpop.f32.mrf.mxu1 }
 0x382   : > { %v14803_v28 = vand.u32 4294901760, %v2544_v15  ;;  %v2546_v3 = vadd.f32 %v2545_v23, %v2463_v7  ;;  %v21613_v23 = vld [vmem:[#allocation38_spill] sm:$0xff] }
 0x384   : > { %21607 = vst [vmem:[#allocation137_spill] sm:$0xff] %v14803_v28  ;;  %v2550_v61 = vpop.f32.mrf.mxu1  ;;  %v14806_v20 = vsub.f32 %v2544_v15, %v14803_v28  ;;  %v14808_v27 = vand.u32 4294901760, %v2546_v3 }
 0x385   : > { %v2551_v51 = vadd.f32 %v2550_v61, %v2468_v44  ;;  %v21614_v44 = vld [vmem:[#allocation41_spill] sm:$0xff]  ;;  %v21616_v61 = vld [vmem:[#allocation50_spill] sm:$0xff] }
 0x386   : > { %v2552_v63 = vpop.f32.mrf.mxu1  ;;  %v20686_v50 = vand.u32 4294901760, %v14806_v20  ;;  %v2748_v37 = vsub.f32 %v2546_v3, %v14808_v27  ;;  %3165 = vmatprep.mubr.f32.mxu1 %v14808_v27  ;;  %v21615_v3 = vld [vmem:[#allocation42_spill] sm:$0xff] }
 0x387   : > { %v14812_v36 = vand.u32 4294901760, %v2551_v51  ;;  %v2553_v29 = vadd.f32 %v2552_v63, %v2470_v4  ;;  %3167 = vmatmul.mubr.f32.vlgmr.msra.gmra.mxu1 %v14803_v28  ;;  %v21617_v4 = vld [vmem:[#allocation45_spill] sm:$0xff]  ;;  %v21619_v63 = vld [vmem:[#allocation47_spill] sm:$0xff]  ;;  %v21636_v28 = vld [vmem:[#allocation74_spill] sm:$0xff] }
 0x388   : > { %3397 = vmatpush1.msra.mxu1 %v14060_v40  ;;  %v2749_v56 = vand.u32 4294901760, %v2748_v37  ;;  %v2756_v11 = vsub.f32 %v14806_v20, %v20686_v50  ;;  %v21633_v50 = vld [vmem:[#allocation63_spill] sm:$0xff] }
 0x389   : > { %21608 = vst [vmem:[#allocation138_spill] sm:$0xff] %v14812_v36  ;;  %v14817_v33 = vsub.f32 %v2551_v51, %v14812_v36  ;;  %v14819_v15 = vand.u32 4294901760, %v2553_v29  ;;  %3399 = vmatprep.subr.mxu1 %v14062_v21  ;;  %v21618_v51 = vld [vmem:[#allocation46_spill] sm:$0xff] }
 0x38a   : > { %3401 = vmatpush1.msra.mxu1 %v14067_v52  ;;  %v2750_v8 = vsub.f32 %v2748_v37, %v2749_v56  ;;  %v2757_v24 = vand.u32 4294901760, %v2756_v11  ;;  %v21623_v11 = vld [vmem:[#allocation52_spill] sm:$0xff] }
 0x38b   : > { %21609 = vst [vmem:[#allocation139_spill] sm:$0xff] %v14819_v15  ;;  %v14827_v18 = vsub.f32 %v2553_v29, %v14819_v15  ;;  %3173 = vmatprep.mubr.f32.mxu1 %v14819_v15  ;;  %v20684_v2 = vand.u32 4294901760, %v14817_v33  ;;  %3403 = vmatprep.subr.mxu1 %v14072_v45  ;;  %v21620_v29 = vld [vmem:[#allocation48_spill] sm:$0xff]  ;;  %v21635_v15 = vld [vmem:[#allocation65_spill] sm:$0xff] }
 0x38c   : > { %3175 = vmatmul.mubr.f32.gmra.mxu1 %v14812_v36  ;;  %v2751_v12 = vand.u32 4294901760, %v2750_v8  ;;  %v21624_v8 = vld [vmem:[#allocation53_spill] sm:$0xff]  ;;  %v21634_v36 = vld [vmem:[#allocation72_spill] sm:$0xff] }
 0x38d   : > { %3405 = vmatpush1.msra.mxu1 %v14074_v0  ;;  %3525 = vmatprep.mubr.f32.mxu1 %v2749_v56  ;;  %v20685_v43 = vand.u32 4294901760, %v14827_v18  ;;  %v2772_v53 = vsub.f32 %v14817_v33, %v20684_v2  ;;  %v21622_v56 = vld [vmem:[#allocation51_spill] sm:$0xff]  ;;  %v21631_v2 = vld [vmem:[#allocation60_spill] sm:$0xff] }
 0x38e   : > { %3407 = vmatprep.subr.mxu1 %v14097_v46  ;;  %2752 = vmatprep.mubr.f32.mxu0 %v2751_v12  ;;  %v21625_v12 = vld [vmem:[#allocation54_spill] sm:$0xff] }
 0x38f   : > { %3409 = vmatpush1.msra.mxu1 %v14108_v6  ;;  %v2766_v34 = vsub.f32 %v14827_v18, %v20685_v43  ;;  %2758 = vmatmul.mubr.f32.vlgmr.msra.gmra.mxu0 %v2757_v24  ;;  %v2773_v7 = vand.u32 4294901760, %v2772_v53  ;;  %v21626_v24 = vld [vmem:[#allocation55_spill] sm:$0xff]  ;;  %v21628_v53 = vld [vmem:[#allocation57_spill] sm:$0xff]  ;;  %v21632_v43 = vld [vmem:[#allocation70_spill] sm:$0xff] }
 0x390   : > { %3411 = vmatprep.subr.mxu1 %v14121_v49  ;;  %3186 = vmatpush1.msra.mxu0 %v14087_v26 }
 0x391   : > { %3413 = vmatpush1.msra.mxu1 %v14123_v58  ;;  %v2767_v5 = vand.u32 4294901760, %v2766_v34  ;;  %3189 = vmatprep.subr.mxu0 %v14090_v32  ;;  %v21627_v34 = vld [vmem:[#allocation56_spill] sm:$0xff] }
 0x392   : > { %3415 = vmatprep.subr.mxu1 %v14129_v42  ;;  %3192 = vmatpush1.msra.mxu0 %v14095_v41 }
 0x393   : > { %3417 = vmatpush1.msra.mxu1 %v21610_v38  ;;  %2768 = vmatprep.mubr.f32.mxu0 %v2767_v5  ;;  %v21629_v5 = vld [vmem:[#allocation58_spill] sm:$0xff] }
 0x394   : > { %3195 = vmatprep.subr.mxu0 %v21611_v55  ;;  %3419 = vmatprep.subr.mxu1 %v21612_v31 }
 0x395   : > { %2774 = vmatmul.mubr.f32.gmra.mxu0 %v2773_v7  ;;  %3421 = vmatpush1.msra.mxu1 %v14155_v30  ;;  %v21630_v7 = vld [vmem:[#allocation59_spill] sm:$0xff] }
 0x396   : > { %3198 = vmatpush1.msra.mxu0 %v21613_v23  ;;  %3375 = vmatprep.mubr.f32.mxu0 %v2748_v37  ;;  %v21621_v37 = vld [vmem:[#allocation49_spill] sm:$0xff] }
 0x397   : > { %3201 = vmatprep.subr.mxu0 %v21614_v44  ;;  %3423 = vmatprep.subr.mxu1 %v14186_v22 }
 0x398   : > { %3204 = vmatpush1.msra.mxu0 %v21615_v3  ;;  %3425 = vmatpush1.msra.mxu1 %v21616_v61 }
 0x399   : > { %3207 = vmatprep.subr.mxu0 %v21617_v4  ;;  %3427 = vmatprep.subr.mxu1 %v14230_v62 }
 0x39a   : > { %3210 = vmatpush1.msra.mxu0 %v21618_v51  ;;  %3429 = vmatpush1.msra.mxu1 %v14240_v14 }
 0x39b   : > { %3213 = vmatprep.subr.mxu0 %v21619_v63  ;;  %3431 = vmatprep.subr.mxu1 %v14242_v57 }
 0x39c   : > { %3216 = vmatpush1.msra.mxu0 %v21620_v29  ;;  %3433 = vmatpush1.msra.mxu1 %v14257_v39 }
 0x39d   : > { %3219 = vmatprep.subr.mxu0 %v21621_v37  ;;  %3435 = vmatprep.subr.mxu1 %v14267_v59 }
 0x39e   : > { %3222 = vmatpush1.msra.mxu0 %v21622_v56  ;;  %3437 = vmatpush1.msra.mxu1 %v14269_v54 }
 0x39f   : > { %3225 = vmatprep.subr.mxu0 %v21623_v11  ;;  %3439 = vmatprep.subr.mxu1 %v14306_v35 }
 0x3a0   : > { %3228 = vmatpush1.msra.mxu0 %v21624_v8  ;;  %3441 = vmatpush1.msra.mxu1 %v14333_v1 }
 0x3a1   : > { %3231 = vmatprep.subr.mxu0 %v21625_v12  ;;  %3443 = vmatprep.subr.mxu1 %v14341_v16 }
 0x3a2   : > { %3234 = vmatpush1.msra.mxu0 %v21626_v24  ;;  %3445 = vmatpush1.msra.mxu1 %v14351_v13 }
 0x3a3   : > { %3237 = vmatprep.subr.mxu0 %v21627_v34  ;;  %3447 = vmatprep.subr.mxu1 %v14357_v47 }
 0x3a4   : > { %3240 = vmatpush1.msra.mxu0 %v21628_v53  ;;  %3449 = vmatpush1.msra.mxu1 %v14367_v10 }
 0x3a5   : > { %3243 = vmatprep.subr.mxu0 %v21629_v5  ;;  %3451 = vmatprep.subr.mxu1 %v14379_v19 }
 0x3a6   : > { %3246 = vmatpush1.msra.mxu0 %v21630_v7  ;;  %3453 = vmatpush1.msra.mxu1 %v14389_v60  ;;  %v21637_v60 = vld [vmem:[#allocation67_spill] sm:$0xff] }
 0x3a7   : > { %3249 = vmatprep.subr.mxu0 %v21631_v2  ;;  %3455 = vmatprep.subr.mxu1 %v14403_v25  ;;  %v21638_v2 = vld [vmem:[#allocation79_spill] sm:$0xff]  ;;  %v21639_v25 = vld [vmem:[#allocation69_spill] sm:$0xff] }
 0x3a8   : > { %3252 = vmatpush1.msra.mxu0 %v14365_v9  ;;  %3457 = vmatpush1.msra.mxu1 %v14410_v17  ;;  %v21640_v9 = vld [vmem:[#allocation80_spill] sm:$0xff]  ;;  %v21641_v17 = vld [vmem:[#allocation71_spill] sm:$0xff] }
 0x3a9   : > { %3255 = vmatprep.subr.mxu0 %v14377_v48  ;;  %3459 = vmatprep.subr.mxu1 %v21632_v43  ;;  %v21642_v48 = vld [vmem:[#allocation82_spill] sm:$0xff]  ;;  %v21643_v43 = vld [vmem:[#allocation73_spill] sm:$0xff] }
 0x3aa   : > { %3258 = vmatpush1.msra.mxu0 %v21633_v50  ;;  %3461 = vmatpush2.msra.mxu1 %v21634_v36  ;;  %v21644_v50 = vld [vmem:[#allocation84_spill] sm:$0xff]  ;;  %v21645_v36 = vld [vmem:[#allocation75_spill] sm:$0xff] }
 0x3ab   : > { %3261 = vmatprep.subr.mxu0 %v21635_v15  ;;  %3463 = vmatprep.subr.mxu1 %v21636_v28  ;;  %v21646_v15 = vld [vmem:[#allocation86_spill] sm:$0xff]  ;;  %v21647_v28 = vld [vmem:[#allocation76_spill] sm:$0xff] }
 0x3ac   : > { %3264 = vmatpush1.msra.mxu0 %v21637_v60  ;;  %3465 = vmatpush2.msra.mxu1 %v21638_v2  ;;  %v21648_v60 = vld [vmem:[#allocation88_spill] sm:$0xff]  ;;  %v21649_v2 = vld [vmem:[#allocation77_spill] sm:$0xff] }
 0x3ad   : > { %3267 = vmatprep.subr.mxu0 %v21639_v25  ;;  %3467 = vmatprep.subr.mxu1 %v21640_v9  ;;  %v21650_v25 = vld [vmem:[#allocation90_spill] sm:$0xff] }
 0x3ae   : > { %3270 = vmatpush1.msra.mxu0 %v21641_v17  ;;  %3469 = vmatpush2.msra.mxu1 %v21642_v48  ;;  %v21651_v9 = vld [vmem:[#allocation78_spill] sm:$0xff]  ;;  %v21652_v17 = vld [vmem:[#allocation92_spill] sm:$0xff]  ;;  %v21653_v48 = vld [vmem:[#allocation81_spill] sm:$0xff] }
 0x3af   : > { %3273 = vmatprep.subr.mxu0 %v21643_v43  ;;  %3471 = vmatprep.subr.mxu1 %v21644_v50  ;;  %v21654_v43 = vld [vmem:[#allocation95_spill] sm:$0xff] }
 0x3b0   : > { %3276 = vmatpush1.msra.mxu0 %v21645_v36  ;;  %3473 = vmatpush2.msra.mxu1 %v21646_v15  ;;  %v21655_v50 = vld [vmem:[#allocation83_spill] sm:$0xff]  ;;  %v21656_v36 = vld [vmem:[#allocation96_spill] sm:$0xff]  ;;  %v21657_v15 = vld [vmem:[#allocation85_spill] sm:$0xff] }
 0x3b1   : > { %3279 = vmatprep.subr.mxu0 %v21647_v28  ;;  %3475 = vmatprep.subr.mxu1 %v21648_v60  ;;  %v21658_v28 = vld [vmem:[#allocation98_spill] sm:$0xff]  ;;  %v21659_v60 = vld [vmem:[#allocation87_spill] sm:$0xff] }
 0x3b2   : > { %3282 = vmatpush2.msra.mxu0 %v21649_v2  ;;  %3477 = vmatpush2.msra.mxu1 %v21650_v25  ;;  %v21660_v2 = vld [vmem:[#allocation100_spill] sm:$0xff]  ;;  %v21661_v25 = vld [vmem:[#allocation89_spill] sm:$0xff] }
 0x3b3   : > { %3285 = vmatprep.subr.mxu0 %v21651_v9  ;;  %3479 = vmatprep.subr.mxu1 %v21652_v17  ;;  %v21662_v9 = vld [vmem:[#allocation102_spill] sm:$0xff]  ;;  %v21663_v17 = vld [vmem:[#allocation91_spill] sm:$0xff] }
 0x3b4   : > { %3288 = vmatpush2.msra.mxu0 %v21653_v48  ;;  %3481 = vmatpush2.msra.mxu1 %v21654_v43  ;;  %v21664_v48 = vld [vmem:[#allocation104_spill] sm:$0xff]  ;;  %v21665_v43 = vld [vmem:[#allocation93_spill] sm:$0xff] }
 0x3b5   : > { %3291 = vmatprep.subr.mxu0 %v21655_v50  ;;  %3483 = vmatprep.subr.mxu1 %v21656_v36  ;;  %v21666_v50 = vld [vmem:[#allocation106_spill] sm:$0xff] }
 0x3b6   : > { %3294 = vmatpush2.msra.mxu0 %v21657_v15  ;;  %3485 = vmatpush2.msra.mxu1 %v21658_v28  ;;  %v21667_v36 = vld [vmem:[#allocation94_spill] sm:$0xff]  ;;  %v21668_v15 = vld [vmem:[#allocation108_spill] sm:$0xff]  ;;  %v21669_v28 = vld [vmem:[#allocation97_spill] sm:$0xff] }
 0x3b7   : > { %3297 = vmatprep.subr.mxu0 %v21659_v60  ;;  %3487 = vmatprep.subr.mxu1 %v21660_v2  ;;  %v21670_v60 = vld [vmem:[#allocation111_spill] sm:$0xff] }
 0x3b8   : > { %3300 = vmatpush2.msra.mxu0 %v21661_v25  ;;  %3489 = vmatpush2.msra.mxu1 %v21662_v9  ;;  %v21671_v2 = vld [vmem:[#allocation99_spill] sm:$0xff]  ;;  %v21672_v25 = vld [vmem:[#allocation112_spill] sm:$0xff]  ;;  %v21673_v9 = vld [vmem:[#allocation101_spill] sm:$0xff] }
 0x3b9   : > { %3303 = vmatprep.subr.mxu0 %v21663_v17  ;;  %3491 = vmatprep.subr.mxu1 %v21664_v48  ;;  %v21674_v17 = vld [vmem:[#allocation114_spill] sm:$0xff]  ;;  %v21675_v48 = vld [vmem:[#allocation103_spill] sm:$0xff] }
 0x3ba   : > { %3306 = vmatpush2.msra.mxu0 %v21665_v43  ;;  %3493 = vmatpush2.msra.mxu1 %v21666_v50  ;;  %v21676_v43 = vld [vmem:[#allocation116_spill] sm:$0xff]  ;;  %v21677_v50 = vld [vmem:[#allocation105_spill] sm:$0xff] }
 0x3bb   : > { %3309 = vmatprep.subr.mxu0 %v21667_v36  ;;  %3495 = vmatprep.subr.mxu1 %v21668_v15  ;;  %v21678_v36 = vld [vmem:[#allocation118_spill] sm:$0xff]  ;;  %v21679_v15 = vld [vmem:[#allocation107_spill] sm:$0xff] }
 0x3bc   : > { %3312 = vmatpush2.msra.mxu0 %v21669_v28  ;;  %3497 = vmatpush2.msra.mxu1 %v21670_v60  ;;  %v21680_v28 = vld [vmem:[#allocation120_spill] sm:$0xff]  ;;  %v21681_v60 = vld [vmem:[#allocation109_spill] sm:$0xff] }
 0x3bd   : > { %3315 = vmatprep.subr.mxu0 %v21671_v2  ;;  %3499 = vmatprep.subr.mxu1 %v21672_v25  ;;  %v21682_v2 = vld [vmem:[#allocation122_spill] sm:$0xff] }
 0x3be   : > { %3318 = vmatpush2.msra.mxu0 %v21673_v9  ;;  %3501 = vmatpush2.msra.mxu1 %v21674_v17  ;;  %v21683_v25 = vld [vmem:[#allocation110_spill] sm:$0xff]  ;;  %v21684_v9 = vld [vmem:[#allocation124_spill] sm:$0xff]  ;;  %v21685_v17 = vld [vmem:[#allocation113_spill] sm:$0xff] }
 0x3bf   : > { %3321 = vmatprep.subr.mxu0 %v21675_v48  ;;  %3503 = vmatprep.subr.mxu1 %v21676_v43  ;;  %v21686_v48 = vld [vmem:[#allocation127_spill] sm:$0xff] }
 0x3c0   : > { %3324 = vmatpush2.msra.mxu0 %v21677_v50  ;;  %3505 = vmatpush2.msra.mxu1 %v21678_v36  ;;  %v21687_v43 = vld [vmem:[#allocation115_spill] sm:$0xff]  ;;  %v21688_v50 = vld [vmem:[#allocation128_spill] sm:$0xff]  ;;  %v21689_v36 = vld [vmem:[#allocation117_spill] sm:$0xff] }
 0x3c1   : > { %3327 = vmatprep.subr.mxu0 %v21679_v15  ;;  %3507 = vmatprep.subr.mxu1 %v21680_v28  ;;  %v21690_v15 = vld [vmem:[#allocation130_spill] sm:$0xff]  ;;  %v21691_v28 = vld [vmem:[#allocation119_spill] sm:$0xff] }
 0x3c2   : > { %3330 = vmatpush2.msra.mxu0 %v21681_v60  ;;  %3509 = vmatpush2.msra.mxu1 %v21682_v2  ;;  %v21692_v60 = vld [vmem:[#allocation132_spill] sm:$0xff]  ;;  %v21693_v2 = vld [vmem:[#allocation121_spill] sm:$0xff] }
 0x3c3   : > { %3333 = vmatprep.subr.mxu0 %v21683_v25  ;;  %3511 = vmatprep.subr.mxu1 %v21684_v9  ;;  %v21694_v25 = vld [vmem:[#allocation134_spill] sm:$0xff]  ;;  %v21695_v9 = vld [vmem:[#allocation123_spill] sm:$0xff] }
 0x3c4   : > { %3336 = vmatpush2.msra.mxu0 %v21685_v17  ;;  %3513 = vmatpush2.msra.mxu1 %v21686_v48  ;;  %v21696_v48 = vand.u32 4294901760, %v14806_v20 }
 0x3c5   : > { %3339 = vmatprep.subr.mxu0 %v21687_v43  ;;  %3515 = vmatprep.subr.mxu1 %v21688_v50  ;;  %v21697_v43 = vld [vmem:[#allocation36_spill] sm:$0xff]  ;;  %v21698_v50 = vld [vmem:[#allocation125_spill] sm:$0xff] }
 0x3c6   : > { %3342 = vmatpush2.msra.mxu0 %v21689_v36  ;;  %3517 = vmatpush2.msra.mxu1 %v21690_v15  ;;  %v21699_v36 = vand.u32 4294901760, %v14827_v18 }
 0x3c7   : > { %3345 = vmatprep.subr.mxu0 %v21691_v28  ;;  %3519 = vmatprep.subr.mxu1 %v21692_v60  ;;  %v21700_v28 = vld [vmem:[#allocation126_spill] sm:$0xff] }
 0x3c8   : > { %3348 = vmatpush2.msra.mxu0 %v21693_v2  ;;  %3521 = vmatpush2.msra.mxu1 %v21694_v25  ;;  %v21701_v2 = vld [vmem:[#allocation129_spill] sm:$0xff] }
 0x3c9   : > { %3351 = vmatprep.subr.mxu0 %v21695_v9  ;;  %3529 = vmatmul.mubr.f32.vlgmr.msra.gmra.mxu1 %v21696_v48  ;;  %v21702_v9 = vld [vmem:[#allocation131_spill] sm:$0xff]  ;;  %v21703_v48 = vand.u32 4294901760, %v14817_v33 }
 0x3ca   : > { %3821 = vmatprep.subr.mxu1 %v21697_v43  ;;  %3354 = vmatpush2.msra.mxu0 %v21698_v50  ;;  %v21704_v43 = vld [vmem:[#allocation133_spill] sm:$0xff] }
 0x3cb   : > { %3537 = vmatprep.mubr.f32.mxu1 %v21699_v36  ;;  %3823 = vmatpush1.msra.mxu1 %v14060_v40  ;;  %v21705_v40 = vld [vmem:[#allocation135_spill] sm:$0xff] }
 0x3cc   : > { %3357 = vmatprep.subr.mxu0 %v21700_v28  ;;  %3825 = vmatprep.subr.mxu1 %v14062_v21  ;;  %v21706_v21 = vld [vmem:[#allocation136_spill] sm:$0xff] }
 0x3cd   : > { %3360 = vmatpush2.msra.mxu0 %v21701_v2  ;;  %3827 = vmatpush1.msra.mxu1 %v14067_v52  ;;  %v21707_v52 = vld [vmem:[#allocation40_spill] sm:$0xff] }
 0x3ce   : > { %3363 = vmatprep.subr.mxu0 %v21702_v9  ;;  %3541 = vmatmul.mubr.f32.gmra.mxu1 %v21703_v48  ;;  %v21708_v36 = vand.u32 4294901760, %v21707_v52  ;;  %v21754_v48 = vld [vmem:[#allocation82_spill] sm:$0xff]  ;;  %v21755_v52 = vld [vmem:[#allocation73_spill] sm:$0xff] }
 0x3cf   : > { %3829 = vmatprep.subr.mxu1 %v14072_v45  ;;  %3366 = vmatpush2.msra.mxu0 %v21704_v43  ;;  %v21709_v45 = vand.u32 4294901760, %v14087_v26  ;;  %v21713_v26 = vand.u32 4294901760, %v21613_v23 }
 0x3d0   : > { %3831 = vmatpush1.msra.mxu1 %v14074_v0  ;;  %3949 = vmatprep.mubr.f32.mxu1 %v14808_v27  ;;  %v21710_v0 = vand.u32 4294901760, %v14090_v32  ;;  %v21714_v32 = vand.u32 4294901760, %v21614_v44  ;;  %v1973_v44 = vld [vmem:[#allocation8 + $0x2f8] sm:$0xff] }
 0x3d1   : > { %3369 = vmatprep.subr.mxu0 %v21705_v40  ;;  %3833 = vmatprep.subr.mxu1 %v14097_v46  ;;  %v21711_v46 = vand.u32 4294901760, %v14095_v41  ;;  %v21715_v41 = vand.u32 4294901760, %v21615_v3  ;;  %v21742_v3 = vld [vmem:[#allocation72_spill] sm:$0xff] }
 0x3d2   : > { %3372 = vmatpush2.msra.mxu0 %v21706_v21  ;;  %3835 = vmatpush1.msra.mxu1 %v14108_v6  ;;  %v21712_v6 = vand.u32 4294901760, %v21611_v55 }
 0x3d3   : > { %3378 = vmatmul.mubr.f32.vlgmr.msra.gmra.mxu0 %v14806_v20  ;;  %3550 = vmatprep.subr.mxu0 %v21708_v36  ;;  %v21730_v20 = vld [vmem:[#allocation64_spill] sm:$0xff]  ;;  %v21756_v36 = vand.u32 4294901760, %v21755_v52 }
 0x3d4   : > { %3837 = vmatprep.subr.mxu1 %v14121_v49  ;;  %3385 = vmatprep.mubr.f32.mxu0 %v14827_v18  ;;  %v21716_v49 = vand.u32 4294901760, %v21617_v4  ;;  %v21792_v52 = vld [vmem:[#allocation100_spill] sm:$0xff] }
 0x3d5   : > { %3554 = vmatpush1.msra.mxu0 %v21709_v45  ;;  %3839 = vmatpush1.msra.mxu1 %v14123_v58  ;;  %v21717_v58 = vand.u32 4294901760, %v21618_v51  ;;  %v21745_v51 = vld [vmem:[#allocation74_spill] sm:$0xff] }
 0x3d6   : > { %3558 = vmatprep.subr.mxu0 %v21710_v0  ;;  %3841 = vmatprep.subr.mxu1 %v14129_v42  ;;  %v21718_v42 = vand.u32 4294901760, %v21619_v63  ;;  %v21746_v63 = vld [vmem:[#allocation67_spill] sm:$0xff]  ;;  %v1969_v0 = vld [vmem:[#allocation8 + $0x2d8] sm:$0xff] }
 0x3d7   : > { %3562 = vmatpush1.msra.mxu0 %v21711_v46  ;;  %3843 = vmatpush1.msra.mxu1 %v21610_v38  ;;  %v21736_v38 = vld [vmem:[#allocation68_spill] sm:$0xff] }
 0x3d8   : > { %3388 = vmatmul.mubr.f32.gmra.mxu0 %v14817_v33  ;;  %3566 = vmatprep.subr.mxu0 %v21712_v6  ;;  %v21733_v33 = vld [vmem:[#allocation66_spill] sm:$0xff]  ;;  %v21757_v46 = vld [vmem:[#allocation84_spill] sm:$0xff]  ;;  %v21758_v6 = vld [vmem:[#allocation75_spill] sm:$0xff] }
 0x3d9   : > { %3845 = vmatprep.subr.mxu1 %v21612_v31  ;;  %3570 = vmatpush1.msra.mxu0 %v21713_v26  ;;  %v21739_v31 = vld [vmem:[#allocation70_spill] sm:$0xff]  ;;  %v21759_v26 = vand.u32 4294901760, %v21758_v6 }
 0x3da   : > { %3804 = vmatprep.mubr.f32.mxu0 %v14808_v27  ;;  %3847 = vmatpush1.msra.mxu1 %v14155_v30  ;;  %v21720_v30 = vand.u32 4294901760, %v21621_v37  ;;  %v1972_v37 = vld [vmem:[#allocation8 + $0x2f0] sm:$0xff] }
 0x3db   : > { %3574 = vmatprep.subr.mxu0 %v21714_v32  ;;  %3849 = vmatprep.subr.mxu1 %v14186_v22  ;;  %v21719_v22 = vand.u32 4294901760, %v21620_v29  ;;  %v21747_v29 = vand.u32 4294901760, %v21746_v63  ;;  %v15076_v45 = vand.u32 4294901760, %v1972_v37  ;;  %v21783_v63 = vld [vmem:[#allocation85_spill] sm:$0xff] }
 0x3dc   : > { %3578 = vmatpush1.msra.mxu0 %v21715_v41  ;;  %3851 = vmatpush1.msra.mxu1 %v21616_v61  ;;  %v21743_v61 = vld [vmem:[#allocation65_spill] sm:$0xff]  ;;  %v1968_v41 = vld [vmem:[#allocation8 + $0x2d0] sm:$0xff] }
 0x3dd   : > { %3582 = vmatprep.subr.mxu0 %v21716_v49  ;;  %3853 = vmatprep.subr.mxu1 %v14230_v62  ;;  %v21721_v62 = vand.u32 4294901760, %v21622_v56  ;;  %v21744_v4 = vand.u32 4294901760, %v21743_v61  ;;  %v21748_v56 = vld [vmem:[#allocation79_spill] sm:$0xff]  ;;  %v21760_v49 = vld [vmem:[#allocation86_spill] sm:$0xff] }
 0x3de   : > { %3586 = vmatpush1.msra.mxu0 %v21717_v58  ;;  %3855 = vmatpush1.msra.mxu1 %v14240_v14  ;;  %v21722_v14 = vand.u32 4294901760, %v21623_v11  ;;  %v21749_v11 = vld [vmem:[#allocation69_spill] sm:$0xff]  ;;  %v21761_v58 = vld [vmem:[#allocation76_spill] sm:$0xff] }
 0x3df   : > { %3590 = vmatprep.subr.mxu0 %v21718_v42  ;;  %3857 = vmatprep.subr.mxu1 %v14242_v57  ;;  %v21723_v57 = vand.u32 4294901760, %v21624_v8  ;;  %v21750_v8 = vand.u32 4294901760, %v21749_v11  ;;  %v21762_v42 = vand.u32 4294901760, %v21761_v58  ;;  %v1962_v11 = vld [vmem:[#allocation8 + $0x2a0] sm:$0xff]  ;;  %v21797_v58 = vld [vmem:[#allocation102_spill] sm:$0xff] }
 0x3e0   : > { %3594 = vmatpush1.msra.mxu0 %v21719_v22  ;;  %3859 = vmatpush1.msra.mxu1 %v14257_v39  ;;  %v21724_v39 = vand.u32 4294901760, %v21625_v12  ;;  %v15068_v12 = vand.u32 4294901760, %v1973_v44 }
 0x3e1   : > { %3598 = vmatprep.subr.mxu0 %v21720_v30  ;;  %3861 = vmatprep.subr.mxu1 %v14267_v59  ;;  %v21725_v59 = vand.u32 4294901760, %v21626_v24  ;;  %v1971_v24 = vld [vmem:[#allocation8 + $0x2e8] sm:$0xff] }
 0x3e2   : > { %3602 = vmatpush1.msra.mxu0 %v21721_v62  ;;  %3863 = vmatpush1.msra.mxu1 %v14269_v54  ;;  %v21726_v54 = vand.u32 4294901760, %v21627_v34  ;;  %v21751_v34 = vld [vmem:[#allocation80_spill] sm:$0xff]  ;;  %v15081_v32 = vand.u32 4294901760, %v1971_v24  ;;  %v15087_v22 = vsub.f32 %v1973_v44, %v15068_v12  ;;  %v1967_v62 = vld [vmem:[#allocation8 + $0x2c8] sm:$0xff] }
 0x3e3   : > { %3606 = vmatprep.subr.mxu0 %v21722_v14  ;;  %3865 = vmatprep.subr.mxu1 %v14306_v35  ;;  %v21727_v35 = vand.u32 4294901760, %v21628_v53  ;;  %v21752_v53 = vld [vmem:[#allocation71_spill] sm:$0xff]  ;;  %v21764_v14 = vld [vmem:[#allocation88_spill] sm:$0xff] }
 0x3e4   : > { %3610 = vmatpush1.msra.mxu0 %v21723_v57  ;;  %3867 = vmatpush1.msra.mxu1 %v14333_v1  ;;  %v21728_v1 = vand.u32 4294901760, %v21629_v5  ;;  %v21753_v5 = vand.u32 4294901760, %v21752_v53  ;;  %21763 = vst [vmem:[#allocation43_spill] sm:$0xff] %v15087_v22  ;;  %v21765_v57 = vld [vmem:[#allocation77_spill] sm:$0xff]  ;;  %v20702_v44 = vand.u32 4294901760, %v15087_v22 }
 0x3e5   : > { %3614 = vmatprep.subr.mxu0 %v21724_v39  ;;  %3869 = vmatprep.subr.mxu1 %v14341_v16  ;;  %v21729_v16 = vand.u32 4294901760, %v21630_v7  ;;  %v1970_v7 = vld [vmem:[#allocation8 + $0x2e0] sm:$0xff]  ;;  %v21766_v39 = vand.u32 4294901760, %v21765_v57 }
 0x3e6   : > { %3618 = vmatpush1.msra.mxu0 %v21725_v59  ;;  %3871 = vmatpush1.msra.mxu1 %v14351_v13  ;;  %v21731_v13 = vld [vmem:[#allocation60_spill] sm:$0xff]  ;;  %v15089_v30 = vand.u32 4294901760, %v1970_v7  ;;  %v15094_v59 = vand.u32 4294901760, %v1969_v0 }
 0x3e7   : > { %3622 = vmatprep.subr.mxu0 %v21726_v54  ;;  %3873 = vmatprep.subr.mxu1 %v14357_v47  ;;  %v21732_v27 = vand.u32 4294901760, %v21731_v13  ;;  %v21734_v47 = vld [vmem:[#allocation61_spill] sm:$0xff]  ;;  %v15102_v13 = vand.u32 4294901760, %v1968_v41 }
 0x3e8   : > { %3626 = vmatpush1.msra.mxu0 %v21727_v35  ;;  %3875 = vmatpush1.msra.mxu1 %v14367_v10  ;;  %v21735_v18 = vand.u32 4294901760, %v21734_v47  ;;  %v21737_v10 = vld [vmem:[#allocation62_spill] sm:$0xff]  ;;  %v1966_v54 = vld [vmem:[#allocation8 + $0x2c0] sm:$0xff] }
 0x3e9   : > { %3630 = vmatprep.subr.mxu0 %v21728_v1  ;;  %3877 = vmatprep.subr.mxu1 %v14379_v19  ;;  %v21738_v55 = vand.u32 4294901760, %v21737_v10  ;;  %v21740_v19 = vld [vmem:[#allocation63_spill] sm:$0xff]  ;;  %v21767_v35 = vld [vmem:[#allocation90_spill] sm:$0xff]  ;;  %21771 = vst [vmem:[#allocation44_spill] sm:$0xff] %v15102_v13  ;;  %v21773_v47 = vld [vmem:[#allocation81_spill] sm:$0xff]  ;;  %v15110_v10 = vand.u32 4294901760, %v1967_v62 }
 0x3ea   : > { %3634 = vmatpush1.msra.mxu0 %v21729_v16  ;;  %3879 = vmatpush1.msra.mxu1 %v21730_v20  ;;  %v21741_v23 = vand.u32 4294901760, %v21740_v19  ;;  %v21768_v1 = vld [vmem:[#allocation78_spill] sm:$0xff]  ;;  %v15100_v20 = vsub.f32 %v1972_v37, %v15076_v45  ;;  %v21778_v19 = vld [vmem:[#allocation83_spill] sm:$0xff]  ;;  %v15119_v61 = vand.u32 4294901760, %v1966_v54  ;;  %v15125_v37 = vsub.f32 %v1969_v0, %v15094_v59 }
 0x3eb   : > { %3638 = vmatprep.subr.mxu0 %v21732_v27  ;;  %3881 = vmatprep.subr.mxu1 %v21733_v33  ;;  %v21769_v16 = vand.u32 4294901760, %v21768_v1  ;;  %v1965_v27 = vld [vmem:[#allocation8 + $0x2b8] sm:$0xff]  ;;  %21776 = vst [vmem:[#allocation41_spill] sm:$0xff] %v15110_v10  ;;  %v15143_v6 = vsub.f32 %v1967_v62, %v15110_v10  ;;  %v15159_v62 = vand.u32 4294901760, %v1962_v11 }
 0x3ec   : > { %3642 = vmatpush1.msra.mxu0 %v21735_v18  ;;  %3883 = vmatpush1.msra.mxu1 %v21736_v38  ;;  %21770 = vst [vmem:[#allocation33_spill] sm:$0xff] %v15100_v20  ;;  %v21772_v33 = vld [vmem:[#allocation92_spill] sm:$0xff]  ;;  %v21774_v18 = vand.u32 4294901760, %v21773_v47  ;;  %v15108_v38 = vsub.f32 %v1971_v24, %v15081_v32  ;;  %21781 = vst [vmem:[#allocation50_spill] sm:$0xff] %v15119_v61  ;;  %v21788_v24 = vld [vmem:[#allocation87_spill] sm:$0xff]  ;;  %v20701_v53 = vand.u32 4294901760, %v15100_v20 }
 0x3ed   : > { %3646 = vmatprep.subr.mxu0 %v21738_v55  ;;  %3885 = vmatprep.subr.mxu1 %v21739_v31  ;;  %v1964_v55 = vld [vmem:[#allocation8 + $0x2b0] sm:$0xff]  ;;  %21785 = vst [vmem:[#allocation45_spill] sm:$0xff] %v15125_v37  ;;  %21795 = vst [vmem:[#allocation49_spill] sm:$0xff] %v15143_v6  ;;  %v21802_v1 = vld [vmem:[#allocation104_spill] sm:$0xff]  ;;  %v20699_v47 = vand.u32 4294901760, %v15125_v37 }
 0x3ee   : > { %3650 = vmatpush1.msra.mxu0 %v21741_v23  ;;  %3887 = vmatpush2.msra.mxu1 %v21742_v3  ;;  %21775 = vst [vmem:[#allocation38_spill] sm:$0xff] %v15108_v38  ;;  %v21777_v31 = vld [vmem:[#allocation95_spill] sm:$0xff]  ;;  %v21779_v23 = vand.u32 4294901760, %v21778_v19  ;;  %v15117_v3 = vsub.f32 %v1970_v7, %v15089_v30  ;;  %v15136_v7 = vand.u32 4294901760, %v1964_v55  ;;  %21801 = vst [vmem:[#allocation53_spill] sm:$0xff] %v15159_v62  ;;  %v21807_v19 = vld [vmem:[#allocation106_spill] sm:$0xff] }
 0x3ef   : > { %3654 = vmatprep.subr.mxu0 %v21744_v4  ;;  %3889 = vmatprep.subr.mxu1 %v21745_v51  ;;  %v1963_v4 = vld [vmem:[#allocation8 + $0x2a8] sm:$0xff]  ;;  %v21782_v51 = vld [vmem:[#allocation96_spill] sm:$0xff] }
 0x3f0   : > { %3658 = vmatpush1.msra.mxu0 %v21747_v29  ;;  %3891 = vmatpush2.msra.mxu1 %v21748_v56  ;;  %21780 = vst [vmem:[#allocation42_spill] sm:$0xff] %v15117_v3  ;;  %v21784_v29 = vand.u32 4294901760, %v21783_v63  ;;  %v15127_v56 = vand.u32 4294901760, %v1965_v27  ;;  %21791 = vst [vmem:[#allocation48_spill] sm:$0xff] %v15136_v7  ;;  %v20698_v57 = vand.u32 4294901760, %v15117_v3 }
 0x3f1   : > { %3662 = vmatprep.subr.mxu0 %v21750_v8  ;;  %3893 = vmatprep.subr.mxu1 %v21751_v34  ;;  %v21787_v8 = vld [vmem:[#allocation98_spill] sm:$0xff]  ;;  %v21789_v34 = vand.u32 4294901760, %v21788_v24  ;;  %v21812_v24 = vld [vmem:[#allocation108_spill] sm:$0xff] }
 0x3f2   : > { %3666 = vmatpush1.msra.mxu0 %v21753_v5  ;;  %3895 = vmatpush2.msra.mxu1 %v21754_v48  ;;  %21786 = vst [vmem:[#allocation46_spill] sm:$0xff] %v15127_v56  ;;  %v15134_v5 = vsub.f32 %v1968_v41, %v15102_v13  ;;  %v1961_v48 = vld [vmem:[#allocation8 + $0x298] sm:$0xff]  ;;  %v21798_v41 = vld [vmem:[#allocation91_spill] sm:$0xff] }
 0x3f3   : > { %3670 = vmatprep.subr.mxu0 %v21756_v36  ;;  %3897 = vmatprep.subr.mxu1 %v21757_v46  ;;  %v21793_v36 = vld [vmem:[#allocation89_spill] sm:$0xff]  ;;  %v20700_v46 = vand.u32 4294901760, %v15108_v38 }
 0x3f4   : > { %3674 = vmatpush1.msra.mxu0 %v21759_v26  ;;  %3899 = vmatpush2.msra.mxu1 %v21760_v49  ;;  %21790 = vst [vmem:[#allocation47_spill] sm:$0xff] %v15134_v5  ;;  %v21794_v0 = vand.u32 4294901760, %v21793_v36  ;;  %v15145_v26 = vand.u32 4294901760, %v1963_v4  ;;  %v1960_v49 = vld [vmem:[#allocation8 + $0x290] sm:$0xff]  ;;  %v20703_v63 = vand.u32 4294901760, %v15134_v5 }
 0x3f5   : > { %3678 = vmatprep.subr.mxu0 %v21762_v42  ;;  %3901 = vmatprep.subr.mxu1 %v21764_v14  ;;  %v21799_v42 = vand.u32 4294901760, %v21798_v41  ;;  %v15153_v14 = vsub.f32 %v15087_v22, %v20702_v44  ;;  %v15190_v36 = vsub.f32 %v15108_v38, %v20700_v46  ;;  %v21817_v41 = vld [vmem:[#allocation111_spill] sm:$0xff]  ;;  %v21830_v46 = vld [vmem:[#allocation116_spill] sm:$0xff]  ;;  %v21859_v38 = vld [vmem:[#allocation117_spill] sm:$0xff] }
 0x3f6   : > { %3682 = vmatpush2.msra.mxu0 %v21766_v39  ;;  %3903 = vmatpush2.msra.mxu1 %v21767_v35  ;;  %21796 = vst [vmem:[#allocation51_spill] sm:$0xff] %v15145_v26  ;;  %v15157_v39 = vsub.f32 %v1966_v54, %v15119_v61  ;;  %v1959_v35 = vld [vmem:[#allocation8 + $0x288] sm:$0xff] }
 0x3f7   : > { %3686 = vmatprep.subr.mxu0 %v21769_v16  ;;  %3905 = vmatprep.subr.mxu1 %v21772_v33  ;;  %v21803_v16 = vld [vmem:[#allocation93_spill] sm:$0xff] }
 0x3f8   : > { %3690 = vmatpush2.msra.mxu0 %v21774_v18  ;;  %3907 = vmatpush2.msra.mxu1 %v21777_v31  ;;  %21800 = vst [vmem:[#allocation52_spill] sm:$0xff] %v15157_v39  ;;  %v21804_v33 = vand.u32 4294901760, %v21803_v16  ;;  %v15166_v18 = vsub.f32 %v1965_v27, %v15127_v56  ;;  %v15168_v31 = vand.u32 4294901760, %v1961_v48  ;;  %v1958_v27 = vld [vmem:[#allocation8 + $0x280] sm:$0xff]  ;;  %v21835_v16 = vld [vmem:[#allocation107_spill] sm:$0xff] }
 0x3f9   : > { %3694 = vmatprep.subr.mxu0 %v21779_v23  ;;  %3909 = vmatprep.subr.mxu1 %v21782_v51  ;;  %v21808_v23 = vld [vmem:[#allocation94_spill] sm:$0xff]  ;;  %v15176_v51 = vsub.f32 %v15100_v20, %v20701_v53  ;;  %v21831_v53 = vld [vmem:[#allocation105_spill] sm:$0xff]  ;;  %v21863_v20 = vld [vmem:[#allocation119_spill] sm:$0xff] }
 0x3fa   : > { %3698 = vmatpush2.msra.mxu0 %v21784_v29  ;;  %3911 = vmatpush2.msra.mxu1 %v21787_v8  ;;  %21805 = vst [vmem:[#allocation54_spill] sm:$0xff] %v15166_v18  ;;  %21806 = vst [vmem:[#allocation55_spill] sm:$0xff] %v15168_v31  ;;  %v21809_v54 = vand.u32 4294901760, %v21808_v23  ;;  %v15180_v29 = vsub.f32 %v1964_v55, %v15136_v7  ;;  %v15182_v8 = vand.u32 4294901760, %v1960_v49  ;;  %v15196_v55 = vand.u32 4294901760, %v1959_v35 }
 0x3fb   : > { %3702 = vmatprep.subr.mxu0 %v21789_v34  ;;  %3913 = vmatprep.subr.mxu1 %v21792_v52  ;;  %v21813_v34 = vld [vmem:[#allocation97_spill] sm:$0xff]  ;;  %v15209_v23 = vsub.f32 %v1962_v11, %v15159_v62  ;;  %v21826_v11 = vld [vmem:[#allocation114_spill] sm:$0xff]  ;;  %v21832_v44 = vand.u32 4294901760, %v21831_v53  ;;  %v21864_v22 = vand.u32 4294901760, %v21863_v20 }
 0x3fc   : > { %3706 = vmatpush2.msra.mxu0 %v21794_v0  ;;  %3915 = vmatpush2.msra.mxu1 %v21797_v58  ;;  %21810 = vst [vmem:[#allocation56_spill] sm:$0xff] %v15180_v29  ;;  %21811 = vst [vmem:[#allocation57_spill] sm:$0xff] %v15182_v8  ;;  %v21814_v52 = vand.u32 4294901760, %v21813_v34  ;;  %v20704_v0 = vand.u32 4294901760, %v15143_v6  ;;  %v15194_v58 = vsub.f32 %v1963_v4, %v15145_v26  ;;  %v21821_v4 = vld [vmem:[#allocation112_spill] sm:$0xff] }
 0x3fd   : > { %3710 = vmatprep.subr.mxu0 %v21799_v42  ;;  %3917 = vmatprep.subr.mxu1 %v21802_v1  ;;  %21816 = vst [vmem:[#allocation59_spill] sm:$0xff] %v15196_v55  ;;  %v21818_v42 = vld [vmem:[#allocation99_spill] sm:$0xff]  ;;  %21820 = vst [vmem:[#allocation113_spill] sm:$0xff] %v15209_v23  ;;  %v15217_v34 = vsub.f32 %v15125_v37, %v20699_v47  ;;  %v21839_v47 = vld [vmem:[#allocation109_spill] sm:$0xff] }
 0x3fe   : > { %3714 = vmatpush2.msra.mxu0 %v21804_v33  ;;  %3919 = vmatpush2.msra.mxu1 %v21807_v19  ;;  %21815 = vst [vmem:[#allocation58_spill] sm:$0xff] %v15194_v58  ;;  %v21819_v1 = vand.u32 4294901760, %v21818_v42  ;;  %v15205_v33 = vsub.f32 %v15117_v3, %v20698_v57  ;;  %v20705_v19 = vand.u32 4294901760, %v15157_v39  ;;  %v15223_v42 = vand.u32 4294901760, %v1958_v27  ;;  %v21827_v57 = vld [vmem:[#allocation103_spill] sm:$0xff] }
 0x3ff   : > { %3718 = vmatprep.subr.mxu0 %v21809_v54  ;;  %3921 = vmatprep.subr.mxu1 %v21812_v24  ;;  %v21822_v54 = vld [vmem:[#allocation101_spill] sm:$0xff]  ;;  %v21853_v37 = vld [vmem:[#allocation115_spill] sm:$0xff] }
 0x400   : > { %3722 = vmatpush2.msra.mxu0 %v21814_v52  ;;  %3923 = vmatpush2.msra.mxu1 %v21817_v41  ;;  %v21823_v24 = vand.u32 4294901760, %v21822_v54  ;;  %v15221_v41 = vsub.f32 %v1961_v48, %v15168_v31  ;;  %21825 = vst [vmem:[#allocation132_spill] sm:$0xff] %v15223_v42  ;;  %v15236_v48 = vsub.f32 %v1960_v49, %v15182_v8  ;;  %v1956_v54 = vld [vmem:[#allocation8 + $0x270] sm:$0xff]  ;;  %v21834_v49 = vld [vmem:[#allocation118_spill] sm:$0xff]  ;;  %v21840_v52 = vand.u32 4294901760, %v21839_v47 }
 0x401   : > { %3726 = vmatprep.subr.mxu0 %v21819_v1  ;;  %3925 = vmatprep.subr.mxu1 %v21821_v4  ;;  %v1957_v1 = vld [vmem:[#allocation8 + $0x278] sm:$0xff]  ;;  %v21828_v4 = vand.u32 4294901760, %v21827_v57  ;;  %v15258_v53 = vsub.f32 %v15157_v39, %v20705_v19  ;;  %v21843_v39 = vld [vmem:[#allocation122_spill] sm:$0xff]  ;;  %v21854_v3 = vand.u32 4294901760, %v21853_v37 }
 0x402   : > { %3730 = vmatpush2.msra.mxu0 %v21823_v24  ;;  %21824 = vst [vmem:[#allocation130_spill] sm:$0xff] %v15221_v41  ;;  %3927 = vmatpush2.msra.mxu1 %v21826_v11  ;;  %v15232_v24 = vsub.f32 %v15134_v5, %v20703_v63  ;;  %21829 = vst [vmem:[#allocation134_spill] sm:$0xff] %v15236_v48  ;;  %v15245_v11 = vsub.f32 %v15143_v6, %v20704_v0  ;;  %v15261_v57 = vand.u32 4294901760, %v1957_v1  ;;  %v1954_v0 = vld [vmem:[#allocation8 + $0x260] sm:$0xff]  ;;  %v21844_v6 = vld [vmem:[#allocation110_spill] sm:$0xff] }
 0x403   : > { %3734 = vmatprep.subr.mxu0 %v21828_v4  ;;  %3929 = vmatprep.subr.mxu1 %v21830_v46  ;;  %v15249_v63 = vsub.f32 %v1959_v35, %v15196_v55  ;;  %v21836_v46 = vand.u32 4294901760, %v21835_v16  ;;  %v1955_v4 = vld [vmem:[#allocation8 + $0x268] sm:$0xff]  ;;  %v21838_v35 = vld [vmem:[#allocation120_spill] sm:$0xff]  ;;  %v21849_v5 = vand.u32 4294901760, %v21685_v17  ;;  %v21861_v37 = vand.u32 4294901760, %v15221_v41 }
 0x404   : > { %3738 = vmatpush2.msra.mxu0 %v21832_v44  ;;  %3931 = vmatpush2.msra.mxu1 %v21834_v49  ;;  %21837 = vst [vmem:[#allocation125_spill] sm:$0xff] %v15261_v57  ;;  %v21841_v49 = vand.u32 4294901760, %v15166_v18  ;;  %v15274_v44 = vsub.f32 %v1958_v27, %v15223_v42  ;;  %v1953_v19 = vld [vmem:[#allocation8 + $0x258] sm:$0xff]  ;;  %v15298_v47 = vand.u32 4294901760, %v1955_v4  ;;  %v21891_v42 = vand.u32 4294901760, %v21701_v2 }
 0x405   : > { %21833 = vst [vmem:[#allocation36_spill] sm:$0xff] %v15249_v63  ;;  %3742 = vmatprep.subr.mxu0 %v21836_v46  ;;  %3933 = vmatprep.subr.mxu1 %v21838_v35  ;;  %v21845_v35 = vand.u32 4294901760, %v21844_v6  ;;  %v21848_v27 = vld [vmem:[#allocation124_spill] sm:$0xff]  ;;  %v15312_v6 = vand.u32 4294901760, %v1954_v0  ;;  %v15321_v17 = vsub.f32 %v15221_v41, %v21861_v37  ;;  %v21868_v41 = vld [vmem:[#allocation121_spill] sm:$0xff]  ;;  %v21870_v20 = vand.u32 4294901760, %v15249_v63 }
 0x406   : > { %3746 = vmatpush2.msra.mxu0 %v21840_v52  ;;  %v15270_v46 = vsub.f32 %v15166_v18, %v21841_v49  ;;  %21842 = vst [vmem:[#allocation126_spill] sm:$0xff] %v15274_v44  ;;  %3935 = vmatpush2.msra.mxu1 %v21843_v39  ;;  %v21846_v52 = vand.u32 4294901760, %v15180_v29  ;;  %v15286_v18 = vand.u32 4294901760, %v1956_v54  ;;  %v21850_v39 = vand.u32 4294901760, %v15194_v58  ;;  %21851 = vst [vmem:[#allocation131_spill] sm:$0xff] %v15298_v47  ;;  %v1952_v49 = vld [vmem:[#allocation8 + $0x250] sm:$0xff] }
 0x407   : > { %3750 = vmatprep.subr.mxu0 %v21845_v35  ;;  %3937 = vmatprep.subr.mxu1 %v21848_v27  ;;  %21857 = vst [vmem:[#allocation135_spill] sm:$0xff] %v15312_v6 }
 0x408   : > { %v15283_v16 = vsub.f32 %v15180_v29, %v21846_v52  ;;  %21847 = vst [vmem:[#allocation129_spill] sm:$0xff] %v15286_v18  ;;  %3754 = vmatpush2.msra.mxu0 %v21849_v5  ;;  %v15295_v35 = vsub.f32 %v15194_v58, %v21850_v39  ;;  %v21852_v29 = vld [vmem:[#allocation127_spill] sm:$0xff]  ;;  %v21855_v5 = vand.u32 4294901760, %v15209_v23  ;;  %v15310_v39 = vsub.f32 %v1957_v1, %v15261_v57  ;;  %v1951_v52 = vld [vmem:[#allocation8 + $0x248] sm:$0xff]  ;;  %v21858_v58 = vld [vmem:[#allocation128_spill] sm:$0xff] }
 0x409   : > { %3939 = vmatpush2.msra.mxu1 %v21852_v29  ;;  %3758 = vmatprep.subr.mxu0 %v21854_v3  ;;  %v21860_v29 = vand.u32 4294901760, %v21859_v38  ;;  %v1950_v1 = vld [vmem:[#allocation8 + $0x240] sm:$0xff]  ;;  %v15336_v37 = vsub.f32 %v1956_v54, %v15286_v18  ;;  %v15338_v3 = vand.u32 4294901760, %v1952_v49  ;;  %v15347_v38 = vsub.f32 %v15249_v63, %v21870_v20  ;;  %v21873_v18 = vld [vmem:[#allocation123_spill] sm:$0xff]  ;;  %v1947_v63 = vld [vmem:[#allocation8 + $0x228] sm:$0xff] }
 0x40a   : > { %v15307_v27 = vsub.f32 %v15209_v23, %v21855_v5  ;;  %21856 = vst [vmem:[#allocation133_spill] sm:$0xff] %v15310_v39  ;;  %3941 = vmatprep.subr.mxu1 %v21858_v58  ;;  %v15324_v23 = vand.u32 4294901760, %v1953_v19  ;;  %v21865_v58 = vand.u32 4294901760, %v15236_v48  ;;  %v1949_v5 = vld [vmem:[#allocation8 + $0x238] sm:$0xff]  ;;  %v15352_v54 = vand.u32 4294901760, %v1951_v52  ;;  %v21883_v57 = vld [vmem:[#allocation139_spill] sm:$0xff] }
 0x40b   : > { %3762 = vmatpush2.msra.mxu0 %v21860_v29  ;;  %3943 = vmatpush2.msra.mxu1 %v21690_v15  ;;  %21866 = vst [vmem:[#allocation40_spill] sm:$0xff] %v15336_v37  ;;  %21867 = vst [vmem:[#allocation64_spill] sm:$0xff] %v15338_v3  ;;  %v21869_v15 = vand.u32 4294901760, %v21868_v41  ;;  %v15362_v20 = vand.u32 4294901760, %v1950_v1 }
 0x40c   : > { %21862 = vst [vmem:[#allocation136_spill] sm:$0xff] %v15324_v23  ;;  %3766 = vmatprep.subr.mxu0 %v21864_v22  ;;  %v15333_v29 = vsub.f32 %v15236_v48, %v21865_v58  ;;  %3945 = vmatprep.subr.mxu1 %v21692_v60  ;;  %v15350_v58 = vsub.f32 %v1955_v4, %v15298_v47  ;;  %21872 = vst [vmem:[#allocation66_spill] sm:$0xff] %v15352_v54  ;;  %v1948_v48 = vld [vmem:[#allocation8 + $0x230] sm:$0xff]  ;;  %v21874_v60 = vand.u32 4294901760, %v21873_v18  ;;  %v21877_v4 = vld [vmem:[#allocation137_spill] sm:$0xff] }
 0x40d   : > { %3770 = vmatpush2.msra.mxu0 %v21869_v15  ;;  %3947 = vmatpush2.msra.mxu1 %v21694_v25  ;;  %v15360_v22 = vsub.f32 %v1954_v0, %v15312_v6  ;;  %21876 = vst [vmem:[#allocation68_spill] sm:$0xff] %v15362_v20  ;;  %v21878_v47 = vand.u32 4294901760, %v15153_v14  ;;  %v21879_v18 = vand.u32 4294901760, %v15274_v44  ;;  %v15374_v41 = vsub.f32 %v1953_v19, %v15324_v23  ;;  %v1946_v15 = vld [vmem:[#allocation8 + $0x220] sm:$0xff] }
 0x40e   : > { %21871 = vst [vmem:[#allocation60_spill] sm:$0xff] %v15350_v58  ;;  %3774 = vmatprep.subr.mxu0 %v21874_v60  ;;  %3951 = vmatmul.mubr.f32.vlgmr.msra.gmra.mxu1 %v21877_v4  ;;  %v15376_v0 = vand.u32 4294901760, %v1949_v5  ;;  %v21882_v6 = vand.u32 4294901760, %v21698_v50  ;;  %v15384_v25 = vsub.f32 %v1952_v49, %v15338_v3  ;;  %v21886_v19 = vand.u32 4294901760, %v15176_v51  ;;  %v1944_v49 = vld [vmem:[#allocation8 + $0x210] sm:$0xff]  ;;  %v1943_v50 = vld [vmem:[#allocation8 + $0x208] sm:$0xff] }
 0x40f   : > { %21875 = vst [vmem:[#allocation61_spill] sm:$0xff] %v15360_v22  ;;  %4131 = vmatprep.subr.mxu1 %v21878_v47  ;;  %v15371_v60 = vsub.f32 %v15274_v44, %v21879_v18  ;;  %21880 = vst [vmem:[#allocation62_spill] sm:$0xff] %v15374_v41  ;;  %3957 = vmatprep.mubr.f32.mxu1 %v21883_v57  ;;  %v15386_v18 = vand.u32 4294901760, %v1948_v48  ;;  %v1945_v44 = vld [vmem:[#allocation8 + $0x218] sm:$0xff]  ;;  %v21887_v23 = vand.u32 4294901760, %v21700_v28  ;;  %v15397_v47 = vand.u32 4294901760, %v1947_v63 }
 0x410   : > { %21881 = vst [vmem:[#allocation70_spill] sm:$0xff] %v15376_v0  ;;  %3778 = vmatpush2.msra.mxu0 %v21882_v6  ;;  %21884 = vst [vmem:[#allocation63_spill] sm:$0xff] %v15384_v25  ;;  %4137 = vmatpush1.msra.mxu1 %v21886_v19  ;;  %v15395_v14 = vsub.f32 %v1951_v52, %v15352_v54  ;;  %v21890_v3 = vand.u32 4294901760, %v15190_v36  ;;  %v21892_v51 = vand.u32 4294901760, %v15310_v39  ;;  %v15412_v52 = vand.u32 4294901760, %v1946_v15 }
 0x411   : > { %21885 = vst [vmem:[#allocation72_spill] sm:$0xff] %v15386_v18  ;;  %3782 = vmatprep.subr.mxu0 %v21887_v23  ;;  %21889 = vst [vmem:[#allocation74_spill] sm:$0xff] %v15397_v47  ;;  %v15410_v19 = vsub.f32 %v1950_v1, %v15362_v20  ;;  %v21895_v6 = vand.u32 4294901760, %v15205_v33  ;;  %v21896_v36 = vand.u32 4294901760, %v21702_v9  ;;  %v21899_v1 = vld [vmem:[#allocation138_spill] sm:$0xff]  ;;  %v21900_v23 = vand.u32 4294901760, %v15217_v34 }
 0x412   : > { %21888 = vst [vmem:[#allocation65_spill] sm:$0xff] %v15395_v14  ;;  %4143 = vmatprep.subr.mxu1 %v21890_v3  ;;  %3786 = vmatpush2.msra.mxu0 %v21891_v42  ;;  %v15406_v28 = vsub.f32 %v15310_v39, %v21892_v51  ;;  %21894 = vst [vmem:[#allocation79_spill] sm:$0xff] %v15412_v52  ;;  %v15421_v3 = vsub.f32 %v1949_v5, %v15376_v0  ;;  %v15423_v51 = vand.u32 4294901760, %v1945_v44  ;;  %v1942_v5 = vld [vmem:[#allocation8 + $0x200] sm:$0xff] }
 0x413   : > { %21893 = vst [vmem:[#allocation67_spill] sm:$0xff] %v15410_v19  ;;  %4149 = vmatpush1.msra.mxu1 %v21895_v6  ;;  %3790 = vmatprep.subr.mxu0 %v21896_v36  ;;  %v21901_v33 = vand.u32 4294901760, %v15336_v37  ;;  %v15435_v36 = vsub.f32 %v1948_v48, %v15386_v18  ;;  %v15437_v2 = vand.u32 4294901760, %v1944_v49  ;;  %v21904_v42 = vand.u32 4294901760, %v21704_v43 }
 0x414   : > { %21897 = vst [vmem:[#allocation69_spill] sm:$0xff] %v15421_v3  ;;  %21898 = vst [vmem:[#allocation80_spill] sm:$0xff] %v15423_v51  ;;  %3959 = vmatmul.mubr.f32.gmra.mxu1 %v21899_v1  ;;  %4155 = vmatprep.subr.mxu1 %v21900_v23  ;;  %v21905_v39 = vand.u32 4294901760, %v15232_v24  ;;  %v21906_v34 = vand.u32 4294901760, %v15350_v58  ;;  %v15450_v9 = vsub.f32 %v1947_v63, %v15397_v47  ;;  %v15452_v48 = vand.u32 4294901760, %v1943_v50 }
 0x415   : > { %v15431_v6 = vsub.f32 %v15336_v37, %v21901_v33  ;;  %21902 = vst [vmem:[#allocation71_spill] sm:$0xff] %v15435_v36  ;;  %21903 = vst [vmem:[#allocation82_spill] sm:$0xff] %v15437_v2  ;;  %3794 = vmatpush2.msra.mxu0 %v21904_v42  ;;  %v21909_v37 = vld [vmem:[#allocation22_spill] sm:$0xff]  ;;  %v21910_v43 = vand.u32 4294901760, %v21705_v40  ;;  %v15465_v33 = vsub.f32 %v1946_v15, %v15412_v52  ;;  %v21913_v63 = vand.u32 4294901760, %v15245_v11  ;;  %v2005_v15 = vld [vmem:[#allocation8 + $0x3f8] sm:$0xff] }
 0x416   : > { %4161 = vmatpush1.msra.mxu1 %v21905_v39  ;;  %v15446_v23 = vsub.f32 %v15350_v58, %v21906_v34  ;;  %21907 = vst [vmem:[#allocation73_spill] sm:$0xff] %v15450_v9  ;;  %21908 = vst [vmem:[#allocation84_spill] sm:$0xff] %v15452_v48  ;;  %4511 = vmatprep.mubr.f32.mxu1 %v21909_v37  ;;  %v21911_v39 = vand.u32 4294901760, %v15360_v22  ;;  %v21914_v37 = vand.u32 4294901760, %v21706_v21  ;;  %v21915_v40 = vand.u32 4294901760, %v15374_v41 }
 0x417   : > { %3798 = vmatprep.subr.mxu0 %v21910_v43  ;;  %21912 = vst [vmem:[#allocation75_spill] sm:$0xff] %v15465_v33  ;;  %4167 = vmatprep.subr.mxu1 %v21913_v63  ;;  %v20762_v24 = vand.u32 4294901760, %v15421_v3  ;;  %v15480_v34 = vand.u32 4294901760, %v1942_v5  ;;  %v21919_v11 = vand.u32 4294901760, %v15384_v25  ;;  %v15506_v21 = vsub.f32 %v1943_v50, %v15452_v48  ;;  %v2004_v63 = vld [vmem:[#allocation8 + $0x3f0] sm:$0xff] }
 0x418   : > { %v15461_v42 = vsub.f32 %v15360_v22, %v21911_v39  ;;  %3802 = vmatpush2.msra.mxu0 %v21914_v37  ;;  %v15474_v43 = vsub.f32 %v15374_v41, %v21915_v40  ;;  %v15478_v39 = vsub.f32 %v1945_v44, %v15423_v51  ;;  %v21918_v22 = vand.u32 4294901760, %v15258_v53 }
 0x419   : > { %21917 = vst [vmem:[#allocation76_spill] sm:$0xff] %v15480_v34  ;;  %3806 = vmatmul.mubr.f32.vlgmr.msra.gmra.mxu0 %v21877_v4  ;;  %v15489_v37 = vsub.f32 %v15384_v25, %v21919_v11  ;;  %v15493_v44 = vsub.f32 %v1944_v49, %v15437_v2  ;;  %3966 = vmatprep.subr.mxu0 %v15068_v12  ;;  %v21921_v40 = vand.u32 4294901760, %v15270_v46  ;;  %21923 = vst [vmem:[#allocation77_spill] sm:$0xff] %v15506_v21  ;;  %v2003_v11 = vld [vmem:[#allocation8 + $0x3e8] sm:$0xff] }
 0x41a   : > { %21916 = vst [vmem:[#allocation86_spill] sm:$0xff] %v15478_v39  ;;  %4173 = vmatpush1.msra.mxu1 %v21918_v22  ;;  %v21922_v22 = vand.u32 4294901760, %v15395_v14  ;;  %3812 = vmatprep.mubr.f32.mxu0 %v21883_v57  ;;  %v21924_v49 = vand.u32 4294901760, %v15410_v19  ;;  %v15517_v53 = vand.u32 4294901760, %v2005_v15  ;;  %v21926_v50 = vand.u32 4294901760, %v15283_v16 }
 0x41b   : > { %21920 = vst [vmem:[#allocation88_spill] sm:$0xff] %v15493_v44  ;;  %4179 = vmatprep.subr.mxu1 %v21921_v40  ;;  %3968 = vmatpush1.msra.mxu0 %v15076_v45  ;;  %v15526_v46 = vsub.f32 %v15421_v3, %v20762_v24  ;;  %v15542_v3 = vand.u32 4294901760, %v2004_v63  ;;  %v2000_v24 = vld [vmem:[#allocation8 + $0x3d0] sm:$0xff]  ;;  %v21934_v25 = vand.u32 4294901760, %v15321_v17  ;;  %v21941_v41 = vand.u32 4294901760, %v15333_v29 }
 0x41c   : > { %v15502_v4 = vsub.f32 %v15395_v14, %v21922_v22  ;;  %v15514_v40 = vsub.f32 %v15410_v19, %v21924_v49  ;;  %21925 = vst [vmem:[#allocation90_spill] sm:$0xff] %v15517_v53  ;;  %4185 = vmatpush1.msra.mxu1 %v21926_v50  ;;  %3970 = vmatprep.subr.mxu0 %v15081_v32  ;;  %v2002_v22 = vld [vmem:[#allocation8 + $0x3e0] sm:$0xff]  ;;  %v21928_v14 = vand.u32 4294901760, %v15295_v35  ;;  %v21929_v50 = vand.u32 4294901760, %v15435_v36  ;;  %v2001_v49 = vld [vmem:[#allocation8 + $0x3d8] sm:$0xff] }
 0x41d   : > { %v15530_v19 = vsub.f32 %v1942_v5, %v15480_v34  ;;  %3972 = vmatpush1.msra.mxu0 %v15089_v30  ;;  %21930 = vst [vmem:[#allocation92_spill] sm:$0xff] %v15542_v3  ;;  %v21931_v5 = vand.u32 4294901760, %v15307_v27  ;;  %v15568_v35 = vand.u32 4294901760, %v2002_v22 }
 0x41e   : > { %4191 = vmatprep.subr.mxu1 %v21928_v14  ;;  %v15539_v57 = vsub.f32 %v15435_v36, %v21929_v50  ;;  %3814 = vmatmul.mubr.f32.gmra.mxu0 %v21899_v1  ;;  %v21932_v14 = vand.u32 4294901760, %v15450_v9  ;;  %v15554_v36 = vand.u32 4294901760, %v2003_v11  ;;  %v21935_v1 = vand.u32 4294901760, %v15465_v33  ;;  %v1999_v50 = vld [vmem:[#allocation8 + $0x3c8] sm:$0xff] }
 0x41f   : > { %21927 = vst [vmem:[#allocation78_spill] sm:$0xff] %v15530_v19  ;;  %4197 = vmatpush1.msra.mxu1 %v21931_v5  ;;  %3974 = vmatprep.subr.mxu0 %v15094_v59  ;;  %21937 = vst [vmem:[#allocation83_spill] sm:$0xff] %v15568_v35  ;;  %v15615_v29 = vsub.f32 %v2002_v22, %v15568_v35 }
 0x420   : > { %v15551_v16 = vsub.f32 %v15450_v9, %v21932_v14  ;;  %21933 = vst [vmem:[#allocation81_spill] sm:$0xff] %v15554_v36  ;;  %4203 = vmatprep.subr.mxu1 %v21934_v25  ;;  %v15563_v5 = vsub.f32 %v15465_v33, %v21935_v1  ;;  %v15566_v14 = vsub.f32 %v2005_v15, %v15517_v53  ;;  %v21938_v9 = vld [vmem:[#allocation31_spill] sm:$0xff]  ;;  %v21939_v25 = vand.u32 4294901760, %v15478_v39  ;;  %v1998_v15 = vld [vmem:[#allocation8 + $0x3c0] sm:$0xff]  ;;  %v1997_v1 = vld [vmem:[#allocation8 + $0x3b8] sm:$0xff] }
 0x421   : > { %3976 = vmatpush1.msra.mxu0 %v15102_v13  ;;  %4098 = vmatprep.mubr.f32.mxu0 %v21938_v9  ;;  %v15579_v33 = vand.u32 4294901760, %v2001_v49  ;;  %v21942_v9 = vand.u32 4294901760, %v15493_v44  ;;  %v21945_v13 = vand.u32 4294901760, %v15347_v38  ;;  %21950 = vst [vmem:[#allocation89_spill] sm:$0xff] %v15615_v29  ;;  %v15631_v22 = vand.u32 4294901760, %v1997_v1  ;;  %v1994_v38 = vld [vmem:[#allocation8 + $0x3a0] sm:$0xff] }
 0x422   : > { %21936 = vst [vmem:[#allocation95_spill] sm:$0xff] %v15566_v14  ;;  %v15576_v27 = vsub.f32 %v15478_v39, %v21939_v25  ;;  %4209 = vmatpush1.msra.mxu1 %v21941_v41  ;;  %3978 = vmatprep.subr.mxu0 %v15110_v10  ;;  %v15591_v25 = vsub.f32 %v2004_v63, %v15542_v3  ;;  %v15593_v39 = vand.u32 4294901760, %v2000_v24  ;;  %v21946_v41 = vand.u32 4294901760, %v15506_v21 }
 0x423   : > { %21940 = vst [vmem:[#allocation96_spill] sm:$0xff] %v15579_v33  ;;  %v15588_v17 = vsub.f32 %v15493_v44, %v21942_v9  ;;  %4215 = vmatprep.subr.mxu1 %v21945_v13  ;;  %3980 = vmatpush1.msra.mxu0 %v15119_v61  ;;  %v15605_v9 = vsub.f32 %v2003_v11, %v15554_v36  ;;  %v15607_v63 = vand.u32 4294901760, %v1999_v50  ;;  %v1996_v44 = vld [vmem:[#allocation8 + $0x3b0] sm:$0xff]  ;;  %v21949_v10 = vand.u32 4294901760, %v15371_v60 }
 0x424   : > { %21943 = vst [vmem:[#allocation85_spill] sm:$0xff] %v15591_v25  ;;  %21944 = vst [vmem:[#allocation98_spill] sm:$0xff] %v15593_v39  ;;  %v15602_v58 = vsub.f32 %v15506_v21, %v21946_v41  ;;  %3982 = vmatprep.subr.mxu0 %v15127_v56  ;;  %v15617_v41 = vand.u32 4294901760, %v1998_v15  ;;  %v1995_v21 = vld [vmem:[#allocation8 + $0x3a8] sm:$0xff]  ;;  %v21952_v11 = vand.u32 4294901760, %v15406_v28  ;;  %v15629_v13 = vsub.f32 %v2001_v49, %v15579_v33 }
 0x425   : > { %21947 = vst [vmem:[#allocation87_spill] sm:$0xff] %v15605_v9  ;;  %21948 = vst [vmem:[#allocation100_spill] sm:$0xff] %v15607_v63  ;;  %4221 = vmatpush1.msra.mxu1 %v21949_v10  ;;  %3984 = vmatpush1.msra.mxu0 %v15136_v7  ;;  %v21953_v10 = vand.u32 4294901760, %v15530_v19  ;;  %v21956_v61 = vand.u32 4294901760, %v15431_v6  ;;  %v15639_v60 = vsub.f32 %v2000_v24, %v15593_v39  ;;  %v21959_v49 = vand.u32 4294901760, %v15446_v23 }
 0x426   : > { %21951 = vst [vmem:[#allocation102_spill] sm:$0xff] %v15617_v41  ;;  %4227 = vmatprep.subr.mxu1 %v21952_v11  ;;  %21954 = vst [vmem:[#allocation91_spill] sm:$0xff] %v15629_v13  ;;  %3986 = vmatprep.subr.mxu0 %v15145_v26  ;;  %v15649_v26 = vsub.f32 %v1999_v50, %v15607_v63  ;;  %v15651_v28 = vand.u32 4294901760, %v1995_v21  ;;  %v1992_v11 = vld [vmem:[#allocation8 + $0x390] sm:$0xff]  ;;  %v21962_v24 = vand.u32 4294901760, %v15461_v42  ;;  %v21963_v23 = vand.u32 4294901760, %v15566_v14 }
 0x427   : > { %v15626_v56 = vsub.f32 %v15530_v19, %v21953_v10  ;;  %21955 = vst [vmem:[#allocation104_spill] sm:$0xff] %v15631_v22  ;;  %4233 = vmatpush1.msra.mxu1 %v21956_v61  ;;  %21957 = vst [vmem:[#allocation93_spill] sm:$0xff] %v15639_v60  ;;  %v15641_v10 = vand.u32 4294901760, %v1996_v44  ;;  %v1993_v19 = vld [vmem:[#allocation8 + $0x398] sm:$0xff]  ;;  %3988 = vmatpush1.msra.mxu0 %v15159_v62  ;;  %v15663_v61 = vsub.f32 %v1998_v15, %v15617_v41  ;;  %v1991_v62 = vld [vmem:[#allocation8 + $0x388] sm:$0xff] }
 0x428   : > { %4239 = vmatprep.subr.mxu1 %v21959_v49  ;;  %21960 = vst [vmem:[#allocation94_spill] sm:$0xff] %v15649_v26  ;;  %21961 = vst [vmem:[#allocation108_spill] sm:$0xff] %v15651_v28  ;;  %3990 = vmatprep.subr.mxu0 %v15168_v31  ;;  %v15659_v49 = vsub.f32 %v15566_v14, %v21963_v23  ;;  %v15665_v50 = vand.u32 4294901760, %v1994_v38  ;;  %v21966_v7 = vand.u32 4294901760, %v15474_v43  ;;  %v15675_v14 = vand.u32 4294901760, %v1993_v19  ;;  %v21979_v31 = vld [vmem:[#allocation125_spill] sm:$0xff] }
 0x429   : > { %21958 = vst [vmem:[#allocation106_spill] sm:$0xff] %v15641_v10  ;;  %4245 = vmatpush1.msra.mxu1 %v21962_v24  ;;  %21964 = vst [vmem:[#allocation97_spill] sm:$0xff] %v15663_v61  ;;  %3992 = vmatpush1.msra.mxu0 %v15182_v8  ;;  %v15673_v23 = vsub.f32 %v1997_v1, %v15631_v22  ;;  %v21969_v15 = vand.u32 4294901760, %v15489_v37  ;;  %v21970_v6 = vand.u32 4294901760, %v15591_v25  ;;  %v15689_v24 = vand.u32 4294901760, %v1992_v11  ;;  %v1990_v1 = vld [vmem:[#allocation8 + $0x380] sm:$0xff] }
 0x42a   : > { %21965 = vst [vmem:[#allocation111_spill] sm:$0xff] %v15665_v50  ;;  %4251 = vmatprep.subr.mxu1 %v21966_v7  ;;  %21968 = vst [vmem:[#allocation112_spill] sm:$0xff] %v15675_v14  ;;  %3994 = vmatprep.subr.mxu0 %v15196_v55  ;;  %v15687_v42 = vsub.f32 %v1996_v44, %v15641_v10  ;;  %v21973_v8 = vand.u32 4294901760, %v15502_v4  ;;  %v21974_v37 = vld [vmem:[#allocation132_spill] sm:$0xff]  ;;  %v15701_v43 = vsub.f32 %v1995_v21, %v15651_v28 }
 0x42b   : > { %21967 = vst [vmem:[#allocation99_spill] sm:$0xff] %v15673_v23  ;;  %4257 = vmatpush1.msra.mxu1 %v21969_v15  ;;  %v15683_v7 = vsub.f32 %v15591_v25, %v21970_v6  ;;  %21972 = vst [vmem:[#allocation114_spill] sm:$0xff] %v15689_v24  ;;  %3996 = vmatpush1.msra.mxu0 %v21974_v37  ;;  %v21975_v15 = vand.u32 4294901760, %v15605_v9  ;;  %v15703_v44 = vand.u32 4294901760, %v1991_v62  ;;  %v21978_v25 = vand.u32 4294901760, %v15514_v40 }
 0x42c   : > { %21971 = vst [vmem:[#allocation101_spill] sm:$0xff] %v15687_v42  ;;  %4263 = vmatprep.subr.mxu1 %v21973_v8  ;;  %21976 = vst [vmem:[#allocation103_spill] sm:$0xff] %v15701_v43  ;;  %3998 = vmatprep.subr.mxu0 %v21979_v31  ;;  %v4322_v8 = vand.u32 4294901760, %v15659_v49  ;;  %v21980_v4 = vand.u32 4294901760, %v15615_v29  ;;  %v15716_v6 = vsub.f32 %v1994_v38, %v15665_v50  ;;  %v21982_v21 = vand.u32 4294901760, %v15526_v46  ;;  %v21988_v46 = vld [vmem:[#allocation131_spill] sm:$0xff] }
 0x42d   : > { %v15697_v55 = vsub.f32 %v15605_v9, %v21975_v15  ;;  %21977 = vst [vmem:[#allocation116_spill] sm:$0xff] %v15703_v44  ;;  %4269 = vmatpush1.msra.mxu1 %v21978_v25  ;;  %v21983_v9 = vld [vmem:[#allocation129_spill] sm:$0xff]  ;;  %v21984_v40 = vand.u32 4294901760, %v15629_v13  ;;  %v1989_v15 = vld [vmem:[#allocation8 + $0x378] sm:$0xff]  ;;  %v21987_v38 = vand.u32 4294901760, %v15539_v57  ;;  %v21992_v31 = vld [vmem:[#allocation135_spill] sm:$0xff] }
 0x42e   : > { %v15712_v37 = vsub.f32 %v15615_v29, %v21980_v4  ;;  %21981 = vst [vmem:[#allocation105_spill] sm:$0xff] %v15716_v6  ;;  %4275 = vmatprep.subr.mxu1 %v21982_v21  ;;  %4000 = vmatpush1.msra.mxu0 %v21983_v9  ;;  %v15728_v4 = vsub.f32 %v1993_v19, %v15675_v14  ;;  %v15730_v29 = vand.u32 4294901760, %v1990_v1  ;;  %v4328_v21 = vand.u32 4294901760, %v15683_v7  ;;  %v1988_v49 = vld [vmem:[#allocation8 + $0x370] sm:$0xff] }
 0x42f   : > { %v15724_v25 = vsub.f32 %v15629_v13, %v21984_v40  ;;  %4281 = vmatpush1.msra.mxu1 %v21987_v38  ;;  %4002 = vmatprep.subr.mxu0 %v21988_v46  ;;  %v21989_v9 = vand.u32 4294901760, %v15639_v60  ;;  %v15743_v19 = vsub.f32 %v1992_v11, %v15689_v24  ;;  %v21991_v13 = vand.u32 4294901760, %v15551_v16  ;;  %v21996_v16 = vld [vmem:[#allocation136_spill] sm:$0xff] }
 0x430   : > { %21985 = vst [vmem:[#allocation118_spill] sm:$0xff] %v15728_v4  ;;  %21986 = vst [vmem:[#allocation107_spill] sm:$0xff] %v15730_v29  ;;  %4004 = vmatpush1.msra.mxu0 %v21992_v31  ;;  %v4334_v57 = vand.u32 4294901760, %v15697_v55  ;;  %v21993_v38 = vand.u32 4294901760, %v15649_v26  ;;  %v21995_v11 = vand.u32 4294901760, %v15563_v5  ;;  %v21997_v55 = vand.u32 4294901760, %v15663_v61 }
 0x431   : > { %v15739_v40 = vsub.f32 %v15639_v60, %v21989_v9  ;;  %21990 = vst [vmem:[#allocation120_spill] sm:$0xff] %v15743_v19  ;;  %4287 = vmatprep.subr.mxu1 %v21991_v13  ;;  %v15756_v60 = vsub.f32 %v1991_v62, %v15703_v44  ;;  %4006 = vmatprep.subr.mxu0 %v21996_v16  ;;  %v4340_v13 = vand.u32 4294901760, %v15712_v37  ;;  %v1987_v9 = vld [vmem:[#allocation8 + $0x368] sm:$0xff]  ;;  %v21999_v62 = vand.u32 4294901760, %v15576_v27  ;;  %v22000_v46 = vld [vmem:[#allocation64_spill] sm:$0xff] }
 0x432   : > { %v15752_v7 = vsub.f32 %v15649_v26, %v21993_v38  ;;  %4293 = vmatpush1.msra.mxu1 %v21995_v11  ;;  %v15765_v31 = vsub.f32 %v15663_v61, %v21997_v55  ;;  %v15768_v26 = vand.u32 4294901760, %v1989_v15  ;;  %4008 = vmatpush1.msra.mxu0 %v22000_v46  ;;  %v4346_v5 = vand.u32 4294901760, %v15724_v25  ;;  %v1986_v38 = vld [vmem:[#allocation8 + $0x360] sm:$0xff]  ;;  %v1985_v55 = vld [vmem:[#allocation8 + $0x358] sm:$0xff] }
 0x433   : > { %21994 = vst [vmem:[#allocation109_spill] sm:$0xff] %v15756_v60  ;;  %4299 = vmatprep.subr.mxu1 %v21999_v62  ;;  %v22001_v11 = vand.u32 4294901760, %v15673_v23  ;;  %v15781_v61 = vsub.f32 %v1990_v1, %v15730_v29  ;;  %v22003_v16 = vand.u32 4294901760, %v15588_v17  ;;  %4010 = vmatprep.subr.mxu0 %v15352_v54  ;;  %v4352_v27 = vand.u32 4294901760, %v15739_v40 }
 0x434   : > { %21998 = vst [vmem:[#allocation122_spill] sm:$0xff] %v15768_v26  ;;  %v22004_v25 = vand.u32 4294901760, %v15687_v42  ;;  %v22006_v1 = vand.u32 4294901760, %v15602_v58  ;;  %4012 = vmatpush1.msra.mxu0 %v15362_v20  ;;  %v4358_v17 = vand.u32 4294901760, %v15752_v7  ;;  %v22009_v54 = vand.u32 4294901760, %v15626_v56 }
 0x435   : > { %v15777_v37 = vsub.f32 %v15673_v23, %v22001_v11  ;;  %22002 = vst [vmem:[#allocation110_spill] sm:$0xff] %v15781_v61  ;;  %4305 = vmatpush1.msra.mxu1 %v22003_v16  ;;  %v15793_v23 = vand.u32 4294901760, %v1988_v49  ;;  %v22007_v16 = vand.u32 4294901760, %v15701_v43  ;;  %v1984_v11 = vld [vmem:[#allocation8 + $0x350] sm:$0xff]  ;;  %4014 = vmatprep.subr.mxu0 %v15376_v0  ;;  %v4364_v58 = vand.u32 4294901760, %v15765_v31 }
 0x436   : > { %v15790_v62 = vsub.f32 %v15687_v42, %v22004_v25  ;;  %4311 = vmatprep.subr.mxu1 %v22006_v1  ;;  %v15805_v42 = vand.u32 4294901760, %v1987_v9  ;;  %v22010_v1 = vand.u32 4294901760, %v15716_v6  ;;  %v1983_v25 = vld [vmem:[#allocation8 + $0x348] sm:$0xff]  ;;  %4016 = vmatpush1.msra.mxu0 %v15386_v18  ;;  %v22017_v0 = vand.u32 4294901760, %v15756_v60 }
 0x437   : > { %22005 = vst [vmem:[#allocation124_spill] sm:$0xff] %v15793_v23  ;;  %v15802_v40 = vsub.f32 %v15701_v43, %v22007_v16  ;;  %4317 = vmatpush1.msra.mxu1 %v22009_v54  ;;  %v15817_v16 = vsub.f32 %v1989_v15, %v15768_v26  ;;  %v15819_v43 = vand.u32 4294901760, %v1986_v38  ;;  %v4370_v56 = vand.u32 4294901760, %v15777_v37  ;;  %4018 = vmatprep.subr.mxu0 %v15397_v47 }
 0x438   : > { %22008 = vst [vmem:[#allocation127_spill] sm:$0xff] %v15805_v42  ;;  %v15814_v7 = vsub.f32 %v15716_v6, %v22010_v1  ;;  %4323 = vmatprep.subr.mxu1 %v4322_v8  ;;  %v22013_v54 = vand.u32 4294901760, %v15728_v4  ;;  %v15829_v1 = vand.u32 4294901760, %v1985_v55  ;;  %v1982_v6 = vld [vmem:[#allocation8 + $0x340] sm:$0xff]  ;;  %v4376_v15 = vand.u32 4294901760, %v15790_v62  ;;  %4020 = vmatpush1.msra.mxu0 %v15412_v52 }
 0x439   : > { %22011 = vst [vmem:[#allocation115_spill] sm:$0xff] %v15817_v16  ;;  %22012 = vst [vmem:[#allocation128_spill] sm:$0xff] %v15819_v43  ;;  %4329 = vmatpush2.msra.mxu1 %v4328_v21  ;;  %v22015_v8 = vand.u32 4294901760, %v15743_v19  ;;  %v15839_v37 = vsub.f32 %v1988_v49, %v15793_v23  ;;  %v4382_v21 = vand.u32 4294901760, %v15802_v40  ;;  %v15848_v62 = vsub.f32 %v15756_v60, %v22017_v0  ;;  %v1980_v49 = vld [vmem:[#allocation8 + $0x330] sm:$0xff]  ;;  %v1979_v0 = vld [vmem:[#allocation8 + $0x328] sm:$0xff] }
 0x43a   : > { %v15826_v31 = vsub.f32 %v15728_v4, %v22013_v54  ;;  %22014 = vst [vmem:[#allocation117_spill] sm:$0xff] %v15829_v1  ;;  %v15841_v54 = vand.u32 4294901760, %v1984_v11  ;;  %v1981_v4 = vld [vmem:[#allocation8 + $0x338] sm:$0xff]  ;;  %4335 = vmatprep.subr.mxu1 %v4334_v57  ;;  %v15851_v47 = vsub.f32 %v1987_v9, %v15805_v42  ;;  %4022 = vmatprep.subr.mxu0 %v15423_v51  ;;  %v4388_v57 = vand.u32 4294901760, %v15814_v7 }
 0x43b   : > { %v15836_v18 = vsub.f32 %v15743_v19, %v22015_v8  ;;  %22016 = vst [vmem:[#allocation119_spill] sm:$0xff] %v15839_v37  ;;  %v15853_v8 = vand.u32 4294901760, %v1983_v25  ;;  %4341 = vmatpush2.msra.mxu1 %v4340_v13  ;;  %v15859_v40 = vsub.f32 %v1986_v38, %v15819_v43  ;;  %v15861_v52 = vand.u32 4294901760, %v1982_v6  ;;  %4024 = vmatpush1.msra.mxu0 %v15437_v2  ;;  %v1978_v38 = vld [vmem:[#allocation8 + $0x320] sm:$0xff] }
 0x43c   : > { %22018 = vst [vmem:[#allocation121_spill] sm:$0xff] %v15851_v47  ;;  %4347 = vmatprep.subr.mxu1 %v4346_v5  ;;  %v4394_v9 = vand.u32 4294901760, %v15826_v31  ;;  %v22020_v60 = vand.u32 4294901760, %v15781_v61  ;;  %v15871_v7 = vsub.f32 %v1985_v55, %v15829_v1  ;;  %v15873_v19 = vand.u32 4294901760, %v1981_v4  ;;  %4026 = vmatprep.subr.mxu0 %v15452_v48 }
 0x43d   : > { %22019 = vst [vmem:[#allocation123_spill] sm:$0xff] %v15853_v8  ;;  %4353 = vmatpush2.msra.mxu1 %v4352_v27  ;;  %v4400_v5 = vand.u32 4294901760, %v15836_v18  ;;  %v15879_v31 = vsub.f32 %v1984_v11, %v15841_v54  ;;  %v15881_v51 = vand.u32 4294901760, %v1980_v49  ;;  %4028 = vmatpush1.msra.mxu0 %v15480_v34  ;;  %v4406_v55 = vand.u32 4294901760, %v15848_v62  ;;  %v1976_v18 = vld [vmem:[#allocation8 + $0x310] sm:$0xff] }
 0x43e   : > { %v15868_v13 = vsub.f32 %v15781_v61, %v22020_v60  ;;  %22021 = vst [vmem:[#allocation137_spill] sm:$0xff] %v15871_v7  ;;  %v1977_v60 = vld [vmem:[#allocation8 + $0x318] sm:$0xff]  ;;  %4359 = vmatprep.subr.mxu1 %v4358_v17  ;;  %v15887_v27 = vsub.f32 %v1983_v25, %v15853_v8  ;;  %v15889_v48 = vand.u32 4294901760, %v1979_v0  ;;  %4030 = vmatprep.subr.mxu0 %v15517_v53  ;;  %v22023_v11 = vand.u32 4294901760, %v15817_v16  ;;  %v1975_v61 = vld [vmem:[#allocation8 + $0x308] sm:$0xff] }
 0x43f   : > { %4365 = vmatpush2.msra.mxu1 %v4364_v58  ;;  %v15897_v34 = vsub.f32 %v1982_v6, %v15861_v52  ;;  %v15899_v62 = vand.u32 4294901760, %v1978_v38  ;;  %4032 = vmatpush2.msra.mxu0 %v15542_v3  ;;  %v15905_v53 = vsub.f32 %v1981_v4, %v15873_v19  ;;  %v15907_v20 = vand.u32 4294901760, %v1977_v60 }
 0x440   : > { %22022 = vst [vmem:[#allocation139_spill] sm:$0xff] %v15887_v27  ;;  %v4417_v2 = vsub.f32 %v15817_v16, %v22023_v11  ;;  %4371 = vmatprep.subr.mxu1 %v4370_v56  ;;  %v4412_v25 = vand.u32 4294901760, %v15868_v13  ;;  %v1974_v11 = vld [vmem:[#allocation8 + $0x300] sm:$0xff]  ;;  %4034 = vmatprep.subr.mxu0 %v15554_v36  ;;  %v22025_v6 = vand.u32 4294901760, %v15839_v37  ;;  %v15915_v16 = vsub.f32 %v1980_v49, %v15881_v51 }
 0x441   : > { %22024 = vst [vmem:[#allocation138_spill] sm:$0xff] %v15907_v20  ;;  %4377 = vmatpush2.msra.mxu1 %v4376_v15  ;;  %v15917_v13 = vand.u32 4294901760, %v1976_v18  ;;  %4036 = vmatpush2.msra.mxu0 %v15568_v35  ;;  %v22027_v4 = vand.u32 4294901760, %v15851_v47  ;;  %v15925_v36 = vsub.f32 %v1979_v0, %v15889_v48  ;;  %v22029_v49 = vand.u32 4294901760, %v15859_v40 }
 0x442   : > { %v4423_v17 = vsub.f32 %v15839_v37, %v22025_v6  ;;  %4383 = vmatprep.subr.mxu1 %v4382_v21  ;;  %v15927_v6 = vand.u32 4294901760, %v1975_v61  ;;  %4038 = vmatprep.subr.mxu0 %v15579_v33  ;;  %v15935_v37 = vsub.f32 %v1978_v38, %v15899_v62  ;;  %v4418_v0 = vand.u32 4294901760, %v4417_v2 }
 0x443   : > { %22026 = vst [vmem:[#allocation140_spill] sm:$0xff] %v15917_v13  ;;  %v4429_v15 = vsub.f32 %v15851_v47, %v22027_v4  ;;  %4389 = vmatpush2.msra.mxu1 %v4388_v57  ;;  %v4435_v21 = vsub.f32 %v15859_v40, %v22029_v49  ;;  %v15937_v4 = vand.u32 4294901760, %v1974_v11  ;;  %4040 = vmatpush2.msra.mxu0 %v15593_v39  ;;  %v22030_v58 = vand.u32 4294901760, %v15871_v7 }
 0x444   : > { %22028 = vst [vmem:[#allocation141_spill] sm:$0xff] %v15927_v6  ;;  %4395 = vmatprep.subr.mxu1 %v4394_v9  ;;  %v15945_v33 = vsub.f32 %v1977_v60, %v15907_v20  ;;  %4042 = vmatprep.subr.mxu0 %v15607_v63  ;;  %v4424_v38 = vand.u32 4294901760, %v4423_v17  ;;  %v22031_v49 = vand.u32 4294901760, %v15879_v31  ;;  %v15953_v2 = vsub.f32 %v1976_v18, %v15917_v13 }
 0x445   : > { %v4441_v57 = vsub.f32 %v15871_v7, %v22030_v58  ;;  %4401 = vmatpush2.msra.mxu1 %v4400_v5  ;;  %4044 = vmatpush2.msra.mxu0 %v15617_v41  ;;  %v4430_v58 = vand.u32 4294901760, %v4429_v15  ;;  %v22032_v60 = vand.u32 4294901760, %v15887_v27  ;;  %v15961_v17 = vsub.f32 %v1975_v61, %v15927_v6 }
 0x446   : > { %v4447_v9 = vsub.f32 %v15879_v31, %v22031_v49  ;;  %4407 = vmatprep.subr.mxu1 %v4406_v55  ;;  %4046 = vmatprep.subr.mxu0 %v15631_v22  ;;  %v4436_v49 = vand.u32 4294901760, %v4435_v21  ;;  %v22033_v18 = vand.u32 4294901760, %v15897_v34  ;;  %v15969_v15 = vsub.f32 %v1974_v11, %v15937_v4 }
 0x447   : > { %v4453_v5 = vsub.f32 %v15887_v27, %v22032_v60  ;;  %4413 = vmatpush2.msra.mxu1 %v4412_v25  ;;  %4048 = vmatpush2.msra.mxu0 %v15641_v10  ;;  %v4442_v60 = vand.u32 4294901760, %v4441_v57  ;;  %v22034_v61 = vand.u32 4294901760, %v15905_v53  ;;  %v22036_v57 = vand.u32 4294901760, %v15925_v36 }
 0x448   : > { %v4459_v55 = vsub.f32 %v15897_v34, %v22033_v18  ;;  %4419 = vmatprep.subr.mxu1 %v4418_v0  ;;  %4050 = vmatprep.subr.mxu0 %v15651_v28  ;;  %v4448_v21 = vand.u32 4294901760, %v4447_v9  ;;  %v22035_v18 = vand.u32 4294901760, %v15915_v16  ;;  %v22037_v9 = vand.u32 4294901760, %v15935_v37 }
 0x449   : > { %v4465_v25 = vsub.f32 %v15905_v53, %v22034_v61  ;;  %4425 = vmatpush2.msra.mxu1 %v4424_v38  ;;  %4052 = vmatpush2.msra.mxu0 %v15665_v50  ;;  %v4454_v0 = vand.u32 4294901760, %v4453_v5  ;;  %v4477_v61 = vsub.f32 %v15925_v36, %v22036_v57  ;;  %v20869_v11 = vand.u32 4294901760, %v15969_v15 }
 0x44a   : > { %v4471_v56 = vsub.f32 %v15915_v16, %v22035_v18  ;;  %4431 = vmatprep.subr.mxu1 %v4430_v58  ;;  %4054 = vmatprep.subr.mxu0 %v15675_v14  ;;  %v4460_v38 = vand.u32 4294901760, %v4459_v55  ;;  %v4483_v18 = vsub.f32 %v15935_v37, %v22037_v9  ;;  %v22038_v5 = vand.u32 4294901760, %v15945_v33 }
 0x44b   : > { %4437 = vmatpush2.msra.mxu1 %v4436_v49  ;;  %4056 = vmatpush2.msra.mxu0 %v15689_v24  ;;  %v4466_v58 = vand.u32 4294901760, %v4465_v25  ;;  %v22039_v55 = vand.u32 4294901760, %v15953_v2  ;;  %v4478_v9 = vand.u32 4294901760, %v4477_v61 }
 0x44c   : > { %4443 = vmatprep.subr.mxu1 %v4442_v60  ;;  %v4489_v57 = vsub.f32 %v15945_v33, %v22038_v5  ;;  %4058 = vmatprep.subr.mxu0 %v15703_v44  ;;  %v4472_v49 = vand.u32 4294901760, %v4471_v56  ;;  %v22040_v60 = vand.u32 4294901760, %v15961_v17  ;;  %v4484_v5 = vand.u32 4294901760, %v4483_v18  ;;  %v3168_v18 = vpop.f32.mrf.mxu1 }
 0x44d   : > { %4449 = vmatpush2.msra.mxu1 %v4448_v21  ;;  %v4495_v47 = vsub.f32 %v15953_v2, %v22039_v55  ;;  %4060 = vmatpush2.msra.mxu0 %v15730_v29  ;;  %v4507_v56 = vsub.f32 %v15969_v15, %v20869_v11  ;;  %v22054_v11 = vld [vmem:[#allocation33_spill] sm:$0xff] }
 0x44e   : > { %4455 = vmatprep.subr.mxu1 %v4454_v0  ;;  %v4501_v25 = vsub.f32 %v15961_v17, %v22040_v60  ;;  %4062 = vmatprep.subr.mxu0 %v15768_v26  ;;  %v4490_v21 = vand.u32 4294901760, %v4489_v57 }
 0x44f   : > { %4461 = vmatpush2.msra.mxu1 %v4460_v38  ;;  %4064 = vmatpush2.msra.mxu0 %v15793_v23  ;;  %v4496_v0 = vand.u32 4294901760, %v4495_v47  ;;  %v4508_v38 = vand.u32 4294901760, %v4507_v56  ;;  %v16015_v47 = vpop.f32.mrf.mxu1  ;;  %v22045_v56 = vld [vmem:[#allocation24_spill] sm:$0xff] }
 0x450   : > { %4467 = vmatprep.subr.mxu1 %v4466_v58  ;;  %4066 = vmatprep.subr.mxu0 %v15805_v42  ;;  %v4502_v61 = vand.u32 4294901760, %v4501_v25  ;;  %v2759_v58 = vpop.f32.mrf.mxu0  ;;  %22041 = vst [vmem:[#allocation142_spill] sm:$0xff] %v16015_v47  ;;  %v22055_v47 = vld [vmem:[#allocation48_spill] sm:$0xff] }
 0x451   : > { %4473 = vmatpush2.msra.mxu1 %v4472_v49  ;;  %4068 = vmatpush2.msra.mxu0 %v15819_v43  ;;  %v16017_v57 = vadd.f32 %v3168_v18, %v2759_v58  ;;  %v22042_v49 = vld [vmem:[#allocation21_spill] sm:$0xff]  ;;  %v3176_v60 = vpop.f32.mrf.mxu1  ;;  %v22050_v18 = vld [vmem:[#allocation32_spill] sm:$0xff]  ;;  %v22051_v58 = vld [vmem:[#allocation43_spill] sm:$0xff] }
 0x452   : > { %4479 = vmatprep.subr.mxu1 %v4478_v9  ;;  %4070 = vmatprep.subr.mxu0 %v15829_v1  ;;  %v16021_v55 = vpop.f32.mrf.mxu0  ;;  %v22044_v9 = vld [vmem:[#allocation27_spill] sm:$0xff] }
 0x453   : > { %4485 = vmatpush2.msra.mxu1 %v4484_v5  ;;  %4072 = vmatpush2.msra.mxu0 %v15841_v54  ;;  %22043 = vst [vmem:[#allocation143_spill] sm:$0xff] %v16021_v55  ;;  %v22056_v55 = vld [vmem:[#allocation38_spill] sm:$0xff] }
 0x454   : > { %4491 = vmatprep.subr.mxu1 %v4490_v21  ;;  %4074 = vmatprep.subr.mxu0 %v15853_v8  ;;  %v22046_v21 = vld [vmem:[#allocation44_spill] sm:$0xff] }
 0x455   : > { %4497 = vmatpush2.msra.mxu1 %v4496_v0  ;;  %4076 = vmatpush2.msra.mxu0 %v15861_v52  ;;  %v2775_v25 = vpop.f32.mrf.mxu0  ;;  %v22047_v0 = vld [vmem:[#allocation30_spill] sm:$0xff] }
 0x456   : > { %4503 = vmatprep.subr.mxu1 %v4502_v61  ;;  %4078 = vmatprep.subr.mxu0 %v15873_v19  ;;  %v16031_v5 = vadd.f32 %v3176_v60, %v2775_v25  ;;  %v22048_v61 = vld [vmem:[#allocation41_spill] sm:$0xff]  ;;  %v22052_v60 = vld [vmem:[#allocation46_spill] sm:$0xff] }
 0x457   : > { %4509 = vmatpush2.msra.mxu1 %v4508_v38  ;;  %4080 = vmatpush2.msra.mxu0 %v15881_v51  ;;  %v22049_v38 = vld [vmem:[#allocation50_spill] sm:$0xff]  ;;  %v22053_v25 = vld [vmem:[#allocation37_spill] sm:$0xff] }
 0x458   : > { %4513 = vmatmul.mubr.f32.vlgmr.msra.gmra.mxu1 %v22042_v49  ;;  %4741 = vmatprep.subr.mxu1 %v15068_v12  ;;  %v22060_v49 = vld [vmem:[#allocation39_spill] sm:$0xff] }
 0x459   : > { %4519 = vmatprep.mubr.f32.mxu1 %v22044_v9  ;;  %4743 = vmatpush1.msra.mxu1 %v15076_v45  ;;  %v22059_v9 = vld [vmem:[#allocation53_spill] sm:$0xff] }
 0x45a   : > { %4082 = vmatprep.subr.mxu0 %v15889_v48  ;;  %4745 = vmatprep.subr.mxu1 %v15081_v32 }
 0x45b   : > { %4084 = vmatpush2.msra.mxu0 %v15899_v62  ;;  %4747 = vmatpush1.msra.mxu1 %v15089_v30 }
 0x45c   : > { %4086 = vmatprep.subr.mxu0 %v15907_v20  ;;  %4521 = vmatmul.mubr.f32.gmra.mxu1 %v22045_v56  ;;  %v22058_v56 = vld [vmem:[#allocation42_spill] sm:$0xff] }
 0x45d   : > { %4749 = vmatprep.subr.mxu1 %v15094_v59  ;;  %4088 = vmatpush2.msra.mxu0 %v15917_v13 }
 0x45e   : > { %4751 = vmatpush1.msra.mxu1 %v22046_v21  ;;  %4871 = vmatprep.mubr.f32.mxu1 %v22047_v0  ;;  %v22057_v0 = vld [vmem:[#allocation51_spill] sm:$0xff] }
 0x45f   : > { %4090 = vmatprep.subr.mxu0 %v15927_v6  ;;  %4753 = vmatprep.subr.mxu1 %v22048_v61 }
 0x460   : > { %4092 = vmatpush2.msra.mxu0 %v15937_v4  ;;  %4755 = vmatpush1.msra.mxu1 %v22049_v38 }
 0x461   : > { %4104 = vmatmul.mubr.f32.vlgmr.msra.gmra.mxu0 %v22050_v18  ;;  %4529 = vmatprep.subr.mxu0 %v22051_v58  ;;  %v22061_v18 = vld [vmem:[#allocation45_spill] sm:$0xff]  ;;  %v22062_v58 = vld [vmem:[#allocation55_spill] sm:$0xff] }
 0x462   : > { %4757 = vmatprep.subr.mxu1 %v22052_v60  ;;  %4114 = vmatprep.mubr.f32.mxu0 %v22053_v25  ;;  %v22063_v60 = vld [vmem:[#allocation47_spill] sm:$0xff] }
 0x463   : > { %4532 = vmatpush1.msra.mxu0 %v22054_v11  ;;  %4759 = vmatpush1.msra.mxu1 %v22055_v47  ;;  %v22064_v25 = vld [vmem:[#allocation23_spill] sm:$0xff]  ;;  %v22065_v11 = vld [vmem:[#allocation57_spill] sm:$0xff] }
 0x464   : > { %4535 = vmatprep.subr.mxu0 %v22056_v55  ;;  %4761 = vmatprep.subr.mxu1 %v22057_v0  ;;  %v22066_v47 = vld [vmem:[#allocation49_spill] sm:$0xff]  ;;  %v22067_v55 = vld [vmem:[#allocation59_spill] sm:$0xff]  ;;  %v22068_v0 = vld [vmem:[#allocation52_spill] sm:$0xff] }
 0x465   : > { %4538 = vmatpush1.msra.mxu0 %v22058_v56  ;;  %4763 = vmatpush1.msra.mxu1 %v22059_v9  ;;  %v22069_v56 = vld [vmem:[#allocation132_spill] sm:$0xff]  ;;  %v22070_v9 = vld [vmem:[#allocation54_spill] sm:$0xff] }
 0x466   : > { %4120 = vmatmul.mubr.f32.gmra.mxu0 %v22060_v49  ;;  %4541 = vmatprep.subr.mxu0 %v22061_v18  ;;  %v22071_v49 = vld [vmem:[#allocation125_spill] sm:$0xff]  ;;  %v22072_v18 = vld [vmem:[#allocation56_spill] sm:$0xff] }
 0x467   : > { %4765 = vmatprep.subr.mxu1 %v22062_v58  ;;  %4544 = vmatpush1.msra.mxu0 %v22063_v60  ;;  %v22073_v58 = vld [vmem:[#allocation129_spill] sm:$0xff]  ;;  %v22074_v60 = vld [vmem:[#allocation58_spill] sm:$0xff] }
 0x468   : > { %4721 = vmatprep.mubr.f32.mxu0 %v22064_v25  ;;  %4767 = vmatpush1.msra.mxu1 %v22065_v11  ;;  %v22075_v25 = vld [vmem:[#allocation131_spill] sm:$0xff]  ;;  %v22076_v11 = vld [vmem:[#allocation113_spill] sm:$0xff] }
 0x469   : > { %4547 = vmatprep.subr.mxu0 %v22066_v47  ;;  %4769 = vmatprep.subr.mxu1 %v22067_v55  ;;  %v22077_v47 = vld [vmem:[#allocation135_spill] sm:$0xff]  ;;  %v22078_v55 = vld [vmem:[#allocation130_spill] sm:$0xff] }
 0x46a   : > { %4550 = vmatpush1.msra.mxu0 %v22068_v0  ;;  %4771 = vmatpush1.msra.mxu1 %v22069_v56  ;;  %v22079_v0 = vld [vmem:[#allocation136_spill] sm:$0xff]  ;;  %v22080_v56 = vld [vmem:[#allocation134_spill] sm:$0xff] }
 0x46b   : > { %4553 = vmatprep.subr.mxu0 %v22070_v9  ;;  %4773 = vmatprep.subr.mxu1 %v22071_v49  ;;  %v22081_v49 = vld [vmem:[#allocation36_spill] sm:$0xff] }
 0x46c   : > { %4556 = vmatpush1.msra.mxu0 %v22072_v18  ;;  %4775 = vmatpush1.msra.mxu1 %v22073_v58  ;;  %v22082_v18 = vld [vmem:[#allocation66_spill] sm:$0xff] }
 0x46d   : > { %4559 = vmatprep.subr.mxu0 %v22074_v60  ;;  %4777 = vmatprep.subr.mxu1 %v22075_v25  ;;  %v22083_v58 = vld [vmem:[#allocation126_spill] sm:$0xff]  ;;  %v22084_v60 = vld [vmem:[#allocation68_spill] sm:$0xff]  ;;  %v22085_v25 = vld [vmem:[#allocation133_spill] sm:$0xff] }
 0x46e   : > { %4562 = vmatpush1.msra.mxu0 %v22076_v11  ;;  %4779 = vmatpush1.msra.mxu1 %v22077_v47  ;;  %v22086_v11 = vld [vmem:[#allocation70_spill] sm:$0xff]  ;;  %v22087_v47 = vld [vmem:[#allocation40_spill] sm:$0xff] }
 0x46f   : > { %4565 = vmatprep.subr.mxu0 %v22078_v55  ;;  %4781 = vmatprep.subr.mxu1 %v22079_v0  ;;  %v22088_v55 = vld [vmem:[#allocation72_spill] sm:$0xff] }
 0x470   : > { %4568 = vmatpush1.msra.mxu0 %v22080_v56  ;;  %4783 = vmatpush1.msra.mxu1 %v22000_v46  ;;  %v22089_v0 = vld [vmem:[#allocation60_spill] sm:$0xff]  ;;  %v22090_v56 = vld [vmem:[#allocation74_spill] sm:$0xff]  ;;  %v22091_v46 = vld [vmem:[#allocation61_spill] sm:$0xff] }
 0x471   : > { %4571 = vmatprep.subr.mxu0 %v22081_v49  ;;  %4785 = vmatprep.subr.mxu1 %v22082_v18  ;;  %v22092_v49 = vld [vmem:[#allocation79_spill] sm:$0xff]  ;;  %v22093_v18 = vld [vmem:[#allocation62_spill] sm:$0xff] }
 0x472   : > { %4574 = vmatpush1.msra.mxu0 %v22083_v58  ;;  %4787 = vmatpush1.msra.mxu1 %v22084_v60  ;;  %v22094_v58 = vld [vmem:[#allocation80_spill] sm:$0xff]  ;;  %v22095_v60 = vld [vmem:[#allocation63_spill] sm:$0xff] }
 0x473   : > { %4577 = vmatprep.subr.mxu0 %v22085_v25  ;;  %4789 = vmatprep.subr.mxu1 %v22086_v11  ;;  %v22096_v25 = vld [vmem:[#allocation82_spill] sm:$0xff]  ;;  %v22097_v11 = vld [vmem:[#allocation65_spill] sm:$0xff] }
 0x474   : > { %4580 = vmatpush1.msra.mxu0 %v22087_v47  ;;  %4791 = vmatpush1.msra.mxu1 %v22088_v55  ;;  %v22098_v47 = vld [vmem:[#allocation84_spill] sm:$0xff]  ;;  %v22099_v55 = vld [vmem:[#allocation67_spill] sm:$0xff] }
 0x475   : > { %4583 = vmatprep.subr.mxu0 %v22089_v0  ;;  %4793 = vmatprep.subr.mxu1 %v22090_v56  ;;  %v22100_v0 = vld [vmem:[#allocation76_spill] sm:$0xff]  ;;  %v22101_v56 = vld [vmem:[#allocation69_spill] sm:$0xff] }
 0x476   : > { %4586 = vmatpush1.msra.mxu0 %v22091_v46  ;;  %4795 = vmatpush1.msra.mxu1 %v22092_v49  ;;  %v22102_v46 = vld [vmem:[#allocation90_spill] sm:$0xff]  ;;  %v22103_v49 = vld [vmem:[#allocation71_spill] sm:$0xff] }
 0x477   : > { %4589 = vmatprep.subr.mxu0 %v22093_v18  ;;  %4797 = vmatprep.subr.mxu1 %v22094_v58  ;;  %v22104_v58 = vld [vmem:[#allocation73_spill] sm:$0xff] }
 0x478   : > { %4592 = vmatpush1.msra.mxu0 %v22095_v60  ;;  %4799 = vmatpush1.msra.mxu1 %v22096_v25  ;;  %v22105_v60 = vld [vmem:[#allocation81_spill] sm:$0xff]  ;;  %v22106_v25 = vld [vmem:[#allocation75_spill] sm:$0xff] }
 0x479   : > { %4595 = vmatprep.subr.mxu0 %v22097_v11  ;;  %4801 = vmatprep.subr.mxu1 %v22098_v47  ;;  %v22107_v47 = vld [vmem:[#allocation86_spill] sm:$0xff] }
 0x47a   : > { %4598 = vmatpush1.msra.mxu0 %v22099_v55  ;;  %4803 = vmatpush1.msra.mxu1 %v22100_v0  ;;  %v22108_v55 = vld [vmem:[#allocation96_spill] sm:$0xff] }
 0x47b   : > { %4601 = vmatprep.subr.mxu0 %v22101_v56  ;;  %4805 = vmatprep.subr.mxu1 %v22102_v46  ;;  %v22109_v0 = vld [vmem:[#allocation88_spill] sm:$0xff]  ;;  %v22110_v46 = vld [vmem:[#allocation77_spill] sm:$0xff] }
 0x47c   : > { %4604 = vmatpush1.msra.mxu0 %v22103_v49  ;;  %4807 = vmatpush2.msra.mxu1 %v15542_v3  ;;  %v22111_v3 = vld [vmem:[#allocation78_spill] sm:$0xff] }
 0x47d   : > { %4607 = vmatprep.subr.mxu0 %v22104_v58  ;;  %4809 = vmatprep.subr.mxu1 %v22105_v60  ;;  %v22112_v60 = vld [vmem:[#allocation95_spill] sm:$0xff] }
 0x47e   : > { %4610 = vmatpush1.msra.mxu0 %v22106_v25  ;;  %4811 = vmatpush2.msra.mxu1 %v15568_v35  ;;  %v22113_v35 = vld [vmem:[#allocation85_spill] sm:$0xff] }
 0x47f   : > { %4613 = vmatprep.subr.mxu0 %v22107_v47  ;;  %4813 = vmatprep.subr.mxu1 %v22108_v55  ;;  %v22114_v55 = vld [vmem:[#allocation87_spill] sm:$0xff] }
 0x480   : > { %4616 = vmatpush1.msra.mxu0 %v22109_v0  ;;  %4815 = vmatpush2.msra.mxu1 %v15593_v39  ;;  %v22115_v39 = vld [vmem:[#allocation89_spill] sm:$0xff] }
 0x481   : > { %4619 = vmatprep.subr.mxu0 %v22110_v46  ;;  %4817 = vmatprep.subr.mxu1 %v15607_v63  ;;  %v22116_v63 = vld [vmem:[#allocation91_spill] sm:$0xff] }
 0x482   : > { %4622 = vmatpush1.msra.mxu0 %v22111_v3  ;;  %4819 = vmatpush2.msra.mxu1 %v15617_v41  ;;  %v22117_v41 = vld [vmem:[#allocation93_spill] sm:$0xff] }
 0x483   : > { %4625 = vmatprep.subr.mxu0 %v22112_v60  ;;  %4821 = vmatprep.subr.mxu1 %v15631_v22  ;;  %v22118_v22 = vld [vmem:[#allocation94_spill] sm:$0xff] }
 0x484   : > { %4628 = vmatpush2.msra.mxu0 %v22113_v35  ;;  %4823 = vmatpush2.msra.mxu1 %v15641_v10  ;;  %v22119_v10 = vld [vmem:[#allocation97_spill] sm:$0xff] }
 0x485   : > { %4631 = vmatprep.subr.mxu0 %v22114_v55  ;;  %4825 = vmatprep.subr.mxu1 %v15651_v28  ;;  %v22120_v28 = vld [vmem:[#allocation99_spill] sm:$0xff] }
 0x486   : > { %4634 = vmatpush2.msra.mxu0 %v22115_v39  ;;  %4827 = vmatpush2.msra.mxu1 %v15665_v50  ;;  %v22121_v50 = vld [vmem:[#allocation101_spill] sm:$0xff] }
 0x487   : > { %4637 = vmatprep.subr.mxu0 %v22116_v63  ;;  %4829 = vmatprep.subr.mxu1 %v15675_v14  ;;  %v22122_v14 = vld [vmem:[#allocation103_spill] sm:$0xff] }
 0x488   : > { %4640 = vmatpush2.msra.mxu0 %v22117_v41  ;;  %4831 = vmatpush2.msra.mxu1 %v15689_v24  ;;  %v22123_v24 = vld [vmem:[#allocation105_spill] sm:$0xff] }
 0x489   : > { %4643 = vmatprep.subr.mxu0 %v22118_v22  ;;  %4833 = vmatprep.subr.mxu1 %v15703_v44  ;;  %v22124_v44 = vld [vmem:[#allocation118_spill] sm:$0xff] }
 0x48a   : > { %4646 = vmatpush2.msra.mxu0 %v22119_v10  ;;  %4835 = vmatpush2.msra.mxu1 %v15730_v29  ;;  %v22125_v29 = vld [vmem:[#allocation120_spill] sm:$0xff] }
 0x48b   : > { %4649 = vmatprep.subr.mxu0 %v22120_v28  ;;  %4837 = vmatprep.subr.mxu1 %v15768_v26  ;;  %v22126_v26 = vld [vmem:[#allocation109_spill] sm:$0xff] }
 0x48c   : > { %4652 = vmatpush2.msra.mxu0 %v22121_v50  ;;  %4839 = vmatpush2.msra.mxu1 %v15793_v23  ;;  %v22127_v23 = vld [vmem:[#allocation110_spill] sm:$0xff] }
 0x48d   : > { %4655 = vmatprep.subr.mxu0 %v22122_v14  ;;  %4841 = vmatprep.subr.mxu1 %v15805_v42  ;;  %v22128_v42 = vld [vmem:[#allocation115_spill] sm:$0xff] }
 0x48e   : > { %4658 = vmatpush2.msra.mxu0 %v22123_v24  ;;  %4843 = vmatpush2.msra.mxu1 %v15819_v43  ;;  %v22129_v43 = vld [vmem:[#allocation119_spill] sm:$0xff] }
 0x48f   : > { %4661 = vmatprep.subr.mxu0 %v22124_v44  ;;  %4845 = vmatprep.subr.mxu1 %v15829_v1  ;;  %v22130_v1 = vld [vmem:[#allocation121_spill] sm:$0xff] }
 0x490   : > { %4664 = vmatpush2.msra.mxu0 %v22125_v29  ;;  %4847 = vmatpush2.msra.mxu1 %v15841_v54  ;;  %v16147_v29 = vpop.f32.mrf.mxu1 }
 0x491   : > { %4667 = vmatprep.subr.mxu0 %v22126_v26  ;;  %4849 = vmatprep.subr.mxu1 %v15853_v8  ;;  %22131 = vst [vmem:[#allocation44_spill] sm:$0xff] %v16147_v29  ;;  %v16151_v8 = vpop.f32.mrf.mxu0 }
 0x492   : > { %4670 = vmatpush2.msra.mxu0 %v22127_v23  ;;  %4851 = vmatpush2.msra.mxu1 %v15861_v52  ;;  %22132 = vst [vmem:[#allocation41_spill] sm:$0xff] %v16151_v8 }
 0x493   : > { %4673 = vmatprep.subr.mxu0 %v22128_v42  ;;  %4853 = vmatprep.subr.mxu1 %v15873_v19  ;;  %v3379_v29 = vpop.f32.mrf.mxu0 }
 0x494   : > { %4676 = vmatpush2.msra.mxu0 %v22129_v43  ;;  %4855 = vmatpush2.msra.mxu1 %v15881_v51  ;;  %v3530_v43 = vpop.f32.mrf.mxu1  ;;  %v3380_v8 = vadd.f32 %v3379_v29, %v16017_v57 }
 0x495   : > { %4679 = vmatprep.subr.mxu0 %v22130_v1  ;;  %4857 = vmatprep.subr.mxu1 %v15889_v48 }
 0x496   : > { %4682 = vmatpush2.msra.mxu0 %v15859_v40  ;;  %4859 = vmatpush2.msra.mxu1 %v15899_v62 }
 0x497   : > { %4685 = vmatprep.subr.mxu0 %v15871_v7  ;;  %4861 = vmatprep.subr.mxu1 %v15907_v20  ;;  %v16164_v7 = vpop.f32.mrf.mxu0  ;;  %v22134_v20 = vld [vmem:[#allocation34_spill] sm:$0xff] }
 0x498   : > { %4688 = vmatpush2.msra.mxu0 %v15879_v31  ;;  %4863 = vmatpush2.msra.mxu1 %v15917_v13  ;;  %22133 = vst [vmem:[#allocation50_spill] sm:$0xff] %v16164_v7  ;;  %v16168_v13 = vpop.f32.mrf.mxu1  ;;  %v22149_v7 = vld [vmem:[#allocation51_spill] sm:$0xff] }
 0x499   : > { %4691 = vmatprep.subr.mxu0 %v15887_v27  ;;  %4865 = vmatprep.subr.mxu1 %v15927_v6  ;;  %22135 = vst [vmem:[#allocation54_spill] sm:$0xff] %v16168_v13  ;;  %v16170_v27 = vadd.f32 %v3530_v43, %v3380_v8  ;;  %v22136_v6 = vld [vmem:[#allocation35_spill] sm:$0xff]  ;;  %v3389_v29 = vpop.f32.mrf.mxu0  ;;  %v22137_v43 = vld [vmem:[#allocation29_spill] sm:$0xff]  ;;  %v22147_v13 = vld [vmem:[#allocation38_spill] sm:$0xff] }
 0x49a   : > { %4694 = vmatpush2.msra.mxu0 %v15897_v34  ;;  %4867 = vmatpush2.msra.mxu1 %v15937_v4  ;;  %v3390_v57 = vadd.f32 %v3389_v29, %v16031_v5  ;;  %v22142_v5 = vld [vmem:[#allocation46_spill] sm:$0xff]  ;;  %v22143_v29 = vld [vmem:[#allocation28_spill] sm:$0xff] }
 0x49b   : > { %4697 = vmatprep.subr.mxu0 %v15905_v53  ;;  %4875 = vmatmul.mubr.f32.vlgmr.msra.gmra.mxu1 %v22134_v20 }
 0x49c   : > { %5167 = vmatprep.subr.mxu1 %v15068_v12  ;;  %4700 = vmatpush2.msra.mxu0 %v15915_v16  ;;  %v3542_v12 = vpop.f32.mrf.mxu1 }
 0x49d   : > { %4883 = vmatprep.mubr.f32.mxu1 %v22136_v6  ;;  %5169 = vmatpush1.msra.mxu1 %v15076_v45  ;;  %v16183_v8 = vadd.f32 %v3542_v12, %v3390_v57  ;;  %v22138_v45 = vld [vmem:[#allocation22_spill] sm:$0xff]  ;;  %v22146_v12 = vld [vmem:[#allocation48_spill] sm:$0xff]  ;;  %v22156_v6 = vld [vmem:[#allocation55_spill] sm:$0xff] }
 0x49e   : > { %4703 = vmatprep.subr.mxu0 %v15925_v36  ;;  %5171 = vmatprep.subr.mxu1 %v15081_v32  ;;  %v22139_v32 = vld [vmem:[#allocation25_spill] sm:$0xff] }
 0x49f   : > { %4706 = vmatpush2.msra.mxu0 %v15935_v37  ;;  %5173 = vmatpush1.msra.mxu1 %v15089_v30  ;;  %v22140_v30 = vld [vmem:[#allocation43_spill] sm:$0xff] }
 0x4a0   : > { %4709 = vmatprep.subr.mxu0 %v15945_v33  ;;  %4887 = vmatmul.mubr.f32.gmra.mxu1 %v22137_v43  ;;  %v22152_v43 = vld [vmem:[#allocation53_spill] sm:$0xff] }
 0x4a1   : > { %5175 = vmatprep.subr.mxu1 %v15094_v59  ;;  %4712 = vmatpush2.msra.mxu0 %v15953_v2  ;;  %v22141_v59 = vand.u32 4294901760, %v22140_v30  ;;  %v22153_v30 = vld [vmem:[#allocation26_spill] sm:$0xff] }
 0x4a2   : > { %5177 = vmatpush1.msra.mxu1 %v22046_v21  ;;  %5295 = vmatprep.mubr.f32.mxu1 %v22138_v45  ;;  %v22144_v21 = vld [vmem:[#allocation33_spill] sm:$0xff] }
 0x4a3   : > { %4715 = vmatprep.subr.mxu0 %v15961_v17  ;;  %5179 = vmatprep.subr.mxu1 %v22048_v61  ;;  %v22145_v57 = vand.u32 4294901760, %v22144_v21  ;;  %v22148_v61 = vand.u32 4294901760, %v22147_v13  ;;  %v22157_v21 = vld [vmem:[#allocation47_spill] sm:$0xff]  ;;  %v22159_v13 = vld [vmem:[#allocation57_spill] sm:$0xff] }
 0x4a4   : > { %4718 = vmatpush2.msra.mxu0 %v15969_v15  ;;  %5181 = vmatpush1.msra.mxu1 %v22049_v38  ;;  %v22150_v38 = vld [vmem:[#allocation42_spill] sm:$0xff] }
 0x4a5   : > { %4724 = vmatmul.mubr.f32.vlgmr.msra.gmra.mxu0 %v22139_v32  ;;  %4896 = vmatprep.subr.mxu0 %v22141_v59  ;;  %v22151_v20 = vand.u32 4294901760, %v22150_v38  ;;  %v22154_v59 = vld [vmem:[#allocation45_spill] sm:$0xff]  ;;  %v22165_v38 = vld [vmem:[#allocation132_spill] sm:$0xff] }
 0x4a6   : > { %5183 = vmatprep.subr.mxu1 %v22142_v5  ;;  %4731 = vmatprep.mubr.f32.mxu0 %v22143_v29  ;;  %v22155_v5 = vand.u32 4294901760, %v22154_v59  ;;  %v22166_v59 = vand.u32 4294901760, %v22070_v9 }
 0x4a7   : > { %4900 = vmatpush1.msra.mxu0 %v22145_v57  ;;  %5185 = vmatpush1.msra.mxu1 %v22146_v12  ;;  %v22158_v57 = vand.u32 4294901760, %v22157_v21 }
 0x4a8   : > { %4904 = vmatprep.subr.mxu0 %v22148_v61  ;;  %5187 = vmatprep.subr.mxu1 %v22149_v7  ;;  %v22160_v7 = vld [vmem:[#allocation49_spill] sm:$0xff] }
 0x4a9   : > { %4908 = vmatpush1.msra.mxu0 %v22151_v20  ;;  %5189 = vmatpush1.msra.mxu1 %v22152_v43  ;;  %v22161_v12 = vand.u32 4294901760, %v22160_v7  ;;  %v22162_v20 = vld [vmem:[#allocation59_spill] sm:$0xff]  ;;  %v22163_v43 = vld [vmem:[#allocation52_spill] sm:$0xff] }
 0x4aa   : > { %4734 = vmatmul.mubr.f32.gmra.mxu0 %v22153_v30  ;;  %4912 = vmatprep.subr.mxu0 %v22155_v5  ;;  %v22164_v61 = vand.u32 4294901760, %v22163_v43  ;;  %v22168_v5 = vld [vmem:[#allocation56_spill] sm:$0xff] }
 0x4ab   : > { %5191 = vmatprep.subr.mxu1 %v22156_v6  ;;  %4916 = vmatpush1.msra.mxu0 %v22158_v57  ;;  %v22167_v6 = vld [vmem:[#allocation125_spill] sm:$0xff]  ;;  %v22169_v21 = vand.u32 4294901760, %v22168_v5 }
 0x4ac   : > { %5150 = vmatprep.mubr.f32.mxu0 %v22138_v45  ;;  %5193 = vmatpush1.msra.mxu1 %v22159_v13  ;;  %v22170_v57 = vld [vmem:[#allocation129_spill] sm:$0xff]  ;;  %v22171_v13 = vld [vmem:[#allocation58_spill] sm:$0xff] }
 0x4ad   : > { %4920 = vmatprep.subr.mxu0 %v22161_v12  ;;  %5195 = vmatprep.subr.mxu1 %v22162_v20  ;;  %v22172_v7 = vand.u32 4294901760, %v22171_v13  ;;  %v22173_v12 = vld [vmem:[#allocation131_spill] sm:$0xff]  ;;  %v22174_v20 = vld [vmem:[#allocation113_spill] sm:$0xff] }
 0x4ae   : > { %4924 = vmatpush1.msra.mxu0 %v22164_v61  ;;  %5197 = vmatpush1.msra.mxu1 %v22165_v38  ;;  %v22175_v43 = vand.u32 4294901760, %v22174_v20  ;;  %v22176_v61 = vld [vmem:[#allocation135_spill] sm:$0xff]  ;;  %v22177_v38 = vld [vmem:[#allocation130_spill] sm:$0xff] }
 0x4af   : > { %4928 = vmatprep.subr.mxu0 %v22166_v59  ;;  %5199 = vmatprep.subr.mxu1 %v22167_v6  ;;  %v22178_v9 = vand.u32 4294901760, %v22177_v38  ;;  %v22179_v59 = vld [vmem:[#allocation136_spill] sm:$0xff]  ;;  %v22180_v6 = vld [vmem:[#allocation134_spill] sm:$0xff] }
 0x4b0   : > { %4932 = vmatpush1.msra.mxu0 %v22169_v21  ;;  %5201 = vmatpush1.msra.mxu1 %v22170_v57  ;;  %v22181_v5 = vand.u32 4294901760, %v22180_v6  ;;  %v22182_v21 = vld [vmem:[#allocation64_spill] sm:$0xff] }
 0x4b1   : > { %4936 = vmatprep.subr.mxu0 %v22172_v7  ;;  %5203 = vmatprep.subr.mxu1 %v22173_v12  ;;  %v22183_v57 = vld [vmem:[#allocation36_spill] sm:$0xff]  ;;  %v22185_v7 = vld [vmem:[#allocation66_spill] sm:$0xff] }
 0x4b2   : > { %4940 = vmatpush1.msra.mxu0 %v22175_v43  ;;  %5205 = vmatpush1.msra.mxu1 %v22176_v61  ;;  %v22184_v13 = vand.u32 4294901760, %v22183_v57  ;;  %v22186_v12 = vld [vmem:[#allocation126_spill] sm:$0xff]  ;;  %v22188_v43 = vld [vmem:[#allocation68_spill] sm:$0xff]  ;;  %v22189_v61 = vld [vmem:[#allocation133_spill] sm:$0xff] }
 0x4b3   : > { %4944 = vmatprep.subr.mxu0 %v22178_v9  ;;  %5207 = vmatprep.subr.mxu1 %v22179_v59  ;;  %v22187_v20 = vand.u32 4294901760, %v22186_v12  ;;  %v22190_v38 = vand.u32 4294901760, %v22189_v61  ;;  %v22191_v9 = vld [vmem:[#allocation70_spill] sm:$0xff]  ;;  %v22192_v59 = vld [vmem:[#allocation40_spill] sm:$0xff] }
 0x4b4   : > { %4948 = vmatpush1.msra.mxu0 %v22181_v5  ;;  %5209 = vmatpush1.msra.mxu1 %v22182_v21  ;;  %v22193_v6 = vand.u32 4294901760, %v22192_v59  ;;  %v22194_v5 = vld [vmem:[#allocation72_spill] sm:$0xff]  ;;  %v22205_v59 = vld [vmem:[#allocation82_spill] sm:$0xff] }
 0x4b5   : > { %4952 = vmatprep.subr.mxu0 %v22184_v13  ;;  %5211 = vmatprep.subr.mxu1 %v22185_v7  ;;  %v22195_v21 = vld [vmem:[#allocation60_spill] sm:$0xff]  ;;  %v22197_v13 = vld [vmem:[#allocation74_spill] sm:$0xff]  ;;  %v22198_v7 = vld [vmem:[#allocation61_spill] sm:$0xff] }
 0x4b6   : > { %4956 = vmatpush1.msra.mxu0 %v22187_v20  ;;  %5213 = vmatpush1.msra.mxu1 %v22188_v43  ;;  %v22196_v57 = vand.u32 4294901760, %v22195_v21  ;;  %v22199_v12 = vand.u32 4294901760, %v22198_v7  ;;  %v22200_v20 = vld [vmem:[#allocation79_spill] sm:$0xff]  ;;  %v22201_v43 = vand.u32 4294901760, %v22093_v18  ;;  %v22202_v61 = vld [vmem:[#allocation80_spill] sm:$0xff]  ;;  %v22211_v18 = vand.u32 4294901760, %v22101_v56 }
 0x4b7   : > { %4960 = vmatprep.subr.mxu0 %v22190_v38  ;;  %5215 = vmatprep.subr.mxu1 %v22191_v9  ;;  %v22203_v38 = vld [vmem:[#allocation63_spill] sm:$0xff]  ;;  %v22212_v7 = vld [vmem:[#allocation90_spill] sm:$0xff]  ;;  %v22219_v56 = vand.u32 4294901760, %v22107_v47  ;;  %v22227_v47 = vand.u32 4294901760, %v22112_v60  ;;  %v22235_v60 = vand.u32 4294901760, %v22116_v63  ;;  %v22243_v63 = vand.u32 4294901760, %v22120_v28 }
 0x4b8   : > { %4964 = vmatpush1.msra.mxu0 %v22193_v6  ;;  %5217 = vmatpush1.msra.mxu1 %v22194_v5  ;;  %v22204_v9 = vand.u32 4294901760, %v22203_v38  ;;  %v22206_v6 = vand.u32 4294901760, %v22097_v11  ;;  %v22207_v5 = vld [vmem:[#allocation84_spill] sm:$0xff]  ;;  %v22208_v21 = vld [vmem:[#allocation67_spill] sm:$0xff]  ;;  %v22215_v11 = vand.u32 4294901760, %v22104_v58  ;;  %v22223_v58 = vand.u32 4294901760, %v22110_v46 }
 0x4b9   : > { %4968 = vmatprep.subr.mxu0 %v22196_v57  ;;  %5219 = vmatprep.subr.mxu1 %v22197_v13  ;;  %v22209_v57 = vand.u32 4294901760, %v22208_v21  ;;  %v22210_v13 = vld [vmem:[#allocation76_spill] sm:$0xff]  ;;  %v22218_v38 = vld [vmem:[#allocation83_spill] sm:$0xff]  ;;  %v22231_v46 = vand.u32 4294901760, %v22114_v55  ;;  %v22239_v55 = vand.u32 4294901760, %v22118_v22  ;;  %v22247_v22 = vand.u32 4294901760, %v22122_v14 }
 0x4ba   : > { %4972 = vmatpush1.msra.mxu0 %v22199_v12  ;;  %5221 = vmatpush1.msra.mxu1 %v22200_v20  ;;  %v22213_v12 = vand.u32 4294901760, %v22103_v49  ;;  %v22214_v20 = vld [vmem:[#allocation92_spill] sm:$0xff]  ;;  %v22221_v49 = vand.u32 4294901760, %v22109_v0  ;;  %v22229_v0 = vand.u32 4294901760, %v22113_v35  ;;  %v22237_v35 = vand.u32 4294901760, %v22117_v41 }
 0x4bb   : > { %4976 = vmatprep.subr.mxu0 %v22201_v43  ;;  %5223 = vmatprep.subr.mxu1 %v22202_v61  ;;  %v22216_v43 = vld [vmem:[#allocation81_spill] sm:$0xff]  ;;  %v22217_v61 = vand.u32 4294901760, %v22106_v25  ;;  %v22225_v25 = vand.u32 4294901760, %v22111_v3  ;;  %v22228_v21 = vld [vmem:[#allocation104_spill] sm:$0xff]  ;;  %v22233_v3 = vand.u32 4294901760, %v22115_v39  ;;  %v22241_v39 = vand.u32 4294901760, %v22119_v10 }
 0x4bc   : > { %4980 = vmatpush1.msra.mxu0 %v22204_v9  ;;  %5225 = vmatpush1.msra.mxu1 %v22205_v59  ;;  %v22220_v9 = vld [vmem:[#allocation96_spill] sm:$0xff]  ;;  %v22222_v59 = vld [vmem:[#allocation98_spill] sm:$0xff]  ;;  %v22245_v41 = vand.u32 4294901760, %v22121_v50  ;;  %v22249_v10 = vand.u32 4294901760, %v22123_v24  ;;  %v22251_v28 = vand.u32 4294901760, %v22124_v44  ;;  %v22255_v14 = vand.u32 4294901760, %v22126_v26 }
 0x4bd   : > { %4984 = vmatprep.subr.mxu0 %v22206_v6  ;;  %5227 = vmatprep.subr.mxu1 %v22207_v5  ;;  %v22224_v6 = vld [vmem:[#allocation100_spill] sm:$0xff]  ;;  %v22226_v5 = vld [vmem:[#allocation102_spill] sm:$0xff]  ;;  %v22257_v24 = vand.u32 4294901760, %v22127_v23  ;;  %v22258_v44 = vand.u32 4294901760, %v22128_v42  ;;  %v22261_v26 = vand.u32 4294901760, %v22130_v1  ;;  %v16354_v23 = vpop.f32.mrf.mxu0  ;;  %v22268_v1 = vand.u32 4294901760, %v15879_v31 }
 0x4be   : > { %4988 = vmatpush1.msra.mxu0 %v22209_v57  ;;  %5229 = vmatpush1.msra.mxu1 %v22210_v13  ;;  %v22230_v57 = vld [vmem:[#allocation106_spill] sm:$0xff]  ;;  %v22232_v13 = vld [vmem:[#allocation108_spill] sm:$0xff]  ;;  %22264 = vst [vmem:[#allocation65_spill] sm:$0xff] %v16354_v23  ;;  %v22274_v31 = vand.u32 4294901760, %v15905_v53 }
 0x4bf   : > { %4992 = vmatprep.subr.mxu0 %v22211_v18  ;;  %5231 = vmatprep.subr.mxu1 %v22212_v7  ;;  %v22234_v18 = vld [vmem:[#allocation111_spill] sm:$0xff]  ;;  %v22236_v7 = vld [vmem:[#allocation112_spill] sm:$0xff] }
 0x4c0   : > { %4996 = vmatpush1.msra.mxu0 %v22213_v12  ;;  %5233 = vmatpush2.msra.mxu1 %v22214_v20  ;;  %v22238_v12 = vld [vmem:[#allocation114_spill] sm:$0xff]  ;;  %v22240_v20 = vld [vmem:[#allocation116_spill] sm:$0xff] }
 0x4c1   : > { %5000 = vmatprep.subr.mxu0 %v22215_v11  ;;  %5235 = vmatprep.subr.mxu1 %v22216_v43  ;;  %v22242_v11 = vld [vmem:[#allocation107_spill] sm:$0xff]  ;;  %v22244_v43 = vld [vmem:[#allocation122_spill] sm:$0xff] }
 0x4c2   : > { %5004 = vmatpush1.msra.mxu0 %v22217_v61  ;;  %5237 = vmatpush2.msra.mxu1 %v22218_v38  ;;  %v22246_v61 = vld [vmem:[#allocation124_spill] sm:$0xff]  ;;  %v22248_v38 = vld [vmem:[#allocation127_spill] sm:$0xff] }
 0x4c3   : > { %5008 = vmatprep.subr.mxu0 %v22219_v56  ;;  %5239 = vmatprep.subr.mxu1 %v22220_v9  ;;  %v22250_v56 = vld [vmem:[#allocation128_spill] sm:$0xff]  ;;  %v22252_v9 = vld [vmem:[#allocation117_spill] sm:$0xff] }
 0x4c4   : > { %5012 = vmatpush1.msra.mxu0 %v22221_v49  ;;  %5241 = vmatpush2.msra.mxu1 %v22222_v59  ;;  %v22253_v49 = vld [vmem:[#allocation120_spill] sm:$0xff]  ;;  %v22256_v59 = vld [vmem:[#allocation123_spill] sm:$0xff] }
 0x4c5   : > { %5016 = vmatprep.subr.mxu0 %v22223_v58  ;;  %5243 = vmatprep.subr.mxu1 %v22224_v6  ;;  %v22254_v50 = vand.u32 4294901760, %v22253_v49  ;;  %v5312_v58 = vld [vmem:[#allocation7 + $0x20] sm:$0xff] }
 0x4c6   : > { %5020 = vmatpush1.msra.mxu0 %v22225_v25  ;;  %5245 = vmatpush2.msra.mxu1 %v22226_v5  ;;  %v22259_v6 = vld [vmem:[#allocation119_spill] sm:$0xff]  ;;  %v16348_v5 = vpop.f32.mrf.mxu1  ;;  %v5315_v42 = vsel %vm2008_vm1, %v5312_v58, 0  ;;  %v5889_v58 = vld [vmem:[#allocation8 + $0x4e0] sm:$0xff] }
 0x4c7   : > { %5024 = vmatprep.subr.mxu0 %v22227_v47  ;;  %5247 = vmatprep.subr.mxu1 %v22228_v21  ;;  %v22260_v25 = vand.u32 4294901760, %v22259_v6  ;;  %22262 = vst [vmem:[#allocation62_spill] sm:$0xff] %v16348_v5  ;;  %v5888_v6 = vld [vmem:[#allocation8 + $0x4d8] sm:$0xff] }
 0x4c8   : > { %5028 = vmatpush2.msra.mxu0 %v22229_v0  ;;  %5249 = vmatpush2.msra.mxu1 %v22230_v57  ;;  %v22269_v0 = vld [vmem:[#allocation140_spill] sm:$0xff] }
 0x4c9   : > { %5032 = vmatprep.subr.mxu0 %v22231_v46  ;;  %5251 = vmatprep.subr.mxu1 %v22232_v13  ;;  %v16366_v13 = vand.u32 4294901760, %v5315_v42 }
 0x4ca   : > { %5036 = vmatpush2.msra.mxu0 %v22233_v3  ;;  %5253 = vmatpush2.msra.mxu1 %v22234_v18  ;;  %v22273_v3 = vand.u32 4294901760, %v15897_v34  ;;  %v22279_v34 = vand.u32 4294901760, %v15915_v16 }
 0x4cb   : > { %5040 = vmatprep.subr.mxu0 %v22235_v60  ;;  %5255 = vmatprep.subr.mxu1 %v22236_v7  ;;  %v16389_v53 = vsub.f32 %v5315_v42, %v16366_v13 }
 0x4cc   : > { %5044 = vmatpush2.msra.mxu0 %v22237_v35  ;;  %5257 = vmatpush2.msra.mxu1 %v22238_v12  ;;  %v22276_v35 = vld [vmem:[#allocation21_spill] sm:$0xff] }
 0x4cd   : > { %5048 = vmatprep.subr.mxu0 %v22239_v55  ;;  %5259 = vmatprep.subr.mxu1 %v22240_v20  ;;  %v22277_v12 = vld [vmem:[#allocation37_spill] sm:$0xff] }
 0x4ce   : > { %5052 = vmatpush2.msra.mxu0 %v22241_v39  ;;  %5261 = vmatpush2.msra.mxu1 %v22242_v11  ;;  %v3952_v21 = vpop.f32.mrf.mxu1  ;;  %v22282_v39 = vand.u32 4294901760, %v15925_v36  ;;  %v5391_v36 = vand.u32 4294901760, %v16389_v53 }
 0x4cf   : > { %5056 = vmatprep.subr.mxu0 %v22243_v63  ;;  %5263 = vmatprep.subr.mxu1 %v22244_v43  ;;  %v22283_v63 = vld [vmem:[#allocation31_spill] sm:$0xff]  ;;  %v22284_v43 = vand.u32 4294901760, %v15935_v37  ;;  %v22288_v37 = vand.u32 4294901760, %v15953_v2 }
 0x4d0   : > { %5060 = vmatpush2.msra.mxu0 %v22245_v41  ;;  %5265 = vmatpush2.msra.mxu1 %v22246_v61  ;;  %v16381_v55 = vpop.f32.mrf.mxu1  ;;  %v22285_v61 = vld [vmem:[#allocation32_spill] sm:$0xff]  ;;  %v5392_v49 = vsub.f32 %v16389_v53, %v5391_v36 }
 0x4d1   : > { %5064 = vmatprep.subr.mxu0 %v22247_v22  ;;  %5267 = vmatprep.subr.mxu1 %v22248_v38  ;;  %22278 = vst [vmem:[#allocation71_spill] sm:$0xff] %v16381_v55  ;;  %v22286_v38 = vand.u32 4294901760, %v15945_v33  ;;  %v22291_v33 = vand.u32 4294901760, %v15969_v15  ;;  %v5892_v15 = vld [vmem:[#allocation8 + $0x4f8] sm:$0xff]  ;;  %v5870_v55 = vld [vmem:[#allocation8 + $0x448] sm:$0xff] }
 0x4d2   : > { %5068 = vmatpush2.msra.mxu0 %v22249_v10  ;;  %5269 = vmatpush2.msra.mxu1 %v22250_v56  ;;  %v22287_v10 = vld [vmem:[#allocation24_spill] sm:$0xff] }
 0x4d3   : > { %5072 = vmatprep.subr.mxu0 %v22251_v28  ;;  %5271 = vmatprep.subr.mxu1 %v22252_v9  ;;  %v22290_v28 = vand.u32 4294901760, %v15961_v17  ;;  %v5393_v17 = vand.u32 4294901760, %v5392_v49 }
 0x4d4   : > { %5076 = vmatpush2.msra.mxu0 %v22254_v50  ;;  %5273 = vmatpush2.msra.mxu1 %v15841_v54  ;;  %v5313_v54 = vld [vmem:[#allocation7 + $0x28] sm:$0xff]  ;;  %v3960_v22 = vpop.f32.mrf.mxu1  ;;  %v5891_v50 = vld [vmem:[#allocation8 + $0x4f0] sm:$0xff] }
 0x4d5   : > { %5080 = vmatprep.subr.mxu0 %v22255_v14  ;;  %5275 = vmatprep.subr.mxu1 %v22256_v59  ;;  %v5890_v14 = vld [vmem:[#allocation8 + $0x4e8] sm:$0xff]  ;;  %v16435_v59 = vand.u32 4294901760, %v5892_v15 }
 0x4d6   : > { %5084 = vmatpush2.msra.mxu0 %v22257_v24  ;;  %5277 = vmatpush2.msra.mxu1 %v15861_v52  ;;  %v22263_v52 = vand.u32 4294901760, %v15859_v40  ;;  %v22270_v40 = vld [vmem:[#allocation139_spill] sm:$0xff]  ;;  %v16437_v24 = vand.u32 4294901760, %v5891_v50 }
 0x4d7   : > { %5088 = vmatprep.subr.mxu0 %v22258_v44  ;;  %5279 = vmatprep.subr.mxu1 %v15873_v19  ;;  %v22265_v19 = vld [vmem:[#allocation137_spill] sm:$0xff]  ;;  %v22271_v57 = vand.u32 4294901760, %v22270_v40  ;;  %22292 = vst [vmem:[#allocation73_spill] sm:$0xff] %v16435_v59  ;;  %v16439_v44 = vand.u32 4294901760, %v5890_v14 }
 0x4d8   : > { %5092 = vmatpush2.msra.mxu0 %v22260_v25  ;;  %5281 = vmatpush2.msra.mxu1 %v15881_v51  ;;  %v22266_v47 = vand.u32 4294901760, %v22265_v19  ;;  %v22267_v51 = vld [vmem:[#allocation138_spill] sm:$0xff]  ;;  %v5887_v25 = vld [vmem:[#allocation8 + $0x4d0] sm:$0xff] }
 0x4d9   : > { %5096 = vmatprep.subr.mxu0 %v22261_v26  ;;  %5283 = vmatprep.subr.mxu1 %v15889_v48  ;;  %v5318_v48 = vsel %vm2008_vm1, %v5313_v54, 0  ;;  %v3807_v46 = vpop.f32.mrf.mxu0  ;;  %v16444_v54 = vand.u32 4294901760, %v5889_v58  ;;  %v16448_v42 = vand.u32 4294901760, %v5887_v25  ;;  %v5886_v19 = vld [vmem:[#allocation8 + $0x4c8] sm:$0xff] }
 0x4da   : > { %5100 = vmatpush2.msra.mxu0 %v22263_v52  ;;  %5285 = vmatpush2.msra.mxu1 %v15899_v62  ;;  %v22272_v62 = vld [vmem:[#allocation141_spill] sm:$0xff]  ;;  %v3808_v18 = vadd.f32 %v3807_v46, %v16170_v27  ;;  %v16377_v7 = vand.u32 4294901760, %v5318_v48  ;;  %v22280_v27 = vld [vmem:[#allocation27_spill] sm:$0xff]  ;;  %v16446_v52 = vand.u32 4294901760, %v5888_v6 }
 0x4db   : > { %5104 = vmatprep.subr.mxu0 %v22266_v47  ;;  %5287 = vmatprep.subr.mxu1 %v22267_v51  ;;  %v16375_v60 = vpop.f32.mrf.mxu0  ;;  %v5885_v47 = vld [vmem:[#allocation8 + $0x4c0] sm:$0xff]  ;;  %v16453_v51 = vsub.f32 %v5892_v15, %v16435_v59  ;;  %v16471_v40 = vsub.f32 %v5887_v25, %v16448_v42 }
 0x4dc   : > { %5108 = vmatpush2.msra.mxu0 %v22268_v1  ;;  %5289 = vmatpush2.msra.mxu1 %v22269_v0  ;;  %22275 = vst [vmem:[#allocation69_spill] sm:$0xff] %v16375_v60  ;;  %v16383_v20 = vadd.f32 %v3952_v21, %v3808_v18  ;;  %v16399_v16 = vsub.f32 %v5318_v48, %v16377_v7  ;;  %v16461_v48 = vand.u32 4294901760, %v5886_v19 }
 0x4dd   : > { %5112 = vmatprep.subr.mxu0 %v22271_v57  ;;  %5291 = vmatprep.subr.mxu1 %v22272_v62  ;;  %22293 = vst [vmem:[#allocation75_spill] sm:$0xff] %v16453_v51  ;;  %v16456_v1 = vsub.f32 %v5891_v50, %v16437_v24  ;;  %v16459_v21 = vsub.f32 %v5890_v14, %v16439_v44  ;;  %v16473_v57 = vand.u32 4294901760, %v5885_v47  ;;  %v20902_v46 = vand.u32 4294901760, %v16453_v51 }
 0x4de   : > { %5116 = vmatpush2.msra.mxu0 %v22273_v3  ;;  %5293 = vmatpush2.msra.mxu1 %v15937_v4  ;;  %v22281_v4 = vld [vmem:[#allocation39_spill] sm:$0xff]  ;;  %v3815_v11 = vpop.f32.mrf.mxu0  ;;  %v5402_v9 = vand.u32 4294901760, %v16399_v16  ;;  %v16465_v0 = vsub.f32 %v5889_v58, %v16444_v54  ;;  %v16479_v18 = vsub.f32 %v5886_v19, %v16461_v48  ;;  %v5877_v58 = vld [vmem:[#allocation8 + $0x480] sm:$0xff] }
 0x4df   : > { %5120 = vmatprep.subr.mxu0 %v22274_v31  ;;  %5297 = vmatmul.mubr.f32.vlgmr.msra.gmra.mxu1 %v22276_v35  ;;  %v3816_v41 = vadd.f32 %v3815_v11, %v16183_v8  ;;  %v22289_v8 = vmov 0.0   ;;  %v20901_v62 = vand.u32 4294901760, %v16456_v1  ;;  %v20900_v3 = vand.u32 4294901760, %v16459_v21 }
 0x4e0   : > { %5444 = vmatprep.subr.mxu1 %v22277_v12  ;;  %5124 = vmatpush2.msra.mxu0 %v22279_v34  ;;  %v16427_v2 = vsub.f32 %v16399_v16, %v5402_v9  ;;  %v20899_v31 = vand.u32 4294901760, %v16465_v0  ;;  %v20897_v34 = vand.u32 4294901760, %v16471_v40 }
 0x4e1   : > { %5303 = vmatprep.mubr.f32.mxu1 %v22280_v27  ;;  %5450 = vmatpush1.msra.mxu1 %v22281_v4  ;;  %v16407_v56 = vadd.f32 %v3960_v22, %v3816_v41  ;;  %v6089_v4 = vsub.f32 %v16453_v51, %v20902_v46  ;;  %v16500_v11 = vsub.f32 %v16459_v21, %v20900_v3  ;;  %v5884_v41 = vld [vmem:[#allocation8 + $0x4b8] sm:$0xff]  ;;  %v5882_v22 = vld [vmem:[#allocation8 + $0x4a8] sm:$0xff]  ;;  %v5875_v46 = vld [vmem:[#allocation8 + $0x470] sm:$0xff] }
 0x4e2   : > { %5128 = vmatprep.subr.mxu0 %v22282_v39  ;;  %5456 = vmatprep.subr.mxu1 %v22283_v63  ;;  %v5404_v26 = vand.u32 4294901760, %v16427_v2  ;;  %v16495_v39 = vsub.f32 %v16456_v1, %v20901_v62  ;;  %v20896_v63 = vand.u32 4294901760, %v16479_v18  ;;  %v5878_v2 = vld [vmem:[#allocation8 + $0x488] sm:$0xff]  ;;  %v16533_v15 = vand.u32 4294901760, %v5884_v41  ;;  %v5871_v62 = vld [vmem:[#allocation8 + $0x450] sm:$0xff] }
 0x4e3   : > { %5132 = vmatpush2.msra.mxu0 %v22284_v43  ;;  %5462 = vmatpush1.msra.mxu1 %v22285_v61  ;;  %v22294_v43 = vld [vmem:[#allocation23_spill] sm:$0xff]  ;;  %v6102_v49 = vand.u32 4294901760, %v16500_v11  ;;  %v16537_v14 = vand.u32 4294901760, %v5882_v22  ;;  %v16640_v23 = vand.u32 4294901760, %v5871_v62 }
 0x4e4   : > { %5136 = vmatprep.subr.mxu0 %v22286_v38  ;;  %5305 = vmatmul.mubr.f32.gmra.mxu1 %v22287_v10  ;;  %v5883_v61 = vld [vmem:[#allocation8 + $0x4b0] sm:$0xff]  ;;  %v6090_v38 = vand.u32 4294901760, %v6089_v4 }
 0x4e5   : > { %5628 = vmatprep.subr.mxu1 %v22280_v27  ;;  %5140 = vmatpush2.msra.mxu0 %v22288_v37  ;;  %v5880_v37 = vld [vmem:[#allocation8 + $0x498] sm:$0xff]  ;;  %v16535_v50 = vand.u32 4294901760, %v5883_v61  ;;  %22305 = vst [vmem:[#allocation95_spill] sm:$0xff] %v16640_v23 }
 0x4e6   : > { %5495 = vmatprep.mubr.f32.mxu1 %v22289_v8  ;;  %5144 = vmatprep.subr.mxu0 %v22290_v28  ;;  %v5879_v28 = vld [vmem:[#allocation8 + $0x490] sm:$0xff] }
 0x4e7   : > { %5148 = vmatpush2.msra.mxu0 %v22291_v33  ;;  %v6096_v33 = vand.u32 4294901760, %v16495_v39  ;;  %v16551_v19 = vand.u32 4294901760, %v5879_v28  ;;  %v16558_v4 = vsub.f32 %v5883_v61, %v16535_v50  ;;  %v16563_v39 = vand.u32 4294901760, %v5878_v2 }
 0x4e8   : > { %5152 = vmatmul.mubr.f32.vlgmr.msra.gmra.mxu0 %v22276_v35  ;;  %5349 = vmatprep.subr.mxu0 %v22280_v27 }
 0x4e9   : > { %5497 = vmatmul.mubr.f32.vlgmr.msra.gmra.mxu1 %v16366_v13  ;;  %5158 = vmatprep.mubr.f32.mxu0 %v22280_v27  ;;  %v20904_v61 = vand.u32 4294901760, %v16558_v4 }
 0x4ea   : > { %5630 = vmatpush1.msra.mxu1 %v22287_v10  ;;  %5351 = vmatpush1.msra.mxu0 %v22287_v10 }
 0x4eb   : > { %5632 = vmatprep.subr.mxu1 %v22138_v45  ;;  %5353 = vmatprep.subr.mxu0 %v22138_v45 }
 0x4ec   : > { %5634 = vmatpush1.msra.mxu1 %v22276_v35  ;;  %5355 = vmatpush1.msra.mxu0 %v22276_v35 }
 0x4ed   : > { %5502 = vmatprep.mubr.f32.mxu1 %v22289_v8  ;;  %5806 = vmatprep.subr.mxu1 %v22280_v27  ;;  %v16485_v27 = vsub.f32 %v5885_v47, %v16473_v57  ;;  %v16555_v47 = vsub.f32 %v5884_v41, %v16533_v15 }
 0x4ee   : > { %5160 = vmatmul.mubr.f32.gmra.mxu0 %v22287_v10  ;;  %5504 = vmatmul.mubr.f32.gmra.mxu1 %v16377_v7 }
 0x4ef   : > { %5540 = vmatprep.subr.mxu0 %v22143_v29  ;;  %5388 = vmatprep.mubr.f32.mxu0 %v22289_v8  ;;  %v16468_v29 = vsub.f32 %v5888_v6, %v16446_v52  ;;  %v20903_v41 = vand.u32 4294901760, %v16555_v47 }
 0x4f0   : > { %5667 = vmatprep.mubr.f32.mxu1 %v22289_v8 }
 0x4f1   : > { %v20898_v12 = vand.u32 4294901760, %v16468_v29 }
 0x4f2   : > { %5394 = vmatmul.mubr.f32.vlgmr.msra.gmra.mxu0 %v5393_v17  ;;  %5671 = vmatmul.mubr.f32.vlgmr.msra.gmra.mxu1 %v5391_v36  ;;  %v5881_v36 = vld [vmem:[#allocation8 + $0x4a0] sm:$0xff]  ;;  %v16531_v17 = vsub.f32 %v16479_v18, %v20896_v63 }
 0x4f3   : > { %5543 = vmatpush1.msra.mxu0 %v22153_v30  ;;  %5808 = vmatpush1.msra.mxu1 %v22287_v10  ;;  %v20895_v30 = vand.u32 4294901760, %v16485_v27  ;;  %v16511_v10 = vsub.f32 %v16465_v0, %v20899_v31  ;;  %v16547_v25 = vand.u32 4294901760, %v5881_v36  ;;  %v22302_v31 = vld [vmem:[#allocation34_spill] sm:$0xff] }
 0x4f4   : > { %5546 = vmatprep.subr.mxu0 %v22294_v43  ;;  %5810 = vmatprep.subr.mxu1 %v22138_v45  ;;  %v22295_v45 = vld [vmem:[#allocation35_spill] sm:$0xff] }
 0x4f5   : > { %5549 = vmatpush1.msra.mxu0 %v22139_v32  ;;  %5812 = vmatpush1.msra.mxu1 %v22276_v35  ;;  %v16520_v32 = vsub.f32 %v16468_v29, %v20898_v12  ;;  %v16525_v35 = vsub.f32 %v16471_v40, %v20897_v34  ;;  %v16545_v6 = vsub.f32 %v16485_v27, %v20895_v30  ;;  %v22301_v34 = vld [vmem:[#allocation30_spill] sm:$0xff]  ;;  %v5876_v12 = vld [vmem:[#allocation8 + $0x478] sm:$0xff] }
 0x4f6   : > { %5399 = vmatprep.mubr.f32.mxu0 %v22289_v8  ;;  %5717 = vmatprep.subr.mxu0 %v22295_v45  ;;  %v16566_v11 = vsub.f32 %v5881_v36, %v16547_v25  ;;  %v16572_v45 = vsub.f32 %v5879_v28, %v16551_v19  ;;  %v16581_v30 = vsub.f32 %v5878_v2, %v16563_v39  ;;  %v22299_v36 = vld [vmem:[#allocation29_spill] sm:$0xff]  ;;  %v16627_v5 = vand.u32 4294901760, %v5876_v12 }
 0x4f7   : > { %5405 = vmatmul.mubr.f32.gmra.mxu0 %v5404_v26  ;;  %5676 = vmatprep.mubr.f32.mxu1 %v22289_v8  ;;  %v16549_v26 = vand.u32 4294901760, %v5880_v37  ;;  %v6137_v2 = vsub.f32 %v16555_v47, %v20903_v41  ;;  %v6120_v3 = vand.u32 4294901760, %v16525_v35  ;;  %v5874_v41 = vld [vmem:[#allocation8 + $0x468] sm:$0xff]  ;;  %v6132_v63 = vand.u32 4294901760, %v16545_v6  ;;  %v5872_v35 = vld [vmem:[#allocation8 + $0x458] sm:$0xff] }
 0x4f8   : > { %5582 = vmatprep.mubr.f32.mxu0 %v22289_v8  ;;  %5680 = vmatmul.mubr.f32.gmra.mxu1 %v5402_v9  ;;  %v16561_v9 = vsub.f32 %v5882_v22, %v16537_v14  ;;  %22297 = vst [vmem:[#allocation88_spill] sm:$0xff] %v16572_v45  ;;  %22298 = vst [vmem:[#allocation77_spill] sm:$0xff] %v16581_v30 }
 0x4f9   : > { %5845 = vmatprep.mubr.f32.mxu1 %v22289_v8  ;;  %6091 = vmatprep.subr.mxu1 %v6090_v38  ;;  %v16569_v43 = vsub.f32 %v5880_v37, %v16549_v26  ;;  %v16574_v38 = vand.u32 4294901760, %v5877_v58  ;;  %v20906_v37 = vand.u32 4294901760, %v16566_v11 }
 0x4fa   : > { %v20905_v22 = vand.u32 4294901760, %v16561_v9 }
 0x4fb   : > { %22296 = vst [vmem:[#allocation86_spill] sm:$0xff] %v16569_v43  ;;  %5585 = vmatmul.mubr.f32.vlgmr.msra.gmra.mxu0 %v16389_v53  ;;  %v20907_v28 = vand.u32 4294901760, %v16569_v43  ;;  %v16589_v53 = vsub.f32 %v5877_v58, %v16574_v38  ;;  %v6108_v58 = vand.u32 4294901760, %v16511_v10  ;;  %v6155_v10 = vsub.f32 %v16566_v11, %v20906_v37 }
 0x4fc   : > { %5721 = vmatpush1.msra.mxu0 %v22299_v36  ;;  %5590 = vmatprep.mubr.f32.mxu0 %v22289_v8  ;;  %v16599_v36 = vsub.f32 %v16558_v4, %v20904_v61  ;;  %v6126_v61 = vand.u32 4294901760, %v16531_v17  ;;  %v22303_v17 = vand.u32 4294901760, %v16572_v45 }
 0x4fd   : > { %22300 = vst [vmem:[#allocation78_spill] sm:$0xff] %v16589_v53  ;;  %5725 = vmatprep.subr.mxu0 %v22301_v34  ;;  %5847 = vmatmul.mubr.f32.vlgmr.msra.gmra.mxu1 %v16366_v13  ;;  %v6114_v34 = vand.u32 4294901760, %v16520_v32  ;;  %v5873_v32 = vld [vmem:[#allocation8 + $0x460] sm:$0xff] }
 0x4fe   : > { %5729 = vmatpush1.msra.mxu0 %v22302_v31  ;;  %5852 = vmatprep.mubr.f32.mxu1 %v22289_v8  ;;  %v6149_v31 = vsub.f32 %v16561_v9, %v20905_v22  ;;  %v6167_v6 = vsub.f32 %v16572_v45, %v22303_v17  ;;  %v6144_v37 = vand.u32 4294901760, %v16599_v36  ;;  %v16636_v60 = vand.u32 4294901760, %v5873_v32 }
 0x4ff   : > { %5593 = vmatmul.mubr.f32.gmra.mxu0 %v16399_v16  ;;  %6097 = vmatpush1.msra.mxu1 %v6096_v33  ;;  %v6138_v16 = vand.u32 4294901760, %v6137_v2  ;;  %v6161_v33 = vsub.f32 %v16569_v43, %v20907_v28  ;;  %v16631_v2 = vand.u32 4294901760, %v5874_v41  ;;  %v22304_v28 = vand.u32 4294901760, %v16581_v30 }
 0x500   : > { %5762 = vmatprep.mubr.f32.mxu0 %v22289_v8  ;;  %6103 = vmatprep.subr.mxu1 %v6102_v49  ;;  %v16629_v49 = vand.u32 4294901760, %v5875_v46  ;;  %v16638_v22 = vand.u32 4294901760, %v5872_v35  ;;  %v16644_v36 = vsub.f32 %v5876_v12, %v16627_v5  ;;  %v16652_v43 = vand.u32 4294901760, %v5870_v55 }
 0x501   : > { %5854 = vmatmul.mubr.f32.gmra.mxu1 %v16377_v7  ;;  %5926 = vmatprep.subr.mxu0 %v16435_v59  ;;  %v6173_v17 = vsub.f32 %v16581_v30, %v22304_v28  ;;  %v6150_v28 = vand.u32 4294901760, %v6149_v31  ;;  %v16656_v30 = vsub.f32 %v5873_v32, %v16636_v60  ;;  %v16662_v12 = vsub.f32 %v5871_v62, %v16640_v23 }
 0x502   : > { %6109 = vmatpush1.msra.mxu1 %v6108_v58  ;;  %22306 = vst [vmem:[#allocation85_spill] sm:$0xff] %v16644_v36  ;;  %v16647_v45 = vsub.f32 %v5875_v46, %v16629_v49  ;;  %v16650_v58 = vsub.f32 %v5874_v41, %v16631_v2  ;;  %22309 = vst [vmem:[#allocation91_spill] sm:$0xff] %v16652_v43  ;;  %v20914_v46 = vand.u32 4294901760, %v16644_v36  ;;  %v6156_v31 = vand.u32 4294901760, %v6155_v10 }
 0x503   : > { %5764 = vmatmul.mubr.f32.vlgmr.msra.gmra.mxu0 %v16366_v13  ;;  %6115 = vmatprep.subr.mxu1 %v6114_v34  ;;  %22310 = vst [vmem:[#allocation93_spill] sm:$0xff] %v16656_v30  ;;  %v16659_v13 = vsub.f32 %v5872_v35, %v16638_v22  ;;  %22312 = vst [vmem:[#allocation97_spill] sm:$0xff] %v16662_v12  ;;  %v22314_v32 = vand.u32 4294901760, %v16589_v53  ;;  %v6162_v35 = vand.u32 4294901760, %v6161_v33 }
 0x504   : > { %22307 = vst [vmem:[#allocation87_spill] sm:$0xff] %v16647_v45  ;;  %22308 = vst [vmem:[#allocation89_spill] sm:$0xff] %v16650_v58  ;;  %5769 = vmatprep.mubr.f32.mxu0 %v22289_v8  ;;  %6121 = vmatpush1.msra.mxu1 %v6120_v3  ;;  %v20919_v41 = vand.u32 4294901760, %v16647_v45  ;;  %v16669_v3 = vsub.f32 %v5870_v55, %v16652_v43  ;;  %v6185_v34 = vsub.f32 %v16644_v36, %v20914_v46 }
 0x505   : > { %22311 = vst [vmem:[#allocation94_spill] sm:$0xff] %v16659_v13  ;;  %6127 = vmatprep.subr.mxu1 %v6126_v61  ;;  %5928 = vmatpush1.msra.mxu0 %v16437_v24  ;;  %v6179_v62 = vsub.f32 %v16589_v53, %v22314_v32  ;;  %v20918_v61 = vand.u32 4294901760, %v16656_v30  ;;  %v20917_v55 = vand.u32 4294901760, %v16659_v13  ;;  %v20916_v32 = vand.u32 4294901760, %v16662_v12 }
 0x506   : > { %22313 = vst [vmem:[#allocation99_spill] sm:$0xff] %v16669_v3  ;;  %6133 = vmatpush1.msra.mxu1 %v6132_v63  ;;  %5930 = vmatprep.subr.mxu0 %v16439_v44  ;;  %v6168_v63 = vand.u32 4294901760, %v6167_v6  ;;  %v6191_v10 = vsub.f32 %v16647_v45, %v20919_v41  ;;  %v20915_v46 = vand.u32 4294901760, %v16669_v3  ;;  %v5919_v45 = vld [vmem:[#allocation8 + $0x5d0] sm:$0xff] }
 0x507   : > { %5771 = vmatmul.mubr.f32.gmra.mxu0 %v16377_v7  ;;  %6139 = vmatprep.subr.mxu1 %v6138_v16  ;;  %v6174_v7 = vand.u32 4294901760, %v6173_v17  ;;  %v22315_v16 = vand.u32 4294901760, %v16650_v58  ;;  %v6203_v6 = vsub.f32 %v16656_v30, %v20918_v61  ;;  %v6209_v17 = vsub.f32 %v16659_v13, %v20917_v55  ;;  %v5864_v55 = vld [vmem:[#allocation8 + $0x418] sm:$0xff] }
 0x508   : > { %6145 = vmatpush1.msra.mxu1 %v6144_v37  ;;  %5932 = vmatpush1.msra.mxu0 %v16444_v54  ;;  %v6180_v37 = vand.u32 4294901760, %v6179_v62  ;;  %v16752_v8 = vand.u32 4294901760, %v5864_v55 }
 0x509   : > { %6151 = vmatprep.subr.mxu1 %v6150_v28  ;;  %5934 = vmatprep.subr.mxu0 %v16446_v52  ;;  %v6197_v33 = vsub.f32 %v16650_v58, %v22315_v16  ;;  %v6186_v28 = vand.u32 4294901760, %v6185_v34  ;;  %v6192_v16 = vand.u32 4294901760, %v6191_v10  ;;  %v6221_v34 = vsub.f32 %v16669_v3, %v20915_v46 }
 0x50a   : > { %6157 = vmatpush1.msra.mxu1 %v6156_v31  ;;  %5936 = vmatpush1.msra.mxu0 %v16448_v42  ;;  %v6215_v31 = vsub.f32 %v16662_v12, %v20916_v32  ;;  %22327 = vst [vmem:[#allocation46_spill] sm:$0xff] %v16752_v8  ;;  %v16771_v58 = vsub.f32 %v5864_v55, %v16752_v8 }
 0x50b   : > { %6163 = vmatprep.subr.mxu1 %v6162_v35  ;;  %5938 = vmatprep.subr.mxu0 %v16461_v48  ;;  %v6198_v62 = vand.u32 4294901760, %v6197_v33  ;;  %v6204_v35 = vand.u32 4294901760, %v6203_v6  ;;  %v5869_v33 = vld [vmem:[#allocation8 + $0x440] sm:$0xff]  ;;  %v5868_v6 = vld [vmem:[#allocation8 + $0x438] sm:$0xff] }
 0x50c   : > { %6169 = vmatpush1.msra.mxu1 %v6168_v63  ;;  %5940 = vmatpush1.msra.mxu0 %v16473_v57  ;;  %v6210_v63 = vand.u32 4294901760, %v6209_v17  ;;  %v6216_v10 = vand.u32 4294901760, %v6215_v31  ;;  %v5867_v17 = vld [vmem:[#allocation8 + $0x430] sm:$0xff]  ;;  %22331 = vst [vmem:[#allocation48_spill] sm:$0xff] %v16771_v58 }
 0x50d   : > { %6175 = vmatprep.subr.mxu1 %v6174_v7  ;;  %5942 = vmatprep.subr.mxu0 %v16533_v15  ;;  %v6222_v7 = vand.u32 4294901760, %v6221_v34  ;;  %v16728_v31 = vand.u32 4294901760, %v5867_v17  ;;  %v16731_v34 = vpop.f32.mrf.mxu1 }
 0x50e   : > { %6181 = vmatpush1.msra.mxu1 %v6180_v37  ;;  %5944 = vmatpush1.msra.mxu0 %v16535_v50  ;;  %v16719_v37 = vand.u32 4294901760, %v5869_v33  ;;  %22320 = vst [vmem:[#allocation109_spill] sm:$0xff] %v16731_v34  ;;  %v5863_v34 = vld [vmem:[#allocation8 + $0x410] sm:$0xff] }
 0x50f   : > { %6187 = vmatprep.subr.mxu1 %v6186_v28  ;;  %5946 = vmatprep.subr.mxu0 %v16537_v14  ;;  %v16722_v28 = vand.u32 4294901760, %v5868_v6  ;;  %22319 = vst [vmem:[#allocation118_spill] sm:$0xff] %v16728_v31  ;;  %v16743_v46 = vsub.f32 %v5867_v17, %v16728_v31  ;;  %v16762_v13 = vand.u32 4294901760, %v5863_v34 }
 0x510   : > { %6193 = vmatpush1.msra.mxu1 %v6192_v16  ;;  %5948 = vmatpush1.msra.mxu0 %v16547_v25  ;;  %22316 = vst [vmem:[#allocation101_spill] sm:$0xff] %v16719_v37  ;;  %v16726_v16 = vsub.f32 %v5869_v33, %v16719_v37 }
 0x511   : > { %6199 = vmatprep.subr.mxu1 %v6198_v62  ;;  %5950 = vmatprep.subr.mxu0 %v16549_v26  ;;  %22317 = vst [vmem:[#allocation103_spill] sm:$0xff] %v16722_v28  ;;  %v5866_v62 = vld [vmem:[#allocation8 + $0x428] sm:$0xff]  ;;  %22324 = vst [vmem:[#allocation22_spill] sm:$0xff] %v16743_v46  ;;  %v20940_v3 = vand.u32 4294901760, %v16743_v46 }
 0x512   : > { %6205 = vmatpush1.msra.mxu1 %v6204_v35  ;;  %5952 = vmatpush1.msra.mxu0 %v16551_v19  ;;  %22318 = vst [vmem:[#allocation105_spill] sm:$0xff] %v16726_v16  ;;  %v16734_v35 = vsub.f32 %v5868_v6, %v16722_v28  ;;  %v22328_v17 = vand.u32 4294901760, %v16726_v16  ;;  %22330 = vst [vmem:[#allocation33_spill] sm:$0xff] %v16762_v13 }
 0x513   : > { %6211 = vmatprep.subr.mxu1 %v6210_v63  ;;  %5954 = vmatprep.subr.mxu0 %v16563_v39  ;;  %v16736_v63 = vand.u32 4294901760, %v5866_v62 }
 0x514   : > { %6217 = vmatpush1.msra.mxu1 %v6216_v10  ;;  %5956 = vmatpush1.msra.mxu0 %v16574_v38  ;;  %22321 = vst [vmem:[#allocation110_spill] sm:$0xff] %v16734_v35  ;;  %v5865_v10 = vld [vmem:[#allocation8 + $0x420] sm:$0xff]  ;;  %v20935_v6 = vand.u32 4294901760, %v16734_v35 }
 0x515   : > { %6223 = vmatprep.subr.mxu1 %v6222_v7  ;;  %5958 = vmatprep.subr.mxu0 %v16627_v5  ;;  %22322 = vst [vmem:[#allocation115_spill] sm:$0xff] %v16736_v63  ;;  %v16739_v7 = vpop.f32.mrf.mxu0  ;;  %v16745_v32 = vand.u32 4294901760, %v5865_v10  ;;  %v16750_v41 = vsub.f32 %v5866_v62, %v16736_v63 }
 0x516   : > { %5960 = vmatpush1.msra.mxu0 %v16629_v49  ;;  %22323 = vst [vmem:[#allocation121_spill] sm:$0xff] %v16739_v7  ;;  %v6227_v7 = vsub.f32 %v16726_v16, %v22328_v17  ;;  %v6233_v30 = vsub.f32 %v16734_v35, %v20935_v6  ;;  %v6239_v16 = vsub.f32 %v16743_v46, %v20940_v3  ;;  %v5862_v6 = vld [vmem:[#allocation8 + $0x408] sm:$0xff]  ;;  %v5861_v35 = vld [vmem:[#allocation8 + $0x400] sm:$0xff]  ;;  %v20954_v46 = vand.u32 4294901760, %v16771_v58 }
 0x517   : > { %5962 = vmatprep.subr.mxu0 %v16631_v2  ;;  %22325 = vst [vmem:[#allocation25_spill] sm:$0xff] %v16745_v32  ;;  %22326 = vst [vmem:[#allocation43_spill] sm:$0xff] %v16750_v41  ;;  %v16760_v12 = vsub.f32 %v5865_v10, %v16745_v32 }
 0x518   : > { %5964 = vmatpush1.msra.mxu0 %v16636_v60  ;;  %v4514_v61 = vpop.f32.mrf.mxu1  ;;  %v6228_v10 = vand.u32 4294901760, %v6227_v7  ;;  %v22335_v7 = vand.u32 4294901760, %v16750_v41  ;;  %v6240_v3 = vand.u32 4294901760, %v6239_v16 }
 0x519   : > { %5966 = vmatprep.subr.mxu0 %v16638_v22  ;;  %22329 = vst [vmem:[#allocation28_spill] sm:$0xff] %v16760_v12 }
 0x51a   : > { %5968 = vmatpush1.msra.mxu0 %v16640_v23  ;;  %v16784_v55 = vpop.f32.mrf.mxu1  ;;  %6229 = vmatpush1.msra.mxu1 %v6228_v10 }
 0x51b   : > { %5970 = vmatprep.subr.mxu0 %v16652_v43  ;;  %22334 = vst [vmem:[#allocation42_spill] sm:$0xff] %v16784_v55 }
 0x51c   : > { %5972 = vmatpush1.msra.mxu0 %v16719_v37 }
 0x51d   : > { %5974 = vmatprep.subr.mxu0 %v16722_v28 }
 0x51e   : > { %5976 = vmatpush1.msra.mxu0 %v16728_v31  ;;  %v5923_v31 = vld [vmem:[#allocation8 + $0x5f0] sm:$0xff] }
 0x51f   : > { %5978 = vmatprep.subr.mxu0 %v16736_v63 }
 0x520   : > { %5980 = vmatpush1.msra.mxu0 %v16745_v32 }
 0x521   : > { %v4105_v33 = vpop.f32.mrf.mxu0  ;;  %5982 = vmatprep.subr.mxu0 %v16752_v8  ;;  %v6234_v8 = vand.u32 4294901760, %v6233_v30  ;;  %v16796_v30 = vand.u32 4294901760, %v5862_v6 }
 0x522   : > { %v4106_v62 = vadd.f32 %v4105_v33, %v16383_v20  ;;  %v20949_v20 = vand.u32 4294901760, %v16760_v12  ;;  %v16781_v33 = vsub.f32 %v5863_v34, %v16762_v13  ;;  %5984 = vmatpush1.msra.mxu0 %v16762_v13  ;;  %v5924_v13 = vld [vmem:[#allocation8 + $0x5f8] sm:$0xff] }
 0x523   : > { %v16774_v17 = vpop.f32.mrf.mxu0  ;;  %6235 = vmatprep.subr.mxu1 %v6234_v8  ;;  %22336 = vst [vmem:[#allocation53_spill] sm:$0xff] %v16796_v30  ;;  %v16808_v8 = vsub.f32 %v5862_v6, %v16796_v30  ;;  %5986 = vmatprep.subr.mxu0 %v16796_v30 }
 0x524   : > { %22332 = vst [vmem:[#allocation38_spill] sm:$0xff] %v16774_v17  ;;  %22333 = vst [vmem:[#allocation51_spill] sm:$0xff] %v16781_v33  ;;  %v16786_v63 = vadd.f32 %v4514_v61, %v4106_v62  ;;  %v6245_v17 = vsub.f32 %v16750_v41, %v22335_v7  ;;  %v6251_v34 = vsub.f32 %v16760_v12, %v20949_v20  ;;  %v20955_v32 = vand.u32 4294901760, %v16781_v33  ;;  %v4522_v12 = vpop.f32.mrf.mxu1 }
 0x525   : > { %v16798_v62 = vand.u32 4294901760, %v5861_v35  ;;  %6241 = vmatpush1.msra.mxu1 %v6240_v3  ;;  %v6257_v7 = vsub.f32 %v16771_v58, %v20954_v46  ;;  %22338 = vst [vmem:[#allocation45_spill] sm:$0xff] %v16808_v8  ;;  %v16813_v41 = vand.u32 4294901760, %v5924_v13  ;;  %v5922_v3 = vld [vmem:[#allocation8 + $0x5e8] sm:$0xff]  ;;  %v20966_v6 = vand.u32 4294901760, %v16808_v8 }
 0x526   : > { %v4121_v55 = vpop.f32.mrf.mxu0  ;;  %v6246_v61 = vand.u32 4294901760, %v6245_v17  ;;  %v6252_v16 = vand.u32 4294901760, %v6251_v34  ;;  %v6263_v20 = vsub.f32 %v16781_v33, %v20955_v32  ;;  %v5920_v34 = vld [vmem:[#allocation8 + $0x5d8] sm:$0xff] }
 0x527   : > { %22337 = vst [vmem:[#allocation26_spill] sm:$0xff] %v16798_v62  ;;  %v4122_v10 = vadd.f32 %v4121_v55, %v16407_v56  ;;  %v16811_v17 = vsub.f32 %v5861_v35, %v16798_v62  ;;  %22340 = vst [vmem:[#allocation47_spill] sm:$0xff] %v16813_v41  ;;  %v16815_v56 = vand.u32 4294901760, %v5923_v31  ;;  %v5921_v55 = vld [vmem:[#allocation8 + $0x5e0] sm:$0xff]  ;;  %v6258_v32 = vand.u32 4294901760, %v6257_v7  ;;  %5988 = vmatpush1.msra.mxu0 %v16798_v62 }
 0x528   : > { %6247 = vmatprep.subr.mxu1 %v6246_v61  ;;  %v6264_v61 = vand.u32 4294901760, %v6263_v20  ;;  %v16824_v33 = vsub.f32 %v5924_v13, %v16813_v41  ;;  %5990 = vmatprep.subr.mxu0 %v16813_v41  ;;  %v16834_v20 = vand.u32 4294901760, %v5920_v34  ;;  %v6269_v13 = vsub.f32 %v16808_v8, %v20966_v6  ;;  %v5918_v6 = vld [vmem:[#allocation8 + $0x5c8] sm:$0xff]  ;;  %v5917_v8 = vld [vmem:[#allocation8 + $0x5c0] sm:$0xff] }
 0x529   : > { %22339 = vst [vmem:[#allocation55_spill] sm:$0xff] %v16811_v17  ;;  %22341 = vst [vmem:[#allocation57_spill] sm:$0xff] %v16815_v56  ;;  %v16818_v46 = vadd.f32 %v4522_v12, %v4122_v10  ;;  %6253 = vmatpush1.msra.mxu1 %v6252_v16  ;;  %v20969_v35 = vand.u32 4294901760, %v16811_v17  ;;  %v16827_v58 = vsub.f32 %v5923_v31, %v16815_v56  ;;  %v16830_v12 = vand.u32 4294901760, %v5922_v3 }
 0x52a   : > { %22342 = vst [vmem:[#allocation49_spill] sm:$0xff] %v16824_v33  ;;  %6259 = vmatprep.subr.mxu1 %v6258_v32  ;;  %v16832_v10 = vand.u32 4294901760, %v5921_v55  ;;  %22346 = vst [vmem:[#allocation125_spill] sm:$0xff] %v16834_v20  ;;  %5992 = vmatpush2.msra.mxu0 %v16815_v56  ;;  %v20978_v16 = vand.u32 4294901760, %v16824_v33  ;;  %v16854_v56 = vand.u32 4294901760, %v5919_v45  ;;  %v16871_v28 = vand.u32 4294901760, %v5918_v6 }
 0x52b   : > { %22343 = vst [vmem:[#allocation59_spill] sm:$0xff] %v16827_v58  ;;  %22344 = vst [vmem:[#allocation52_spill] sm:$0xff] %v16830_v12  ;;  %6265 = vmatpush1.msra.mxu1 %v6264_v61  ;;  %v6275_v31 = vsub.f32 %v16811_v17, %v20969_v35  ;;  %v16846_v7 = vsub.f32 %v5922_v3, %v16830_v12  ;;  %v16852_v61 = vsub.f32 %v5920_v34, %v16834_v20 }
 0x52c   : > { %22345 = vst [vmem:[#allocation132_spill] sm:$0xff] %v16832_v10  ;;  %v16849_v41 = vsub.f32 %v5921_v55, %v16832_v10  ;;  %22350 = vst [vmem:[#allocation131_spill] sm:$0xff] %v16854_v56  ;;  %5994 = vmatprep.subr.mxu0 %v16830_v12  ;;  %v6270_v35 = vand.u32 4294901760, %v6269_v13  ;;  %v6281_v32 = vsub.f32 %v16824_v33, %v20978_v16  ;;  %v22351_v3 = vand.u32 4294901760, %v16827_v58  ;;  %v5916_v13 = vld [vmem:[#allocation8 + $0x5b8] sm:$0xff] }
 0x52d   : > { %22347 = vst [vmem:[#allocation56_spill] sm:$0xff] %v16846_v7  ;;  %22349 = vst [vmem:[#allocation58_spill] sm:$0xff] %v16852_v61  ;;  %v6276_v17 = vand.u32 4294901760, %v6275_v31  ;;  %5996 = vmatpush2.msra.mxu0 %v16832_v10  ;;  %v20987_v34 = vand.u32 4294901760, %v16846_v7  ;;  %v16868_v12 = vsub.f32 %v5919_v45, %v16854_v56  ;;  %v5915_v31 = vld [vmem:[#allocation8 + $0x5b0] sm:$0xff] }
 0x52e   : > { %22348 = vst [vmem:[#allocation129_spill] sm:$0xff] %v16849_v41  ;;  %v6287_v55 = vsub.f32 %v16827_v58, %v22351_v3  ;;  %v20992_v62 = vand.u32 4294901760, %v16849_v41  ;;  %5998 = vmatprep.subr.mxu0 %v16834_v20  ;;  %6271 = vmatprep.subr.mxu1 %v6270_v35  ;;  %v6282_v16 = vand.u32 4294901760, %v6281_v32  ;;  %22353 = vst [vmem:[#allocation135_spill] sm:$0xff] %v16871_v28  ;;  %v16873_v3 = vand.u32 4294901760, %v5917_v8  ;;  %v5913_v20 = vld [vmem:[#allocation8 + $0x5a0] sm:$0xff] }
 0x52f   : > { %22352 = vst [vmem:[#allocation113_spill] sm:$0xff] %v16868_v12  ;;  %6000 = vmatpush2.msra.mxu0 %v16854_v56  ;;  %6277 = vmatpush1.msra.mxu1 %v6276_v17  ;;  %v6293_v30 = vsub.f32 %v16846_v7, %v20987_v34  ;;  %v22355_v58 = vand.u32 4294901760, %v16852_v61  ;;  %v16892_v56 = vand.u32 4294901760, %v5916_v13  ;;  %v16894_v34 = vand.u32 4294901760, %v5915_v31  ;;  %v5914_v7 = vld [vmem:[#allocation8 + $0x5a8] sm:$0xff] }
 0x530   : > { %v6288_v33 = vand.u32 4294901760, %v6287_v55  ;;  %22354 = vst [vmem:[#allocation130_spill] sm:$0xff] %v16873_v3  ;;  %v6299_v45 = vsub.f32 %v16849_v41, %v20992_v62  ;;  %6283 = vmatprep.subr.mxu1 %v6282_v16  ;;  %v16887_v55 = vsub.f32 %v5918_v6, %v16871_v28  ;;  %v16890_v17 = vsub.f32 %v5917_v8, %v16873_v3  ;;  %v5912_v62 = vld [vmem:[#allocation8 + $0x598] sm:$0xff] }
 0x531   : > { %v6305_v35 = vsub.f32 %v16852_v61, %v22355_v58  ;;  %22358 = vst [vmem:[#allocation64_spill] sm:$0xff] %v16892_v56  ;;  %22359 = vst [vmem:[#allocation36_spill] sm:$0xff] %v16894_v34  ;;  %6002 = vmatprep.subr.mxu0 %v16871_v28  ;;  %v6294_v58 = vand.u32 4294901760, %v6293_v30  ;;  %v22360_v16 = vand.u32 4294901760, %v16868_v12  ;;  %v16904_v10 = vsub.f32 %v5916_v13, %v16892_v56 }
 0x532   : > { %22356 = vst [vmem:[#allocation136_spill] sm:$0xff] %v16887_v55  ;;  %22357 = vst [vmem:[#allocation134_spill] sm:$0xff] %v16890_v17  ;;  %6289 = vmatpush2.msra.mxu1 %v6288_v33  ;;  %v6300_v61 = vand.u32 4294901760, %v6299_v45  ;;  %6004 = vmatpush2.msra.mxu0 %v16873_v3  ;;  %v21007_v8 = vand.u32 4294901760, %v16887_v55  ;;  %v21010_v41 = vand.u32 4294901760, %v16890_v17  ;;  %v16907_v36 = vsub.f32 %v5915_v31, %v16894_v34  ;;  %v5911_v33 = vld [vmem:[#allocation8 + $0x590] sm:$0xff] }
 0x533   : > { %v6306_v32 = vand.u32 4294901760, %v6305_v35  ;;  %v6311_v6 = vsub.f32 %v16868_v12, %v22360_v16  ;;  %22361 = vst [vmem:[#allocation66_spill] sm:$0xff] %v16904_v10  ;;  %6006 = vmatprep.subr.mxu0 %v16892_v56  ;;  %6295 = vmatprep.subr.mxu1 %v6294_v58  ;;  %v16910_v45 = vand.u32 4294901760, %v5914_v7  ;;  %v16912_v35 = vand.u32 4294901760, %v5913_v20 }
 0x534   : > { %22362 = vst [vmem:[#allocation126_spill] sm:$0xff] %v16907_v36  ;;  %v16914_v16 = vand.u32 4294901760, %v5912_v62  ;;  %6008 = vmatpush2.msra.mxu0 %v16894_v34  ;;  %6301 = vmatpush2.msra.mxu1 %v6300_v61  ;;  %v6317_v13 = vsub.f32 %v16887_v55, %v21007_v8  ;;  %v6323_v31 = vsub.f32 %v16890_v17, %v21010_v41  ;;  %v16934_v34 = vand.u32 4294901760, %v5911_v33  ;;  %v5910_v8 = vld [vmem:[#allocation8 + $0x588] sm:$0xff]  ;;  %v5909_v55 = vld [vmem:[#allocation8 + $0x580] sm:$0xff] }
 0x535   : > { %v6312_v30 = vand.u32 4294901760, %v6311_v6  ;;  %22363 = vst [vmem:[#allocation68_spill] sm:$0xff] %v16910_v45  ;;  %22364 = vst [vmem:[#allocation133_spill] sm:$0xff] %v16912_v35  ;;  %v21019_v6 = vand.u32 4294901760, %v16907_v36  ;;  %6307 = vmatprep.subr.mxu1 %v6306_v32  ;;  %v16926_v12 = vsub.f32 %v5914_v7, %v16910_v45  ;;  %v16929_v56 = vsub.f32 %v5913_v20, %v16912_v35 }
 0x536   : > { %22365 = vst [vmem:[#allocation70_spill] sm:$0xff] %v16914_v16  ;;  %v16932_v61 = vsub.f32 %v5912_v62, %v16914_v16  ;;  %22369 = vst [vmem:[#allocation74_spill] sm:$0xff] %v16934_v34  ;;  %6010 = vmatprep.subr.mxu0 %v16910_v45  ;;  %v6318_v41 = vand.u32 4294901760, %v6317_v13  ;;  %v6324_v58 = vand.u32 4294901760, %v6323_v31  ;;  %v22370_v32 = vand.u32 4294901760, %v16904_v10  ;;  %v5908_v13 = vld [vmem:[#allocation8 + $0x578] sm:$0xff] }
 0x537   : > { %22366 = vst [vmem:[#allocation40_spill] sm:$0xff] %v16926_v12  ;;  %22367 = vst [vmem:[#allocation72_spill] sm:$0xff] %v16929_v56  ;;  %6313 = vmatpush2.msra.mxu1 %v6312_v30  ;;  %v6335_v20 = vsub.f32 %v16907_v36, %v21019_v6  ;;  %6012 = vmatpush2.msra.mxu0 %v16912_v35  ;;  %v21024_v62 = vand.u32 4294901760, %v16926_v12  ;;  %v21029_v17 = vand.u32 4294901760, %v16929_v56  ;;  %v5907_v31 = vld [vmem:[#allocation8 + $0x570] sm:$0xff]  ;;  %v16951_v45 = vand.u32 4294901760, %v5910_v8 }
 0x538   : > { %22368 = vst [vmem:[#allocation60_spill] sm:$0xff] %v16932_v61  ;;  %v6329_v7 = vsub.f32 %v16904_v10, %v22370_v32  ;;  %v16948_v30 = vsub.f32 %v5911_v33, %v16934_v34  ;;  %6014 = vmatprep.subr.mxu0 %v16914_v16  ;;  %6319 = vmatprep.subr.mxu1 %v6318_v41  ;;  %v16953_v6 = vand.u32 4294901760, %v5909_v55  ;;  %v22374_v36 = vand.u32 4294901760, %v16932_v61  ;;  %v5905_v16 = vld [vmem:[#allocation8 + $0x560] sm:$0xff] }
 0x539   : > { %v6336_v10 = vand.u32 4294901760, %v6335_v20  ;;  %22372 = vst [vmem:[#allocation79_spill] sm:$0xff] %v16951_v45  ;;  %6016 = vmatpush2.msra.mxu0 %v16934_v34  ;;  %6325 = vmatpush2.msra.mxu1 %v6324_v58  ;;  %v6341_v3 = vsub.f32 %v16926_v12, %v21024_v62  ;;  %v6347_v33 = vsub.f32 %v16929_v56, %v21029_v17  ;;  %v16972_v34 = vand.u32 4294901760, %v5908_v13  ;;  %v5906_v12 = vld [vmem:[#allocation8 + $0x568] sm:$0xff]  ;;  %v5904_v17 = vld [vmem:[#allocation8 + $0x558] sm:$0xff] }
 0x53a   : > { %22371 = vst [vmem:[#allocation61_spill] sm:$0xff] %v16948_v30  ;;  %v6330_v32 = vand.u32 4294901760, %v6329_v7  ;;  %22373 = vst [vmem:[#allocation80_spill] sm:$0xff] %v16953_v6  ;;  %v6353_v41 = vsub.f32 %v16932_v61, %v22374_v36  ;;  %v16967_v20 = vsub.f32 %v5910_v8, %v16951_v45  ;;  %v16970_v58 = vsub.f32 %v5909_v55, %v16953_v6 }
 0x53b   : > { %22377 = vst [vmem:[#allocation84_spill] sm:$0xff] %v16972_v34  ;;  %v16974_v62 = vand.u32 4294901760, %v5907_v31  ;;  %6018 = vmatprep.subr.mxu0 %v16951_v45  ;;  %v6342_v36 = vand.u32 4294901760, %v6341_v3  ;;  %v6348_v61 = vand.u32 4294901760, %v6347_v33  ;;  %v16984_v35 = vsub.f32 %v5908_v13, %v16972_v34 }
 0x53c   : > { %6331 = vmatprep.subr.mxu1 %v6330_v32  ;;  %22375 = vst [vmem:[#allocation63_spill] sm:$0xff] %v16967_v20  ;;  %22376 = vst [vmem:[#allocation82_spill] sm:$0xff] %v16970_v58  ;;  %v6354_v7 = vand.u32 4294901760, %v6353_v41  ;;  %v22379_v32 = vand.u32 4294901760, %v16948_v30  ;;  %6020 = vmatpush2.msra.mxu0 %v16953_v6  ;;  %v21044_v55 = vand.u32 4294901760, %v16967_v20  ;;  %v21047_v56 = vand.u32 4294901760, %v16970_v58 }
 0x53d   : > { %22378 = vst [vmem:[#allocation67_spill] sm:$0xff] %v16974_v62  ;;  %6337 = vmatpush2.msra.mxu1 %v6336_v10  ;;  %22380 = vst [vmem:[#allocation76_spill] sm:$0xff] %v16984_v35  ;;  %v16987_v28 = vsub.f32 %v5907_v31, %v16974_v62  ;;  %v5903_v10 = vld [vmem:[#allocation8 + $0x550] sm:$0xff]  ;;  %6022 = vmatprep.subr.mxu0 %v16972_v34  ;;  %v16990_v33 = vand.u32 4294901760, %v5906_v12  ;;  %v16992_v41 = vand.u32 4294901760, %v5905_v16 }
 0x53e   : > { %v6359_v8 = vsub.f32 %v16948_v30, %v22379_v32  ;;  %6343 = vmatprep.subr.mxu1 %v6342_v36  ;;  %v16994_v32 = vand.u32 4294901760, %v5904_v17  ;;  %6024 = vmatpush2.msra.mxu0 %v16974_v62  ;;  %v6365_v13 = vsub.f32 %v16967_v20, %v21044_v55  ;;  %v6371_v31 = vsub.f32 %v16970_v58, %v21047_v56  ;;  %v5902_v55 = vld [vmem:[#allocation8 + $0x548] sm:$0xff]  ;;  %v5901_v20 = vld [vmem:[#allocation8 + $0x540] sm:$0xff] }
 0x53f   : > { %22381 = vst [vmem:[#allocation90_spill] sm:$0xff] %v16987_v28  ;;  %22382 = vst [vmem:[#allocation92_spill] sm:$0xff] %v16990_v33  ;;  %6349 = vmatpush2.msra.mxu1 %v6348_v61  ;;  %v17006_v30 = vsub.f32 %v5906_v12, %v16990_v33  ;;  %v17009_v34 = vsub.f32 %v5905_v16, %v16992_v41  ;;  %v17014_v62 = vand.u32 4294901760, %v5903_v10  ;;  %6026 = vmatprep.subr.mxu0 %v16990_v33 }
 0x540   : > { %v6360_v3 = vand.u32 4294901760, %v6359_v8  ;;  %22383 = vst [vmem:[#allocation81_spill] sm:$0xff] %v16992_v41  ;;  %22384 = vst [vmem:[#allocation83_spill] sm:$0xff] %v16994_v32  ;;  %v21056_v8 = vand.u32 4294901760, %v16987_v28  ;;  %6355 = vmatprep.subr.mxu1 %v6354_v7  ;;  %v17012_v61 = vsub.f32 %v5904_v17, %v16994_v32  ;;  %v6366_v56 = vand.u32 4294901760, %v6365_v13  ;;  %6028 = vmatpush2.msra.mxu0 %v16992_v41  ;;  %v5900_v13 = vld [vmem:[#allocation8 + $0x538] sm:$0xff] }
 0x541   : > { %22385 = vst [vmem:[#allocation96_spill] sm:$0xff] %v17006_v30  ;;  %22386 = vst [vmem:[#allocation98_spill] sm:$0xff] %v17009_v34  ;;  %v6372_v36 = vand.u32 4294901760, %v6371_v31  ;;  %v22389_v7 = vand.u32 4294901760, %v16984_v35  ;;  %v21061_v17 = vand.u32 4294901760, %v17006_v30  ;;  %v21066_v58 = vand.u32 4294901760, %v17009_v34  ;;  %6030 = vmatprep.subr.mxu0 %v16994_v32 }
 0x542   : > { %22387 = vst [vmem:[#allocation100_spill] sm:$0xff] %v17012_v61  ;;  %22388 = vst [vmem:[#allocation102_spill] sm:$0xff] %v17014_v62  ;;  %6361 = vmatpush2.msra.mxu1 %v6360_v3  ;;  %v6383_v16 = vsub.f32 %v16987_v28, %v21056_v8  ;;  %v17028_v3 = vsub.f32 %v5903_v10, %v17014_v62  ;;  %v5899_v31 = vld [vmem:[#allocation8 + $0x530] sm:$0xff]  ;;  %v17031_v33 = vand.u32 4294901760, %v5902_v55  ;;  %v17033_v8 = vand.u32 4294901760, %v5901_v20  ;;  %v5897_v32 = vld [vmem:[#allocation8 + $0x520] sm:$0xff] }
 0x543   : > { %v6377_v12 = vsub.f32 %v16984_v35, %v22389_v7  ;;  %6367 = vmatprep.subr.mxu1 %v6366_v56  ;;  %6032 = vmatpush2.msra.mxu0 %v17014_v62  ;;  %v6389_v6 = vsub.f32 %v17006_v30, %v21061_v17  ;;  %v6395_v10 = vsub.f32 %v17009_v34, %v21066_v58  ;;  %v22393_v28 = vand.u32 4294901760, %v17012_v61  ;;  %v5898_v30 = vld [vmem:[#allocation8 + $0x528] sm:$0xff]  ;;  %v5896_v58 = vld [vmem:[#allocation8 + $0x518] sm:$0xff] }
 0x544   : > { %22390 = vst [vmem:[#allocation104_spill] sm:$0xff] %v17028_v3  ;;  %v6384_v35 = vand.u32 4294901760, %v6383_v16  ;;  %22391 = vst [vmem:[#allocation106_spill] sm:$0xff] %v17031_v33  ;;  %6373 = vmatpush2.msra.mxu1 %v6372_v36  ;;  %v17047_v16 = vsub.f32 %v5902_v55, %v17031_v33  ;;  %v17050_v36 = vsub.f32 %v5901_v20, %v17033_v8  ;;  %v17052_v62 = vand.u32 4294901760, %v5900_v13 }
 0x545   : > { %v6378_v7 = vand.u32 4294901760, %v6377_v12  ;;  %22392 = vst [vmem:[#allocation108_spill] sm:$0xff] %v17033_v8  ;;  %v6401_v56 = vsub.f32 %v17012_v61, %v22393_v28  ;;  %v17054_v17 = vand.u32 4294901760, %v5899_v31  ;;  %6034 = vmatprep.subr.mxu0 %v17031_v33  ;;  %v6390_v28 = vand.u32 4294901760, %v6389_v6 }
 0x546   : > { %22394 = vst [vmem:[#allocation111_spill] sm:$0xff] %v17047_v16  ;;  %22395 = vst [vmem:[#allocation112_spill] sm:$0xff] %v17050_v36  ;;  %v6396_v61 = vand.u32 4294901760, %v6395_v10  ;;  %6036 = vmatpush2.msra.mxu0 %v17033_v8  ;;  %v21081_v20 = vand.u32 4294901760, %v17047_v16  ;;  %v21084_v34 = vand.u32 4294901760, %v17050_v36  ;;  %v17064_v41 = vsub.f32 %v5900_v13, %v17052_v62 }
 0x547   : > { %6379 = vmatprep.subr.mxu1 %v6378_v7  ;;  %22396 = vst [vmem:[#allocation114_spill] sm:$0xff] %v17052_v62  ;;  %22397 = vst [vmem:[#allocation116_spill] sm:$0xff] %v17054_v17  ;;  %v6402_v12 = vand.u32 4294901760, %v6401_v56  ;;  %v22398_v7 = vand.u32 4294901760, %v17028_v3  ;;  %v17067_v45 = vsub.f32 %v5899_v31, %v17054_v17  ;;  %6038 = vmatprep.subr.mxu0 %v17052_v62  ;;  %v17070_v10 = vand.u32 4294901760, %v5898_v30 }
 0x548   : > { %6385 = vmatpush2.msra.mxu1 %v6384_v35  ;;  %22399 = vst [vmem:[#allocation107_spill] sm:$0xff] %v17064_v41  ;;  %v5895_v35 = vld [vmem:[#allocation8 + $0x510] sm:$0xff]  ;;  %v17072_v56 = vand.u32 4294901760, %v5897_v32  ;;  %6040 = vmatpush2.msra.mxu0 %v17054_v17  ;;  %v6413_v13 = vsub.f32 %v17047_v16, %v21081_v20  ;;  %v6419_v31 = vsub.f32 %v17050_v36, %v21084_v34  ;;  %v5894_v20 = vld [vmem:[#allocation8 + $0x508] sm:$0xff]  ;;  %v5893_v16 = vld [vmem:[#allocation8 + $0x500] sm:$0xff] }
 0x549   : > { %v6407_v55 = vsub.f32 %v17028_v3, %v22398_v7  ;;  %22400 = vst [vmem:[#allocation122_spill] sm:$0xff] %v17067_v45  ;;  %6391 = vmatprep.subr.mxu1 %v6390_v28  ;;  %22401 = vst [vmem:[#allocation124_spill] sm:$0xff] %v17070_v10  ;;  %v17074_v7 = vand.u32 4294901760, %v5896_v58  ;;  %v17086_v3 = vsub.f32 %v5898_v30, %v17070_v10  ;;  %v17094_v17 = vand.u32 4294901760, %v5895_v35 }
 0x54a   : > { %22402 = vst [vmem:[#allocation127_spill] sm:$0xff] %v17072_v56  ;;  %6397 = vmatpush2.msra.mxu1 %v6396_v61  ;;  %v17089_v62 = vsub.f32 %v5897_v32, %v17072_v56  ;;  %6042 = vmatprep.subr.mxu0 %v17070_v10  ;;  %v6414_v34 = vand.u32 4294901760, %v6413_v13  ;;  %v6420_v28 = vand.u32 4294901760, %v6419_v31 }
 0x54b   : > { %v6408_v6 = vand.u32 4294901760, %v6407_v55  ;;  %22403 = vst [vmem:[#allocation128_spill] sm:$0xff] %v17074_v7  ;;  %v21091_v55 = vand.u32 4294901760, %v17067_v45  ;;  %6403 = vmatprep.subr.mxu1 %v6402_v12  ;;  %22404 = vst [vmem:[#allocation117_spill] sm:$0xff] %v17086_v3  ;;  %v17092_v61 = vsub.f32 %v5896_v58, %v17074_v7  ;;  %v22408_v12 = vand.u32 4294901760, %v17064_v41  ;;  %6044 = vmatpush2.msra.mxu0 %v17072_v56 }
 0x54c   : > { %22405 = vst [vmem:[#allocation120_spill] sm:$0xff] %v17089_v62  ;;  %22407 = vst [vmem:[#allocation119_spill] sm:$0xff] %v17094_v17  ;;  %v21092_v58 = vand.u32 4294901760, %v17086_v3  ;;  %v21097_v36 = vand.u32 4294901760, %v17089_v62  ;;  %6046 = vmatprep.subr.mxu0 %v17074_v7 }
 0x54d   : > { %22406 = vst [vmem:[#allocation123_spill] sm:$0xff] %v17092_v61  ;;  %6409 = vmatpush2.msra.mxu1 %v6408_v6  ;;  %v6425_v30 = vsub.f32 %v17064_v41, %v22408_v12  ;;  %v6431_v32 = vsub.f32 %v17067_v45, %v21091_v55  ;;  %v21100_v8 = vand.u32 4294901760, %v17092_v61  ;;  %v17108_v6 = vsub.f32 %v5895_v35, %v17094_v17 }
 0x54e   : > { %6415 = vmatprep.subr.mxu1 %v6414_v34  ;;  %v17111_v12 = vand.u32 4294901760, %v5894_v20  ;;  %v17113_v41 = vand.u32 4294901760, %v5893_v16  ;;  %6048 = vmatpush2.msra.mxu0 %v17094_v17  ;;  %v6437_v55 = vsub.f32 %v17086_v3, %v21092_v58  ;;  %v6443_v35 = vsub.f32 %v17089_v62, %v21097_v36 }
 0x54f   : > { %22409 = vst [vmem:[#allocation137_spill] sm:$0xff] %v17108_v6  ;;  %v6426_v13 = vand.u32 4294901760, %v6425_v30  ;;  %v6432_v31 = vand.u32 4294901760, %v6431_v32  ;;  %6421 = vmatpush2.msra.mxu1 %v6420_v28  ;;  %v6449_v34 = vsub.f32 %v17092_v61, %v21100_v8  ;;  %v21098_v30 = vand.u32 4294901760, %v17108_v6 }
 0x550   : > { %22410 = vst [vmem:[#allocation138_spill] sm:$0xff] %v17111_v12  ;;  %22411 = vst [vmem:[#allocation140_spill] sm:$0xff] %v17113_v41  ;;  %v17127_v32 = vsub.f32 %v5894_v20, %v17111_v12  ;;  %v17130_v28 = vsub.f32 %v5893_v16, %v17113_v41  ;;  %6050 = vmatprep.subr.mxu0 %v17111_v12  ;;  %v6438_v58 = vand.u32 4294901760, %v6437_v55  ;;  %v6444_v3 = vand.u32 4294901760, %v6443_v35 }
 0x551   : > { %6427 = vmatprep.subr.mxu1 %v6426_v13  ;;  %v6450_v45 = vand.u32 4294901760, %v6449_v34  ;;  %v6455_v36 = vsub.f32 %v17108_v6, %v21098_v30  ;;  %6052 = vmatpush2.msra.mxu0 %v17113_v41  ;;  %v17147_v30 = vpop.f32.mrf.mxu1 }
 0x552   : > { %22412 = vst [vmem:[#allocation139_spill] sm:$0xff] %v17127_v32  ;;  %22413 = vst [vmem:[#allocation141_spill] sm:$0xff] %v17130_v28  ;;  %6433 = vmatpush2.msra.mxu1 %v6432_v31  ;;  %v21099_v13 = vand.u32 4294901760, %v17127_v32  ;;  %v21102_v20 = vand.u32 4294901760, %v17130_v28  ;;  %6489 = vmatprep.subr.mxu0 %v16453_v51 }
 0x553   : > { %6439 = vmatprep.subr.mxu1 %v6438_v58  ;;  %v6456_v16 = vand.u32 4294901760, %v6455_v36  ;;  %22414 = vst [vmem:[#allocation21_spill] sm:$0xff] %v17147_v30  ;;  %v17149_v36 = vpop.f32.mrf.mxu0 }
 0x554   : > { %6445 = vmatpush2.msra.mxu1 %v6444_v3  ;;  %v6461_v55 = vsub.f32 %v17127_v32, %v21099_v13  ;;  %v6467_v31 = vsub.f32 %v17130_v28, %v21102_v20  ;;  %22415 = vst [vmem:[#allocation37_spill] sm:$0xff] %v17149_v36 }
 0x555   : > { %6451 = vmatprep.subr.mxu1 %v6450_v45 }
 0x556   : > { %6457 = vmatpush2.msra.mxu1 %v6456_v16  ;;  %v6462_v35 = vand.u32 4294901760, %v6461_v55  ;;  %v6468_v34 = vand.u32 4294901760, %v6467_v31 }
 0x558   : > { %6463 = vmatprep.subr.mxu1 %v6462_v35 }
 0x559   : > { %6469 = vmatpush2.msra.mxu1 %v6468_v34 }
 0x55a   : > { %6701 = vmatprep.subr.mxu1 %v16435_v59 }
 0x55b   : > { %v4876_v3 = vpop.f32.mrf.mxu1 }
 0x55d   : > { %v17154_v51 = vpop.f32.mrf.mxu1 }
 0x55e   : > { %22417 = vst [vmem:[#allocation39_spill] sm:$0xff] %v17154_v51 }
 0x560   : > { %v4888_v31 = vpop.f32.mrf.mxu1 }
 0x562   : > { %v17157_v34 = vpop.f32.mrf.mxu1 }
 0x563   : > { %22418 = vst [vmem:[#allocation31_spill] sm:$0xff] %v17157_v34 }
 0x565   : > { %v4725_v58 = vpop.f32.mrf.mxu0 }
 0x566   : > { %v4726_v13 = vadd.f32 %v4725_v58, %v16786_v63 }
 0x567   : > { %v17152_v8 = vpop.f32.mrf.mxu0 }
 0x568   : > { %22416 = vst [vmem:[#allocation27_spill] sm:$0xff] %v17152_v8  ;;  %v4877_v45 = vadd.f32 %v4876_v3, %v4726_v13 }
 0x56a   : > { %v4735_v16 = vpop.f32.mrf.mxu0 }
 0x56b   : > { %v4736_v55 = vadd.f32 %v4735_v16, %v16818_v46 }
 0x56c   : > { %v17161_v28 = vpop.f32.mrf.mxu0 }
 0x56d   : > { %v4889_v35 = vadd.f32 %v4888_v31, %v4736_v55  ;;  %22420 = vst [vmem:[#allocation24_spill] sm:$0xff] %v17161_v28 }
 0x59f   : > { %v5298_v20 = vpop.f32.mrf.mxu1 }
 0x5a1   : > { %v17159_v30 = vpop.f32.mrf.mxu1 }
 0x5a2   : > { %22419 = vst [vmem:[#allocation32_spill] sm:$0xff] %v17159_v30 }
 0x5a4   : > { %v5306_v36 = vpop.f32.mrf.mxu1 }
 0x5a6   : > { %v17163_v32 = vpop.f32.mrf.mxu1 }
 0x5a7   : > { %22421 = vst [vmem:[#allocation23_spill] sm:$0xff] %v17163_v32 }
 0x5a8   : > { %v5153_v63 = vpop.f32.mrf.mxu0 }
 0x5a9   : > { %v5154_v58 = vadd.f32 %v5153_v63, %v4877_v45  ;;  %v5498_v8 = vpop.f32.mrf.mxu1 }
 0x5aa   : > { %v17165_v51 = vpop.f32.mrf.mxu0 }
 0x5ab   : > { %22422 = vst [vmem:[#allocation35_spill] sm:$0xff] %v17165_v51  ;;  %v17167_v13 = vadd.f32 %v5298_v20, %v5154_v58  ;;  %v5500_v46 = vpop.f32.mrf.mxu1 }
 0x5ad   : > { %22423 = vst [vmem:[#allocation29_spill] sm:$0xff] %v17167_v13 }
 0x5ae   : > { %v5161_v3 = vpop.f32.mrf.mxu0  ;;  %v5505_v16 = vpop.f32.mrf.mxu1 }
 0x5af   : > { %v5162_v55 = vadd.f32 %v5161_v3, %v4889_v35 }
 0x5b0   : > { %v17169_v31 = vpop.f32.mrf.mxu0  ;;  %v5507_v34 = vpop.f32.mrf.mxu1 }
 0x5b1   : > { %22424 = vst [vmem:[#allocation30_spill] sm:$0xff] %v17169_v31  ;;  %v17171_v30 = vadd.f32 %v5306_v36, %v5162_v55 }
 0x5b2   : > { %v5395_v6 = vpop.f32.mrf.mxu0  ;;  %v5672_v28 = vpop.f32.mrf.mxu1 }
 0x5b3   : > { %22425 = vst [vmem:[#allocation34_spill] sm:$0xff] %v17171_v30  ;;  %v5499_v20 = vadd.f32 %v5498_v8, %v5395_v6 }
 0x5b4   : > { %v5397_v61 = vpop.f32.mrf.mxu0  ;;  %v5674_v32 = vpop.f32.mrf.mxu1 }
 0x5b5   : > { %v5501_v13 = vadd.f32 %v5500_v46, %v5397_v61 }
 0x5b7   : > { %v5406_v62 = vpop.f32.mrf.mxu0 }
 0x5b8   : > { %v5681_v45 = vpop.f32.mrf.mxu1  ;;  %v5506_v3 = vadd.f32 %v5505_v16, %v5406_v62 }
 0x5b9   : > { %v5408_v63 = vpop.f32.mrf.mxu0 }
 0x5ba   : > { %v5683_v51 = vpop.f32.mrf.mxu1  ;;  %v5508_v36 = vadd.f32 %v5507_v34, %v5408_v63 }
 0x5bb   : > { %v5586_v59 = vpop.f32.mrf.mxu0 }
 0x5bc   : > { %v5587_v41 = vadd.f32 %v5586_v59, %v5499_v20 }
 0x5bd   : > { %v5588_v58 = vpop.f32.mrf.mxu0  ;;  %v5848_v35 = vpop.f32.mrf.mxu1 }
 0x5be   : > { %v5589_v31 = vadd.f32 %v5588_v58, %v5501_v13  ;;  %v5673_v55 = vadd.f32 %v5672_v28, %v5587_v41 }
 0x5bf   : > { %v5594_v12 = vpop.f32.mrf.mxu0  ;;  %v5850_v56 = vpop.f32.mrf.mxu1 }
 0x5c0   : > { %v5595_v30 = vadd.f32 %v5594_v12, %v5506_v3  ;;  %v5675_v10 = vadd.f32 %v5674_v32, %v5589_v31 }
 0x5c1   : > { %v5596_v17 = vpop.f32.mrf.mxu0  ;;  %v5855_v43 = vpop.f32.mrf.mxu1 }
 0x5c2   : > { %v5597_v33 = vadd.f32 %v5596_v17, %v5508_v36  ;;  %v5682_v23 = vadd.f32 %v5681_v45, %v5595_v30  ;;  %v22429_v36 = vld [vmem:[#allocation86_spill] sm:$0xff] }
 0x5c3   : > { %v5765_v7 = vpop.f32.mrf.mxu0  ;;  %v5857_v34 = vpop.f32.mrf.mxu1 }
 0x5c4   : > { %v5766_v37 = vadd.f32 %v5765_v7, %v5673_v55  ;;  %v5684_v59 = vadd.f32 %v5683_v51, %v5597_v33  ;;  %v22430_v55 = vld [vmem:[#allocation88_spill] sm:$0xff] }
 0x5c5   : > { %v5767_v53 = vpop.f32.mrf.mxu0 }
 0x5c6   : > { %v5849_v8 = vadd.f32 %v5848_v35, %v5766_v37  ;;  %v5768_v6 = vadd.f32 %v5767_v53, %v5675_v10 }
 0x5c7   : > { %v5772_v61 = vpop.f32.mrf.mxu0 }
 0x5c8   : > { %v17173_v46 = vand.u32 4294901760, %v5849_v8  ;;  %v5851_v62 = vadd.f32 %v5850_v56, %v5768_v6  ;;  %v5773_v13 = vadd.f32 %v5772_v61, %v5682_v23  ;;  %v22432_v6 = vld [vmem:[#allocation77_spill] sm:$0xff]  ;;  %v22433_v61 = vld [vmem:[#allocation91_spill] sm:$0xff] }
 0x5c9   : > { %v5774_v16 = vpop.f32.mrf.mxu0 }
 0x5ca   : > { %22426 = vst [vmem:[#allocation144_spill] sm:$0xff] %v17173_v46  ;;  %v17176_v41 = vsub.f32 %v5849_v8, %v17173_v46  ;;  %v17178_v12 = vand.u32 4294901760, %v5851_v62  ;;  %v5775_v17 = vadd.f32 %v5774_v16, %v5684_v59  ;;  %v5856_v7 = vadd.f32 %v5855_v43, %v5773_v13  ;;  %v22431_v8 = vld [vmem:[#allocation95_spill] sm:$0xff]  ;;  %v22434_v59 = vld [vmem:[#allocation78_spill] sm:$0xff]  ;;  %v22436_v13 = vld [vmem:[#allocation85_spill] sm:$0xff] }
 0x5cb   : > { %v22437_v16 = vld [vmem:[#allocation103_spill] sm:$0xff] }
 0x5cc   : > { %v21138_v32 = vand.u32 4294901760, %v17176_v41  ;;  %v6054_v37 = vsub.f32 %v5851_v62, %v17178_v12  ;;  %v17182_v53 = vand.u32 4294901760, %v5856_v7  ;;  %v5858_v51 = vadd.f32 %v5857_v34, %v5775_v17  ;;  %6471 = vmatprep.mubr.f32.mxu1 %v17178_v12  ;;  %v22435_v62 = vld [vmem:[#allocation101_spill] sm:$0xff]  ;;  %v22438_v34 = vld [vmem:[#allocation87_spill] sm:$0xff]  ;;  %v22439_v17 = vld [vmem:[#allocation118_spill] sm:$0xff] }
 0x5cd   : > { %6473 = vmatmul.mubr.f32.vlgmr.msra.gmra.mxu1 %v17173_v46  ;;  %v22457_v46 = vld [vmem:[#allocation52_spill] sm:$0xff] }
 0x5ce   : > { %22427 = vst [vmem:[#allocation145_spill] sm:$0xff] %v17182_v53  ;;  %v17187_v23 = vsub.f32 %v5856_v7, %v17182_v53  ;;  %v17189_v33 = vand.u32 4294901760, %v5858_v51  ;;  %6703 = vmatpush1.msra.mxu1 %v16437_v24  ;;  %v6055_v10 = vand.u32 4294901760, %v6054_v37  ;;  %v6062_v43 = vsub.f32 %v17176_v41, %v21138_v32  ;;  %v22440_v7 = vld [vmem:[#allocation89_spill] sm:$0xff]  ;;  %v22454_v32 = vld [vmem:[#allocation22_spill] sm:$0xff] }
 0x5cf   : > { %6705 = vmatprep.subr.mxu1 %v16439_v44 }
 0x5d0   : > { %22428 = vst [vmem:[#allocation146_spill] sm:$0xff] %v17189_v33  ;;  %v17197_v56 = vsub.f32 %v5858_v51, %v17189_v33  ;;  %6707 = vmatpush1.msra.mxu1 %v16444_v54  ;;  %6479 = vmatprep.mubr.f32.mxu1 %v17189_v33  ;;  %v6056_v30 = vsub.f32 %v6054_v37, %v6055_v10  ;;  %v21136_v28 = vand.u32 4294901760, %v17187_v23  ;;  %v6063_v63 = vand.u32 4294901760, %v6062_v43  ;;  %v22442_v51 = vld [vmem:[#allocation93_spill] sm:$0xff]  ;;  %v22444_v43 = vld [vmem:[#allocation94_spill] sm:$0xff]  ;;  %v22456_v33 = vld [vmem:[#allocation43_spill] sm:$0xff] }
 0x5d1   : > { %6709 = vmatprep.subr.mxu1 %v16446_v52  ;;  %6481 = vmatmul.mubr.f32.gmra.mxu1 %v17182_v53  ;;  %v22455_v53 = vld [vmem:[#allocation57_spill] sm:$0xff] }
 0x5d2   : > { %6711 = vmatpush1.msra.mxu1 %v16448_v42  ;;  %6831 = vmatprep.mubr.f32.mxu1 %v6055_v10  ;;  %v6057_v31 = vand.u32 4294901760, %v6056_v30  ;;  %v21137_v45 = vand.u32 4294901760, %v17197_v56  ;;  %v6078_v58 = vsub.f32 %v17187_v23, %v21136_v28  ;;  %v22443_v10 = vld [vmem:[#allocation25_spill] sm:$0xff]  ;;  %v22445_v30 = vld [vmem:[#allocation46_spill] sm:$0xff] }
 0x5d3   : > { %6713 = vmatprep.subr.mxu1 %v16461_v48  ;;  %v22452_v28 = vld [vmem:[#allocation110_spill] sm:$0xff] }
 0x5d4   : > { %6715 = vmatpush1.msra.mxu1 %v16473_v57  ;;  %6058 = vmatprep.mubr.f32.mxu0 %v6057_v31  ;;  %v6072_v20 = vsub.f32 %v17197_v56, %v21137_v45  ;;  %v6079_v3 = vand.u32 4294901760, %v6078_v58  ;;  %v22446_v31 = vld [vmem:[#allocation97_spill] sm:$0xff]  ;;  %v22453_v45 = vld [vmem:[#allocation47_spill] sm:$0xff] }
 0x5d5   : > { %6717 = vmatprep.subr.mxu1 %v16533_v15  ;;  %6064 = vmatmul.mubr.f32.vlgmr.msra.gmra.mxu0 %v6063_v63  ;;  %v22447_v63 = vld [vmem:[#allocation33_spill] sm:$0xff] }
 0x5d6   : > { %6492 = vmatpush1.msra.mxu0 %v16456_v1  ;;  %6719 = vmatpush1.msra.mxu1 %v16535_v50  ;;  %v6073_v35 = vand.u32 4294901760, %v6072_v20  ;;  %v22448_v20 = vld [vmem:[#allocation99_spill] sm:$0xff]  ;;  %v22449_v58 = vld [vmem:[#allocation53_spill] sm:$0xff] }
 0x5d7   : > { %6495 = vmatprep.subr.mxu0 %v16459_v21  ;;  %6721 = vmatprep.subr.mxu1 %v16537_v14 }
 0x5d8   : > { %6498 = vmatpush1.msra.mxu0 %v16465_v0  ;;  %6723 = vmatpush1.msra.mxu1 %v16547_v25 }
 0x5d9   : > { %6074 = vmatprep.mubr.f32.mxu0 %v6073_v35  ;;  %6501 = vmatprep.subr.mxu0 %v16468_v29  ;;  %v22450_v35 = vld [vmem:[#allocation105_spill] sm:$0xff] }
 0x5da   : > { %6725 = vmatprep.subr.mxu1 %v16549_v26  ;;  %6080 = vmatmul.mubr.f32.gmra.mxu0 %v6079_v3  ;;  %v22451_v3 = vld [vmem:[#allocation26_spill] sm:$0xff] }
 0x5db   : > { %6504 = vmatpush1.msra.mxu0 %v16471_v40  ;;  %6727 = vmatpush1.msra.mxu1 %v16551_v19 }
 0x5dc   : > { %6507 = vmatprep.subr.mxu0 %v16479_v18  ;;  %6681 = vmatprep.mubr.f32.mxu0 %v6054_v37  ;;  %v22441_v37 = vld [vmem:[#allocation115_spill] sm:$0xff] }
 0x5dd   : > { %6729 = vmatprep.subr.mxu1 %v16563_v39  ;;  %6510 = vmatpush1.msra.mxu0 %v16485_v27 }
 0x5de   : > { %6731 = vmatpush1.msra.mxu1 %v16574_v38  ;;  %6513 = vmatprep.subr.mxu0 %v16555_v47 }
 0x5df   : > { %6733 = vmatprep.subr.mxu1 %v16627_v5  ;;  %6516 = vmatpush1.msra.mxu0 %v16558_v4 }
 0x5e0   : > { %6735 = vmatpush1.msra.mxu1 %v16629_v49  ;;  %6519 = vmatprep.subr.mxu0 %v16561_v9 }
 0x5e1   : > { %6737 = vmatprep.subr.mxu1 %v16631_v2  ;;  %6522 = vmatpush1.msra.mxu0 %v16566_v11 }
 0x5e2   : > { %6739 = vmatpush1.msra.mxu1 %v16636_v60  ;;  %6525 = vmatprep.subr.mxu0 %v22429_v36 }
 0x5e3   : > { %6741 = vmatprep.subr.mxu1 %v16638_v22  ;;  %6528 = vmatpush1.msra.mxu0 %v22430_v55 }
 0x5e4   : > { %6743 = vmatpush1.msra.mxu1 %v22431_v8  ;;  %6531 = vmatprep.subr.mxu0 %v22432_v6 }
 0x5e5   : > { %6745 = vmatprep.subr.mxu1 %v22433_v61  ;;  %6534 = vmatpush1.msra.mxu0 %v22434_v59 }
 0x5e6   : > { %6747 = vmatpush1.msra.mxu1 %v22435_v62  ;;  %6537 = vmatprep.subr.mxu0 %v22436_v13 }
 0x5e7   : > { %6749 = vmatprep.subr.mxu1 %v22437_v16  ;;  %6540 = vmatpush1.msra.mxu0 %v22438_v34 }
 0x5e8   : > { %6751 = vmatpush1.msra.mxu1 %v22439_v17  ;;  %6543 = vmatprep.subr.mxu0 %v22440_v7 }
 0x5e9   : > { %6753 = vmatprep.subr.mxu1 %v22441_v37  ;;  %6546 = vmatpush1.msra.mxu0 %v22442_v51 }
 0x5ea   : > { %6755 = vmatpush1.msra.mxu1 %v22443_v10  ;;  %6549 = vmatprep.subr.mxu0 %v22444_v43 }
 0x5eb   : > { %6757 = vmatprep.subr.mxu1 %v22445_v30  ;;  %6552 = vmatpush1.msra.mxu0 %v22446_v31 }
 0x5ec   : > { %6759 = vmatpush1.msra.mxu1 %v22447_v63  ;;  %6555 = vmatprep.subr.mxu0 %v22448_v20  ;;  %v22458_v63 = vld [vmem:[#allocation28_spill] sm:$0xff] }
 0x5ed   : > { %6761 = vmatprep.subr.mxu1 %v22449_v58  ;;  %6558 = vmatpush1.msra.mxu0 %v22450_v35  ;;  %v22459_v20 = vld [vmem:[#allocation132_spill] sm:$0xff]  ;;  %v22461_v35 = vld [vmem:[#allocation125_spill] sm:$0xff] }
 0x5ee   : > { %6763 = vmatpush1.msra.mxu1 %v22451_v3  ;;  %6561 = vmatprep.subr.mxu0 %v22452_v28  ;;  %v22460_v58 = vld [vmem:[#allocation48_spill] sm:$0xff]  ;;  %v22462_v3 = vld [vmem:[#allocation51_spill] sm:$0xff] }
 0x5ef   : > { %6765 = vmatprep.subr.mxu1 %v22453_v45  ;;  %6564 = vmatpush1.msra.mxu0 %v22454_v32  ;;  %v22463_v28 = vld [vmem:[#allocation131_spill] sm:$0xff]  ;;  %v22464_v45 = vld [vmem:[#allocation45_spill] sm:$0xff] }
 0x5f0   : > { %6767 = vmatpush2.msra.mxu1 %v22455_v53  ;;  %6567 = vmatprep.subr.mxu0 %v22456_v33  ;;  %v22465_v32 = vld [vmem:[#allocation135_spill] sm:$0xff]  ;;  %v22467_v33 = vld [vmem:[#allocation130_spill] sm:$0xff] }
 0x5f1   : > { %6769 = vmatprep.subr.mxu1 %v22457_v46  ;;  %6570 = vmatpush1.msra.mxu0 %v22458_v63  ;;  %v22466_v53 = vld [vmem:[#allocation55_spill] sm:$0xff]  ;;  %v22468_v46 = vld [vmem:[#allocation49_spill] sm:$0xff]  ;;  %v22469_v63 = vld [vmem:[#allocation64_spill] sm:$0xff] }
 0x5f2   : > { %6771 = vmatpush2.msra.mxu1 %v22459_v20  ;;  %6573 = vmatprep.subr.mxu0 %v22460_v58  ;;  %v22470_v20 = vld [vmem:[#allocation59_spill] sm:$0xff]  ;;  %v22471_v58 = vld [vmem:[#allocation36_spill] sm:$0xff] }
 0x5f3   : > { %6773 = vmatprep.subr.mxu1 %v22461_v35  ;;  %6576 = vmatpush1.msra.mxu0 %v22462_v3  ;;  %v22472_v35 = vld [vmem:[#allocation56_spill] sm:$0xff] }
 0x5f4   : > { %6775 = vmatpush2.msra.mxu1 %v22463_v28  ;;  %6579 = vmatprep.subr.mxu0 %v22464_v45  ;;  %v22473_v3 = vld [vmem:[#allocation68_spill] sm:$0xff]  ;;  %v22474_v28 = vld [vmem:[#allocation129_spill] sm:$0xff] }
 0x5f5   : > { %6777 = vmatprep.subr.mxu1 %v22465_v32  ;;  %6582 = vmatpush1.msra.mxu0 %v22466_v53  ;;  %v22475_v45 = vld [vmem:[#allocation133_spill] sm:$0xff]  ;;  %v22476_v32 = vld [vmem:[#allocation58_spill] sm:$0xff] }
 0x5f6   : > { %6779 = vmatpush2.msra.mxu1 %v22467_v33  ;;  %6585 = vmatprep.subr.mxu0 %v22468_v46  ;;  %v22477_v53 = vld [vmem:[#allocation70_spill] sm:$0xff]  ;;  %v22478_v33 = vld [vmem:[#allocation113_spill] sm:$0xff] }
 0x5f7   : > { %6781 = vmatprep.subr.mxu1 %v22469_v63  ;;  %6588 = vmatpush2.msra.mxu0 %v22470_v20  ;;  %v22479_v46 = vld [vmem:[#allocation74_spill] sm:$0xff]  ;;  %v22480_v63 = vld [vmem:[#allocation136_spill] sm:$0xff]  ;;  %v22481_v20 = vld [vmem:[#allocation79_spill] sm:$0xff] }
 0x5f8   : > { %6783 = vmatpush2.msra.mxu1 %v22471_v58  ;;  %6591 = vmatprep.subr.mxu0 %v22472_v35  ;;  %v22482_v58 = vld [vmem:[#allocation134_spill] sm:$0xff]  ;;  %v22483_v35 = vld [vmem:[#allocation80_spill] sm:$0xff] }
 0x5f9   : > { %6785 = vmatprep.subr.mxu1 %v22473_v3  ;;  %6594 = vmatpush2.msra.mxu0 %v22474_v28  ;;  %v22484_v3 = vld [vmem:[#allocation66_spill] sm:$0xff]  ;;  %v22485_v28 = vld [vmem:[#allocation84_spill] sm:$0xff] }
 0x5fa   : > { %6787 = vmatpush2.msra.mxu1 %v22475_v45  ;;  %6597 = vmatprep.subr.mxu0 %v22476_v32  ;;  %v22486_v45 = vld [vmem:[#allocation126_spill] sm:$0xff]  ;;  %v22487_v32 = vld [vmem:[#allocation67_spill] sm:$0xff] }
 0x5fb   : > { %6789 = vmatprep.subr.mxu1 %v22477_v53  ;;  %6600 = vmatpush2.msra.mxu0 %v22478_v33  ;;  %v22488_v53 = vld [vmem:[#allocation40_spill] sm:$0xff] }
 0x5fc   : > { %6791 = vmatpush2.msra.mxu1 %v22479_v46  ;;  %6603 = vmatprep.subr.mxu0 %v22480_v63  ;;  %v22489_v33 = vld [vmem:[#allocation92_spill] sm:$0xff]  ;;  %v22491_v63 = vld [vmem:[#allocation81_spill] sm:$0xff] }
 0x5fd   : > { %6793 = vmatprep.subr.mxu1 %v22481_v20  ;;  %6606 = vmatpush2.msra.mxu0 %v22482_v58  ;;  %v22490_v46 = vld [vmem:[#allocation72_spill] sm:$0xff]  ;;  %v22493_v58 = vld [vmem:[#allocation83_spill] sm:$0xff] }
 0x5fe   : > { %6795 = vmatpush2.msra.mxu1 %v22483_v35  ;;  %6609 = vmatprep.subr.mxu0 %v22484_v3  ;;  %v22492_v20 = vld [vmem:[#allocation60_spill] sm:$0xff]  ;;  %v22494_v35 = vld [vmem:[#allocation61_spill] sm:$0xff]  ;;  %v22495_v3 = vld [vmem:[#allocation102_spill] sm:$0xff] }
 0x5ff   : > { %6797 = vmatprep.subr.mxu1 %v22485_v28  ;;  %6612 = vmatpush2.msra.mxu0 %v22486_v45  ;;  %v22496_v28 = vld [vmem:[#allocation63_spill] sm:$0xff]  ;;  %v22497_v45 = vld [vmem:[#allocation106_spill] sm:$0xff] }
 0x600   : > { %6799 = vmatpush2.msra.mxu1 %v22487_v32  ;;  %6615 = vmatprep.subr.mxu0 %v22488_v53  ;;  %v22498_v32 = vld [vmem:[#allocation82_spill] sm:$0xff]  ;;  %v22499_v53 = vld [vmem:[#allocation108_spill] sm:$0xff] }
 0x601   : > { %6801 = vmatprep.subr.mxu1 %v22489_v33  ;;  %6618 = vmatpush2.msra.mxu0 %v22490_v46  ;;  %v22500_v33 = vld [vmem:[#allocation76_spill] sm:$0xff]  ;;  %v22501_v46 = vld [vmem:[#allocation114_spill] sm:$0xff] }
 0x602   : > { %6803 = vmatpush2.msra.mxu1 %v22491_v63  ;;  %6621 = vmatprep.subr.mxu0 %v22492_v20  ;;  %v22502_v63 = vld [vmem:[#allocation90_spill] sm:$0xff]  ;;  %v22503_v20 = vld [vmem:[#allocation116_spill] sm:$0xff] }
 0x603   : > { %6805 = vmatprep.subr.mxu1 %v22493_v58  ;;  %6624 = vmatpush2.msra.mxu0 %v22494_v35  ;;  %v22504_v58 = vld [vmem:[#allocation96_spill] sm:$0xff] }
 0x604   : > { %6807 = vmatpush2.msra.mxu1 %v22495_v3  ;;  %6627 = vmatprep.subr.mxu0 %v22496_v28  ;;  %v22505_v35 = vld [vmem:[#allocation124_spill] sm:$0xff]  ;;  %v22506_v3 = vld [vmem:[#allocation98_spill] sm:$0xff]  ;;  %v22507_v28 = vld [vmem:[#allocation127_spill] sm:$0xff] }
 0x605   : > { %6809 = vmatprep.subr.mxu1 %v22497_v45  ;;  %6630 = vmatpush2.msra.mxu0 %v22498_v32  ;;  %v22508_v45 = vld [vmem:[#allocation100_spill] sm:$0xff] }
 0x606   : > { %6811 = vmatpush2.msra.mxu1 %v22499_v53  ;;  %6633 = vmatprep.subr.mxu0 %v22500_v33  ;;  %v22509_v32 = vld [vmem:[#allocation128_spill] sm:$0xff]  ;;  %v22511_v33 = vld [vmem:[#allocation119_spill] sm:$0xff] }
 0x607   : > { %6813 = vmatprep.subr.mxu1 %v22501_v46  ;;  %6636 = vmatpush2.msra.mxu0 %v22502_v63  ;;  %v22510_v53 = vld [vmem:[#allocation104_spill] sm:$0xff]  ;;  %v22512_v46 = vld [vmem:[#allocation111_spill] sm:$0xff]  ;;  %v22513_v63 = vld [vmem:[#allocation138_spill] sm:$0xff] }
 0x608   : > { %6815 = vmatpush2.msra.mxu1 %v22503_v20  ;;  %6639 = vmatprep.subr.mxu0 %v22504_v58  ;;  %v22514_v20 = vld [vmem:[#allocation112_spill] sm:$0xff] }
 0x609   : > { %6817 = vmatprep.subr.mxu1 %v22505_v35  ;;  %6642 = vmatpush2.msra.mxu0 %v22506_v3  ;;  %v22515_v58 = vld [vmem:[#allocation140_spill] sm:$0xff]  ;;  %v22516_v35 = vld [vmem:[#allocation107_spill] sm:$0xff] }
 0x60a   : > { %6819 = vmatpush2.msra.mxu1 %v22507_v28  ;;  %6645 = vmatprep.subr.mxu0 %v22508_v45  ;;  %v22517_v28 = vand.u32 4294901760, %v17176_v41  ;;  %v22518_v45 = vld [vmem:[#allocation73_spill] sm:$0xff] }
 0x60b   : > { %6821 = vmatprep.subr.mxu1 %v22509_v32  ;;  %6648 = vmatpush2.msra.mxu0 %v22510_v53  ;;  %v22519_v32 = vld [vmem:[#allocation122_spill] sm:$0xff]  ;;  %v22520_v53 = vand.u32 4294901760, %v17197_v56 }
 0x60c   : > { %6823 = vmatpush2.msra.mxu1 %v22511_v33  ;;  %6651 = vmatprep.subr.mxu0 %v22512_v46  ;;  %v22521_v46 = vld [vmem:[#allocation117_spill] sm:$0xff] }
 0x60d   : > { %6825 = vmatprep.subr.mxu1 %v22513_v63  ;;  %6654 = vmatpush2.msra.mxu0 %v22514_v20  ;;  %v22522_v20 = vld [vmem:[#allocation120_spill] sm:$0xff] }
 0x60e   : > { %6827 = vmatpush2.msra.mxu1 %v22515_v58  ;;  %6657 = vmatprep.subr.mxu0 %v22516_v35  ;;  %v22523_v35 = vld [vmem:[#allocation123_spill] sm:$0xff] }
 0x60f   : > { %6835 = vmatmul.mubr.f32.vlgmr.msra.gmra.mxu1 %v22517_v28  ;;  %7127 = vmatprep.subr.mxu1 %v22518_v45  ;;  %v22524_v28 = vand.u32 4294901760, %v17187_v23  ;;  %v22525_v45 = vld [vmem:[#allocation137_spill] sm:$0xff] }
 0x610   : > { %6660 = vmatpush2.msra.mxu0 %v22519_v32  ;;  %6843 = vmatprep.mubr.f32.mxu1 %v22520_v53 }
 0x611   : > { %7129 = vmatpush1.msra.mxu1 %v16437_v24  ;;  %6663 = vmatprep.subr.mxu0 %v22521_v46  ;;  %v22526_v24 = vld [vmem:[#allocation139_spill] sm:$0xff] }
 0x612   : > { %7131 = vmatprep.subr.mxu1 %v16439_v44  ;;  %6666 = vmatpush2.msra.mxu0 %v22522_v20  ;;  %v22527_v44 = vld [vmem:[#allocation141_spill] sm:$0xff] }
 0x613   : > { %7133 = vmatpush1.msra.mxu1 %v16444_v54  ;;  %6669 = vmatprep.subr.mxu0 %v22523_v35  ;;  %v22528_v54 = vld [vmem:[#allocation75_spill] sm:$0xff] }
 0x614   : > { %6847 = vmatmul.mubr.f32.gmra.mxu1 %v22524_v28  ;;  %7135 = vmatprep.subr.mxu1 %v16446_v52  ;;  %v22529_v53 = vand.u32 4294901760, %v22528_v54  ;;  %v22530_v52 = vand.u32 4294901760, %v16456_v1  ;;  %v22534_v1 = vand.u32 4294901760, %v16471_v40  ;;  %v22538_v40 = vand.u32 4294901760, %v16558_v4  ;;  %v22581_v54 = vld [vmem:[#allocation130_spill] sm:$0xff] }
 0x615   : > { %6672 = vmatpush2.msra.mxu0 %v22525_v45  ;;  %7137 = vmatpush1.msra.mxu1 %v16448_v42  ;;  %v22531_v42 = vand.u32 4294901760, %v16459_v21  ;;  %v22535_v21 = vand.u32 4294901760, %v16479_v18  ;;  %v22539_v18 = vand.u32 4294901760, %v16561_v9  ;;  %v22550_v4 = vand.u32 4294901760, %v22446_v31  ;;  %v22551_v9 = vld [vmem:[#allocation33_spill] sm:$0xff]  ;;  %v22579_v31 = vld [vmem:[#allocation55_spill] sm:$0xff] }
 0x616   : > { %7255 = vmatprep.mubr.f32.mxu1 %v17178_v12  ;;  %6675 = vmatprep.subr.mxu0 %v22526_v24  ;;  %v22580_v28 = vand.u32 4294901760, %v22579_v31  ;;  %v22632_v31 = vld [vmem:[#allocation114_spill] sm:$0xff] }
 0x617   : > { %7139 = vmatprep.subr.mxu1 %v16461_v48  ;;  %6678 = vmatpush2.msra.mxu0 %v22527_v44  ;;  %v22532_v48 = vand.u32 4294901760, %v16465_v0  ;;  %v22536_v0 = vand.u32 4294901760, %v16485_v27  ;;  %v22540_v27 = vand.u32 4294901760, %v16566_v11 }
 0x618   : > { %7141 = vmatpush1.msra.mxu1 %v16473_v57  ;;  %6684 = vmatmul.mubr.f32.vlgmr.msra.gmra.mxu0 %v17176_v41  ;;  %v22533_v57 = vand.u32 4294901760, %v16468_v29  ;;  %v22537_v29 = vand.u32 4294901760, %v16555_v47  ;;  %v22549_v47 = vand.u32 4294901760, %v22444_v43  ;;  %v22558_v41 = vld [vmem:[#allocation110_spill] sm:$0xff] }
 0x619   : > { %6856 = vmatprep.subr.mxu0 %v22529_v53  ;;  %7143 = vmatprep.subr.mxu1 %v16533_v15  ;;  %v22541_v15 = vand.u32 4294901760, %v22429_v36  ;;  %v22582_v53 = vld [vmem:[#allocation49_spill] sm:$0xff] }
 0x61a   : > { %6691 = vmatprep.mubr.f32.mxu0 %v17197_v56  ;;  %6860 = vmatpush1.msra.mxu0 %v22530_v52  ;;  %v22561_v56 = vld [vmem:[#allocation22_spill] sm:$0xff]  ;;  %v22583_v52 = vand.u32 4294901760, %v22582_v53  ;;  %v22635_v53 = vld [vmem:[#allocation116_spill] sm:$0xff] }
 0x61b   : > { %7145 = vmatpush1.msra.mxu1 %v16535_v50  ;;  %6864 = vmatprep.subr.mxu0 %v22531_v42  ;;  %v22543_v50 = vand.u32 4294901760, %v22432_v6  ;;  %v22562_v36 = vand.u32 4294901760, %v22561_v56  ;;  %v22584_v42 = vld [vmem:[#allocation64_spill] sm:$0xff] }
 0x61c   : > { %7147 = vmatprep.subr.mxu1 %v16537_v14  ;;  %6868 = vmatpush1.msra.mxu0 %v22532_v48  ;;  %v22544_v14 = vand.u32 4294901760, %v22434_v59  ;;  %v22567_v59 = vld [vmem:[#allocation28_spill] sm:$0xff]  ;;  %v22585_v48 = vld [vmem:[#allocation59_spill] sm:$0xff] }
 0x61d   : > { %7149 = vmatpush1.msra.mxu1 %v16547_v25  ;;  %6694 = vmatmul.mubr.f32.gmra.mxu0 %v17187_v23  ;;  %v22546_v25 = vand.u32 4294901760, %v22438_v34  ;;  %v22560_v23 = vld [vmem:[#allocation47_spill] sm:$0xff]  ;;  %v22614_v56 = vld [vmem:[#allocation92_spill] sm:$0xff] }
 0x61e   : > { %6872 = vmatprep.subr.mxu0 %v22533_v57  ;;  %7151 = vmatprep.subr.mxu1 %v16549_v26  ;;  %v22547_v26 = vand.u32 4294901760, %v22440_v7  ;;  %v22573_v7 = vld [vmem:[#allocation51_spill] sm:$0xff]  ;;  %v22586_v57 = vand.u32 4294901760, %v22585_v48  ;;  %v22638_v48 = vld [vmem:[#allocation124_spill] sm:$0xff] }
 0x61f   : > { %6876 = vmatpush1.msra.mxu0 %v22534_v1  ;;  %7110 = vmatprep.mubr.f32.mxu0 %v17178_v12  ;;  %v22559_v12 = vand.u32 4294901760, %v22558_v41  ;;  %v22587_v1 = vld [vmem:[#allocation36_spill] sm:$0xff]  ;;  %v22611_v41 = vld [vmem:[#allocation67_spill] sm:$0xff] }
 0x620   : > { %7153 = vmatpush1.msra.mxu1 %v16551_v19  ;;  %6880 = vmatprep.subr.mxu0 %v22535_v21  ;;  %v22548_v19 = vand.u32 4294901760, %v22442_v51  ;;  %v22575_v51 = vld [vmem:[#allocation131_spill] sm:$0xff]  ;;  %v22588_v21 = vld [vmem:[#allocation56_spill] sm:$0xff] }
 0x621   : > { %7155 = vmatprep.subr.mxu1 %v16563_v39  ;;  %6884 = vmatpush1.msra.mxu0 %v22536_v0  ;;  %v22552_v39 = vld [vmem:[#allocation99_spill] sm:$0xff]  ;;  %v22589_v0 = vand.u32 4294901760, %v22588_v21  ;;  %v22641_v21 = vld [vmem:[#allocation100_spill] sm:$0xff] }
 0x622   : > { %7157 = vmatpush1.msra.mxu1 %v16574_v38  ;;  %6888 = vmatprep.subr.mxu0 %v22537_v29  ;;  %v22553_v11 = vand.u32 4294901760, %v22552_v39  ;;  %v22554_v38 = vld [vmem:[#allocation53_spill] sm:$0xff]  ;;  %v22590_v29 = vld [vmem:[#allocation68_spill] sm:$0xff] }
 0x623   : > { %7159 = vmatprep.subr.mxu1 %v16627_v5  ;;  %6892 = vmatpush1.msra.mxu0 %v22538_v40  ;;  %v22542_v5 = vand.u32 4294901760, %v22430_v55  ;;  %v22563_v55 = vld [vmem:[#allocation57_spill] sm:$0xff]  ;;  %v22605_v39 = vld [vmem:[#allocation80_spill] sm:$0xff] }
 0x624   : > { %7161 = vmatpush1.msra.mxu1 %v16629_v49  ;;  %6896 = vmatprep.subr.mxu0 %v22539_v18  ;;  %v22591_v40 = vld [vmem:[#allocation129_spill] sm:$0xff] }
 0x625   : > { %7163 = vmatprep.subr.mxu1 %v16631_v2  ;;  %6900 = vmatpush1.msra.mxu0 %v22540_v27  ;;  %v22557_v2 = vld [vmem:[#allocation26_spill] sm:$0xff]  ;;  %v22592_v18 = vand.u32 4294901760, %v22591_v40  ;;  %v22593_v27 = vld [vmem:[#allocation133_spill] sm:$0xff]  ;;  %v22644_v40 = vld [vmem:[#allocation104_spill] sm:$0xff] }
 0x626   : > { %7165 = vmatpush1.msra.mxu1 %v16636_v60  ;;  %6904 = vmatprep.subr.mxu0 %v22541_v15  ;;  %v22545_v60 = vand.u32 4294901760, %v22436_v13  ;;  %v22569_v13 = vld [vmem:[#allocation132_spill] sm:$0xff]  ;;  %v22594_v15 = vld [vmem:[#allocation58_spill] sm:$0xff] }
 0x627   : > { %7167 = vmatprep.subr.mxu1 %v16638_v22  ;;  %6908 = vmatpush1.msra.mxu0 %v22542_v5  ;;  %v22555_v22 = vld [vmem:[#allocation105_spill] sm:$0xff]  ;;  %v22595_v5 = vand.u32 4294901760, %v22594_v15 }
 0x628   : > { %7169 = vmatpush1.msra.mxu1 %v22431_v8  ;;  %6912 = vmatprep.subr.mxu0 %v22543_v50  ;;  %v22556_v49 = vand.u32 4294901760, %v22555_v22  ;;  %v22564_v8 = vld [vmem:[#allocation43_spill] sm:$0xff]  ;;  %v22596_v50 = vld [vmem:[#allocation70_spill] sm:$0xff]  ;;  %v22608_v22 = vld [vmem:[#allocation84_spill] sm:$0xff] }
 0x629   : > { %7171 = vmatprep.subr.mxu1 %v22433_v61  ;;  %6916 = vmatpush1.msra.mxu0 %v22544_v14  ;;  %v22565_v6 = vand.u32 4294901760, %v22564_v8  ;;  %v22566_v61 = vld [vmem:[#allocation52_spill] sm:$0xff]  ;;  %v22597_v14 = vld [vmem:[#allocation113_spill] sm:$0xff] }
 0x62a   : > { %7173 = vmatpush1.msra.mxu1 %v22435_v62  ;;  %6920 = vmatprep.subr.mxu0 %v22545_v60  ;;  %v22568_v62 = vand.u32 4294901760, %v22567_v59  ;;  %v22598_v60 = vand.u32 4294901760, %v22597_v14  ;;  %v22617_v8 = vld [vmem:[#allocation81_spill] sm:$0xff]  ;;  %v22620_v59 = vld [vmem:[#allocation83_spill] sm:$0xff] }
 0x62b   : > { %7175 = vmatprep.subr.mxu1 %v22437_v16  ;;  %6924 = vmatpush1.msra.mxu0 %v22546_v25  ;;  %v22570_v16 = vld [vmem:[#allocation48_spill] sm:$0xff]  ;;  %v22599_v25 = vld [vmem:[#allocation74_spill] sm:$0xff] }
 0x62c   : > { %7177 = vmatpush1.msra.mxu1 %v22439_v17  ;;  %6928 = vmatprep.subr.mxu0 %v22547_v26  ;;  %v22571_v34 = vand.u32 4294901760, %v22570_v16  ;;  %v22572_v17 = vld [vmem:[#allocation125_spill] sm:$0xff]  ;;  %v22600_v26 = vld [vmem:[#allocation136_spill] sm:$0xff]  ;;  %v22623_v16 = vld [vmem:[#allocation102_spill] sm:$0xff] }
 0x62d   : > { %7179 = vmatprep.subr.mxu1 %v22441_v37  ;;  %6932 = vmatpush1.msra.mxu0 %v22548_v19  ;;  %v22574_v37 = vand.u32 4294901760, %v22573_v7  ;;  %v22601_v19 = vand.u32 4294901760, %v22600_v26  ;;  %v22626_v7 = vld [vmem:[#allocation106_spill] sm:$0xff] }
 0x62e   : > { %7181 = vmatpush1.msra.mxu1 %v22443_v10  ;;  %6936 = vmatprep.subr.mxu0 %v22549_v47  ;;  %v22576_v10 = vld [vmem:[#allocation45_spill] sm:$0xff]  ;;  %v22602_v47 = vld [vmem:[#allocation79_spill] sm:$0xff]  ;;  %v22654_v26 = vld [vmem:[#allocation146_spill] sm:$0xff] }
 0x62f   : > { %7183 = vmatprep.subr.mxu1 %v22445_v30  ;;  %6940 = vmatpush1.msra.mxu0 %v22550_v4  ;;  %v22577_v43 = vand.u32 4294901760, %v22576_v10  ;;  %v22578_v30 = vld [vmem:[#allocation135_spill] sm:$0xff]  ;;  %v22603_v4 = vld [vmem:[#allocation134_spill] sm:$0xff]  ;;  %v22629_v10 = vld [vmem:[#allocation108_spill] sm:$0xff] }
 0x630   : > { %7185 = vmatpush1.msra.mxu1 %v22551_v9  ;;  %6944 = vmatprep.subr.mxu0 %v22553_v11  ;;  %v22604_v9 = vand.u32 4294901760, %v22603_v4  ;;  %v22606_v11 = vld [vmem:[#allocation66_spill] sm:$0xff]  ;;  %v22660_v4 = vand.u32 4294901760, %v22526_v24 }
 0x631   : > { %7187 = vmatprep.subr.mxu1 %v22554_v38  ;;  %6948 = vmatpush1.msra.mxu0 %v22556_v49  ;;  %v22607_v38 = vand.u32 4294901760, %v22606_v11  ;;  %v22609_v49 = vld [vmem:[#allocation126_spill] sm:$0xff]  ;;  %v7308_v11 = vld [vmem:[%s20344_s8 + $0x68] sm:$0xff] }
 0x632   : > { %7189 = vmatpush1.msra.mxu1 %v22557_v2  ;;  %6952 = vmatprep.subr.mxu0 %v22559_v12  ;;  %v22610_v2 = vand.u32 4294901760, %v22609_v49  ;;  %v22612_v12 = vld [vmem:[#allocation40_spill] sm:$0xff]  ;;  %v17570_v49 = vand.u32 4294901760, %v7308_v11 }
 0x633   : > { %7191 = vmatprep.subr.mxu1 %v22560_v23  ;;  %6956 = vmatpush1.msra.mxu0 %v22562_v36  ;;  %v22613_v23 = vand.u32 4294901760, %v22612_v12  ;;  %v22615_v36 = vld [vmem:[#allocation72_spill] sm:$0xff] }
 0x634   : > { %7193 = vmatpush2.msra.mxu1 %v22563_v55  ;;  %6960 = vmatprep.subr.mxu0 %v22565_v6  ;;  %v22616_v55 = vand.u32 4294901760, %v22615_v36  ;;  %v22618_v6 = vld [vmem:[#allocation60_spill] sm:$0xff] }
 0x635   : > { %7195 = vmatprep.subr.mxu1 %v22566_v61  ;;  %6964 = vmatpush1.msra.mxu0 %v22568_v62  ;;  %v22619_v61 = vand.u32 4294901760, %v22618_v6  ;;  %v22621_v62 = vld [vmem:[#allocation61_spill] sm:$0xff]  ;;  %v17597_v6 = vsub.f32 %v7308_v11, %v17570_v49 }
 0x636   : > { %7197 = vmatpush2.msra.mxu1 %v22569_v13  ;;  %6968 = vmatprep.subr.mxu0 %v22571_v34  ;;  %v22622_v13 = vand.u32 4294901760, %v22621_v62  ;;  %v22624_v34 = vld [vmem:[#allocation63_spill] sm:$0xff] }
 0x637   : > { %7199 = vmatprep.subr.mxu1 %v22572_v17  ;;  %6972 = vmatpush1.msra.mxu0 %v22574_v37  ;;  %v22625_v17 = vand.u32 4294901760, %v22624_v34  ;;  %v22627_v37 = vld [vmem:[#allocation82_spill] sm:$0xff] }
 0x638   : > { %7201 = vmatpush2.msra.mxu1 %v22575_v51  ;;  %6976 = vmatprep.subr.mxu0 %v22577_v43  ;;  %v22628_v51 = vand.u32 4294901760, %v22627_v37  ;;  %v22630_v43 = vld [vmem:[#allocation76_spill] sm:$0xff] }
 0x639   : > { %7203 = vmatprep.subr.mxu1 %v22578_v30  ;;  %6980 = vmatpush1.msra.mxu0 %v22580_v28  ;;  %v22631_v30 = vand.u32 4294901760, %v22630_v43  ;;  %v22633_v28 = vld [vmem:[#allocation90_spill] sm:$0xff] }
 0x63a   : > { %7205 = vmatpush2.msra.mxu1 %v22581_v54  ;;  %6984 = vmatprep.subr.mxu0 %v22583_v52  ;;  %v22634_v54 = vand.u32 4294901760, %v22633_v28  ;;  %v22636_v52 = vld [vmem:[#allocation96_spill] sm:$0xff] }
 0x63b   : > { %7207 = vmatprep.subr.mxu1 %v22584_v42  ;;  %6988 = vmatpush2.msra.mxu0 %v22586_v57  ;;  %v22637_v42 = vand.u32 4294901760, %v22636_v52  ;;  %v22639_v57 = vand.u32 4294901760, %v22506_v3  ;;  %v7322_v52 = vld [vmem:[%s20344_s8 + $0xd8] sm:$0xff] }
 0x63c   : > { %7209 = vmatpush2.msra.mxu1 %v22587_v1  ;;  %6992 = vmatprep.subr.mxu0 %v22589_v0  ;;  %v22640_v1 = vld [vmem:[#allocation127_spill] sm:$0xff]  ;;  %v22642_v0 = vand.u32 4294901760, %v22641_v21 }
 0x63d   : > { %7211 = vmatprep.subr.mxu1 %v22590_v29  ;;  %6996 = vmatpush2.msra.mxu0 %v22592_v18  ;;  %v22643_v29 = vld [vmem:[#allocation128_spill] sm:$0xff]  ;;  %v22645_v18 = vand.u32 4294901760, %v22644_v40  ;;  %v17649_v40 = vand.u32 4294901760, %v7322_v52 }
 0x63e   : > { %7213 = vmatpush2.msra.mxu1 %v22593_v27  ;;  %7000 = vmatprep.subr.mxu0 %v22595_v5  ;;  %v22646_v27 = vld [vmem:[#allocation111_spill] sm:$0xff]  ;;  %v22648_v5 = vld [vmem:[#allocation112_spill] sm:$0xff] }
 0x63f   : > { %7215 = vmatprep.subr.mxu1 %v22596_v50  ;;  %7004 = vmatpush2.msra.mxu0 %v22598_v60  ;;  %v22647_v15 = vand.u32 4294901760, %v22646_v27  ;;  %v22649_v3 = vand.u32 4294901760, %v22648_v5  ;;  %v22650_v50 = vld [vmem:[#allocation107_spill] sm:$0xff]  ;;  %v22652_v60 = vld [vmem:[#allocation144_spill] sm:$0xff] }
 0x640   : > { %7217 = vmatpush2.msra.mxu1 %v22599_v25  ;;  %7008 = vmatprep.subr.mxu0 %v22601_v19  ;;  %v22651_v14 = vand.u32 4294901760, %v22650_v50  ;;  %v22653_v25 = vand.u32 4294901760, %v22519_v32  ;;  %v22657_v19 = vand.u32 4294901760, %v22523_v35  ;;  %v22661_v32 = vand.u32 4294901760, %v22527_v44  ;;  %v7325_v35 = vld [vmem:[%s20344_s8 + $0xf0] sm:$0xff] }
 0x641   : > { %7219 = vmatprep.subr.mxu1 %v22602_v47  ;;  %7012 = vmatpush2.msra.mxu0 %v22604_v9  ;;  %v22659_v47 = vand.u32 4294901760, %v22525_v45  ;;  %v17555_v44 = vand.u32 4294901760, %v7325_v35  ;;  %v7309_v9 = vld [vmem:[%s20344_s8 + $0x70] sm:$0xff] }
 0x642   : > { %7221 = vmatpush2.msra.mxu1 %v22605_v39  ;;  %7016 = vmatprep.subr.mxu0 %v22607_v38  ;;  %v7324_v39 = vld [vmem:[%s20344_s8 + $0xe8] sm:$0xff]  ;;  %v17566_v38 = vand.u32 4294901760, %v7309_v9 }
 0x643   : > { %7223 = vmatprep.subr.mxu1 %v22608_v22  ;;  %7020 = vmatpush2.msra.mxu0 %v22610_v2  ;;  %v17568_v22 = vand.u32 4294901760, %v7324_v39  ;;  %v7323_v2 = vld [vmem:[%s20344_s8 + $0xe0] sm:$0xff] }
 0x644   : > { %7225 = vmatpush2.msra.mxu1 %v22611_v41  ;;  %7024 = vmatprep.subr.mxu0 %v22613_v23  ;;  %v7307_v41 = vld [vmem:[%s20344_s8 + $0x60] sm:$0xff]  ;;  %v17587_v36 = vand.u32 4294901760, %v7323_v2 }
 0x645   : > { %7227 = vmatprep.subr.mxu1 %v22614_v56  ;;  %7028 = vmatpush2.msra.mxu0 %v22616_v55  ;;  %v17585_v56 = vsub.f32 %v7325_v35, %v17555_v44  ;;  %v17591_v55 = vsub.f32 %v7309_v9, %v17566_v38 }
 0x646   : > { %7229 = vmatpush2.msra.mxu1 %v22617_v8  ;;  %7032 = vmatprep.subr.mxu0 %v22619_v61  ;;  %v17594_v8 = vsub.f32 %v7324_v39, %v17568_v22  ;;  %v17599_v61 = vand.u32 4294901760, %v7307_v41  ;;  %v7319_v39 = vld [vmem:[%s20344_s8 + $0xc0] sm:$0xff] }
 0x647   : > { %7231 = vmatprep.subr.mxu1 %v22620_v59  ;;  %7036 = vmatpush2.msra.mxu0 %v22622_v13  ;;  %v21162_v13 = vand.u32 4294901760, %v17585_v56  ;;  %v21161_v34 = vand.u32 4294901760, %v17591_v55 }
 0x648   : > { %7233 = vmatpush2.msra.mxu1 %v22623_v16  ;;  %7040 = vmatprep.subr.mxu0 %v22625_v17  ;;  %v17606_v16 = vsub.f32 %v7323_v2, %v17587_v36  ;;  %v21160_v17 = vand.u32 4294901760, %v17594_v8  ;;  %v17613_v37 = vsub.f32 %v7307_v41, %v17599_v61  ;;  %v17704_v41 = vand.u32 4294901760, %v7319_v39 }
 0x649   : > { %7235 = vmatprep.subr.mxu1 %v22626_v7  ;;  %7044 = vmatpush2.msra.mxu0 %v22628_v51  ;;  %v21159_v7 = vand.u32 4294901760, %v17597_v6  ;;  %v7584_v43 = vsub.f32 %v17585_v56, %v21162_v13 }
 0x64a   : > { %7237 = vmatpush2.msra.mxu1 %v22629_v10  ;;  %7048 = vmatprep.subr.mxu0 %v22631_v30  ;;  %v21157_v30 = vand.u32 4294901760, %v17606_v16  ;;  %v7591_v28 = vsub.f32 %v17594_v8, %v21160_v17 }
 0x64b   : > { %7239 = vmatprep.subr.mxu1 %v22632_v31  ;;  %7052 = vmatpush2.msra.mxu0 %v22634_v54  ;;  %v7472_v31 = vsub.f32 %v17591_v55, %v21161_v34  ;;  %v7479_v54 = vsub.f32 %v17597_v6, %v21159_v7 }
 0x64c   : > { %7241 = vmatpush2.msra.mxu1 %v22635_v53  ;;  %7056 = vmatprep.subr.mxu0 %v22637_v42  ;;  %v21155_v53 = vand.u32 4294901760, %v17613_v37 }
 0x64d   : > { %7243 = vmatprep.subr.mxu1 %v22638_v48  ;;  %7060 = vmatpush2.msra.mxu0 %v22639_v57  ;;  %v7585_v57 = vand.u32 4294901760, %v7584_v43  ;;  %v7473_v21 = vand.u32 4294901760, %v7472_v31 }
 0x64e   : > { %7245 = vmatpush2.msra.mxu1 %v22640_v1  ;;  %7064 = vmatprep.subr.mxu0 %v22642_v0  ;;  %v7598_v1 = vsub.f32 %v17606_v16, %v21157_v30  ;;  %v7486_v0 = vsub.f32 %v17613_v37, %v21155_v53 }
 0x64f   : > { %7247 = vmatprep.subr.mxu1 %v22643_v29  ;;  %7068 = vmatpush2.msra.mxu0 %v22645_v18  ;;  %v7592_v29 = vand.u32 4294901760, %v7591_v28  ;;  %v7480_v18 = vand.u32 4294901760, %v7479_v54  ;;  %v7318_v54 = vld [vmem:[%s20344_s8 + $0xb8] sm:$0xff] }
 0x650   : > { %7249 = vmatpush2.msra.mxu1 %v22511_v33  ;;  %7072 = vmatprep.subr.mxu0 %v22647_v15  ;;  %v22655_v33 = vand.u32 4294901760, %v22521_v46  ;;  %v7326_v46 = vld [vmem:[%s20344_s8 + $0xf8] sm:$0xff]  ;;  %v7599_v27 = vand.u32 4294901760, %v7598_v1  ;;  %v17652_v15 = vsub.f32 %v7322_v52, %v17649_v40  ;;  %v7487_v5 = vand.u32 4294901760, %v7486_v0 }
 0x651   : > { %7251 = vmatprep.subr.mxu1 %v22513_v63  ;;  %7076 = vmatpush2.msra.mxu0 %v22649_v3  ;;  %v22656_v63 = vand.u32 4294901760, %v22522_v20  ;;  %v7310_v20 = vld [vmem:[%s20344_s8 + $0x78] sm:$0xff]  ;;  %v17551_v45 = vand.u32 4294901760, %v7326_v46 }
 0x652   : > { %7253 = vmatpush2.msra.mxu1 %v22515_v58  ;;  %7080 = vmatprep.subr.mxu0 %v22651_v14  ;;  %v22658_v58 = vld [vmem:[#allocation145_spill] sm:$0xff]  ;;  %v17553_v24 = vand.u32 4294901760, %v7310_v20  ;;  %v21153_v3 = vand.u32 4294901760, %v17652_v15  ;;  %v7302_v1 = vld [vmem:[%s20344_s8 + $0x38] sm:$0xff] }
 0x653   : > { %7257 = vmatmul.mubr.f32.vlgmr.msra.gmra.mxu1 %v22652_v60  ;;  %7084 = vmatpush2.msra.mxu0 %v22653_v25  ;;  %22662 = vst [vmem:[#allocation86_spill] sm:$0xff] %v17551_v45  ;;  %v17579_v12 = vsub.f32 %v7326_v46, %v17551_v45  ;;  %v7304_v46 = vld [vmem:[%s20344_s8 + $0x48] sm:$0xff] }
 0x654   : > { %7263 = vmatprep.mubr.f32.mxu1 %v22654_v26  ;;  %7088 = vmatprep.subr.mxu0 %v22655_v33  ;;  %v17582_v23 = vsub.f32 %v7310_v20, %v17553_v24  ;;  %v7605_v50 = vsub.f32 %v17652_v15, %v21153_v3  ;;  %v17694_v9 = vand.u32 4294901760, %v7304_v46 }
 0x655   : > { %7092 = vmatpush2.msra.mxu0 %v22656_v63  ;;  %22663 = vst [vmem:[#allocation88_spill] sm:$0xff] %v17579_v12  ;;  %v21164_v59 = vand.u32 4294901760, %v17579_v12  ;;  %v7305_v63 = vld [vmem:[%s20344_s8 + $0x50] sm:$0xff] }
 0x656   : > { %7096 = vmatprep.subr.mxu0 %v22657_v19  ;;  %v21163_v62 = vand.u32 4294901760, %v17582_v23  ;;  %v7606_v14 = vand.u32 4294901760, %v7605_v50  ;;  %v17715_v31 = vsub.f32 %v7304_v46, %v17694_v9 }
 0x657   : > { %7265 = vmatmul.mubr.f32.gmra.mxu1 %v22658_v58  ;;  %7100 = vmatpush2.msra.mxu0 %v22659_v47  ;;  %v7577_v51 = vsub.f32 %v17579_v12, %v21164_v59  ;;  %v7320_v47 = vld [vmem:[%s20344_s8 + $0xc8] sm:$0xff] }
 0x658   : > { %7104 = vmatprep.subr.mxu0 %v22660_v4  ;;  %v7465_v10 = vsub.f32 %v17582_v23, %v21163_v62  ;;  %22666 = vst [vmem:[#allocation91_spill] sm:$0xff] %v17715_v31 }
 0x659   : > { %7108 = vmatpush2.msra.mxu0 %v22661_v32  ;;  %v7578_v42 = vand.u32 4294901760, %v7577_v51  ;;  %v17684_v32 = vand.u32 4294901760, %v7320_v47  ;;  %v7303_v51 = vld [vmem:[%s20344_s8 + $0x40] sm:$0xff] }
 0x65a   : > { %7112 = vmatmul.mubr.f32.vlgmr.msra.gmra.mxu0 %v22652_v60  ;;  %12482 = vmatprep.subr.mxu0 %v17551_v45  ;;  %v7466_v48 = vand.u32 4294901760, %v7465_v10  ;;  %v7306_v60 = vld [vmem:[%s20344_s8 + $0x58] sm:$0xff]  ;;  %v17717_v28 = vand.u32 4294901760, %v7303_v51 }
 0x65b   : > { %7118 = vmatprep.mubr.f32.mxu0 %v22654_v26  ;;  %12483 = vmatpush3.msra.mxu0 %v17553_v24  ;;  %v17662_v25 = vand.u32 4294901760, %v7306_v60  ;;  %v7321_v26 = vld [vmem:[%s20344_s8 + $0xd0] sm:$0xff]  ;;  %v17702_v2 = vsub.f32 %v7320_v47, %v17684_v32 }
 0x65c   : > { %12484 = vmatprep.subr.mxu0 %v17555_v44  ;;  %12520 = vmatprep.subr.mxu1 %v7578_v42  ;;  %v17667_v33 = vand.u32 4294901760, %v7321_v26 }
 0x65d   : > { %12485 = vmatpush3.msra.mxu0 %v17566_v38  ;;  %12521 = vmatpush3.msra.mxu1 %v7466_v48  ;;  %v17673_v19 = vsub.f32 %v7306_v60, %v17662_v25  ;;  %22665 = vst [vmem:[#allocation77_spill] sm:$0xff] %v17702_v2  ;;  %v21147_v42 = vand.u32 4294901760, %v17702_v2  ;;  %v17728_v48 = vsub.f32 %v7319_v39, %v17704_v41  ;;  %v17762_v39 = vand.u32 4294901760, %v7302_v1 }
 0x65e   : > { %7120 = vmatmul.mubr.f32.gmra.mxu0 %v22658_v58  ;;  %12486 = vmatprep.subr.mxu0 %v17568_v22  ;;  %v17675_v58 = vand.u32 4294901760, %v7305_v63  ;;  %v17682_v4 = vsub.f32 %v7321_v26, %v17667_v33  ;;  %v7301_v26 = vld [vmem:[%s20344_s8 + $0x30] sm:$0xff] }
 0x65f   : > { %12487 = vmatpush3.msra.mxu0 %v17570_v49  ;;  %12522 = vmatprep.subr.mxu1 %v7585_v57  ;;  %v21152_v20 = vand.u32 4294901760, %v17673_v19  ;;  %22667 = vst [vmem:[#allocation78_spill] sm:$0xff] %v17728_v48  ;;  %v17730_v57 = vand.u32 4294901760, %v7318_v54  ;;  %v7619_v50 = vsub.f32 %v17702_v2, %v21147_v42 }
 0x660   : > { %12488 = vmatprep.subr.mxu0 %v17587_v36  ;;  %12523 = vmatpush3.msra.mxu1 %v7473_v21  ;;  %v17692_v35 = vsub.f32 %v7305_v63, %v17675_v58  ;;  %v21151_v11 = vand.u32 4294901760, %v17682_v4 }
 0x661   : > { %12489 = vmatpush3.msra.mxu0 %v17599_v61  ;;  %12524 = vmatprep.subr.mxu1 %v7592_v29  ;;  %v7493_v10 = vsub.f32 %v17673_v19, %v21152_v20  ;;  %v21145_v29 = vand.u32 4294901760, %v17715_v31  ;;  %v17752_v60 = vsub.f32 %v7318_v54, %v17730_v57 }
 0x662   : > { %12490 = vmatprep.subr.mxu0 %v17649_v40  ;;  %12525 = vmatpush3.msra.mxu1 %v7480_v18  ;;  %22664 = vst [vmem:[#allocation95_spill] sm:$0xff] %v17692_v35  ;;  %v21149_v43 = vand.u32 4294901760, %v17692_v35  ;;  %v7612_v52 = vsub.f32 %v17682_v4, %v21151_v11  ;;  %v17741_v18 = vsub.f32 %v7303_v51, %v17717_v28  ;;  %v7620_v51 = vand.u32 4294901760, %v7619_v50 }
 0x663   : > { %12526 = vmatprep.subr.mxu1 %v7599_v27  ;;  %12491 = vmatpush3.msra.mxu0 %v17662_v25  ;;  %v7494_v21 = vand.u32 4294901760, %v7493_v10  ;;  %v7317_v27 = vld [vmem:[%s20344_s8 + $0xb0] sm:$0xff]  ;;  %22669 = vst [vmem:[#allocation85_spill] sm:$0xff] %v17752_v60  ;;  %v7507_v47 = vsub.f32 %v17715_v31, %v21145_v29  ;;  %v21150_v54 = vand.u32 4294901760, %v17752_v60  ;;  %v17779_v50 = vand.u32 4294901760, %v7301_v26 }
 0x664   : > { %12527 = vmatpush3.msra.mxu1 %v7487_v5  ;;  %12492 = vmatprep.subr.mxu0 %v17667_v33  ;;  %v7500_v0 = vsub.f32 %v17692_v35, %v21149_v43  ;;  %22668 = vst [vmem:[#allocation101_spill] sm:$0xff] %v17741_v18  ;;  %v7613_v5 = vand.u32 4294901760, %v7612_v52  ;;  %v21148_v46 = vand.u32 4294901760, %v17741_v18  ;;  %v17768_v52 = vand.u32 4294901760, %v7317_v27  ;;  %v22718_v35 = vld [vmem:[#allocation39_spill] sm:$0xff] }
 0x665   : > { %12528 = vmatprep.subr.mxu1 %v7606_v14  ;;  %12493 = vmatpush3.msra.mxu0 %v17675_v58  ;;  %v21146_v14 = vand.u32 4294901760, %v17728_v48  ;;  %22672 = vst [vmem:[#allocation118_spill] sm:$0xff] %v17779_v50 }
 0x666   : > { %12494 = vmatprep.subr.mxu0 %v17684_v32  ;;  %12529 = vmatpush3.msra.mxu1 %v7494_v21  ;;  %v7501_v63 = vand.u32 4294901760, %v7500_v0  ;;  %22670 = vst [vmem:[#allocation103_spill] sm:$0xff] %v17768_v52  ;;  %v7316_v21 = vld [vmem:[%s20344_s8 + $0xa8] sm:$0xff]  ;;  %v7508_v0 = vand.u32 4294901760, %v7507_v47  ;;  %v7514_v29 = vsub.f32 %v17741_v18, %v21148_v46  ;;  %v17789_v47 = vsub.f32 %v7317_v27, %v17768_v52  ;;  %v7299_v27 = vld [vmem:[%s20344_s8 + $0x20] sm:$0xff]  ;;  %v22711_v18 = vld [vmem:[#allocation38_spill] sm:$0xff] }
 0x667   : > { %12495 = vmatpush3.msra.mxu0 %v17694_v9  ;;  %12530 = vmatprep.subr.mxu1 %v7613_v5  ;;  %v7626_v10 = vsub.f32 %v17728_v48, %v21146_v14  ;;  %v17777_v5 = vsub.f32 %v7302_v1, %v17762_v39  ;;  %v7300_v14 = vld [vmem:[%s20344_s8 + $0x28] sm:$0xff]  ;;  %v7315_v1 = vld [vmem:[%s20344_s8 + $0xa0] sm:$0xff] }
 0x668   : > { %12496 = vmatprep.subr.mxu0 %v17704_v41  ;;  %12531 = vmatpush3.msra.mxu1 %v7501_v63  ;;  %v7633_v63 = vsub.f32 %v17752_v60, %v21150_v54  ;;  %22673 = vst [vmem:[#allocation89_spill] sm:$0xff] %v17789_v47  ;;  %v7515_v46 = vand.u32 4294901760, %v7514_v29  ;;  %v21156_v11 = vand.u32 4294901760, %v17789_v47  ;;  %v17806_v20 = vand.u32 4294901760, %v7300_v14 }
 0x669   : > { %12497 = vmatpush3.msra.mxu0 %v17717_v28  ;;  %22671 = vst [vmem:[#allocation87_spill] sm:$0xff] %v17777_v5  ;;  %12532 = vmatprep.subr.mxu1 %v7620_v51  ;;  %v7627_v42 = vand.u32 4294901760, %v7626_v10  ;;  %v21154_v43 = vand.u32 4294901760, %v17777_v5  ;;  %v17797_v51 = vsub.f32 %v7301_v26, %v17779_v50  ;;  %v17799_v10 = vand.u32 4294901760, %v7316_v21 }
 0x66a   : > { %12498 = vmatprep.subr.mxu0 %v17730_v57  ;;  %12533 = vmatpush3.msra.mxu1 %v7508_v0  ;;  %v7634_v54 = vand.u32 4294901760, %v7633_v63  ;;  %22676 = vst [vmem:[#allocation25_spill] sm:$0xff] %v17806_v20  ;;  %v17815_v3 = vand.u32 4294901760, %v7315_v1  ;;  %v17824_v63 = vand.u32 4294901760, %v7299_v27 }
 0x66b   : > { %12499 = vmatpush3.msra.mxu0 %v17762_v39  ;;  %22674 = vst [vmem:[#allocation115_spill] sm:$0xff] %v17797_v51  ;;  %22675 = vst [vmem:[#allocation93_spill] sm:$0xff] %v17799_v10  ;;  %12534 = vmatprep.subr.mxu1 %v7627_v42  ;;  %v7521_v29 = vsub.f32 %v17777_v5, %v21154_v43  ;;  %v21158_v26 = vand.u32 4294901760, %v17797_v51  ;;  %v17813_v0 = vsub.f32 %v7316_v21, %v17799_v10 }
 0x66c   : > { %12500 = vmatprep.subr.mxu0 %v17768_v52  ;;  %12535 = vmatpush3.msra.mxu1 %v7515_v46  ;;  %22678 = vst [vmem:[#allocation46_spill] sm:$0xff] %v17815_v3  ;;  %v7640_v42 = vsub.f32 %v17789_v47, %v21156_v11  ;;  %v17822_v46 = vsub.f32 %v7300_v14, %v17806_v20  ;;  %22680 = vst [vmem:[#allocation98_spill] sm:$0xff] %v17824_v63 }
 0x66d   : > { %12501 = vmatpush3.msra.mxu0 %v17779_v50  ;;  %22677 = vst [vmem:[#allocation94_spill] sm:$0xff] %v17813_v0  ;;  %12536 = vmatprep.subr.mxu1 %v7634_v54  ;;  %v7522_v43 = vand.u32 4294901760, %v7521_v29  ;;  %v7528_v21 = vsub.f32 %v17797_v51, %v21158_v26  ;;  %v21166_v53 = vand.u32 4294901760, %v17813_v0  ;;  %v7314_v54 = vld [vmem:[%s20344_s8 + $0x98] sm:$0xff]  ;;  %v17837_v30 = vsub.f32 %v7315_v1, %v17815_v3  ;;  %v7313_v26 = vld [vmem:[%s20344_s8 + $0x90] sm:$0xff] }
 0x66e   : > { %12502 = vmatprep.subr.mxu0 %v17799_v10  ;;  %22679 = vst [vmem:[#allocation97_spill] sm:$0xff] %v17822_v46  ;;  %v7641_v11 = vand.u32 4294901760, %v7640_v42  ;;  %v21165_v14 = vand.u32 4294901760, %v17822_v46  ;;  %v7298_v29 = vld [vmem:[%s20344_s8 + $0x18] sm:$0xff]  ;;  %v17850_v17 = vsub.f32 %v7299_v27, %v17824_v63  ;;  %v17856_v13 = vand.u32 4294901760, %v7314_v54  ;;  %v7312_v27 = vld [vmem:[%s20344_s8 + $0x88] sm:$0xff] }
 0x66f   : > { %12503 = vmatpush3.msra.mxu0 %v17806_v20  ;;  %22681 = vst [vmem:[#allocation119_spill] sm:$0xff] %v17837_v30  ;;  %12537 = vmatpush3.msra.mxu1 %v7522_v43  ;;  %v7529_v7 = vand.u32 4294901760, %v7528_v21  ;;  %v7647_v42 = vsub.f32 %v17813_v0, %v21166_v53  ;;  %v21171_v34 = vand.u32 4294901760, %v17837_v30  ;;  %v17859_v21 = vand.u32 4294901760, %v7298_v29  ;;  %v22716_v10 = vld [vmem:[#allocation21_spill] sm:$0xff] }
 0x670   : > { %12504 = vmatprep.subr.mxu0 %v17815_v3  ;;  %22682 = vst [vmem:[#allocation138_spill] sm:$0xff] %v17850_v17  ;;  %12538 = vmatprep.subr.mxu1 %v7641_v11  ;;  %v7535_v1 = vsub.f32 %v17822_v46, %v21165_v14  ;;  %22683 = vst [vmem:[#allocation140_spill] sm:$0xff] %v17856_v13  ;;  %v21172_v43 = vand.u32 4294901760, %v17850_v17  ;;  %v17861_v59 = vand.u32 4294901760, %v7313_v26  ;;  %v7297_v11 = vld [vmem:[%s20344_s8 + $0x10] sm:$0xff] }
 0x671   : > { %12505 = vmatpush3.msra.mxu0 %v17824_v63  ;;  %12539 = vmatpush3.msra.mxu1 %v7529_v7  ;;  %v7648_v62 = vand.u32 4294901760, %v7647_v42  ;;  %22684 = vst [vmem:[#allocation73_spill] sm:$0xff] %v17859_v21  ;;  %v7654_v7 = vsub.f32 %v17837_v30, %v21171_v34  ;;  %v17877_v53 = vsub.f32 %v7314_v54, %v17856_v13  ;;  %v17893_v54 = vand.u32 4294901760, %v7312_v27  ;;  %v22713_v3 = vld [vmem:[#allocation37_spill] sm:$0xff] }
 0x672   : > { %22685 = vst [vmem:[#allocation122_spill] sm:$0xff] %v17861_v59  ;;  %v7536_v14 = vand.u32 4294901760, %v7535_v1  ;;  %12506 = vmatprep.subr.mxu0 %v17856_v13  ;;  %v7542_v42 = vsub.f32 %v17850_v17, %v21172_v43  ;;  %v17880_v46 = vsub.f32 %v7298_v29, %v17859_v21  ;;  %v17883_v0 = vsub.f32 %v7313_v26, %v17861_v59  ;;  %v7296_v1 = vld [vmem:[%s20344_s8 + $0x8] sm:$0xff]  ;;  %v7295_v29 = vld [vmem:[%s20344_s8] sm:$0xff] }
 0x673   : > { %12540 = vmatprep.subr.mxu1 %v7648_v62  ;;  %22686 = vst [vmem:[#allocation117_spill] sm:$0xff] %v17877_v53  ;;  %v7311_v62 = vld [vmem:[%s20344_s8 + $0x80] sm:$0xff]  ;;  %v7655_v34 = vand.u32 4294901760, %v7654_v7  ;;  %v17891_v43 = vand.u32 4294901760, %v7297_v11  ;;  %22690 = vst [vmem:[#allocation139_spill] sm:$0xff] %v17893_v54  ;;  %12507 = vmatpush3.msra.mxu0 %v17859_v21  ;;  %v21187_v17 = vand.u32 4294901760, %v17877_v53  ;;  %v17907_v7 = vsub.f32 %v7312_v27, %v17893_v54 }
 0x674   : > { %22687 = vst [vmem:[#allocation120_spill] sm:$0xff] %v17880_v46  ;;  %22688 = vst [vmem:[#allocation123_spill] sm:$0xff] %v17883_v0  ;;  %12541 = vmatpush3.msra.mxu1 %v7536_v14  ;;  %v7543_v26 = vand.u32 4294901760, %v7542_v42  ;;  %v21188_v30 = vand.u32 4294901760, %v17880_v46  ;;  %v21193_v51 = vand.u32 4294901760, %v17883_v0  ;;  %12508 = vmatprep.subr.mxu0 %v17861_v59  ;;  %v17909_v47 = vand.u32 4294901760, %v7296_v1 }
 0x675   : > { %22689 = vst [vmem:[#allocation137_spill] sm:$0xff] %v17891_v43  ;;  %12542 = vmatprep.subr.mxu1 %v7655_v34  ;;  %v17904_v14 = vsub.f32 %v7297_v11, %v17891_v43  ;;  %22692 = vst [vmem:[#allocation75_spill] sm:$0xff] %v17907_v7  ;;  %v17911_v5 = vand.u32 4294901760, %v7311_v62  ;;  %12509 = vmatpush3.msra.mxu0 %v17891_v43  ;;  %v7661_v42 = vsub.f32 %v17877_v53, %v21187_v17 }
 0x676   : > { %22693 = vst [vmem:[#allocation33_spill] sm:$0xff] %v17909_v47  ;;  %12543 = vmatpush3.msra.mxu1 %v7543_v26  ;;  %v7549_v34 = vsub.f32 %v17880_v46, %v21188_v30  ;;  %v7668_v11 = vsub.f32 %v17883_v0, %v21193_v51  ;;  %v17923_v27 = vand.u32 4294901760, %v7295_v29  ;;  %12510 = vmatprep.subr.mxu0 %v17893_v54  ;;  %v22708_v54 = vld [vmem:[#allocation62_spill] sm:$0xff] }
 0x677   : > { %22691 = vst [vmem:[#allocation141_spill] sm:$0xff] %v17904_v14  ;;  %22694 = vst [vmem:[#allocation99_spill] sm:$0xff] %v17911_v5  ;;  %v21198_v59 = vand.u32 4294901760, %v17904_v14  ;;  %v17929_v43 = vsub.f32 %v7296_v1, %v17909_v47  ;;  %v17932_v17 = vsub.f32 %v7311_v62, %v17911_v5  ;;  %12511 = vmatpush3.msra.mxu0 %v17909_v47  ;;  %v7662_v30 = vand.u32 4294901760, %v7661_v42 }
 0x678   : > { %22695 = vst [vmem:[#allocation53_spill] sm:$0xff] %v17923_v27  ;;  %v7550_v46 = vand.u32 4294901760, %v7549_v34  ;;  %v7669_v53 = vand.u32 4294901760, %v7668_v11  ;;  %v17936_v51 = vsub.f32 %v7295_v29, %v17923_v27  ;;  %12512 = vmatprep.subr.mxu0 %v17911_v5  ;;  %v22699_v1 = vand.u32 4294901760, %v17907_v7 }
 0x679   : > { %22696 = vst [vmem:[#allocation105_spill] sm:$0xff] %v17929_v43  ;;  %22697 = vst [vmem:[#allocation26_spill] sm:$0xff] %v17932_v17  ;;  %v7556_v26 = vsub.f32 %v17904_v14, %v21198_v59  ;;  %v21201_v62 = vand.u32 4294901760, %v17929_v43  ;;  %v21203_v47 = vand.u32 4294901760, %v17932_v17  ;;  %12513 = vmatpush3.msra.mxu0 %v17923_v27  ;;  %12544 = vmatprep.subr.mxu1 %v7662_v30 }
 0x67a   : > { %22698 = vst [vmem:[#allocation110_spill] sm:$0xff] %v17936_v51  ;;  %v7675_v0 = vsub.f32 %v17907_v7, %v22699_v1  ;;  %v21210_v29 = vand.u32 4294901760, %v17936_v51  ;;  %12558 = vmatprep.subr.mxu0 %v17579_v12  ;;  %12545 = vmatpush3.msra.mxu1 %v7550_v46  ;;  %v22700_v12 = vld [vmem:[#allocation143_spill] sm:$0xff] }
 0x67b   : > { %v7557_v42 = vand.u32 4294901760, %v7556_v26  ;;  %v7563_v11 = vsub.f32 %v17929_v43, %v21201_v62  ;;  %v7682_v1 = vsub.f32 %v17932_v17, %v21203_v47  ;;  %12546 = vmatprep.subr.mxu1 %v7669_v53  ;;  %v22701_v47 = vld [vmem:[#allocation142_spill] sm:$0xff] }
 0x67c   : > { %v7676_v34 = vand.u32 4294901760, %v7675_v0  ;;  %v7570_v30 = vsub.f32 %v17936_v51, %v21210_v29  ;;  %v3171_v53 = vadd.f32 %v22701_v47, %v22700_v12  ;;  %v22702_v17 = vld [vmem:[#allocation50_spill] sm:$0xff]  ;;  %v22709_v12 = vld [vmem:[#allocation121_spill] sm:$0xff] }
 0x67d   : > { %12547 = vmatpush3.msra.mxu1 %v7557_v42  ;;  %v7564_v59 = vand.u32 4294901760, %v7563_v11  ;;  %v7683_v7 = vand.u32 4294901760, %v7682_v1  ;;  %v22703_v42 = vld [vmem:[#allocation41_spill] sm:$0xff]  ;;  %v22704_v11 = vld [vmem:[#allocation44_spill] sm:$0xff] }
 0x67e   : > { %12548 = vmatprep.subr.mxu1 %v7676_v34  ;;  %v7571_v46 = vand.u32 4294901760, %v7570_v30  ;;  %v3382_v43 = vadd.f32 %v22702_v17, %v3171_v53  ;;  %v3179_v1 = vadd.f32 %v22704_v11, %v22703_v42  ;;  %v22705_v34 = vld [vmem:[#allocation65_spill] sm:$0xff]  ;;  %v22710_v17 = vld [vmem:[#allocation71_spill] sm:$0xff] }
 0x67f   : > { %12549 = vmatpush3.msra.mxu1 %v7564_v59  ;;  %v22706_v59 = vld [vmem:[#allocation54_spill] sm:$0xff]  ;;  %v22712_v11 = vld [vmem:[#allocation109_spill] sm:$0xff] }
 0x680   : > { %12550 = vmatprep.subr.mxu1 %v7683_v7  ;;  %v3392_v30 = vadd.f32 %v22705_v34, %v3179_v1  ;;  %v3533_v7 = vadd.f32 %v22706_v59, %v3382_v43  ;;  %v7277_v59 = vlaneseq }
 0x681   : > { %12551 = vmatpush3.msra.mxu1 %v7571_v46 }
 0x682   : > { %12596 = vmatprep.subr.mxu1 %v17551_v45  ;;  %v22707_v45 = vld [vmem:[#allocation69_spill] sm:$0xff]  ;;  %v3545_v21 = vadd.f32 %v22708_v54, %v3392_v30  ;;  %v22715_v54 = vld [vmem:[#allocation27_spill] sm:$0xff] }
 0x683   : > { %v3810_v27 = vadd.f32 %v22707_v45, %v3533_v7  ;;  %v22714_v45 = vld [vmem:[#allocation42_spill] sm:$0xff] }
 0x684   : > { %v3818_v47 = vadd.f32 %v22709_v12, %v3545_v21 }
 0x685   : > { %v3955_v53 = vadd.f32 %v22710_v17, %v3810_v27  ;;  %v7278_v17 = vshrl.u32 %v7277_v59, 7 }
 0x686   : > { %v3963_v1 = vadd.f32 %v22712_v11, %v3818_v47  ;;  %v22717_v11 = vld [vmem:[#allocation24_spill] sm:$0xff] }
 0x687   : > { %v4108_v42 = vadd.f32 %v22711_v18, %v3955_v53 }
 0x688   : > { %v4124_v48 = vadd.f32 %v22713_v3, %v3963_v1 }
 0x689   : > { %v4517_v7 = vadd.f32 %v22714_v45, %v4108_v42  ;;  %v22719_v45 = vld [vmem:[#allocation35_spill] sm:$0xff] }
 0x68a   : > { %v4525_v2 = vadd.f32 %v22716_v10, %v4124_v48  ;;  %v7283_v48 = vsub.s32 1, %v7278_v17 }
 0x68b   : > { %v4728_v30 = vadd.f32 %v22715_v54, %v4517_v7 }
 0x68c   : > { %v4738_v50 = vadd.f32 %v22717_v11, %v4525_v2  ;;  %v22720_v2 = vld [vmem:[#allocation31_spill] sm:$0xff] }
 0x68d   : > { %v6474_v0 = vpop.f32.mrf.mxu1  ;;  %v4879_v52 = vadd.f32 %v22718_v35, %v4728_v30 }
 0x68f   : > { %v6476_v26 = vpop.f32.mrf.mxu1  ;;  %v5156_v7 = vadd.f32 %v22719_v45, %v4879_v52  ;;  %v22722_v52 = vld [vmem:[#allocation30_spill] sm:$0xff] }
 0x691   : > { %v6482_v14 = vpop.f32.mrf.mxu1 }
 0x693   : > { %v6484_v46 = vpop.f32.mrf.mxu1 }
 0x695   : > { %v6065_v62 = vpop.f32.mrf.mxu0 }
 0x696   : > { %v6475_v20 = vadd.f32 %v6474_v0, %v6065_v62  ;;  %v7279_v0 = vsub.s32 0, %v7278_v17 }
 0x697   : > { %v6067_v29 = vpop.f32.mrf.mxu0 }
 0x698   : > { %v6477_v12 = vadd.f32 %v6476_v26, %v6067_v29 }
 0x69a   : > { %v6081_v51 = vpop.f32.mrf.mxu0 }
 0x69b   : > { %v6483_v53 = vadd.f32 %v6482_v14, %v6081_v51  ;;  %v4891_v14 = vadd.f32 %v22720_v2, %v4738_v50 }
 0x69c   : > { %v6083_v13 = vpop.f32.mrf.mxu0 }
 0x69d   : > { %v6485_v1 = vadd.f32 %v6484_v46, %v6083_v13  ;;  %v5164_v30 = vadd.f32 %v22722_v52, %v4891_v14 }
 0x6cf   : > { %v6836_v5 = vpop.f32.mrf.mxu1 }
 0x6d1   : > { %v6838_v60 = vpop.f32.mrf.mxu1 }
 0x6d4   : > { %v6848_v34 = vpop.f32.mrf.mxu1 }
 0x6d6   : > { %v6850_v31 = vpop.f32.mrf.mxu1 }
 0x6d8   : > { %v6685_v63 = vpop.f32.mrf.mxu0 }
 0x6d9   : > { %v6686_v27 = vadd.f32 %v6685_v63, %v6475_v20  ;;  %v7275_v20 = vld [vmem:[%s20343_s7] sm:$0x3] }
 0x6da   : > { %v6687_v43 = vpop.f32.mrf.mxu0  ;;  %v7280_v13 = vrot.slane %v7275_v20, %v7279_v0  ;;  %v22724_v0 = vld [vmem:[#allocation23_spill] sm:$0xff] }
 0x6db   : > { %v6688_v47 = vadd.f32 %v6687_v43, %v6477_v12  ;;  %v6837_v62 = vadd.f32 %v6836_v5, %v6686_v27  ;;  %v22721_v43 = vld [vmem:[#allocation32_spill] sm:$0xff]  ;;  %v7284_v12 = vrot.slane %v7275_v20, %v7283_v48  ;;  %v5309_v45 = vadd.f32 %v22724_v0, %v5164_v30  ;;  %v22732_v0 = vld [vmem:[#allocation77_spill] sm:$0xff] }
 0x6dc   : > { %v5301_v59 = vadd.f32 %v22721_v43, %v5156_v7 }
 0x6dd   : > { %v6695_v21 = vpop.f32.mrf.mxu0  ;;  %v6839_v63 = vadd.f32 %v6838_v60, %v6688_v47 }
 0x6de   : > { %v6696_v42 = vadd.f32 %v6695_v21, %v6483_v53  ;;  %v22723_v53 = vld [vmem:[#allocation29_spill] sm:$0xff] }
 0x6df   : > { %v6697_v3 = vpop.f32.mrf.mxu0 }
 0x6e0   : > { %v6698_v51 = vadd.f32 %v6697_v3, %v6485_v1  ;;  %v6849_v5 = vadd.f32 %v6848_v34, %v6696_v42 }
 0x6e2   : > { %v6851_v1 = vadd.f32 %v6850_v31, %v6698_v51 }
 0x713   : > { %v7258_v18 = vpop.f32.mrf.mxu1 }
 0x715   : > { %v7260_v54 = vpop.f32.mrf.mxu1 }
 0x717   : > { %v7266_v21 = vpop.f32.mrf.mxu1 }
 0x719   : > { %v7268_v34 = vpop.f32.mrf.mxu1 }
 0x71a   : > { %v7113_v29 = vpop.f32.mrf.mxu0 }
 0x71b   : > { %v7114_v10 = vadd.f32 %v7113_v29, %v6837_v62  ;;  %v22725_v29 = vld [vmem:[#allocation34_spill] sm:$0xff] }
 0x71c   : > { %v7115_v35 = vpop.f32.mrf.mxu0 }
 0x71d   : > { %v7259_v26 = vadd.f32 %v7258_v18, %v7114_v10  ;;  %v7116_v46 = vadd.f32 %v7115_v35, %v6839_v63 }
 0x71e   : > { %v7121_v27 = vpop.f32.mrf.mxu0 }
 0x71f   : > { %v7271_v11 = vadd.f32 %v7259_v26, %v22723_v53  ;;  %v7261_v17 = vadd.f32 %v7260_v54, %v7116_v46  ;;  %v7122_v3 = vadd.f32 %v7121_v27, %v6849_v5 }
 0x720   : > { %v7123_v60 = vpop.f32.mrf.mxu0 }
 0x721   : > { %v7287_v47 = vadd.f32 %v7280_v13, %v7271_v11  ;;  %v7272_v50 = vadd.f32 %v7261_v17, %v5301_v59  ;;  %v7267_v62 = vadd.f32 %v7266_v21, %v7122_v3  ;;  %v7124_v18 = vadd.f32 %v7123_v60, %v6851_v1 }
 0x723   : > { %v7291_v42 = vmax.f32 %v7287_v47, 0.0  ;;  %v7288_v7 = vadd.f32 %v7284_v12, %v7272_v50  ;;  %v7273_v10 = vadd.f32 %v7267_v62, %v22725_v29  ;;  %v7269_v63 = vadd.f32 %v7268_v34, %v7124_v18  ;;  %v22729_v50 = vld [vmem:[#allocation103_spill] sm:$0xff]  ;;  %v22731_v18 = vld [vmem:[#allocation118_spill] sm:$0xff] }
 0x724   : > { %v22730_v62 = vld [vmem:[#allocation95_spill] sm:$0xff]  ;;  %v22737_v29 = vld [vmem:[#allocation46_spill] sm:$0xff] }
 0x725   : > { %v17989_v20 = vand.u32 4294901760, %v7291_v42  ;;  %v7292_v48 = vmax.f32 %v7288_v7, 0.0  ;;  %v7289_v2 = vadd.f32 %v7280_v13, %v7273_v10  ;;  %v7274_v54 = vadd.f32 %v7269_v63, %v5309_v45  ;;  %v22733_v45 = vld [vmem:[#allocation93_spill] sm:$0xff]  ;;  %v22734_v34 = vld [vmem:[#allocation91_spill] sm:$0xff]  ;;  %v22736_v7 = vld [vmem:[#allocation78_spill] sm:$0xff] }
 0x726   : > { %v22738_v10 = vld [vmem:[#allocation101_spill] sm:$0xff]  ;;  %v22739_v63 = vld [vmem:[#allocation98_spill] sm:$0xff] }
 0x727   : > { %22726 = vst [vmem:[#allocation47_spill] sm:$0xff] %v17989_v20  ;;  %v17992_v31 = vsub.f32 %v7291_v42, %v17989_v20  ;;  %v7293_v51 = vmax.f32 %v7289_v2, 0.0  ;;  %v7290_v14 = vadd.f32 %v7284_v12, %v7274_v54  ;;  %v17994_v35 = vand.u32 4294901760, %v7292_v48  ;;  %v22735_v42 = vld [vmem:[#allocation25_spill] sm:$0xff]  ;;  %v22741_v2 = vld [vmem:[#allocation140_spill] sm:$0xff]  ;;  %v22742_v54 = vld [vmem:[#allocation87_spill] sm:$0xff] }
 0x729   : > { %v7438_v26 = vand.u32 4294901760, %v17992_v31  ;;  %v7294_v46 = vmax.f32 %v7290_v14, 0.0  ;;  %7686 = vmatprep.mubr.f32.mxu1 %v17994_v35  ;;  %v17998_v5 = vand.u32 4294901760, %v7293_v51  ;;  %v7431_v43 = vsub.f32 %v7292_v48, %v17994_v35  ;;  %v22740_v48 = vld [vmem:[#allocation85_spill] sm:$0xff] }
 0x72a   : > { %7688 = vmatmul.mubr.f32.vlgmr.msra.gmra.mxu1 %v17989_v20  ;;  %v22744_v14 = vld [vmem:[#allocation89_spill] sm:$0xff]  ;;  %v22760_v20 = vld [vmem:[#allocation123_spill] sm:$0xff] }
 0x72b   : > { %22727 = vst [vmem:[#allocation22_spill] sm:$0xff] %v17998_v5  ;;  %12597 = vmatpush3.msra.mxu1 %v17553_v24  ;;  %v18003_v13 = vand.u32 4294901760, %v7294_v46  ;;  %v7432_v59 = vand.u32 4294901760, %v7431_v43  ;;  %v18006_v52 = vsub.f32 %v7293_v51, %v17998_v5  ;;  %v7439_v30 = vsub.f32 %v17992_v31, %v7438_v26  ;;  %v22743_v51 = vld [vmem:[#allocation73_spill] sm:$0xff] }
 0x72c   : > { %12598 = vmatprep.subr.mxu1 %v17555_v44 }
 0x72d   : > { %22728 = vst [vmem:[#allocation57_spill] sm:$0xff] %v18003_v13  ;;  %12599 = vmatpush3.msra.mxu1 %v17566_v38  ;;  %7693 = vmatprep.mubr.f32.mxu1 %v18003_v13  ;;  %v7433_v21 = vsub.f32 %v7431_v43, %v7432_v59  ;;  %v18015_v12 = vsub.f32 %v7294_v46, %v18003_v13  ;;  %v21248_v27 = vand.u32 4294901760, %v18006_v52  ;;  %v7440_v17 = vand.u32 4294901760, %v7439_v30  ;;  %v22745_v46 = vld [vmem:[#allocation122_spill] sm:$0xff] }
 0x72e   : > { %12600 = vmatprep.subr.mxu1 %v17568_v22  ;;  %7695 = vmatmul.mubr.f32.gmra.mxu1 %v17998_v5  ;;  %v22748_v30 = vld [vmem:[#allocation94_spill] sm:$0xff]  ;;  %v22758_v5 = vld [vmem:[#allocation120_spill] sm:$0xff] }
 0x72f   : > { %12601 = vmatpush3.msra.mxu1 %v17570_v49  ;;  %7946 = vmatprep.mubr.f32.mxu1 %v7432_v59  ;;  %v7434_v53 = vand.u32 4294901760, %v7433_v21  ;;  %v21249_v11 = vand.u32 4294901760, %v18015_v12  ;;  %v7454_v1 = vsub.f32 %v18006_v52, %v21248_v27  ;;  %v22747_v59 = vld [vmem:[#allocation137_spill] sm:$0xff]  ;;  %v22749_v21 = vld [vmem:[#allocation139_spill] sm:$0xff]  ;;  %v22759_v13 = vand.u32 4294901760, %v18015_v12 }
 0x730   : > { %12602 = vmatprep.subr.mxu1 %v17587_v36  ;;  %v22756_v27 = vld [vmem:[#allocation117_spill] sm:$0xff] }
 0x731   : > { %12603 = vmatpush3.msra.mxu1 %v17599_v61  ;;  %7435 = vmatprep.mubr.f32.mxu0 %v7434_v53  ;;  %v7448_v3 = vsub.f32 %v18015_v12, %v21249_v11  ;;  %v7455_v47 = vand.u32 4294901760, %v7454_v1  ;;  %v22750_v53 = vld [vmem:[#allocation97_spill] sm:$0xff]  ;;  %v22753_v1 = vld [vmem:[#allocation99_spill] sm:$0xff]  ;;  %v22757_v11 = vld [vmem:[#allocation86_spill] sm:$0xff] }
 0x732   : > { %12604 = vmatprep.subr.mxu1 %v17649_v40  ;;  %7441 = vmatmul.mubr.f32.vlgmr.msra.gmra.mxu0 %v7440_v17  ;;  %v22751_v17 = vld [vmem:[#allocation33_spill] sm:$0xff] }
 0x733   : > { %12559 = vmatpush3.msra.mxu0 %v17582_v23  ;;  %12605 = vmatpush3.msra.mxu1 %v17662_v25  ;;  %v7449_v60 = vand.u32 4294901760, %v7448_v3  ;;  %v22752_v3 = vld [vmem:[#allocation119_spill] sm:$0xff] }
 0x734   : > { %12560 = vmatprep.subr.mxu0 %v17585_v56  ;;  %12606 = vmatprep.subr.mxu1 %v17667_v33 }
 0x735   : > { %12561 = vmatpush3.msra.mxu0 %v17591_v55  ;;  %12607 = vmatpush3.msra.mxu1 %v17675_v58 }
 0x736   : > { %7450 = vmatprep.mubr.f32.mxu0 %v7449_v60  ;;  %12562 = vmatprep.subr.mxu0 %v17594_v8  ;;  %v22754_v60 = vld [vmem:[#allocation138_spill] sm:$0xff] }
 0x737   : > { %12608 = vmatprep.subr.mxu1 %v17684_v32  ;;  %7456 = vmatmul.mubr.f32.gmra.mxu0 %v7455_v47  ;;  %v22755_v47 = vld [vmem:[#allocation53_spill] sm:$0xff] }
 0x738   : > { %12563 = vmatpush3.msra.mxu0 %v17597_v6  ;;  %12609 = vmatpush3.msra.mxu1 %v17694_v9 }
 0x739   : > { %12564 = vmatprep.subr.mxu0 %v17606_v16  ;;  %7830 = vmatprep.mubr.f32.mxu0 %v7431_v43  ;;  %v22746_v43 = vld [vmem:[#allocation115_spill] sm:$0xff] }
 0x73a   : > { %12610 = vmatprep.subr.mxu1 %v17704_v41  ;;  %12565 = vmatpush3.msra.mxu0 %v17613_v37 }
 0x73b   : > { %12611 = vmatpush3.msra.mxu1 %v17717_v28  ;;  %12566 = vmatprep.subr.mxu0 %v17652_v15 }
 0x73c   : > { %12612 = vmatprep.subr.mxu1 %v17730_v57  ;;  %12567 = vmatpush3.msra.mxu0 %v17673_v19 }
 0x73d   : > { %12613 = vmatpush3.msra.mxu1 %v17762_v39  ;;  %12568 = vmatprep.subr.mxu0 %v17682_v4 }
 0x73e   : > { %12614 = vmatprep.subr.mxu1 %v22729_v50  ;;  %12569 = vmatpush3.msra.mxu0 %v22730_v62 }
 0x73f   : > { %12615 = vmatpush3.msra.mxu1 %v22731_v18  ;;  %12570 = vmatprep.subr.mxu0 %v22732_v0 }
 0x740   : > { %12616 = vmatprep.subr.mxu1 %v22733_v45  ;;  %12571 = vmatpush3.msra.mxu0 %v22734_v34 }
 0x741   : > { %12617 = vmatpush3.msra.mxu1 %v22735_v42  ;;  %12572 = vmatprep.subr.mxu0 %v22736_v7 }
 0x742   : > { %12618 = vmatprep.subr.mxu1 %v22737_v29  ;;  %12573 = vmatpush3.msra.mxu0 %v22738_v10 }
 0x743   : > { %12619 = vmatpush3.msra.mxu1 %v22739_v63  ;;  %12574 = vmatprep.subr.mxu0 %v22740_v48 }
 0x744   : > { %12620 = vmatprep.subr.mxu1 %v22741_v2  ;;  %12575 = vmatpush3.msra.mxu0 %v22742_v54 }
 0x745   : > { %12621 = vmatpush3.msra.mxu1 %v22743_v51  ;;  %12576 = vmatprep.subr.mxu0 %v22744_v14 }
 0x746   : > { %12622 = vmatprep.subr.mxu1 %v22745_v46  ;;  %12577 = vmatpush3.msra.mxu0 %v22746_v43 }
 0x747   : > { %12623 = vmatpush3.msra.mxu1 %v22747_v59  ;;  %12578 = vmatprep.subr.mxu0 %v22748_v30 }
 0x748   : > { %12624 = vmatprep.subr.mxu1 %v22749_v21  ;;  %12579 = vmatpush3.msra.mxu0 %v22750_v53 }
 0x749   : > { %12625 = vmatpush3.msra.mxu1 %v22751_v17  ;;  %12580 = vmatprep.subr.mxu0 %v22752_v3 }
 0x74a   : > { %12626 = vmatprep.subr.mxu1 %v22753_v1  ;;  %12581 = vmatpush3.msra.mxu0 %v22754_v60  ;;  %v22761_v60 = vld [vmem:[#allocation141_spill] sm:$0xff] }
 0x74b   : > { %12627 = vmatpush3.msra.mxu1 %v22755_v47  ;;  %12582 = vmatprep.subr.mxu0 %v22756_v27  ;;  %v22762_v27 = vld [vmem:[#allocation75_spill] sm:$0xff] }
 0x74c   : > { %7950 = vmatmul.mubr.f32.vlgmr.msra.gmra.mxu1 %v7438_v26  ;;  %12672 = vmatprep.subr.mxu1 %v22757_v11  ;;  %v22763_v26 = vand.u32 4294901760, %v18006_v52  ;;  %v22764_v11 = vld [vmem:[#allocation105_spill] sm:$0xff] }
 0x74d   : > { %12583 = vmatpush3.msra.mxu0 %v22758_v5  ;;  %7957 = vmatprep.mubr.f32.mxu1 %v22759_v13 }
 0x74e   : > { %12673 = vmatpush3.msra.mxu1 %v17553_v24  ;;  %12584 = vmatprep.subr.mxu0 %v22760_v20  ;;  %v22765_v24 = vld [vmem:[#allocation26_spill] sm:$0xff] }
 0x74f   : > { %12674 = vmatprep.subr.mxu1 %v17555_v44  ;;  %12585 = vmatpush3.msra.mxu0 %v22761_v60  ;;  %v22766_v44 = vld [vmem:[#allocation110_spill] sm:$0xff] }
 0x750   : > { %12675 = vmatpush3.msra.mxu1 %v17566_v38  ;;  %12586 = vmatprep.subr.mxu0 %v22762_v27  ;;  %v22767_v38 = vld [vmem:[#allocation88_spill] sm:$0xff] }
 0x751   : > { %7961 = vmatmul.mubr.f32.gmra.mxu1 %v22763_v26  ;;  %12676 = vmatprep.subr.mxu1 %v17568_v22  ;;  %v22768_v13 = vand.u32 4294901760, %v22767_v38  ;;  %v22769_v22 = vand.u32 4294901760, %v17582_v23  ;;  %v22773_v23 = vand.u32 4294901760, %v17597_v6  ;;  %v22777_v6 = vand.u32 4294901760, %v17673_v19 }
 0x752   : > { %12587 = vmatpush3.msra.mxu0 %v22764_v11  ;;  %12677 = vmatpush3.msra.mxu1 %v17570_v49  ;;  %v22770_v49 = vand.u32 4294901760, %v17585_v56  ;;  %v22774_v56 = vand.u32 4294901760, %v17606_v16  ;;  %v22778_v16 = vand.u32 4294901760, %v17682_v4  ;;  %v22784_v19 = vand.u32 4294901760, %v22740_v48 }
 0x753   : > { %8238 = vmatprep.mubr.f32.mxu1 %v17994_v35  ;;  %12588 = vmatprep.subr.mxu0 %v22765_v24  ;;  %v22786_v4 = vand.u32 4294901760, %v22744_v14 }
 0x754   : > { %12678 = vmatprep.subr.mxu1 %v17587_v36  ;;  %12589 = vmatpush3.msra.mxu0 %v22766_v44  ;;  %v22771_v36 = vand.u32 4294901760, %v17591_v55  ;;  %v22775_v55 = vand.u32 4294901760, %v17613_v37  ;;  %v22779_v37 = vand.u32 4294901760, %v22730_v62  ;;  %v22798_v62 = vand.u32 4294901760, %v22760_v20  ;;  %v8281_v20 = vld [vmem:[%s20347_s11 + $0xe8] sm:$0xff] }
 0x755   : > { %12679 = vmatpush3.msra.mxu1 %v17599_v61  ;;  %7833 = vmatmul.mubr.f32.vlgmr.msra.gmra.mxu0 %v17992_v31  ;;  %v22772_v61 = vand.u32 4294901760, %v17594_v8  ;;  %v22776_v8 = vand.u32 4294901760, %v17652_v15  ;;  %v22781_v15 = vand.u32 4294901760, %v22734_v34  ;;  %v22793_v31 = vld [vmem:[#allocation117_spill] sm:$0xff]  ;;  %v22802_v34 = vand.u32 4294901760, %v22764_v11 }
 0x756   : > { %12634 = vmatprep.subr.mxu0 %v22768_v13  ;;  %12680 = vmatprep.subr.mxu1 %v17649_v40  ;;  %v22780_v40 = vand.u32 4294901760, %v22732_v0  ;;  %v22800_v0 = vand.u32 4294901760, %v22762_v27  ;;  %v18203_v27 = vand.u32 4294901760, %v8281_v20 }
 0x757   : > { %7839 = vmatprep.mubr.f32.mxu0 %v18015_v12  ;;  %12635 = vmatpush3.msra.mxu0 %v22769_v22  ;;  %v22796_v12 = vand.u32 4294901760, %v22758_v5  ;;  %v22804_v5 = vmov 0.0  }
 0x758   : > { %12681 = vmatpush3.msra.mxu1 %v17662_v25  ;;  %12636 = vmatprep.subr.mxu0 %v22770_v49  ;;  %v22782_v25 = vand.u32 4294901760, %v22736_v7  ;;  %v22805_v7 = vand.u32 4294901760, %v22766_v44  ;;  %v18214_v48 = vsub.f32 %v8281_v20, %v18203_v27  ;;  %v8265_v49 = vld [vmem:[%s20347_s11 + $0x68] sm:$0xff]  ;;  %v8252_v20 = vld [vmem:[%s20347_s11] sm:$0xff] }
 0x759   : > { %12682 = vmatprep.subr.mxu1 %v17667_v33  ;;  %12637 = vmatpush3.msra.mxu0 %v22771_v36  ;;  %v22783_v33 = vand.u32 4294901760, %v22738_v10 }
 0x75a   : > { %12683 = vmatpush3.msra.mxu1 %v17675_v58  ;;  %7842 = vmatmul.mubr.f32.gmra.mxu0 %v18006_v52  ;;  %v22785_v58 = vand.u32 4294901760, %v22742_v54  ;;  %v22795_v52 = vld [vmem:[#allocation47_spill] sm:$0xff]  ;;  %22806 = vst [vmem:[#allocation43_spill] sm:$0xff] %v18214_v48 }
 0x75b   : > { %12638 = vmatprep.subr.mxu0 %v22772_v61  ;;  %12684 = vmatprep.subr.mxu1 %v17684_v32  ;;  %v22787_v32 = vand.u32 4294901760, %v22746_v43  ;;  %v8276_v54 = vld [vmem:[%s20347_s11 + $0xc0] sm:$0xff]  ;;  %v21271_v43 = vand.u32 4294901760, %v18214_v48 }
 0x75c   : > { %12639 = vmatpush3.msra.mxu0 %v22773_v23  ;;  %8127 = vmatprep.mubr.f32.mxu0 %v17994_v35  ;;  %v22794_v35 = vand.u32 4294901760, %v22793_v31  ;;  %v18225_v14 = vand.u32 4294901760, %v8276_v54 }
 0x75d   : > { %12685 = vmatpush3.msra.mxu1 %v17694_v9  ;;  %12640 = vmatprep.subr.mxu0 %v22774_v56  ;;  %v22788_v9 = vand.u32 4294901760, %v22748_v30 }
 0x75e   : > { %12686 = vmatprep.subr.mxu1 %v17704_v41  ;;  %12641 = vmatpush3.msra.mxu0 %v22775_v55  ;;  %v22789_v41 = vand.u32 4294901760, %v22750_v53  ;;  %v8264_v55 = vld [vmem:[%s20347_s11 + $0x60] sm:$0xff] }
 0x75f   : > { %12687 = vmatpush3.msra.mxu1 %v17717_v28  ;;  %12642 = vmatprep.subr.mxu0 %v22776_v8  ;;  %v22790_v28 = vand.u32 4294901760, %v22752_v3 }
 0x760   : > { %12688 = vmatprep.subr.mxu1 %v17730_v57  ;;  %12643 = vmatpush3.msra.mxu0 %v22777_v6  ;;  %v22791_v57 = vld [vmem:[#allocation138_spill] sm:$0xff] }
 0x761   : > { %12689 = vmatpush3.msra.mxu1 %v17762_v39  ;;  %12644 = vmatprep.subr.mxu0 %v22778_v16  ;;  %v22792_v39 = vand.u32 4294901760, %v22791_v57 }
 0x762   : > { %12690 = vmatprep.subr.mxu1 %v22729_v50  ;;  %12645 = vmatpush3.msra.mxu0 %v22779_v37  ;;  %v22797_v50 = vld [vmem:[#allocation57_spill] sm:$0xff] }
 0x763   : > { %12691 = vmatpush3.msra.mxu1 %v22731_v18  ;;  %12646 = vmatprep.subr.mxu0 %v22780_v40  ;;  %v22799_v18 = vand.u32 4294901760, %v22761_v60  ;;  %v8413_v60 = vsub.f32 %v18214_v48, %v21271_v43  ;;  %v8261_v40 = vld [vmem:[%s20347_s11 + $0x48] sm:$0xff] }
 0x764   : > { %12692 = vmatprep.subr.mxu1 %v22733_v45  ;;  %12647 = vmatpush3.msra.mxu0 %v22781_v15  ;;  %v22801_v45 = vld [vmem:[#allocation22_spill] sm:$0xff] }
 0x765   : > { %12693 = vmatpush3.msra.mxu1 %v22735_v42  ;;  %12648 = vmatprep.subr.mxu0 %v22782_v25  ;;  %v22803_v42 = vand.u32 4294901760, %v22765_v24  ;;  %v8268_v24 = vld [vmem:[%s20347_s11 + $0x80] sm:$0xff]  ;;  %v8414_v36 = vand.u32 4294901760, %v8413_v60 }
 0x766   : > { %12694 = vmatprep.subr.mxu1 %v22737_v29  ;;  %12649 = vmatpush3.msra.mxu0 %v22783_v33  ;;  %v8280_v29 = vld [vmem:[%s20347_s11 + $0xe0] sm:$0xff]  ;;  %v18271_v22 = vand.u32 4294901760, %v8268_v24 }
 0x767   : > { %12695 = vmatpush3.msra.mxu1 %v22739_v63  ;;  %12650 = vmatprep.subr.mxu0 %v22784_v19  ;;  %v18208_v10 = vand.u32 4294901760, %v8280_v29  ;;  %v8277_v63 = vld [vmem:[%s20347_s11 + $0xc8] sm:$0xff]  ;;  %v18303_v19 = vand.u32 4294901760, %v8265_v49 }
 0x768   : > { %12696 = vmatprep.subr.mxu1 %v22741_v2  ;;  %12651 = vmatpush3.msra.mxu0 %v22785_v58  ;;  %v18216_v2 = vand.u32 4294901760, %v8277_v63  ;;  %v18293_v37 = vsub.f32 %v8268_v24, %v18271_v22  ;;  %v8260_v58 = vld [vmem:[%s20347_s11 + $0x40] sm:$0xff] }
 0x769   : > { %12697 = vmatpush3.msra.mxu1 %v22743_v51  ;;  %12652 = vmatprep.subr.mxu0 %v22786_v4  ;;  %v18223_v51 = vsub.f32 %v8280_v29, %v18208_v10  ;;  %v18321_v31 = vsub.f32 %v8265_v49, %v18303_v19 }
 0x76a   : > { %12698 = vmatprep.subr.mxu1 %v22745_v46  ;;  %12653 = vmatpush3.msra.mxu0 %v22787_v32  ;;  %v8273_v46 = vld [vmem:[%s20347_s11 + $0xa8] sm:$0xff] }
 0x76b   : > { %12699 = vmatpush3.msra.mxu1 %v22747_v59  ;;  %12654 = vmatprep.subr.mxu0 %v22788_v9  ;;  %v18233_v59 = vsub.f32 %v8277_v63, %v18216_v2  ;;  %v18235_v30 = vand.u32 4294901760, %v8273_v46  ;;  %v21270_v53 = vand.u32 4294901760, %v18223_v51  ;;  %v21264_v9 = vand.u32 4294901760, %v18293_v37 }
 0x76c   : > { %12700 = vmatprep.subr.mxu1 %v22749_v21  ;;  %12655 = vmatpush3.msra.mxu0 %v22789_v41  ;;  %v8272_v21 = vld [vmem:[%s20347_s11 + $0xa0] sm:$0xff]  ;;  %v18312_v41 = vand.u32 4294901760, %v8264_v55 }
 0x76d   : > { %12701 = vmatpush3.msra.mxu1 %v22751_v17  ;;  %12656 = vmatprep.subr.mxu0 %v22790_v28  ;;  %v18243_v17 = vsub.f32 %v8276_v54, %v18225_v14  ;;  %v18245_v3 = vand.u32 4294901760, %v8272_v21  ;;  %v18256_v26 = vsub.f32 %v8273_v46, %v18235_v30  ;;  %v8419_v44 = vsub.f32 %v18223_v51, %v21270_v53  ;;  %v8257_v28 = vld [vmem:[%s20347_s11 + $0x28] sm:$0xff] }
 0x76e   : > { %12702 = vmatprep.subr.mxu1 %v22753_v1  ;;  %12657 = vmatpush3.msra.mxu0 %v22792_v39  ;;  %v8269_v1 = vld [vmem:[%s20347_s11 + $0x88] sm:$0xff] }
 0x76f   : > { %12703 = vmatpush3.msra.mxu1 %v22755_v47  ;;  %12658 = vmatprep.subr.mxu0 %v22794_v35  ;;  %v21269_v47 = vand.u32 4294901760, %v18233_v59  ;;  %v18258_v11 = vand.u32 4294901760, %v8269_v1  ;;  %v21268_v38 = vand.u32 4294901760, %v18243_v17  ;;  %v18269_v13 = vsub.f32 %v8272_v21, %v18245_v3 }
 0x770   : > { %8240 = vmatmul.mubr.f32.vlgmr.msra.gmra.mxu1 %v22795_v52  ;;  %12659 = vmatpush3.msra.mxu0 %v22796_v12  ;;  %v21267_v23 = vand.u32 4294901760, %v18256_v26  ;;  %v8420_v8 = vand.u32 4294901760, %v8419_v44  ;;  %v18323_v35 = vand.u32 4294901760, %v8261_v40 }
 0x771   : > { %8245 = vmatprep.mubr.f32.mxu1 %v22797_v50  ;;  %12660 = vmatprep.subr.mxu0 %v22798_v62  ;;  %v8425_v61 = vsub.f32 %v18233_v59, %v21269_v47  ;;  %v18282_v56 = vsub.f32 %v8269_v1, %v18258_v11  ;;  %v8431_v6 = vsub.f32 %v18243_v17, %v21268_v38  ;;  %v21266_v16 = vand.u32 4294901760, %v18269_v13 }
 0x772   : > { %12661 = vmatpush3.msra.mxu0 %v22799_v18  ;;  %8415 = vmatprep.subr.mxu1 %v8414_v36  ;;  %v8437_v25 = vsub.f32 %v18256_v26, %v21267_v23  ;;  %v18333_v62 = vsub.f32 %v8264_v55, %v18312_v41  ;;  %v18335_v18 = vand.u32 4294901760, %v8260_v58 }
 0x773   : > { %12662 = vmatprep.subr.mxu0 %v22800_v0  ;;  %v8426_v15 = vand.u32 4294901760, %v8425_v61  ;;  %v21265_v33 = vand.u32 4294901760, %v18282_v56  ;;  %8421 = vmatpush1.msra.mxu1 %v8420_v8  ;;  %v8432_v4 = vand.u32 4294901760, %v8431_v6  ;;  %v8443_v32 = vsub.f32 %v18269_v13, %v21266_v16  ;;  %v8253_v0 = vld [vmem:[%s20347_s11 + $0x8] sm:$0xff] }
 0x774   : > { %8247 = vmatmul.mubr.f32.gmra.mxu1 %v22801_v45  ;;  %12663 = vmatpush3.msra.mxu0 %v22802_v34  ;;  %v8438_v57 = vand.u32 4294901760, %v8437_v25  ;;  %v21263_v34 = vand.u32 4294901760, %v18321_v31  ;;  %v21262_v63 = vand.u32 4294901760, %v18333_v62  ;;  %v18353_v54 = vsub.f32 %v8260_v58, %v18335_v18 }
 0x775   : > { %12664 = vmatprep.subr.mxu0 %v22803_v42  ;;  %8538 = vmatprep.mubr.f32.mxu1 %v22804_v5  ;;  %v8449_v39 = vsub.f32 %v18282_v56, %v21265_v33  ;;  %v8444_v12 = vand.u32 4294901760, %v8443_v32  ;;  %v18343_v42 = vsub.f32 %v8261_v40, %v18323_v35  ;;  %v18365_v24 = vand.u32 4294901760, %v8253_v0 }
 0x776   : > { %12665 = vmatpush3.msra.mxu0 %v22805_v7  ;;  %8427 = vmatprep.subr.mxu1 %v8426_v15  ;;  %v18345_v7 = vand.u32 4294901760, %v8257_v28  ;;  %v8461_v21 = vsub.f32 %v18321_v31, %v21263_v34  ;;  %v8467_v44 = vsub.f32 %v18333_v62, %v21262_v63  ;;  %v21260_v49 = vand.u32 4294901760, %v18353_v54 }
 0x777   : > { %8129 = vmatmul.mubr.f32.vlgmr.msra.gmra.mxu0 %v22795_v52  ;;  %8308 = vmatprep.subr.mxu0 %v18203_v27  ;;  %v8256_v52 = vld [vmem:[%s20347_s11 + $0x20] sm:$0xff]  ;;  %v21261_v1 = vand.u32 4294901760, %v18343_v42  ;;  %v18375_v61 = vand.u32 4294901760, %v8252_v20  ;;  %v18383_v40 = vsub.f32 %v8253_v0, %v18365_v24 }
 0x778   : > { %8134 = vmatprep.mubr.f32.mxu0 %v22797_v50  ;;  %8310 = vmatpush1.msra.mxu0 %v18208_v10  ;;  %v8455_v50 = vsub.f32 %v18293_v37, %v21264_v9  ;;  %v18355_v46 = vand.u32 4294901760, %v8256_v52  ;;  %v18363_v60 = vsub.f32 %v8257_v28, %v18345_v7  ;;  %v8462_v55 = vand.u32 4294901760, %v8461_v21 }
 0x779   : > { %8312 = vmatprep.subr.mxu0 %v18216_v2  ;;  %8433 = vmatpush1.msra.mxu1 %v8432_v4  ;;  %v8473_v8 = vsub.f32 %v18343_v42, %v21261_v1  ;;  %22808 = vst [vmem:[#allocation28_spill] sm:$0xff] %v18383_v40  ;;  %v8468_v15 = vand.u32 4294901760, %v8467_v44  ;;  %v8479_v25 = vsub.f32 %v18353_v54, %v21260_v49 }
 0x77a   : > { %8314 = vmatpush1.msra.mxu0 %v18225_v14  ;;  %8439 = vmatprep.subr.mxu1 %v8438_v57  ;;  %v8456_v29 = vand.u32 4294901760, %v8455_v50  ;;  %v18373_v36 = vsub.f32 %v8256_v52, %v18355_v46  ;;  %v21259_v6 = vand.u32 4294901760, %v18363_v60  ;;  %v18391_v4 = vsub.f32 %v8252_v20, %v18375_v61 }
 0x77b   : > { %8136 = vmatmul.mubr.f32.gmra.mxu0 %v22801_v45  ;;  %8316 = vmatprep.subr.mxu0 %v18235_v30  ;;  %v8450_v45 = vand.u32 4294901760, %v8449_v39  ;;  %v8474_v32 = vand.u32 4294901760, %v8473_v8  ;;  %v21256_v57 = vand.u32 4294901760, %v18383_v40  ;;  %v8480_v39 = vand.u32 4294901760, %v8479_v25 }
 0x77c   : > { %8371 = vmatprep.mubr.f32.mxu0 %v22804_v5  ;;  %8318 = vmatpush1.msra.mxu0 %v18245_v3  ;;  %22807 = vst [vmem:[#allocation52_spill] sm:$0xff] %v18373_v36  ;;  %v21257_v58 = vand.u32 4294901760, %v18373_v36  ;;  %22809 = vst [vmem:[#allocation132_spill] sm:$0xff] %v18391_v4  ;;  %v8485_v28 = vsub.f32 %v18363_v60, %v21259_v6 }
 0x77d   : > { %8320 = vmatprep.subr.mxu0 %v18258_v11  ;;  %8445 = vmatpush1.msra.mxu1 %v8444_v12  ;;  %v21258_v12 = vand.u32 4294901760, %v18391_v4  ;;  %v8497_v0 = vsub.f32 %v18383_v40, %v21256_v57 }
 0x77e   : > { %8322 = vmatpush1.msra.mxu0 %v18271_v22  ;;  %8451 = vmatprep.subr.mxu1 %v8450_v45  ;;  %v8491_v52 = vsub.f32 %v18373_v36, %v21257_v58  ;;  %v8486_v50 = vand.u32 4294901760, %v8485_v28 }
 0x77f   : > { %8324 = vmatprep.subr.mxu0 %v18303_v19  ;;  %8457 = vmatpush1.msra.mxu1 %v8456_v29  ;;  %v8503_v20 = vsub.f32 %v18391_v4, %v21258_v12  ;;  %v8498_v29 = vand.u32 4294901760, %v8497_v0 }
 0x780   : > { %8326 = vmatpush1.msra.mxu0 %v18312_v41  ;;  %8463 = vmatprep.subr.mxu1 %v8462_v55  ;;  %v8492_v45 = vand.u32 4294901760, %v8491_v52 }
 0x781   : > { %8328 = vmatprep.subr.mxu0 %v18323_v35  ;;  %8469 = vmatpush1.msra.mxu1 %v8468_v15  ;;  %v8504_v21 = vand.u32 4294901760, %v8503_v20 }
 0x782   : > { %8330 = vmatpush1.msra.mxu0 %v18335_v18  ;;  %8475 = vmatprep.subr.mxu1 %v8474_v32 }
 0x783   : > { %8332 = vmatprep.subr.mxu0 %v18345_v7  ;;  %8481 = vmatpush1.msra.mxu1 %v8480_v39 }
 0x784   : > { %8334 = vmatpush1.msra.mxu0 %v18355_v46  ;;  %8487 = vmatprep.subr.mxu1 %v8486_v50 }
 0x785   : > { %8336 = vmatprep.subr.mxu0 %v18365_v24  ;;  %8493 = vmatpush1.msra.mxu1 %v8492_v45  ;;  %v12425_v45 = vld [vmem:[%s20345_s9] ss:$0 sm:$0xff] }
 0x786   : > { %8338 = vmatpush1.msra.mxu0 %v18375_v61  ;;  %8499 = vmatprep.subr.mxu1 %v8498_v29 }
 0x787   : > { %8571 = vmatprep.subr.mxu0 %v18214_v48  ;;  %8505 = vmatpush1.msra.mxu1 %v8504_v21 }
 0x788   : > { %8683 = vmatprep.subr.mxu1 %v18203_v27 }
 0x7ea   : > { %v12552_v44 = vpop.f32.mrf.mxu1 }
 0x7ec   : > { %v12553_v55 = vpop.f32.mrf.mxu1 }
 0x7ed   : > { %v12554_v1 = vadd.f32 %v12553_v55, %v12552_v44 }
 0x7ee   : > { %v12555_v15 = vpop.f32.mrf.mxu1 }
 0x7f0   : > { %v12556_v32 = vpop.f32.mrf.mxu1 }
 0x7f1   : > { %v12557_v23 = vadd.f32 %v12556_v32, %v12555_v15  ;;  %v8279_v32 = vld [vmem:[%s20347_s11 + $0xd8] sm:$0xff] }
 0x7f2   : > { %v12514_v8 = vpop.f32.mrf.mxu0 }
 0x7f4   : > { %v12515_v25 = vpop.f32.mrf.mxu0 }
 0x7f5   : > { %v12516_v0 = vadd.f32 %v12515_v25, %v12514_v8 }
 0x7f7   : > { %v12517_v28 = vpop.f32.mrf.mxu0  ;;  %v7443_v21 = vadd.f32 %v12516_v0, %v12425_v45 }
 0x7f9   : > { %v12518_v52 = vpop.f32.mrf.mxu0  ;;  %v7690_v33 = vadd.f32 %v12554_v1, %v7443_v21  ;;  %v8271_v21 = vld [vmem:[%s20347_s11 + $0x98] sm:$0xff] }
 0x7fa   : > { %v12519_v6 = vadd.f32 %v12518_v52, %v12517_v28 }
 0x7fc   : > { %v7458_v9 = vadd.f32 %v12519_v6, %v12425_v45 }
 0x7fe   : > { %v7697_v25 = vadd.f32 %v12557_v23, %v7458_v9 }
 0x80c   : > { %v12628_v39 = vpop.f32.mrf.mxu1 }
 0x80e   : > { %v12629_v57 = vpop.f32.mrf.mxu1 }
 0x80f   : > { %v12630_v8 = vadd.f32 %v12629_v57, %v12628_v39 }
 0x811   : > { %v12631_v12 = vpop.f32.mrf.mxu1 }
 0x813   : > { %v12632_v20 = vpop.f32.mrf.mxu1 }
 0x814   : > { %v12633_v28 = vadd.f32 %v12632_v20, %v12631_v12  ;;  %v8282_v12 = vld [vmem:[%s20347_s11 + $0xf0] sm:$0xff]  ;;  %v18490_v20 = vand.u32 4294901760, %v8279_v32 }
 0x815   : > { %v12590_v58 = vpop.f32.mrf.mxu0  ;;  %v18486_v45 = vand.u32 4294901760, %v8282_v12 }
 0x817   : > { %v12591_v50 = vpop.f32.mrf.mxu0 }
 0x818   : > { %v12592_v63 = vadd.f32 %v12591_v50, %v12590_v58  ;;  %v8278_v50 = vld [vmem:[%s20347_s11 + $0xd0] sm:$0xff] }
 0x81a   : > { %v12593_v29 = vpop.f32.mrf.mxu0  ;;  %v7835_v38 = vadd.f32 %v12592_v63, %v7690_v33 }
 0x81c   : > { %v12594_v34 = vpop.f32.mrf.mxu0  ;;  %v7952_v40 = vadd.f32 %v12630_v8, %v7835_v38  ;;  %v18513_v8 = vsub.f32 %v8282_v12, %v18486_v45  ;;  %v22816_v12 = vand.u32 4294901760, %v18233_v59 }
 0x81d   : > { %v12595_v47 = vadd.f32 %v12594_v34, %v12593_v29  ;;  %v18497_v29 = vand.u32 4294901760, %v8278_v50 }
 0x81f   : > { %v7844_v4 = vadd.f32 %v12595_v47, %v7697_v25 }
 0x821   : > { %v7963_v55 = vadd.f32 %v12633_v28, %v7844_v4  ;;  %v8283_v4 = vld [vmem:[%s20347_s11 + $0xf8] sm:$0xff]  ;;  %v22811_v28 = vld [vmem:[#allocation28_spill] sm:$0xff] }
 0x822   : > { %v18479_v39 = vand.u32 4294901760, %v8283_v4 }
 0x830   : > { %v12704_v49 = vpop.f32.mrf.mxu1 }
 0x832   : > { %v12705_v16 = vpop.f32.mrf.mxu1 }
 0x833   : > { %v12706_v52 = vadd.f32 %v12705_v16, %v12704_v49 }
 0x834   : > { %v12707_v43 = vpop.f32.mrf.mxu1 }
 0x836   : > { %v12708_v58 = vpop.f32.mrf.mxu1 }
 0x837   : > { %v12666_v53 = vpop.f32.mrf.mxu0  ;;  %v12709_v33 = vadd.f32 %v12708_v58, %v12707_v43  ;;  %v18530_v58 = vsub.f32 %v8278_v50, %v18497_v29 }
 0x839   : > { %v12667_v48 = vpop.f32.mrf.mxu0 }
 0x83a   : > { %v12668_v36 = vadd.f32 %v12667_v48, %v12666_v53 }
 0x83b   : > { %v12669_v0 = vpop.f32.mrf.mxu0 }
 0x83c   : > { %v8131_v44 = vadd.f32 %v12668_v36, %v7952_v40 }
 0x83d   : > { %v12670_v6 = vpop.f32.mrf.mxu0 }
 0x83e   : > { %v8242_v1 = vadd.f32 %v12706_v52, %v8131_v44  ;;  %v12671_v15 = vadd.f32 %v12670_v6, %v12669_v0  ;;  %v8270_v0 = vld [vmem:[%s20347_s11 + $0x90] sm:$0xff]  ;;  %v18523_v52 = vsub.f32 %v8279_v32, %v18490_v20  ;;  %v18532_v6 = vand.u32 4294901760, %v8271_v21 }
 0x840   : > { %v8286_v34 = vsel %vm8284_vm2, %v8242_v1, 0  ;;  %v8138_v63 = vadd.f32 %v12671_v15, %v7963_v55  ;;  %v18540_v55 = vand.u32 4294901760, %v8270_v0  ;;  %v22813_v15 = vld [vmem:[#allocation43_spill] sm:$0xff] }
 0x841   : > { %v18413_v57 = vand.u32 4294901760, %v8286_v34 }
 0x842   : > { %v8249_v23 = vadd.f32 %v12709_v33, %v8138_v63  ;;  %v22814_v33 = vand.u32 4294901760, %v22813_v15 }
 0x843   : > { %v18416_v47 = vsub.f32 %v8286_v34, %v18413_v57  ;;  %8540 = vmatmul.mubr.f32.vlgmr.msra.gmra.mxu1 %v18413_v57  ;;  %v21280_v34 = vand.u32 4294901760, %v18513_v8 }
 0x844   : > { %v8289_v48 = vsel %vm8284_vm2, %v8249_v23, 0  ;;  %8685 = vmatpush1.msra.mxu1 %v18208_v10  ;;  %8545 = vmatprep.mubr.f32.mxu1 %v22804_v5  ;;  %v22815_v23 = vand.u32 4294901760, %v18223_v51 }
 0x845   : > { %v18422_v53 = vand.u32 4294901760, %v18416_v47  ;;  %v18424_v38 = vand.u32 4294901760, %v8289_v48  ;;  %8687 = vmatprep.subr.mxu1 %v18216_v2 }
 0x846   : > { %8689 = vmatpush1.msra.mxu1 %v18225_v14 }
 0x847   : > { %v18429_v43 = vsub.f32 %v8289_v48, %v18424_v38  ;;  %8691 = vmatprep.subr.mxu1 %v18235_v30  ;;  %8547 = vmatmul.mubr.f32.gmra.mxu1 %v18424_v38  ;;  %v8375_v16 = vsub.f32 %v18416_v47, %v18422_v53  ;;  %v21279_v48 = vand.u32 4294901760, %v18523_v52 }
 0x848   : > { %8693 = vmatpush1.msra.mxu1 %v18245_v3  ;;  %8746 = vmatprep.mubr.f32.mxu1 %v22804_v5 }
 0x849   : > { %8695 = vmatprep.subr.mxu1 %v18258_v11  ;;  %v18438_v9 = vand.u32 4294901760, %v8375_v16  ;;  %v18441_v49 = vand.u32 4294901760, %v18429_v43 }
 0x84a   : > { %8697 = vmatpush1.msra.mxu1 %v18271_v22 }
 0x84b   : > { %8699 = vmatprep.subr.mxu1 %v18303_v19  ;;  %8377 = vmatmul.mubr.f32.vlgmr.msra.gmra.mxu0 %v18438_v9  ;;  %v8386_v36 = vsub.f32 %v18429_v43, %v18441_v49 }
 0x84c   : > { %8574 = vmatpush1.msra.mxu0 %v18223_v51  ;;  %8701 = vmatpush1.msra.mxu1 %v18312_v41  ;;  %v18572_v51 = vsub.f32 %v8271_v21, %v18532_v6 }
 0x84d   : > { %8577 = vmatprep.subr.mxu0 %v18233_v59  ;;  %8703 = vmatprep.subr.mxu1 %v18323_v35  ;;  %v18452_v40 = vand.u32 4294901760, %v8386_v36 }
 0x84e   : > { %8580 = vmatpush1.msra.mxu0 %v18243_v17  ;;  %8705 = vmatpush1.msra.mxu1 %v18335_v18 }
 0x84f   : > { %8382 = vmatprep.mubr.f32.mxu0 %v22804_v5  ;;  %8583 = vmatprep.subr.mxu0 %v18256_v26 }
 0x850   : > { %8707 = vmatprep.subr.mxu1 %v18345_v7  ;;  %8388 = vmatmul.mubr.f32.gmra.mxu0 %v18452_v40 }
 0x851   : > { %8586 = vmatpush1.msra.mxu0 %v18269_v13  ;;  %8709 = vmatpush1.msra.mxu1 %v18355_v46 }
 0x852   : > { %8589 = vmatprep.subr.mxu0 %v18282_v56  ;;  %8711 = vmatprep.subr.mxu1 %v18365_v24 }
 0x853   : > { %8592 = vmatpush1.msra.mxu0 %v18293_v37  ;;  %8713 = vmatpush1.msra.mxu1 %v18375_v61 }
 0x854   : > { %8595 = vmatprep.subr.mxu0 %v18321_v31  ;;  %8750 = vmatmul.mubr.f32.vlgmr.msra.gmra.mxu1 %v18422_v53 }
 0x855   : > { %8909 = vmatprep.subr.mxu1 %v18203_v27  ;;  %8598 = vmatpush1.msra.mxu0 %v18333_v62  ;;  %v8275_v27 = vld [vmem:[%s20347_s11 + $0xb8] sm:$0xff] }
 0x856   : > { %8911 = vmatpush1.msra.mxu1 %v18208_v10  ;;  %8601 = vmatprep.subr.mxu0 %v18343_v42  ;;  %v8274_v10 = vld [vmem:[%s20347_s11 + $0xb0] sm:$0xff]  ;;  %v18515_v25 = vand.u32 4294901760, %v8275_v27 }
 0x857   : > { %8913 = vmatprep.subr.mxu1 %v18216_v2  ;;  %8604 = vmatpush1.msra.mxu0 %v18353_v54  ;;  %v18505_v2 = vsub.f32 %v8283_v4, %v18479_v39  ;;  %v18525_v44 = vand.u32 4294901760, %v8274_v10  ;;  %v8262_v4 = vld [vmem:[%s20347_s11 + $0x50] sm:$0xff] }
 0x858   : > { %8755 = vmatprep.mubr.f32.mxu1 %v22804_v5  ;;  %8915 = vmatpush1.msra.mxu1 %v18225_v14  ;;  %v22810_v14 = vld [vmem:[#allocation52_spill] sm:$0xff]  ;;  %v18550_v63 = vsub.f32 %v8275_v27, %v18515_v25  ;;  %v8259_v27 = vld [vmem:[%s20347_s11 + $0x38] sm:$0xff]  ;;  %v18596_v15 = vand.u32 4294901760, %v8262_v4 }
 0x859   : > { %8607 = vmatprep.subr.mxu0 %v18363_v60  ;;  %8759 = vmatmul.mubr.f32.gmra.mxu1 %v18441_v49  ;;  %v21282_v1 = vand.u32 4294901760, %v18505_v2  ;;  %v18560_v16 = vsub.f32 %v8274_v10, %v18525_v44  ;;  %v22817_v10 = vand.u32 4294901760, %v18243_v17  ;;  %v9121_v17 = vsub.f32 %v18523_v52, %v21279_v48 }
 0x85a   : > { %8917 = vmatprep.subr.mxu1 %v18235_v30  ;;  %8610 = vmatpush1.msra.mxu0 %v22810_v14  ;;  %v22812_v30 = vld [vmem:[#allocation132_spill] sm:$0xff]  ;;  %v21283_v21 = vand.u32 4294901760, %v18550_v63 }
 0x85b   : > { %8919 = vmatpush1.msra.mxu1 %v18245_v3  ;;  %8613 = vmatprep.subr.mxu0 %v22811_v28  ;;  %v8267_v3 = vld [vmem:[%s20347_s11 + $0x78] sm:$0xff]  ;;  %v9109_v50 = vsub.f32 %v18505_v2, %v21282_v1 }
 0x85c   : > { %8921 = vmatprep.subr.mxu1 %v18258_v11  ;;  %8616 = vmatpush1.msra.mxu0 %v22812_v30  ;;  %v8266_v11 = vld [vmem:[%s20347_s11 + $0x70] sm:$0xff]  ;;  %v18562_v36 = vand.u32 4294901760, %v8267_v3 }
 0x85d   : > { %8649 = vmatprep.mubr.f32.mxu0 %v22804_v5  ;;  %8923 = vmatpush1.msra.mxu1 %v18271_v22  ;;  %v8263_v22 = vld [vmem:[%s20347_s11 + $0x58] sm:$0xff]  ;;  %v18574_v32 = vand.u32 4294901760, %v8266_v11 }
 0x85e   : > { %8652 = vmatmul.mubr.f32.vlgmr.msra.gmra.mxu0 %v18416_v47  ;;  %8784 = vmatprep.subr.mxu0 %v22814_v33  ;;  %v18584_v59 = vand.u32 4294901760, %v8263_v22  ;;  %v22818_v33 = vand.u32 4294901760, %v18256_v26 }
 0x85f   : > { %8925 = vmatprep.subr.mxu1 %v18303_v19  ;;  %8788 = vmatpush1.msra.mxu0 %v22815_v23  ;;  %v21281_v19 = vand.u32 4294901760, %v18530_v58  ;;  %v18609_v23 = vsub.f32 %v8267_v3, %v18562_v36  ;;  %v18622_v48 = vsub.f32 %v8266_v11, %v18574_v32  ;;  %v18624_v3 = vand.u32 4294901760, %v8259_v27 }
 0x860   : > { %8927 = vmatpush1.msra.mxu1 %v18312_v41  ;;  %8792 = vmatprep.subr.mxu0 %v22816_v12  ;;  %v18582_v41 = vsub.f32 %v8270_v0, %v18540_v55  ;;  %v8258_v0 = vld [vmem:[%s20347_s11 + $0x30] sm:$0xff]  ;;  %v8255_v12 = vld [vmem:[%s20347_s11 + $0x18] sm:$0xff]  ;;  %v22821_v11 = vand.u32 4294901760, %v18293_v37 }
 0x861   : > { %8929 = vmatprep.subr.mxu1 %v18323_v35  ;;  %8657 = vmatprep.mubr.f32.mxu0 %v22804_v5  ;;  %v9115_v35 = vsub.f32 %v18513_v8, %v21280_v34  ;;  %v9127_v26 = vsub.f32 %v18530_v58, %v21281_v19  ;;  %v8254_v34 = vld [vmem:[%s20347_s11 + $0x10] sm:$0xff]  ;;  %v18634_v19 = vsub.f32 %v8263_v22, %v18584_v59  ;;  %v18636_v1 = vand.u32 4294901760, %v8258_v0 }
 0x862   : > { %8796 = vmatpush1.msra.mxu0 %v22817_v10  ;;  %8931 = vmatpush1.msra.mxu1 %v18335_v18  ;;  %v21284_v18 = vand.u32 4294901760, %v18560_v16  ;;  %v22819_v10 = vand.u32 4294901760, %v18269_v13  ;;  %v22820_v13 = vand.u32 4294901760, %v18282_v56  ;;  %v18645_v56 = vsub.f32 %v8262_v4, %v18596_v15 }
 0x863   : > { %8660 = vmatmul.mubr.f32.gmra.mxu0 %v18429_v43  ;;  %8800 = vmatprep.subr.mxu0 %v22818_v33  ;;  %v9116_v33 = vand.u32 4294901760, %v9115_v35  ;;  %v9122_v22 = vand.u32 4294901760, %v9121_v17  ;;  %v18655_v35 = vand.u32 4294901760, %v8254_v34  ;;  %v9128_v4 = vand.u32 4294901760, %v9127_v26 }
 0x864   : > { %8933 = vmatprep.subr.mxu1 %v18345_v7  ;;  %8804 = vmatpush1.msra.mxu0 %v22819_v10  ;;  %v9110_v7 = vand.u32 4294901760, %v9109_v50  ;;  %v9150_v10 = vand.u32 4294901760, %v18582_v41  ;;  %v18647_v50 = vand.u32 4294901760, %v8255_v12  ;;  %v9139_v37 = vsub.f32 %v18560_v16, %v21284_v18 }
 0x865   : > { %8935 = vmatpush1.msra.mxu1 %v18355_v46  ;;  %8808 = vmatprep.subr.mxu0 %v22820_v13  ;;  %v9133_v46 = vsub.f32 %v18550_v63, %v21283_v21  ;;  %v22822_v13 = vand.u32 4294901760, %v18321_v31  ;;  %v18665_v21 = vsub.f32 %v8259_v27, %v18624_v3  ;;  %v22824_v18 = vand.u32 4294901760, %v18333_v62 }
 0x866   : > { %8937 = vmatprep.subr.mxu1 %v18365_v24  ;;  %8812 = vmatpush1.msra.mxu0 %v22821_v11  ;;  %v9156_v24 = vand.u32 4294901760, %v18609_v23  ;;  %v22823_v11 = vand.u32 4294901760, %v18572_v51  ;;  %v9151_v31 = vsub.f32 %v18582_v41, %v9150_v10  ;;  %v18674_v26 = vsub.f32 %v8258_v0, %v18636_v1 }
 0x867   : > { %8939 = vmatpush1.msra.mxu1 %v18375_v61  ;;  %8972 = vmatprep.mubr.f32.mxu1 %v22804_v5  ;;  %v9134_v17 = vand.u32 4294901760, %v9133_v46  ;;  %v9174_v27 = vand.u32 4294901760, %v18645_v56  ;;  %v22826_v62 = vand.u32 4294901760, %v18353_v54  ;;  %v22827_v46 = vand.u32 4294901760, %v18622_v48 }
 0x868   : > { %8816 = vmatprep.subr.mxu0 %v22822_v13  ;;  %8974 = vmatmul.mubr.f32.vlgmr.msra.gmra.mxu1 %v18413_v57  ;;  %v9145_v61 = vsub.f32 %v18572_v51, %v22823_v11  ;;  %v9168_v13 = vand.u32 4294901760, %v18634_v19  ;;  %v22825_v11 = vand.u32 4294901760, %v18343_v42  ;;  %v9157_v0 = vsub.f32 %v18609_v23, %v9156_v24 }
 0x869   : > { %9111 = vmatprep.subr.mxu1 %v9110_v7  ;;  %8820 = vmatpush1.msra.mxu0 %v22824_v18  ;;  %v18680_v7 = vsub.f32 %v8255_v12, %v18647_v50  ;;  %v9140_v18 = vand.u32 4294901760, %v9139_v37  ;;  %v9163_v12 = vsub.f32 %v18622_v48, %v22827_v46  ;;  %v22828_v54 = vand.u32 4294901760, %v18363_v60 }
 0x86a   : > { %9117 = vmatpush1.msra.mxu1 %v9116_v33  ;;  %8824 = vmatprep.subr.mxu0 %v22825_v11  ;;  %v18688_v33 = vsub.f32 %v8254_v34, %v18655_v35  ;;  %v9146_v42 = vand.u32 4294901760, %v9145_v61  ;;  %v9152_v37 = vand.u32 4294901760, %v9151_v31  ;;  %v9169_v34 = vsub.f32 %v18634_v19, %v9168_v13 }
 0x86b   : > { %9123 = vmatprep.subr.mxu1 %v9122_v22  ;;  %8828 = vmatpush1.msra.mxu0 %v22826_v62  ;;  %v9180_v22 = vand.u32 4294901760, %v18665_v21  ;;  %v9186_v11 = vand.u32 4294901760, %v18674_v26  ;;  %v9175_v61 = vsub.f32 %v18645_v56, %v9174_v27  ;;  %v9192_v60 = vand.u32 4294901760, %v18680_v7 }
 0x86c   : > { %8979 = vmatprep.mubr.f32.mxu1 %v22804_v5  ;;  %9129 = vmatpush1.msra.mxu1 %v9128_v4  ;;  %v22829_v4 = vand.u32 4294901760, %v22810_v14  ;;  %v22830_v62 = vand.u32 4294901760, %v22811_v28  ;;  %v9158_v31 = vand.u32 4294901760, %v9157_v0  ;;  %v9198_v46 = vand.u32 4294901760, %v18688_v33 }
 0x86d   : > { %8832 = vmatprep.subr.mxu0 %v22828_v54  ;;  %8981 = vmatmul.mubr.f32.gmra.mxu1 %v18424_v38  ;;  %v22831_v54 = vand.u32 4294901760, %v22812_v30  ;;  %v9181_v14 = vsub.f32 %v18665_v21, %v9180_v22  ;;  %v9187_v28 = vsub.f32 %v18674_v26, %v9186_v11  ;;  %v9193_v30 = vsub.f32 %v18680_v7, %v9192_v60 }
 0x86e   : > { %9135 = vmatprep.subr.mxu1 %v9134_v17  ;;  %8836 = vmatpush1.msra.mxu0 %v22829_v4  ;;  %v9164_v17 = vand.u32 4294901760, %v9163_v12  ;;  %v9170_v4 = vand.u32 4294901760, %v9169_v34  ;;  %v9199_v0 = vsub.f32 %v18688_v33, %v9198_v46 }
 0x86f   : > { %9141 = vmatpush1.msra.mxu1 %v9140_v18  ;;  %8840 = vmatprep.subr.mxu0 %v22830_v62  ;;  %v9176_v18 = vand.u32 4294901760, %v9175_v61  ;;  %v9188_v12 = vand.u32 4294901760, %v9187_v28  ;;  %v9686_v62 = vld [vmem:[%s20346_s10 + $0x18] sm:$0xff] }
 0x870   : > { %9147 = vmatprep.subr.mxu1 %v9146_v42  ;;  %8844 = vmatpush1.msra.mxu0 %v22831_v54  ;;  %v9182_v42 = vand.u32 4294901760, %v9181_v14  ;;  %v9200_v34 = vand.u32 4294901760, %v9199_v0  ;;  %v9709_v0 = vsel %vm2008_vm1, %v9686_v62, 0 }
 0x871   : > { %8877 = vmatprep.mubr.f32.mxu0 %v22804_v5  ;;  %9153 = vmatpush1.msra.mxu1 %v9152_v37  ;;  %v9194_v37 = vand.u32 4294901760, %v9193_v30 }
 0x872   : > { %8879 = vmatmul.mubr.f32.vlgmr.msra.gmra.mxu0 %v18413_v57  ;;  %9004 = vmatprep.subr.mxu0 %v18479_v39 }
 0x873   : > { %9159 = vmatprep.subr.mxu1 %v9158_v31  ;;  %9006 = vmatpush1.msra.mxu0 %v18486_v45 }
 0x874   : > { %9165 = vmatpush1.msra.mxu1 %v9164_v17  ;;  %9008 = vmatprep.subr.mxu0 %v18490_v20 }
 0x875   : > { %9171 = vmatprep.subr.mxu1 %v9170_v4  ;;  %8884 = vmatprep.mubr.f32.mxu0 %v22804_v5 }
 0x876   : > { %9010 = vmatpush1.msra.mxu0 %v18497_v29  ;;  %9177 = vmatpush1.msra.mxu1 %v9176_v18 }
 0x877   : > { %8886 = vmatmul.mubr.f32.gmra.mxu0 %v18424_v38  ;;  %9012 = vmatprep.subr.mxu0 %v18515_v25 }
 0x878   : > { %9183 = vmatprep.subr.mxu1 %v9182_v42  ;;  %9014 = vmatpush1.msra.mxu0 %v18525_v44 }
 0x879   : > { %9189 = vmatpush1.msra.mxu1 %v9188_v12  ;;  %9016 = vmatprep.subr.mxu0 %v18532_v6 }
 0x87a   : > { %9195 = vmatprep.subr.mxu1 %v9194_v37  ;;  %9018 = vmatpush1.msra.mxu0 %v18540_v55 }
 0x87b   : > { %9201 = vmatpush1.msra.mxu1 %v9200_v34  ;;  %9234 = vmatprep.mubr.f32.mxu1 %v22804_v5 }
 0x87c   : > { %9020 = vmatprep.subr.mxu0 %v18562_v36  ;;  %9236 = vmatmul.mubr.f32.vlgmr.msra.gmra.mxu1 %v18413_v57 }
 0x87d   : > { %9379 = vmatprep.subr.mxu1 %v18479_v39  ;;  %9022 = vmatpush1.msra.mxu0 %v18574_v32 }
 0x87e   : > { %9381 = vmatpush1.msra.mxu1 %v18486_v45  ;;  %9024 = vmatprep.subr.mxu0 %v18584_v59 }
 0x87f   : > { %9383 = vmatprep.subr.mxu1 %v18490_v20  ;;  %9026 = vmatpush1.msra.mxu0 %v18596_v15 }
 0x880   : > { %9241 = vmatprep.mubr.f32.mxu1 %v22804_v5  ;;  %9385 = vmatpush1.msra.mxu1 %v18497_v29 }
 0x881   : > { %9028 = vmatprep.subr.mxu0 %v18624_v3  ;;  %9243 = vmatmul.mubr.f32.gmra.mxu1 %v18424_v38 }
 0x882   : > { %9387 = vmatprep.subr.mxu1 %v18515_v25  ;;  %9030 = vmatpush1.msra.mxu0 %v18636_v1 }
 0x883   : > { %9389 = vmatpush1.msra.mxu1 %v18525_v44  ;;  %9032 = vmatprep.subr.mxu0 %v18647_v50 }
 0x884   : > { %9391 = vmatprep.subr.mxu1 %v18532_v6  ;;  %9034 = vmatpush1.msra.mxu0 %v18655_v35 }
 0x885   : > { %9067 = vmatprep.mubr.f32.mxu0 %v22804_v5  ;;  %9393 = vmatpush1.msra.mxu1 %v18540_v55 }
 0x886   : > { %9073 = vmatmul.mubr.f32.vlgmr.msra.gmra.mxu0 %v18438_v9  ;;  %9267 = vmatprep.subr.mxu0 %v18505_v2  ;;  %v22833_v9 = vand.u32 4294901760, %v18513_v8 }
 0x887   : > { %9395 = vmatprep.subr.mxu1 %v18562_v36  ;;  %9270 = vmatpush1.msra.mxu0 %v18513_v8 }
 0x888   : > { %9397 = vmatpush1.msra.mxu1 %v18574_v32  ;;  %9273 = vmatprep.subr.mxu0 %v18523_v52 }
 0x889   : > { %9399 = vmatprep.subr.mxu1 %v18584_v59  ;;  %9078 = vmatprep.mubr.f32.mxu0 %v22804_v5 }
 0x88a   : > { %9276 = vmatpush1.msra.mxu0 %v18530_v58  ;;  %9401 = vmatpush1.msra.mxu1 %v18596_v15 }
 0x88b   : > { %9084 = vmatmul.mubr.f32.gmra.mxu0 %v18452_v40  ;;  %9279 = vmatprep.subr.mxu0 %v18550_v63  ;;  %v22835_v40 = vand.u32 4294901760, %v18530_v58 }
 0x88c   : > { %9403 = vmatprep.subr.mxu1 %v18624_v3  ;;  %9282 = vmatpush1.msra.mxu0 %v18560_v16 }
 0x88d   : > { %9405 = vmatpush1.msra.mxu1 %v18636_v1  ;;  %9285 = vmatprep.subr.mxu0 %v18572_v51 }
 0x88e   : > { %9407 = vmatprep.subr.mxu1 %v18647_v50  ;;  %9288 = vmatpush1.msra.mxu0 %v18582_v41  ;;  %v9684_v41 = vld [vmem:[%s20346_s10 + $0x8] sm:$0xff] }
 0x88f   : > { %9409 = vmatpush1.msra.mxu1 %v18655_v35  ;;  %9442 = vmatprep.mubr.f32.mxu1 %v22804_v5 }
 0x890   : > { %9291 = vmatprep.subr.mxu0 %v18609_v23  ;;  %9446 = vmatmul.mubr.f32.vlgmr.msra.gmra.mxu1 %v18422_v53  ;;  %v22832_v53 = vand.u32 4294901760, %v18505_v2 }
 0x891   : > { %9605 = vmatprep.subr.mxu1 %v18479_v39  ;;  %9294 = vmatpush1.msra.mxu0 %v18622_v48  ;;  %v22837_v39 = vand.u32 4294901760, %v18560_v16 }
 0x892   : > { %9607 = vmatpush1.msra.mxu1 %v18486_v45  ;;  %9297 = vmatprep.subr.mxu0 %v18634_v19  ;;  %v22838_v45 = vand.u32 4294901760, %v18572_v51 }
 0x893   : > { %9609 = vmatprep.subr.mxu1 %v18490_v20  ;;  %9300 = vmatpush1.msra.mxu0 %v18645_v56 }
 0x894   : > { %9451 = vmatprep.mubr.f32.mxu1 %v22804_v5  ;;  %9611 = vmatpush1.msra.mxu1 %v18497_v29 }
 0x895   : > { %9303 = vmatprep.subr.mxu0 %v18665_v21  ;;  %9455 = vmatmul.mubr.f32.gmra.mxu1 %v18441_v49  ;;  %v22834_v49 = vand.u32 4294901760, %v18523_v52 }
 0x896   : > { %9613 = vmatprep.subr.mxu1 %v18515_v25  ;;  %9306 = vmatpush1.msra.mxu0 %v18674_v26 }
 0x897   : > { %9615 = vmatpush1.msra.mxu1 %v18525_v44  ;;  %9309 = vmatprep.subr.mxu0 %v18680_v7 }
 0x898   : > { %9617 = vmatprep.subr.mxu1 %v18532_v6  ;;  %9312 = vmatpush1.msra.mxu0 %v18688_v33 }
 0x899   : > { %9345 = vmatprep.mubr.f32.mxu0 %v22804_v5  ;;  %9619 = vmatpush1.msra.mxu1 %v18540_v55 }
 0x89a   : > { %9348 = vmatmul.mubr.f32.vlgmr.msra.gmra.mxu0 %v18416_v47  ;;  %9480 = vmatprep.subr.mxu0 %v22832_v53  ;;  %v22836_v47 = vand.u32 4294901760, %v18550_v63 }
 0x89b   : > { %9621 = vmatprep.subr.mxu1 %v18562_v36  ;;  %9484 = vmatpush1.msra.mxu0 %v22833_v9  ;;  %v9687_v9 = vld [vmem:[%s20346_s10 + $0x20] sm:$0xff] }
 0x89c   : > { %9623 = vmatpush1.msra.mxu1 %v18574_v32  ;;  %9488 = vmatprep.subr.mxu0 %v22834_v49 }
 0x89d   : > { %9625 = vmatprep.subr.mxu1 %v18584_v59  ;;  %9353 = vmatprep.mubr.f32.mxu0 %v22804_v5 }
 0x89e   : > { %9492 = vmatpush1.msra.mxu0 %v22835_v40  ;;  %9627 = vmatpush1.msra.mxu1 %v18596_v15 }
 0x89f   : > { %9356 = vmatmul.mubr.f32.gmra.mxu0 %v18429_v43  ;;  %9496 = vmatprep.subr.mxu0 %v22836_v47  ;;  %v22839_v43 = vand.u32 4294901760, %v18622_v48  ;;  %v18889_v47 = vand.u32 4294901760, %v9709_v0 }
 0x8a0   : > { %9629 = vmatprep.subr.mxu1 %v18624_v3  ;;  %9500 = vmatpush1.msra.mxu0 %v22837_v39 }
 0x8a1   : > { %9631 = vmatpush1.msra.mxu1 %v18636_v1  ;;  %9504 = vmatprep.subr.mxu0 %v22838_v45  ;;  %22843 = vst [vmem:[#allocation131_spill] sm:$0xff] %v18889_v47 }
 0x8a2   : > { %9633 = vmatprep.subr.mxu1 %v18647_v50  ;;  %9508 = vmatpush1.msra.mxu0 %v9150_v10  ;;  %v9703_v10 = vsel %vm2008_vm1, %v9684_v41, 0  ;;  %v9685_v50 = vld [vmem:[%s20346_s10 + $0x10] sm:$0xff] }
 0x8a3   : > { %9635 = vmatpush1.msra.mxu1 %v18655_v35  ;;  %9668 = vmatprep.mubr.f32.mxu1 %v22804_v5 }
 0x8a4   : > { %9512 = vmatprep.subr.mxu0 %v9156_v24  ;;  %9670 = vmatmul.mubr.f32.vlgmr.msra.gmra.mxu1 %v18413_v57 }
 0x8a5   : > { %9516 = vmatpush1.msra.mxu0 %v22839_v43  ;;  %9675 = vmatprep.mubr.f32.mxu1 %v22804_v5 }
 0x8a6   : > { %9520 = vmatprep.subr.mxu0 %v9168_v13  ;;  %9573 = vmatprep.mubr.f32.mxu0 %v22804_v5 }
 0x8a7   : > { %9524 = vmatpush1.msra.mxu0 %v9174_v27 }
 0x8a8   : > { %9528 = vmatprep.subr.mxu0 %v9180_v22  ;;  %9677 = vmatmul.mubr.f32.gmra.mxu1 %v18424_v38  ;;  %v18867_v22 = vand.u32 4294901760, %v9703_v10 }
 0x8a9   : > { %9532 = vmatpush1.msra.mxu0 %v9186_v11  ;;  %10076 = vmatprep.mubr.f32.mxu1 %v22804_v5 }
 0x8aa   : > { %9536 = vmatprep.subr.mxu0 %v9192_v60  ;;  %22841 = vst [vmem:[#allocation125_spill] sm:$0xff] %v18867_v22  ;;  %v9706_v60 = vsel %vm2008_vm1, %v9685_v50, 0  ;;  %v18877_v18 = vsub.f32 %v9703_v10, %v18867_v22 }
 0x8ab   : > { %9540 = vmatpush1.msra.mxu0 %v9198_v46  ;;  %v18879_v30 = vand.u32 4294901760, %v9706_v60 }
 0x8ac   : > { %9575 = vmatmul.mubr.f32.vlgmr.msra.gmra.mxu0 %v18413_v57  ;;  %v9683_v57 = vld [vmem:[%s20346_s10] sm:$0xff]  ;;  %v18894_v43 = vand.u32 4294901760, %v18877_v18 }
 0x8ad   : > { %9580 = vmatprep.mubr.f32.mxu0 %v22804_v5  ;;  %v9700_v16 = vsel %vm2008_vm1, %v9683_v57, 0  ;;  %22842 = vst [vmem:[#allocation51_spill] sm:$0xff] %v18879_v30 }
 0x8ae   : > { %v18858_v59 = vand.u32 4294901760, %v9700_v16 }
 0x8b0   : > { %9582 = vmatmul.mubr.f32.gmra.mxu0 %v18424_v38  ;;  %22840 = vst [vmem:[#allocation48_spill] sm:$0xff] %v18858_v59  ;;  %v18865_v26 = vsub.f32 %v9700_v16, %v18858_v59 }
 0x8b1   : > { %9815 = vmatprep.mubr.f32.mxu0 %v22804_v5 }
 0x8b2   : > { %v18874_v17 = vand.u32 4294901760, %v18865_v26 }
 0x8b4   : > { %v9819_v45 = vsub.f32 %v18865_v26, %v18874_v17 }
 0x903   : > { %v8541_v20 = vpop.f32.mrf.mxu1 }
 0x905   : > { %v8543_v2 = vpop.f32.mrf.mxu1 }
 0x907   : > { %v8548_v25 = vpop.f32.mrf.mxu1 }
 0x909   : > { %v8550_v44 = vpop.f32.mrf.mxu1 }
 0x90b   : > { %v8378_v29 = vpop.f32.mrf.mxu0 }
 0x90c   : > { %v8542_v38 = vadd.f32 %v8541_v20, %v8378_v29  ;;  %v18897_v20 = vsub.f32 %v9706_v60, %v18879_v30 }
 0x90d   : > { %v8380_v8 = vpop.f32.mrf.mxu0 }
 0x90e   : > { %v8544_v19 = vadd.f32 %v8543_v2, %v8380_v8 }
 0x910   : > { %v8389_v52 = vpop.f32.mrf.mxu0 }
 0x911   : > { %v8549_v23 = vadd.f32 %v8548_v25, %v8389_v52  ;;  %v9712_v25 = vsel %vm2008_vm1, %v9687_v9, 0 }
 0x912   : > { %v8391_v6 = vpop.f32.mrf.mxu0  ;;  %v18924_v57 = vand.u32 4294901760, %v9712_v25 }
 0x913   : > { %v8551_v24 = vadd.f32 %v8550_v44, %v8391_v6  ;;  %v18914_v6 = vsub.f32 %v9709_v0, %v18889_v47 }
 0x914   : > { %v8751_v58 = vpop.f32.mrf.mxu1  ;;  %22844 = vst [vmem:[#allocation45_spill] sm:$0xff] %v18924_v57 }
 0x916   : > { %v8753_v55 = vpop.f32.mrf.mxu1 }
 0x919   : > { %v8760_v48 = vpop.f32.mrf.mxu1 }
 0x91b   : > { %v8762_v51 = vpop.f32.mrf.mxu1 }
 0x91e   : > { %v8653_v1 = vpop.f32.mrf.mxu0 }
 0x91f   : > { %v8654_v32 = vadd.f32 %v8653_v1, %v8542_v38  ;;  %v9688_v1 = vld [vmem:[%s20346_s10 + $0x28] sm:$0xff]  ;;  %v18928_v38 = vand.u32 4294901760, %v9819_v45 }
 0x920   : > { %v8655_v63 = vpop.f32.mrf.mxu0 }
 0x921   : > { %v8656_v21 = vadd.f32 %v8655_v63, %v8544_v19  ;;  %v8752_v56 = vadd.f32 %v8751_v58, %v8654_v32  ;;  %v18922_v63 = vand.u32 4294901760, %v18897_v20  ;;  %22845 = vst [vmem:[#allocation135_spill] sm:$0xff] %v18928_v38  ;;  %v9689_v32 = vld [vmem:[%s20346_s10 + $0x30] sm:$0xff] }
 0x923   : > { %v8661_v36 = vpop.f32.mrf.mxu0  ;;  %v8754_v33 = vadd.f32 %v8753_v55, %v8656_v21  ;;  %v9830_v55 = vsub.f32 %v18877_v18, %v18894_v43  ;;  %v18940_v21 = vand.u32 4294901760, %v18914_v6  ;;  %v9841_v10 = vsub.f32 %v18897_v20, %v18922_v63 }
 0x924   : > { %v8662_v35 = vadd.f32 %v8661_v36, %v8549_v23 }
 0x925   : > { %v8663_v3 = vpop.f32.mrf.mxu0  ;;  %v18943_v23 = vand.u32 4294901760, %v9830_v55 }
 0x926   : > { %v8664_v11 = vadd.f32 %v8663_v3, %v8551_v24  ;;  %v8761_v54 = vadd.f32 %v8760_v48, %v8662_v35 }
 0x927   : > { %22846 = vst [vmem:[#allocation55_spill] sm:$0xff] %v18943_v23 }
 0x928   : > { %v8975_v15 = vpop.f32.mrf.mxu1  ;;  %v8763_v12 = vadd.f32 %v8762_v51, %v8664_v11  ;;  %v9715_v51 = vsel %vm2008_vm1, %v9688_v1, 0  ;;  %v9852_v11 = vsub.f32 %v18914_v6, %v18940_v21 }
 0x929   : > { %v18957_v35 = vand.u32 4294901760, %v9715_v51 }
 0x92a   : > { %v8977_v27 = vpop.f32.mrf.mxu1 }
 0x92b   : > { %22847 = vst [vmem:[#allocation130_spill] sm:$0xff] %v18957_v35  ;;  %v18987_v0 = vsub.f32 %v9715_v51, %v18957_v35 }
 0x92d   : > { %v8982_v14 = vpop.f32.mrf.mxu1 }
 0x92f   : > { %v8984_v39 = vpop.f32.mrf.mxu1 }
 0x932   : > { %v8880_v13 = vpop.f32.mrf.mxu0 }
 0x933   : > { %v8881_v7 = vadd.f32 %v8880_v13, %v8752_v56  ;;  %v18951_v56 = vsub.f32 %v9712_v25, %v18924_v57  ;;  %v9718_v13 = vsel %vm2008_vm1, %v9689_v32, 0  ;;  %v19006_v25 = vand.u32 4294901760, %v18987_v0 }
 0x934   : > { %v8882_v61 = vpop.f32.mrf.mxu0 }
 0x935   : > { %v8976_v31 = vadd.f32 %v8975_v15, %v8881_v7  ;;  %v8883_v46 = vadd.f32 %v8882_v61, %v8754_v33  ;;  %v9690_v61 = vld [vmem:[%s20346_s10 + $0x38] sm:$0xff] }
 0x937   : > { %v8978_v4 = vadd.f32 %v8977_v27, %v8883_v46  ;;  %v8887_v28 = vpop.f32.mrf.mxu0  ;;  %v18882_v37 = vand.u32 4294901760, %v8976_v31  ;;  %v18977_v46 = vand.u32 4294901760, %v18951_v56 }
 0x938   : > { %v8888_v42 = vadd.f32 %v8887_v28, %v8761_v54  ;;  %v18979_v54 = vand.u32 4294901760, %v9718_v13  ;;  %v18984_v28 = vand.u32 4294901760, %v9841_v10 }
 0x939   : > { %v18884_v34 = vand.u32 4294901760, %v8978_v4  ;;  %v8889_v53 = vpop.f32.mrf.mxu0  ;;  %v18906_v52 = vsub.f32 %v8976_v31, %v18882_v37 }
 0x93a   : > { %v8983_v49 = vadd.f32 %v8982_v14, %v8888_v42  ;;  %v8890_v40 = vadd.f32 %v8889_v53, %v8763_v12  ;;  %22848 = vst [vmem:[#allocation49_spill] sm:$0xff] %v18979_v54  ;;  %22849 = vst [vmem:[#allocation64_spill] sm:$0xff] %v18984_v28  ;;  %v9721_v12 = vsel %vm2008_vm1, %v9690_v61, 0  ;;  %v9691_v53 = vld [vmem:[%s20346_s10 + $0x40] sm:$0xff]  ;;  %v18999_v45 = vsub.f32 %v9718_v13, %v18979_v54 }
 0x93b   : > { %v18902_v8 = vsub.f32 %v8978_v4, %v18884_v34  ;;  %v21285_v19 = vand.u32 4294901760, %v18906_v52  ;;  %v19008_v1 = vand.u32 4294901760, %v9721_v12  ;;  %v9724_v55 = vsel %vm2008_vm1, %v9691_v53, 0 }
 0x93c   : > { %v18899_v29 = vand.u32 4294901760, %v8983_v49  ;;  %v8985_v2 = vadd.f32 %v8984_v39, %v8890_v40  ;;  %v9237_v15 = vpop.f32.mrf.mxu1  ;;  %v18994_v40 = vand.u32 4294901760, %v9852_v11  ;;  %v9863_v39 = vsub.f32 %v18951_v56, %v18977_v46  ;;  %v9694_v11 = vld [vmem:[%s20346_s10 + $0x58] sm:$0xff] }
 0x93d   : > { %v21286_v36 = vand.u32 4294901760, %v18902_v8  ;;  %v10041_v27 = vsub.f32 %v18906_v52, %v21285_v19  ;;  %22851 = vst [vmem:[#allocation36_spill] sm:$0xff] %v19008_v1  ;;  %v19020_v51 = vand.u32 4294901760, %v18999_v45  ;;  %v19022_v32 = vand.u32 4294901760, %v9724_v55 }
 0x93e   : > { %v18909_v44 = vsub.f32 %v8983_v49, %v18899_v29  ;;  %v18911_v58 = vand.u32 4294901760, %v8985_v2  ;;  %v18971_v60 = vpop.f32.mrf.mxu1  ;;  %22850 = vst [vmem:[#allocation59_spill] sm:$0xff] %v18994_v40 }
 0x93f   : > { %v10035_v24 = vsub.f32 %v18902_v8, %v21286_v36  ;;  %v10042_v42 = vand.u32 4294901760, %v10041_v27  ;;  %22852 = vst [vmem:[#allocation56_spill] sm:$0xff] %v19022_v32  ;;  %v19044_v13 = vsub.f32 %v9724_v55, %v19022_v32 }
 0x940   : > { %v21287_v48 = vand.u32 4294901760, %v18909_v44  ;;  %9776 = vmatprep.subr.mxu0 %v18911_v58  ;;  %v10021_v16 = vsub.f32 %v8985_v2, %v18911_v58 }
 0x941   : > { %9778 = vmatpush1.msra.mxu0 %v18899_v29  ;;  %v10036_v4 = vand.u32 4294901760, %v10035_v24  ;;  %v9244_v9 = vpop.f32.mrf.mxu1  ;;  %v9885_v24 = vsub.f32 %v18999_v45, %v19020_v51 }
 0x942   : > { %9780 = vmatprep.subr.mxu0 %v18884_v34  ;;  %v10022_v41 = vand.u32 4294901760, %v10021_v16  ;;  %v10029_v3 = vsub.f32 %v18909_v44, %v21287_v48 }
 0x943   : > { %9782 = vmatpush1.msra.mxu0 %v18882_v37  ;;  %v19061_v61 = vpop.f32.mrf.mxu1 }
 0x944   : > { %9821 = vmatmul.mubr.f32.vlgmr.msra.gmra.mxu0 %v18928_v38  ;;  %10219 = vmatprep.subr.mxu0 %v10021_v16  ;;  %v10023_v50 = vsub.f32 %v10021_v16, %v10022_v41  ;;  %v10030_v31 = vand.u32 4294901760, %v10029_v3  ;;  %v9692_v16 = vld [vmem:[%s20346_s10 + $0x48] sm:$0xff]  ;;  %v19031_v3 = vsub.f32 %v9721_v12, %v19008_v1 }
 0x945   : > { %10222 = vmatpush1.msra.mxu0 %v18909_v44  ;;  %9826 = vmatprep.mubr.f32.mxu0 %v22804_v5  ;;  %v9727_v10 = vsel %vm2008_vm1, %v9692_v16, 0  ;;  %v9695_v16 = vld [vmem:[%s20346_s10 + $0x60] sm:$0xff] }
 0x946   : > { %v9074_v7 = vpop.f32.mrf.mxu0  ;;  %10225 = vmatprep.subr.mxu0 %v18902_v8  ;;  %v10024_v33 = vand.u32 4294901760, %v10023_v50  ;;  %v9693_v50 = vld [vmem:[%s20346_s10 + $0x50] sm:$0xff] }
 0x947   : > { %v18973_v62 = vadd.f32 %v9237_v15, %v9074_v7  ;;  %10228 = vmatpush1.msra.mxu0 %v18906_v52  ;;  %v9874_v15 = vsub.f32 %v18987_v0, %v19006_v25  ;;  %v19052_v7 = vand.u32 4294901760, %v9727_v10 }
 0x948   : > { %v18981_v14 = vpop.f32.mrf.mxu0  ;;  %9832 = vmatmul.mubr.f32.gmra.mxu0 %v18943_v23  ;;  %10025 = vmatprep.subr.mxu1 %v10024_v33  ;;  %v9730_v33 = vsel %vm2008_vm1, %v9693_v50, 0 }
 0x949   : > { %10634 = vmatprep.subr.mxu0 %v10022_v41  ;;  %10031 = vmatpush1.msra.mxu1 %v10030_v31  ;;  %v19026_v41 = vand.u32 4294901760, %v9863_v39  ;;  %v19047_v27 = vand.u32 4294901760, %v9874_v15  ;;  %v19063_v31 = vand.u32 4294901760, %v9885_v24  ;;  %v19074_v53 = vsub.f32 %v9727_v10, %v19052_v7 }
 0x94a   : > { %10037 = vmatprep.subr.mxu1 %v10036_v4  ;;  %9837 = vmatprep.mubr.f32.mxu0 %v22804_v5  ;;  %v19066_v4 = vand.u32 4294901760, %v19044_v13 }
 0x94b   : > { %v9085_v49 = vpop.f32.mrf.mxu0  ;;  %10043 = vmatpush1.msra.mxu1 %v10042_v42  ;;  %22853 = vst [vmem:[#allocation68_spill] sm:$0xff] %v19026_v41  ;;  %22854 = vst [vmem:[#allocation129_spill] sm:$0xff] %v19047_v27  ;;  %v19096_v19 = vand.u32 4294901760, %v19074_v53 }
 0x94c   : > { %v19001_v2 = vadd.f32 %v9244_v9, %v9085_v49  ;;  %9843 = vmatmul.mubr.f32.gmra.mxu0 %v18984_v28  ;;  %10078 = vmatmul.mubr.f32.vlgmr.msra.gmra.mxu1 %v18858_v59  ;;  %22855 = vst [vmem:[#allocation133_spill] sm:$0xff] %v19063_v31  ;;  %v19076_v9 = vand.u32 4294901760, %v9730_v33  ;;  %v9733_v49 = vsel %vm2008_vm1, %v9694_v11, 0  ;;  %v9907_v10 = vsub.f32 %v19044_v13, %v19066_v4 }
 0x94d   : > { %10419 = vmatprep.subr.mxu1 %v18911_v58  ;;  %9848 = vmatprep.mubr.f32.mxu0 %v22804_v5  ;;  %v19068_v42 = vpop.f32.mrf.mxu0  ;;  %v19088_v50 = vand.u32 4294901760, %v9733_v49 }
 0x94e   : > { %10421 = vmatpush1.msra.mxu1 %v18899_v29  ;;  %10083 = vmatprep.mubr.f32.mxu1 %v22804_v5  ;;  %22856 = vst [vmem:[#allocation58_spill] sm:$0xff] %v19076_v9  ;;  %v19099_v36 = vsub.f32 %v9730_v33, %v19076_v9 }
 0x94f   : > { %10423 = vmatprep.subr.mxu1 %v18884_v34  ;;  %22857 = vst [vmem:[#allocation70_spill] sm:$0xff] %v19088_v50  ;;  %v19113_v33 = vsub.f32 %v9733_v49, %v19088_v50 }
 0x950   : > { %10425 = vmatpush1.msra.mxu1 %v18882_v37  ;;  %9854 = vmatmul.mubr.f32.gmra.mxu0 %v18994_v40  ;;  %v9447_v39 = vpop.f32.mrf.mxu1 }
 0x951   : > { %10085 = vmatmul.mubr.f32.gmra.mxu1 %v18867_v22  ;;  %10821 = vmatprep.subr.mxu1 %v18911_v58  ;;  %v19050_v58 = vand.u32 4294901760, %v19031_v3 }
 0x952   : > { %9859 = vmatprep.mubr.f32.mxu0 %v22804_v5  ;;  %10090 = vmatprep.mubr.f32.mxu1 %v22804_v5  ;;  %v19101_v48 = vpop.f32.mrf.mxu1 }
 0x953   : > { %v9896_v12 = vsub.f32 %v19031_v3, %v19050_v58 }
 0x954   : > { %9865 = vmatmul.mubr.f32.gmra.mxu0 %v19026_v41 }
 0x955   : > { %10092 = vmatmul.mubr.f32.gmra.mxu1 %v18879_v30  ;;  %9870 = vmatprep.mubr.f32.mxu0 %v22804_v5  ;;  %v19093_v11 = vand.u32 4294901760, %v9896_v12  ;;  %v9696_v12 = vld [vmem:[%s20346_s10 + $0x68] sm:$0xff]  ;;  %v9456_v40 = vpop.f32.mrf.mxu1 }
 0x956   : > { %10097 = vmatprep.mubr.f32.mxu1 %v22804_v5  ;;  %v9739_v49 = vsel %vm2008_vm1, %v9696_v12, 0 }
 0x957   : > { %22858 = vst [vmem:[#allocation113_spill] sm:$0xff] %v19093_v11  ;;  %v19144_v23 = vand.u32 4294901760, %v9739_v49 }
 0x958   : > { %9876 = vmatmul.mubr.f32.gmra.mxu0 %v19047_v27  ;;  %v19110_v27 = vand.u32 4294901760, %v9907_v10  ;;  %v19134_v10 = vand.u32 4294901760, %v19113_v33 }
 0x959   : > { %10099 = vmatmul.mubr.f32.gmra.mxu1 %v18889_v47  ;;  %9881 = vmatprep.mubr.f32.mxu0 %v22804_v5  ;;  %22863 = vst [vmem:[#allocation80_spill] sm:$0xff] %v19144_v23  ;;  %v19162_v38 = vsub.f32 %v9739_v49, %v19144_v23 }
 0x95a   : > { %v9349_v55 = vpop.f32.mrf.mxu0  ;;  %10104 = vmatprep.mubr.f32.mxu1 %v22804_v5  ;;  %22859 = vst [vmem:[#allocation74_spill] sm:$0xff] %v19110_v27  ;;  %22861 = vst [vmem:[#allocation79_spill] sm:$0xff] %v19134_v10 }
 0x95b   : > { %v9350_v15 = vadd.f32 %v9349_v55, %v18973_v62  ;;  %v9736_v55 = vsel %vm2008_vm1, %v9695_v16, 0  ;;  %v19120_v16 = vand.u32 4294901760, %v19099_v36  ;;  %22866 = vst [vmem:[#allocation126_spill] sm:$0xff] %v19162_v38  ;;  %v19176_v47 = vand.u32 4294901760, %v19162_v38 }
 0x95c   : > { %v19090_v24 = vpop.f32.mrf.mxu0  ;;  %9887 = vmatmul.mubr.f32.gmra.mxu0 %v19063_v31 }
 0x95d   : > { %10106 = vmatmul.mubr.f32.gmra.mxu1 %v18924_v57  ;;  %9892 = vmatprep.mubr.f32.mxu0 %v22804_v5  ;;  %v9448_v62 = vadd.f32 %v9447_v39, %v9350_v15  ;;  %v9918_v39 = vsub.f32 %v19074_v53, %v19096_v19  ;;  %v19122_v15 = vand.u32 4294901760, %v9736_v55  ;;  %v9929_v28 = vsub.f32 %v19099_v36, %v19120_v16 }
 0x95e   : > { %10111 = vmatprep.mubr.f32.mxu1 %v22804_v5  ;;  %22869 = vst [vmem:[#allocation92_spill] sm:$0xff] %v19176_v47 }
 0x95f   : > { %v9357_v31 = vpop.f32.mrf.mxu0  ;;  %22860 = vst [vmem:[#allocation136_spill] sm:$0xff] %v19122_v15  ;;  %v19142_v12 = vsub.f32 %v9736_v55, %v19122_v15  ;;  %v19156_v55 = vand.u32 4294901760, %v9929_v28  ;;  %v9458_v28 = vpop.f32.mrf.mxu1 }
 0x960   : > { %v9358_v41 = vadd.f32 %v9357_v31, %v19001_v2  ;;  %9898 = vmatmul.mubr.f32.gmra.mxu0 %v19093_v11  ;;  %v9697_v31 = vld [vmem:[%s20346_s10 + $0x70] sm:$0xff]  ;;  %v19137_v11 = vand.u32 4294901760, %v9918_v39  ;;  %v9940_v39 = vsub.f32 %v19113_v33, %v19134_v10 }
 0x961   : > { %10113 = vmatmul.mubr.f32.gmra.mxu1 %v18957_v35  ;;  %9903 = vmatprep.mubr.f32.mxu0 %v22804_v5  ;;  %22864 = vst [vmem:[#allocation66_spill] sm:$0xff] %v19156_v55  ;;  %v9359_v35 = vpop.f32.mrf.mxu0 }
 0x962   : > { %10118 = vmatprep.mubr.f32.mxu1 %v22804_v5  ;;  %v19128_v2 = vadd.f32 %v9456_v40, %v9358_v41  ;;  %22862 = vst [vmem:[#allocation134_spill] sm:$0xff] %v19137_v11  ;;  %v9742_v40 = vsel %vm2008_vm1, %v9697_v31, 0  ;;  %v9698_v41 = vld [vmem:[%s20346_s10 + $0x78] sm:$0xff] }
 0x963   : > { %v19164_v31 = vand.u32 4294901760, %v9742_v40 }
 0x964   : > { %9909 = vmatmul.mubr.f32.gmra.mxu0 %v19110_v27  ;;  %v19159_v27 = vand.u32 4294901760, %v19142_v12 }
 0x965   : > { %10120 = vmatmul.mubr.f32.gmra.mxu1 %v18979_v54  ;;  %9914 = vmatprep.mubr.f32.mxu0 %v22804_v5  ;;  %22867 = vst [vmem:[#allocation67_spill] sm:$0xff] %v19164_v31  ;;  %v9745_v54 = vsel %vm2008_vm1, %v9698_v41, 0 }
 0x966   : > { %10125 = vmatprep.mubr.f32.mxu1 %v22804_v5  ;;  %22865 = vst [vmem:[#allocation84_spill] sm:$0xff] %v19159_v27  ;;  %v9951_v49 = vsub.f32 %v19142_v12, %v19159_v27  ;;  %v19181_v30 = vand.u32 4294901760, %v9745_v54 }
 0x968   : > { %9920 = vmatmul.mubr.f32.gmra.mxu0 %v19137_v11  ;;  %v19170_v11 = vand.u32 4294901760, %v9940_v39  ;;  %22871 = vst [vmem:[#allocation81_spill] sm:$0xff] %v19181_v30  ;;  %v9671_v39 = vpop.f32.mrf.mxu1 }
 0x969   : > { %10127 = vmatmul.mubr.f32.gmra.mxu1 %v19008_v1  ;;  %9925 = vmatprep.mubr.f32.mxu0 %v22804_v5  ;;  %v19179_v1 = vsub.f32 %v9742_v40, %v19164_v31  ;;  %v19195_v40 = vand.u32 4294901760, %v9951_v49 }
 0x96a   : > { %10132 = vmatprep.mubr.f32.mxu1 %v22804_v5  ;;  %22868 = vst [vmem:[#allocation40_spill] sm:$0xff] %v19170_v11 }
 0x96b   : > { %22870 = vst [vmem:[#allocation72_spill] sm:$0xff] %v19179_v1  ;;  %22872 = vst [vmem:[#allocation60_spill] sm:$0xff] %v19195_v40 }
 0x96c   : > { %v9576_v57 = vpop.f32.mrf.mxu0  ;;  %9931 = vmatmul.mubr.f32.gmra.mxu0 %v19156_v55  ;;  %v9247_v55 = vadd.f32 %v19061_v61, %v19068_v42  ;;  %v19207_v61 = vpop.f32.mrf.mxu1 }
 0x96d   : > { %v9577_v41 = vadd.f32 %v9576_v57, %v9448_v62  ;;  %10134 = vmatmul.mubr.f32.gmra.mxu1 %v19022_v32  ;;  %9936 = vmatprep.mubr.f32.mxu0 %v22804_v5  ;;  %v9962_v57 = vsub.f32 %v19162_v38, %v19176_v47  ;;  %v19200_v62 = vand.u32 4294901760, %v19179_v1  ;;  %v19203_v32 = vsub.f32 %v9745_v54, %v19181_v30 }
 0x96e   : > { %v19185_v22 = vpop.f32.mrf.mxu0  ;;  %10139 = vmatprep.mubr.f32.mxu1 %v22804_v5  ;;  %v9360_v10 = vadd.f32 %v9359_v35, %v9247_v55  ;;  %v19220_v55 = vpop.f32.mrf.mxu1 }
 0x96f   : > { %v19190_v59 = vadd.f32 %v9671_v39, %v9577_v41  ;;  %22873 = vst [vmem:[#allocation83_spill] sm:$0xff] %v19200_v62  ;;  %22874 = vst [vmem:[#allocation61_spill] sm:$0xff] %v19203_v32  ;;  %v19211_v49 = vand.u32 4294901760, %v9962_v57  ;;  %v9973_v41 = vsub.f32 %v19179_v1, %v19200_v62  ;;  %v19216_v54 = vand.u32 4294901760, %v19203_v32 }
 0x970   : > { %v19192_v27 = vpop.f32.mrf.mxu0  ;;  %9942 = vmatmul.mubr.f32.gmra.mxu0 %v19170_v11  ;;  %v9459_v35 = vadd.f32 %v9458_v28, %v9360_v10  ;;  %v9680_v10 = vpop.f32.mrf.mxu1 }
 0x971   : > { %10141 = vmatmul.mubr.f32.gmra.mxu1 %v19052_v7  ;;  %9947 = vmatprep.mubr.f32.mxu0 %v22804_v5  ;;  %22875 = vst [vmem:[#allocation102_spill] sm:$0xff] %v19216_v54  ;;  %v19224_v57 = vand.u32 4294901760, %v9973_v41 }
 0x972   : > { %10146 = vmatprep.mubr.f32.mxu1 %v22804_v5  ;;  %v9585_v42 = vpop.f32.mrf.mxu0 }
 0x973   : > { %v9586_v39 = vadd.f32 %v9585_v42, %v9459_v35  ;;  %v22877_v35 = vand.u32 4294901760, %v18902_v8 }
 0x974   : > { %9953 = vmatmul.mubr.f32.gmra.mxu0 %v19195_v40  ;;  %v9984_v40 = vsub.f32 %v19203_v32, %v19216_v54 }
 0x975   : > { %10148 = vmatmul.mubr.f32.gmra.mxu1 %v19076_v9  ;;  %9958 = vmatprep.mubr.f32.mxu0 %v22804_v5  ;;  %v9681_v28 = vadd.f32 %v9680_v10, %v9586_v39  ;;  %v22878_v39 = vand.u32 4294901760, %v18906_v52 }
 0x976   : > { %10153 = vmatprep.mubr.f32.mxu1 %v22804_v5  ;;  %v19232_v11 = vand.u32 4294901760, %v9984_v40  ;;  %v22876_v40 = vand.u32 4294901760, %v18909_v44  ;;  %v9584_v44 = vadd.f32 %v19192_v27, %v19128_v2  ;;  %v22880_v2 = vld [vmem:[#allocation84_spill] sm:$0xff] }
 0x977   : > { %v19237_v42 = vand.u32 4294901760, %v9681_v28 }
 0x978   : > { %9964 = vmatmul.mubr.f32.gmra.mxu0 %v19211_v49 }
 0x979   : > { %10155 = vmatmul.mubr.f32.gmra.mxu1 %v19088_v50  ;;  %9969 = vmatprep.mubr.f32.mxu0 %v22804_v5  ;;  %v19244_v41 = vsub.f32 %v9681_v28, %v19237_v42 }
 0x97a   : > { %10160 = vmatprep.mubr.f32.mxu1 %v22804_v5 }
 0x97b   : > { %v11248_v10 = vand.u32 4294901760, %v19244_v41 }
 0x97c   : > { %9975 = vmatmul.mubr.f32.gmra.mxu0 %v19224_v57 }
 0x97d   : > { %10162 = vmatmul.mubr.f32.gmra.mxu1 %v19122_v15  ;;  %9980 = vmatprep.mubr.f32.mxu0 %v22804_v5  ;;  %v11249_v8 = vsub.f32 %v19244_v41, %v11248_v10 }
 0x97e   : > { %10167 = vmatprep.mubr.f32.mxu1 %v22804_v5 }
 0x97f   : > { %v11250_v52 = vand.u32 4294901760, %v11249_v8 }
 0x980   : > { %9986 = vmatmul.mubr.f32.gmra.mxu0 %v19232_v11 }
 0x981   : > { %10169 = vmatmul.mubr.f32.gmra.mxu1 %v19144_v23  ;;  %10261 = vmatprep.mubr.f32.mxu0 %v22804_v5 }
 0x982   : > { %10174 = vmatprep.mubr.f32.mxu1 %v22804_v5 }
 0x984   : > { %10264 = vmatmul.mubr.f32.vlgmr.msra.gmra.mxu0 %v18865_v26 }
 0x985   : > { %10176 = vmatmul.mubr.f32.gmra.mxu1 %v19164_v31  ;;  %10638 = vmatpush1.msra.mxu0 %v22876_v40 }
 0x986   : > { %10642 = vmatprep.subr.mxu0 %v22877_v35  ;;  %10181 = vmatprep.mubr.f32.mxu1 %v22804_v5 }
 0x987   : > { %10646 = vmatpush1.msra.mxu0 %v22878_v39  ;;  %10269 = vmatprep.mubr.f32.mxu0 %v22804_v5  ;;  %v22881_v39 = vld [vmem:[#allocation48_spill] sm:$0xff] }
 0x988   : > { %11002 = vmatprep.subr.mxu0 %v19237_v42  ;;  %10272 = vmatmul.mubr.f32.gmra.mxu0 %v18877_v18 }
 0x989   : > { %10183 = vmatmul.mubr.f32.gmra.mxu1 %v19181_v30  ;;  %10277 = vmatprep.mubr.f32.mxu0 %v22804_v5 }
 0x98a   : > { %10458 = vmatprep.mubr.f32.mxu1 %v22804_v5 }
 0x98c   : > { %10280 = vmatmul.mubr.f32.gmra.mxu0 %v18897_v20 }
 0x98d   : > { %10462 = vmatmul.mubr.f32.vlgmr.msra.gmra.mxu1 %v18874_v17  ;;  %10285 = vmatprep.mubr.f32.mxu0 %v22804_v5 }
 0x98e   : > { %10823 = vmatpush1.msra.mxu1 %v18899_v29  ;;  %10467 = vmatprep.mubr.f32.mxu1 %v22804_v5 }
 0x98f   : > { %10825 = vmatprep.subr.mxu1 %v18884_v34 }
 0x990   : > { %10827 = vmatpush1.msra.mxu1 %v18882_v37  ;;  %10288 = vmatmul.mubr.f32.gmra.mxu0 %v18914_v6  ;;  %v9240_v37 = vadd.f32 %v18971_v60, %v18981_v14  ;;  %v9679_v14 = vadd.f32 %v19220_v55, %v9584_v44  ;;  %v19333_v55 = vand.u32 4294901760, %v19190_v59  ;;  %v22883_v44 = vld [vmem:[#allocation51_spill] sm:$0xff] }
 0x991   : > { %11251 = vmatprep.subr.mxu1 %v11250_v52  ;;  %10471 = vmatmul.mubr.f32.gmra.mxu1 %v18894_v43 }
 0x992   : > { %10293 = vmatprep.mubr.f32.mxu0 %v22804_v5  ;;  %10476 = vmatprep.mubr.f32.mxu1 %v22804_v5  ;;  %v9352_v34 = vadd.f32 %v19090_v24, %v9240_v37  ;;  %v19325_v27 = vand.u32 4294901760, %v9679_v14  ;;  %v19347_v40 = vsub.f32 %v19190_v59, %v19333_v55  ;;  %v22882_v59 = vld [vmem:[#allocation125_spill] sm:$0xff] }
 0x994   : > { %10296 = vmatmul.mubr.f32.gmra.mxu0 %v18951_v56  ;;  %v9450_v29 = vadd.f32 %v19101_v48, %v9352_v34  ;;  %v22879_v48 = vld [vmem:[#allocation79_spill] sm:$0xff]  ;;  %v21324_v52 = vand.u32 4294901760, %v19347_v40 }
 0x995   : > { %10480 = vmatmul.mubr.f32.gmra.mxu1 %v18922_v63  ;;  %10301 = vmatprep.mubr.f32.mxu0 %v22804_v5 }
 0x996   : > { %10485 = vmatprep.mubr.f32.mxu1 %v22804_v5  ;;  %v9579_v60 = vadd.f32 %v19185_v22, %v9450_v29  ;;  %v11267_v29 = vsub.f32 %v19347_v40, %v21324_v52  ;;  %v22890_v52 = vld [vmem:[#allocation135_spill] sm:$0xff] }
 0x998   : > { %10304 = vmatmul.mubr.f32.gmra.mxu0 %v18987_v0  ;;  %v9674_v24 = vadd.f32 %v19207_v61, %v9579_v60  ;;  %v19337_v61 = vsub.f32 %v9679_v14, %v19325_v27 }
 0x999   : > { %10489 = vmatmul.mubr.f32.gmra.mxu1 %v18940_v21  ;;  %10309 = vmatprep.mubr.f32.mxu0 %v22804_v5 }
 0x99a   : > { %10494 = vmatprep.mubr.f32.mxu1 %v22804_v5  ;;  %v19328_v22 = vand.u32 4294901760, %v9674_v24  ;;  %v21325_v35 = vand.u32 4294901760, %v19337_v61 }
 0x99c   : > { %10312 = vmatmul.mubr.f32.gmra.mxu0 %v18999_v45  ;;  %v19341_v28 = vsub.f32 %v9674_v24, %v19328_v22  ;;  %v11255_v37 = vsub.f32 %v19337_v61, %v21325_v35  ;;  %v11268_v24 = vand.u32 4294901760, %v11267_v29  ;;  %v22887_v29 = vld [vmem:[#allocation49_spill] sm:$0xff] }
 0x99d   : > { %10498 = vmatmul.mubr.f32.gmra.mxu1 %v18977_v46  ;;  %10317 = vmatprep.mubr.f32.mxu0 %v22804_v5 }
 0x99e   : > { %10503 = vmatprep.mubr.f32.mxu1 %v22804_v5  ;;  %v21323_v8 = vand.u32 4294901760, %v19341_v28  ;;  %v11256_v60 = vand.u32 4294901760, %v11255_v37  ;;  %v22885_v37 = vld [vmem:[#allocation45_spill] sm:$0xff] }
 0x9a0   : > { %10320 = vmatmul.mubr.f32.gmra.mxu0 %v19031_v3  ;;  %v11261_v34 = vsub.f32 %v19341_v28, %v21323_v8  ;;  %v22884_v8 = vld [vmem:[#allocation131_spill] sm:$0xff] }
 0x9a1   : > { %10507 = vmatmul.mubr.f32.gmra.mxu1 %v19006_v25  ;;  %10325 = vmatprep.mubr.f32.mxu0 %v22804_v5 }
 0x9a2   : > { %10512 = vmatprep.mubr.f32.mxu1 %v22804_v5  ;;  %v11262_v14 = vand.u32 4294901760, %v11261_v34  ;;  %v22886_v34 = vld [vmem:[#allocation130_spill] sm:$0xff] }
 0x9a4   : > { %10328 = vmatmul.mubr.f32.gmra.mxu0 %v19044_v13 }
 0x9a5   : > { %10516 = vmatmul.mubr.f32.gmra.mxu1 %v19020_v51  ;;  %10333 = vmatprep.mubr.f32.mxu0 %v22804_v5 }
 0x9a6   : > { %10521 = vmatprep.mubr.f32.mxu1 %v22804_v5 }
 0x9a8   : > { %10336 = vmatmul.mubr.f32.gmra.mxu0 %v19074_v53 }
 0x9a9   : > { %10525 = vmatmul.mubr.f32.gmra.mxu1 %v19050_v58  ;;  %10341 = vmatprep.mubr.f32.mxu0 %v22804_v5 }
 0x9aa   : > { %10530 = vmatprep.mubr.f32.mxu1 %v22804_v5 }
 0x9ac   : > { %10344 = vmatmul.mubr.f32.gmra.mxu0 %v19099_v36 }
 0x9ad   : > { %10534 = vmatmul.mubr.f32.gmra.mxu1 %v19066_v4  ;;  %10349 = vmatprep.mubr.f32.mxu0 %v22804_v5 }
 0x9ae   : > { %10539 = vmatprep.mubr.f32.mxu1 %v22804_v5 }
 0x9b0   : > { %10352 = vmatmul.mubr.f32.gmra.mxu0 %v19113_v33 }
 0x9b1   : > { %10543 = vmatmul.mubr.f32.gmra.mxu1 %v19096_v19  ;;  %10357 = vmatprep.mubr.f32.mxu0 %v22804_v5 }
 0x9b2   : > { %10548 = vmatprep.mubr.f32.mxu1 %v22804_v5 }
 0x9b4   : > { %10360 = vmatmul.mubr.f32.gmra.mxu0 %v19142_v12 }
 0x9b5   : > { %10552 = vmatmul.mubr.f32.gmra.mxu1 %v19120_v16  ;;  %10365 = vmatprep.mubr.f32.mxu0 %v22804_v5 }
 0x9b6   : > { %10557 = vmatprep.mubr.f32.mxu1 %v22804_v5 }
 0x9b8   : > { %10368 = vmatmul.mubr.f32.gmra.mxu0 %v19162_v38 }
 0x9b9   : > { %10561 = vmatmul.mubr.f32.gmra.mxu1 %v22879_v48  ;;  %10373 = vmatprep.mubr.f32.mxu0 %v22804_v5 }
 0x9ba   : > { %10566 = vmatprep.mubr.f32.mxu1 %v22804_v5 }
 0x9bc   : > { %10376 = vmatmul.mubr.f32.gmra.mxu0 %v19179_v1 }
 0x9bd   : > { %10570 = vmatmul.mubr.f32.gmra.mxu1 %v22880_v2  ;;  %10381 = vmatprep.mubr.f32.mxu0 %v22804_v5  ;;  %v22892_v2 = vld [vmem:[#allocation64_spill] sm:$0xff] }
 0x9be   : > { %10575 = vmatprep.mubr.f32.mxu1 %v22804_v5 }
 0x9c0   : > { %10384 = vmatmul.mubr.f32.gmra.mxu0 %v19203_v32 }
 0x9c1   : > { %10579 = vmatmul.mubr.f32.gmra.mxu1 %v19176_v47  ;;  %10679 = vmatprep.mubr.f32.mxu0 %v22804_v5 }
 0x9c2   : > { %10584 = vmatprep.mubr.f32.mxu1 %v22804_v5 }
 0x9c4   : > { %10681 = vmatmul.mubr.f32.vlgmr.msra.gmra.mxu0 %v22881_v39 }
 0x9c5   : > { %10588 = vmatmul.mubr.f32.gmra.mxu1 %v19200_v62  ;;  %11004 = vmatpush1.msra.mxu0 %v19325_v27  ;;  %v22891_v62 = vld [vmem:[#allocation55_spill] sm:$0xff] }
 0x9c6   : > { %11006 = vmatprep.subr.mxu0 %v19328_v22  ;;  %10593 = vmatprep.mubr.f32.mxu1 %v22804_v5 }
 0x9c7   : > { %11008 = vmatpush1.msra.mxu0 %v19333_v55  ;;  %10686 = vmatprep.mubr.f32.mxu0 %v22804_v5 }
 0x9c8   : > { %11445 = vmatprep.subr.mxu0 %v19244_v41  ;;  %10688 = vmatmul.mubr.f32.gmra.mxu0 %v22882_v59 }
 0x9c9   : > { %10597 = vmatmul.mubr.f32.gmra.mxu1 %v19216_v54  ;;  %10693 = vmatprep.mubr.f32.mxu0 %v22804_v5 }
 0x9ca   : > { %10860 = vmatprep.mubr.f32.mxu1 %v22804_v5 }
 0x9cc   : > { %10695 = vmatmul.mubr.f32.gmra.mxu0 %v22883_v44 }
 0x9cd   : > { %10862 = vmatmul.mubr.f32.vlgmr.msra.gmra.mxu1 %v22881_v39  ;;  %10700 = vmatprep.mubr.f32.mxu0 %v22804_v5 }
 0x9ce   : > { %11257 = vmatpush1.msra.mxu1 %v11256_v60  ;;  %10867 = vmatprep.mubr.f32.mxu1 %v22804_v5  ;;  %v22888_v60 = vld [vmem:[#allocation36_spill] sm:$0xff] }
 0x9cf   : > { %11263 = vmatprep.subr.mxu1 %v11262_v14  ;;  %v22889_v14 = vld [vmem:[#allocation56_spill] sm:$0xff] }
 0x9d0   : > { %11269 = vmatpush1.msra.mxu1 %v11268_v24  ;;  %10702 = vmatmul.mubr.f32.gmra.mxu0 %v22884_v8 }
 0x9d1   : > { %11645 = vmatprep.subr.mxu1 %v19237_v42  ;;  %10869 = vmatmul.mubr.f32.gmra.mxu1 %v22882_v59 }
 0x9d2   : > { %10707 = vmatprep.mubr.f32.mxu0 %v22804_v5  ;;  %10874 = vmatprep.mubr.f32.mxu1 %v22804_v5 }
 0x9d4   : > { %10709 = vmatmul.mubr.f32.gmra.mxu0 %v22885_v37 }
 0x9d5   : > { %10876 = vmatmul.mubr.f32.gmra.mxu1 %v22883_v44  ;;  %10714 = vmatprep.mubr.f32.mxu0 %v22804_v5 }
 0x9d6   : > { %10881 = vmatprep.mubr.f32.mxu1 %v22804_v5 }
 0x9d8   : > { %10716 = vmatmul.mubr.f32.gmra.mxu0 %v22886_v34 }
 0x9d9   : > { %10883 = vmatmul.mubr.f32.gmra.mxu1 %v22884_v8  ;;  %10721 = vmatprep.mubr.f32.mxu0 %v22804_v5 }
 0x9da   : > { %10888 = vmatprep.mubr.f32.mxu1 %v22804_v5 }
 0x9dc   : > { %10723 = vmatmul.mubr.f32.gmra.mxu0 %v22887_v29 }
 0x9dd   : > { %10890 = vmatmul.mubr.f32.gmra.mxu1 %v22885_v37  ;;  %10728 = vmatprep.mubr.f32.mxu0 %v22804_v5 }
 0x9de   : > { %10895 = vmatprep.mubr.f32.mxu1 %v22804_v5 }
 0x9e0   : > { %10730 = vmatmul.mubr.f32.gmra.mxu0 %v22888_v60 }
 0x9e1   : > { %10897 = vmatmul.mubr.f32.gmra.mxu1 %v22886_v34  ;;  %10735 = vmatprep.mubr.f32.mxu0 %v22804_v5 }
 0x9e2   : > { %10902 = vmatprep.mubr.f32.mxu1 %v22804_v5 }
 0x9e4   : > { %10737 = vmatmul.mubr.f32.gmra.mxu0 %v22889_v14 }
 0x9e5   : > { %10904 = vmatmul.mubr.f32.gmra.mxu1 %v22887_v29  ;;  %10742 = vmatprep.mubr.f32.mxu0 %v22804_v5 }
 0x9e6   : > { %10909 = vmatprep.mubr.f32.mxu1 %v22804_v5 }
 0x9e8   : > { %10744 = vmatmul.mubr.f32.gmra.mxu0 %v19052_v7 }
 0x9e9   : > { %10911 = vmatmul.mubr.f32.gmra.mxu1 %v22888_v60  ;;  %10749 = vmatprep.mubr.f32.mxu0 %v22804_v5 }
 0x9ea   : > { %10916 = vmatprep.mubr.f32.mxu1 %v22804_v5 }
 0x9ec   : > { %10751 = vmatmul.mubr.f32.gmra.mxu0 %v19076_v9 }
 0x9ed   : > { %10918 = vmatmul.mubr.f32.gmra.mxu1 %v22889_v14  ;;  %10756 = vmatprep.mubr.f32.mxu0 %v22804_v5 }
 0x9ee   : > { %10923 = vmatprep.mubr.f32.mxu1 %v22804_v5 }
 0x9f0   : > { %10758 = vmatmul.mubr.f32.gmra.mxu0 %v19088_v50 }
 0x9f1   : > { %10925 = vmatmul.mubr.f32.gmra.mxu1 %v19052_v7  ;;  %10763 = vmatprep.mubr.f32.mxu0 %v22804_v5 }
 0x9f2   : > { %10930 = vmatprep.mubr.f32.mxu1 %v22804_v5 }
 0x9f4   : > { %10765 = vmatmul.mubr.f32.gmra.mxu0 %v19122_v15 }
 0x9f5   : > { %10932 = vmatmul.mubr.f32.gmra.mxu1 %v19076_v9  ;;  %10770 = vmatprep.mubr.f32.mxu0 %v22804_v5 }
 0x9f6   : > { %10937 = vmatprep.mubr.f32.mxu1 %v22804_v5 }
 0x9f8   : > { %10772 = vmatmul.mubr.f32.gmra.mxu0 %v19144_v23 }
 0x9f9   : > { %10939 = vmatmul.mubr.f32.gmra.mxu1 %v19088_v50  ;;  %10777 = vmatprep.mubr.f32.mxu0 %v22804_v5 }
 0x9fa   : > { %10944 = vmatprep.mubr.f32.mxu1 %v22804_v5 }
 0x9fc   : > { %10779 = vmatmul.mubr.f32.gmra.mxu0 %v19164_v31 }
 0x9fd   : > { %10946 = vmatmul.mubr.f32.gmra.mxu1 %v19122_v15  ;;  %10784 = vmatprep.mubr.f32.mxu0 %v22804_v5 }
 0x9fe   : > { %10951 = vmatprep.mubr.f32.mxu1 %v22804_v5 }
 0xa00   : > { %10786 = vmatmul.mubr.f32.gmra.mxu0 %v19181_v30 }
 0xa01   : > { %10953 = vmatmul.mubr.f32.gmra.mxu1 %v19144_v23  ;;  %11041 = vmatprep.mubr.f32.mxu0 %v22804_v5 }
 0xa02   : > { %10958 = vmatprep.mubr.f32.mxu1 %v22804_v5 }
 0xa04   : > { %v9822_v24 = vpop.f32.mrf.mxu0  ;;  %11047 = vmatmul.mubr.f32.vlgmr.msra.gmra.mxu0 %v22890_v52 }
 0xa05   : > { %10960 = vmatmul.mubr.f32.gmra.mxu1 %v19164_v31  ;;  %11448 = vmatpush1.msra.mxu0 %v19337_v61 }
 0xa06   : > { %11451 = vmatprep.subr.mxu0 %v19341_v28  ;;  %v9824_v35 = vpop.f32.mrf.mxu0  ;;  %10965 = vmatprep.mubr.f32.mxu1 %v22804_v5 }
 0xa07   : > { %11454 = vmatpush1.msra.mxu0 %v19347_v40  ;;  %11052 = vmatprep.mubr.f32.mxu0 %v22804_v5 }
 0xa08   : > { %11860 = vmatprep.subr.mxu0 %v11248_v10  ;;  %v9833_v54 = vpop.f32.mrf.mxu0  ;;  %11058 = vmatmul.mubr.f32.gmra.mxu0 %v22891_v62 }
 0xa09   : > { %10967 = vmatmul.mubr.f32.gmra.mxu1 %v19181_v30  ;;  %11063 = vmatprep.mubr.f32.mxu0 %v22804_v5 }
 0xa0a   : > { %v9835_v52 = vpop.f32.mrf.mxu0  ;;  %11302 = vmatprep.mubr.f32.mxu1 %v22804_v5 }
 0xa0c   : > { %v9844_v47 = vpop.f32.mrf.mxu0  ;;  %v10079_v32 = vpop.f32.mrf.mxu1  ;;  %11069 = vmatmul.mubr.f32.gmra.mxu0 %v22892_v2  ;;  %v22895_v2 = vld [vmem:[#allocation59_spill] sm:$0xff] }
 0xa0d   : > { %v19445_v1 = vadd.f32 %v10079_v32, %v9822_v24  ;;  %11304 = vmatmul.mubr.f32.vlgmr.msra.gmra.mxu1 %v22881_v39  ;;  %11074 = vmatprep.mubr.f32.mxu0 %v22804_v5 }
 0xa0e   : > { %11647 = vmatpush1.msra.mxu1 %v19325_v27  ;;  %v9846_v62 = vpop.f32.mrf.mxu0  ;;  %v10081_v41 = vpop.f32.mrf.mxu1  ;;  %11309 = vmatprep.mubr.f32.mxu1 %v22804_v5 }
 0xa0f   : > { %22893 = vst [vmem:[#allocation63_spill] sm:$0xff] %v19445_v1  ;;  %11649 = vmatprep.subr.mxu1 %v19328_v22  ;;  %v19452_v10 = vadd.f32 %v10081_v41, %v9824_v35 }
 0xa10   : > { %11651 = vmatpush1.msra.mxu1 %v19333_v55  ;;  %v9855_v48 = vpop.f32.mrf.mxu0  ;;  %11080 = vmatmul.mubr.f32.gmra.mxu0 %v22895_v2 }
 0xa11   : > { %22894 = vst [vmem:[#allocation106_spill] sm:$0xff] %v19452_v10  ;;  %12047 = vmatprep.subr.mxu1 %v19237_v42  ;;  %v10086_v32 = vpop.f32.mrf.mxu1  ;;  %11311 = vmatmul.mubr.f32.gmra.mxu1 %v22882_v59  ;;  %v22898_v10 = vld [vmem:[#allocation68_spill] sm:$0xff]  ;;  %v22901_v59 = vld [vmem:[#allocation129_spill] sm:$0xff] }
 0xa12   : > { %v19458_v24 = vadd.f32 %v10086_v32, %v9833_v54  ;;  %v9857_v1 = vpop.f32.mrf.mxu0  ;;  %11085 = vmatprep.mubr.f32.mxu0 %v22804_v5  ;;  %11316 = vmatprep.mubr.f32.mxu1 %v22804_v5 }
 0xa13   : > { %v10088_v39 = vpop.f32.mrf.mxu1 }
 0xa14   : > { %22896 = vst [vmem:[#allocation82_spill] sm:$0xff] %v19458_v24  ;;  %v19462_v35 = vadd.f32 %v10088_v39, %v9835_v52  ;;  %v9866_v41 = vpop.f32.mrf.mxu0  ;;  %11091 = vmatmul.mubr.f32.gmra.mxu0 %v22898_v10 }
 0xa15   : > { %v10093_v38 = vpop.f32.mrf.mxu1  ;;  %11318 = vmatmul.mubr.f32.gmra.mxu1 %v22883_v44  ;;  %11096 = vmatprep.mubr.f32.mxu0 %v22804_v5 }
 0xa16   : > { %22897 = vst [vmem:[#allocation108_spill] sm:$0xff] %v19462_v35  ;;  %v19467_v42 = vadd.f32 %v10093_v38, %v9844_v47  ;;  %v9868_v54 = vpop.f32.mrf.mxu0  ;;  %11323 = vmatprep.mubr.f32.mxu1 %v22804_v5  ;;  %v22904_v35 = vld [vmem:[#allocation133_spill] sm:$0xff] }
 0xa17   : > { %v10095_v2 = vpop.f32.mrf.mxu1 }
 0xa18   : > { %22899 = vst [vmem:[#allocation76_spill] sm:$0xff] %v19467_v42  ;;  %v19470_v32 = vadd.f32 %v10095_v2, %v9846_v62  ;;  %v9877_v24 = vpop.f32.mrf.mxu0  ;;  %11102 = vmatmul.mubr.f32.gmra.mxu0 %v22901_v59 }
 0xa19   : > { %v10100_v39 = vpop.f32.mrf.mxu1  ;;  %11325 = vmatmul.mubr.f32.gmra.mxu1 %v22884_v8  ;;  %11107 = vmatprep.mubr.f32.mxu0 %v22804_v5 }
 0xa1a   : > { %22900 = vst [vmem:[#allocation114_spill] sm:$0xff] %v19470_v32  ;;  %v19475_v52 = vadd.f32 %v10100_v39, %v9855_v48  ;;  %v9879_v10 = vpop.f32.mrf.mxu0  ;;  %11330 = vmatprep.mubr.f32.mxu1 %v22804_v5  ;;  %v22907_v32 = vld [vmem:[#allocation113_spill] sm:$0xff] }
 0xa1b   : > { %v10102_v47 = vpop.f32.mrf.mxu1 }
 0xa1c   : > { %22902 = vst [vmem:[#allocation90_spill] sm:$0xff] %v19475_v52  ;;  %v19478_v38 = vadd.f32 %v10102_v47, %v9857_v1  ;;  %v9888_v42 = vpop.f32.mrf.mxu0  ;;  %11113 = vmatmul.mubr.f32.gmra.mxu0 %v22904_v35 }
 0xa1d   : > { %v10107_v62 = vpop.f32.mrf.mxu1  ;;  %11332 = vmatmul.mubr.f32.gmra.mxu1 %v22885_v37  ;;  %11118 = vmatprep.mubr.f32.mxu0 %v22804_v5 }
 0xa1e   : > { %22903 = vst [vmem:[#allocation116_spill] sm:$0xff] %v19478_v38  ;;  %v19483_v59 = vadd.f32 %v10107_v62, %v9866_v41  ;;  %v9890_v2 = vpop.f32.mrf.mxu0  ;;  %11337 = vmatprep.mubr.f32.mxu1 %v22804_v5  ;;  %v22910_v38 = vld [vmem:[#allocation74_spill] sm:$0xff] }
 0xa1f   : > { %v10109_v48 = vpop.f32.mrf.mxu1 }
 0xa20   : > { %22905 = vst [vmem:[#allocation96_spill] sm:$0xff] %v19483_v59  ;;  %v19486_v39 = vadd.f32 %v10109_v48, %v9868_v54  ;;  %v9899_v52 = vpop.f32.mrf.mxu0  ;;  %11124 = vmatmul.mubr.f32.gmra.mxu0 %v22907_v32 }
 0xa21   : > { %v10114_v1 = vpop.f32.mrf.mxu1  ;;  %11339 = vmatmul.mubr.f32.gmra.mxu1 %v22886_v34  ;;  %11129 = vmatprep.mubr.f32.mxu0 %v22804_v5 }
 0xa22   : > { %22906 = vst [vmem:[#allocation124_spill] sm:$0xff] %v19486_v39  ;;  %v19491_v35 = vadd.f32 %v10114_v1, %v9877_v24  ;;  %v9901_v47 = vpop.f32.mrf.mxu0  ;;  %11344 = vmatprep.mubr.f32.mxu1 %v22804_v5  ;;  %v22913_v39 = vld [vmem:[#allocation134_spill] sm:$0xff] }
 0xa23   : > { %v10116_v41 = vpop.f32.mrf.mxu1 }
 0xa24   : > { %22908 = vst [vmem:[#allocation127_spill] sm:$0xff] %v19491_v35  ;;  %v19494_v62 = vadd.f32 %v10116_v41, %v9879_v10  ;;  %v9910_v59 = vpop.f32.mrf.mxu0  ;;  %11135 = vmatmul.mubr.f32.gmra.mxu0 %v22910_v38 }
 0xa25   : > { %v10121_v54 = vpop.f32.mrf.mxu1  ;;  %11346 = vmatmul.mubr.f32.gmra.mxu1 %v22887_v29  ;;  %11140 = vmatprep.mubr.f32.mxu0 %v22804_v5 }
 0xa26   : > { %22909 = vst [vmem:[#allocation100_spill] sm:$0xff] %v19494_v62  ;;  %v19499_v32 = vadd.f32 %v10121_v54, %v9888_v42  ;;  %v9912_v48 = vpop.f32.mrf.mxu0  ;;  %11351 = vmatprep.mubr.f32.mxu1 %v22804_v5  ;;  %v22916_v62 = vld [vmem:[#allocation66_spill] sm:$0xff] }
 0xa27   : > { %v10123_v24 = vpop.f32.mrf.mxu1 }
 0xa28   : > { %22911 = vst [vmem:[#allocation128_spill] sm:$0xff] %v19499_v32  ;;  %v19502_v1 = vadd.f32 %v10123_v24, %v9890_v2  ;;  %v9921_v35 = vpop.f32.mrf.mxu0  ;;  %11146 = vmatmul.mubr.f32.gmra.mxu0 %v22913_v39 }
 0xa29   : > { %v10128_v10 = vpop.f32.mrf.mxu1  ;;  %11353 = vmatmul.mubr.f32.gmra.mxu1 %v22888_v60  ;;  %11151 = vmatprep.mubr.f32.mxu0 %v22804_v5 }
 0xa2a   : > { %22912 = vst [vmem:[#allocation104_spill] sm:$0xff] %v19502_v1  ;;  %v19507_v38 = vadd.f32 %v10128_v10, %v9899_v52  ;;  %v9923_v41 = vpop.f32.mrf.mxu0  ;;  %11358 = vmatprep.mubr.f32.mxu1 %v22804_v5  ;;  %v22918_v1 = vld [vmem:[#allocation40_spill] sm:$0xff] }
 0xa2b   : > { %v10130_v42 = vpop.f32.mrf.mxu1 }
 0xa2c   : > { %22914 = vst [vmem:[#allocation111_spill] sm:$0xff] %v19507_v38  ;;  %v19510_v54 = vadd.f32 %v10130_v42, %v9901_v47  ;;  %v9932_v32 = vpop.f32.mrf.mxu0  ;;  %11157 = vmatmul.mubr.f32.gmra.mxu0 %v22916_v62 }
 0xa2d   : > { %v10135_v2 = vpop.f32.mrf.mxu1  ;;  %11360 = vmatmul.mubr.f32.gmra.mxu1 %v22889_v14  ;;  %11162 = vmatprep.mubr.f32.mxu0 %v22804_v5 }
 0xa2e   : > { %22915 = vst [vmem:[#allocation112_spill] sm:$0xff] %v19510_v54  ;;  %v19515_v39 = vadd.f32 %v10135_v2, %v9910_v59  ;;  %v9934_v24 = vpop.f32.mrf.mxu0  ;;  %11365 = vmatprep.mubr.f32.mxu1 %v22804_v5  ;;  %v22921_v54 = vld [vmem:[#allocation60_spill] sm:$0xff] }
 0xa2f   : > { %v10137_v52 = vpop.f32.mrf.mxu1 }
 0xa30   : > { %22917 = vst [vmem:[#allocation107_spill] sm:$0xff] %v19515_v39  ;;  %v19518_v10 = vadd.f32 %v10137_v52, %v9912_v48  ;;  %v9943_v38 = vpop.f32.mrf.mxu0  ;;  %11168 = vmatmul.mubr.f32.gmra.mxu0 %v22918_v1 }
 0xa31   : > { %v10142_v47 = vpop.f32.mrf.mxu1  ;;  %11367 = vmatmul.mubr.f32.gmra.mxu1 %v19052_v7  ;;  %11173 = vmatprep.mubr.f32.mxu0 %v22804_v5 }
 0xa32   : > { %v19523_v62 = vadd.f32 %v10142_v47, %v9921_v35  ;;  %v9945_v42 = vpop.f32.mrf.mxu0  ;;  %11372 = vmatprep.mubr.f32.mxu1 %v22804_v5 }
 0xa33   : > { %v10144_v59 = vpop.f32.mrf.mxu1 }
 0xa34   : > { %22919 = vst [vmem:[#allocation144_spill] sm:$0xff] %v19523_v62  ;;  %v19526_v2 = vadd.f32 %v10144_v59, %v9923_v41  ;;  %v9954_v39 = vpop.f32.mrf.mxu0  ;;  %11179 = vmatmul.mubr.f32.gmra.mxu0 %v22921_v54 }
 0xa35   : > { %v10149_v48 = vpop.f32.mrf.mxu1  ;;  %11374 = vmatmul.mubr.f32.gmra.mxu1 %v19076_v9  ;;  %11184 = vmatprep.mubr.f32.mxu0 %v22804_v5 }
 0xa36   : > { %22920 = vst [vmem:[#allocation146_spill] sm:$0xff] %v19526_v2  ;;  %v19531_v1 = vadd.f32 %v10149_v48, %v9932_v32  ;;  %v9956_v52 = vpop.f32.mrf.mxu0  ;;  %11379 = vmatprep.mubr.f32.mxu1 %v22804_v5 }
 0xa37   : > { %v10151_v35 = vpop.f32.mrf.mxu1 }
 0xa38   : > { %22922 = vst [vmem:[#allocation145_spill] sm:$0xff] %v19531_v1  ;;  %v19534_v47 = vadd.f32 %v10151_v35, %v9934_v24  ;;  %v9965_v62 = vpop.f32.mrf.mxu0  ;;  %11190 = vmatmul.mubr.f32.gmra.mxu0 %v19211_v49 }
 0xa39   : > { %v10156_v41 = vpop.f32.mrf.mxu1  ;;  %11381 = vmatmul.mubr.f32.gmra.mxu1 %v19088_v50  ;;  %11195 = vmatprep.mubr.f32.mxu0 %v22804_v5 }
 0xa3a   : > { %22923 = vst [vmem:[#allocation143_spill] sm:$0xff] %v19534_v47  ;;  %v19539_v54 = vadd.f32 %v10156_v41, %v9943_v38  ;;  %v9967_v59 = vpop.f32.mrf.mxu0  ;;  %11386 = vmatprep.mubr.f32.mxu1 %v22804_v5 }
 0xa3b   : > { %v10158_v32 = vpop.f32.mrf.mxu1 }
 0xa3c   : > { %22924 = vst [vmem:[#allocation142_spill] sm:$0xff] %v19539_v54  ;;  %v19542_v48 = vadd.f32 %v10158_v32, %v9945_v42  ;;  %v9976_v1 = vpop.f32.mrf.mxu0  ;;  %11201 = vmatmul.mubr.f32.gmra.mxu0 %v19224_v57 }
 0xa3d   : > { %v10163_v24 = vpop.f32.mrf.mxu1  ;;  %11388 = vmatmul.mubr.f32.gmra.mxu1 %v19122_v15  ;;  %11206 = vmatprep.mubr.f32.mxu0 %v22804_v5 }
 0xa3e   : > { %22925 = vst [vmem:[#allocation50_spill] sm:$0xff] %v19542_v48  ;;  %v19547_v49 = vadd.f32 %v10163_v24, %v9954_v39  ;;  %v9978_v35 = vpop.f32.mrf.mxu0  ;;  %11393 = vmatprep.mubr.f32.mxu1 %v22804_v5 }
 0xa3f   : > { %v10165_v38 = vpop.f32.mrf.mxu1 }
 0xa40   : > { %22926 = vst [vmem:[#allocation41_spill] sm:$0xff] %v19547_v49  ;;  %v19550_v41 = vadd.f32 %v10165_v38, %v9956_v52  ;;  %v9987_v54 = vpop.f32.mrf.mxu0  ;;  %11212 = vmatmul.mubr.f32.gmra.mxu0 %v19232_v11  ;;  %v22930_v11 = vand.u32 4294901760, %v19337_v61 }
 0xa41   : > { %v10170_v42 = vpop.f32.mrf.mxu1  ;;  %11395 = vmatmul.mubr.f32.gmra.mxu1 %v19144_v23  ;;  %11487 = vmatprep.mubr.f32.mxu0 %v22804_v5 }
 0xa42   : > { %22927 = vst [vmem:[#allocation44_spill] sm:$0xff] %v19550_v41  ;;  %v19555_v57 = vadd.f32 %v10170_v42, %v9965_v62  ;;  %v9989_v32 = vpop.f32.mrf.mxu0  ;;  %11400 = vmatprep.mubr.f32.mxu1 %v22804_v5  ;;  %v22932_v62 = vand.u32 4294901760, %v19341_v28 }
 0xa43   : > { %v10172_v39 = vpop.f32.mrf.mxu1 }
 0xa44   : > { %22928 = vst [vmem:[#allocation65_spill] sm:$0xff] %v19555_v57  ;;  %v19558_v24 = vadd.f32 %v10172_v39, %v9967_v59  ;;  %v19560_v49 = vpop.f32.mrf.mxu0  ;;  %11490 = vmatmul.mubr.f32.vlgmr.msra.gmra.mxu0 %v18865_v26  ;;  %v22933_v39 = vand.u32 4294901760, %v19347_v40 }
 0xa45   : > { %v10177_v52 = vpop.f32.mrf.mxu1  ;;  %11402 = vmatmul.mubr.f32.gmra.mxu1 %v19164_v31  ;;  %11864 = vmatpush1.msra.mxu0 %v22930_v11 }
 0xa46   : > { %22929 = vst [vmem:[#allocation54_spill] sm:$0xff] %v19558_v24  ;;  %v19566_v38 = vadd.f32 %v10177_v52, %v9976_v1  ;;  %11868 = vmatprep.subr.mxu0 %v22932_v62  ;;  %v19570_v42 = vpop.f32.mrf.mxu0  ;;  %11407 = vmatprep.mubr.f32.mxu1 %v22804_v5 }
 0xa47   : > { %v10179_v59 = vpop.f32.mrf.mxu1  ;;  %11872 = vmatpush1.msra.mxu0 %v22933_v39  ;;  %11495 = vmatprep.mubr.f32.mxu0 %v22804_v5 }
 0xa48   : > { %22931 = vst [vmem:[#allocation69_spill] sm:$0xff] %v19566_v38  ;;  %v19576_v26 = vadd.f32 %v10179_v59, %v9978_v35  ;;  %v19578_v24 = vpop.f32.mrf.mxu0  ;;  %11498 = vmatmul.mubr.f32.gmra.mxu0 %v18877_v18 }
 0xa49   : > { %v10184_v61 = vpop.f32.mrf.mxu1  ;;  %11409 = vmatmul.mubr.f32.gmra.mxu1 %v19181_v30  ;;  %11503 = vmatprep.mubr.f32.mxu0 %v22804_v5 }
 0xa4a   : > { %22934 = vst [vmem:[#allocation62_spill] sm:$0xff] %v19576_v26  ;;  %v19583_v28 = vadd.f32 %v10184_v61, %v9987_v54  ;;  %v19585_v1 = vpop.f32.mrf.mxu0  ;;  %11684 = vmatprep.mubr.f32.mxu1 %v22804_v5 }
 0xa4b   : > { %v10186_v40 = vpop.f32.mrf.mxu1 }
 0xa4c   : > { %22935 = vst [vmem:[#allocation121_spill] sm:$0xff] %v19583_v28  ;;  %v19588_v52 = vadd.f32 %v10186_v40, %v9989_v32  ;;  %v19590_v35 = vpop.f32.mrf.mxu0  ;;  %11506 = vmatmul.mubr.f32.gmra.mxu0 %v18897_v20 }
 0xa4d   : > { %v19593_v11 = vpop.f32.mrf.mxu1  ;;  %11688 = vmatmul.mubr.f32.vlgmr.msra.gmra.mxu1 %v18874_v17  ;;  %11511 = vmatprep.mubr.f32.mxu0 %v22804_v5 }
 0xa4e   : > { %22936 = vst [vmem:[#allocation71_spill] sm:$0xff] %v19588_v52  ;;  %12049 = vmatpush1.msra.mxu1 %v19325_v27  ;;  %v19598_v18 = vpop.f32.mrf.mxu0  ;;  %11693 = vmatprep.mubr.f32.mxu1 %v22804_v5 }
 0xa4f   : > { %12051 = vmatprep.subr.mxu1 %v19328_v22  ;;  %v19602_v54 = vpop.f32.mrf.mxu1 }
 0xa50   : > { %12053 = vmatpush1.msra.mxu1 %v19333_v55  ;;  %v19605_v32 = vpop.f32.mrf.mxu0  ;;  %11514 = vmatmul.mubr.f32.gmra.mxu0 %v18914_v6 }
 0xa51   : > { %v19608_v20 = vpop.f32.mrf.mxu1  ;;  %11697 = vmatmul.mubr.f32.gmra.mxu1 %v18894_v43  ;;  %11519 = vmatprep.mubr.f32.mxu0 %v22804_v5 }
 0xa52   : > { %v19612_v17 = vpop.f32.mrf.mxu0  ;;  %11702 = vmatprep.mubr.f32.mxu1 %v22804_v5 }
 0xa53   : > { %v19615_v27 = vpop.f32.mrf.mxu1 }
 0xa54   : > { %v19617_v22 = vpop.f32.mrf.mxu0  ;;  %11522 = vmatmul.mubr.f32.gmra.mxu0 %v18951_v56 }
 0xa55   : > { %v19620_v55 = vpop.f32.mrf.mxu1  ;;  %11706 = vmatmul.mubr.f32.gmra.mxu1 %v18922_v63  ;;  %11527 = vmatprep.mubr.f32.mxu0 %v22804_v5 }
 0xa56   : > { %v19624_v6 = vpop.f32.mrf.mxu0  ;;  %11711 = vmatprep.mubr.f32.mxu1 %v22804_v5 }
 0xa57   : > { %v19627_v43 = vpop.f32.mrf.mxu1 }
 0xa58   : > { %v19629_v62 = vpop.f32.mrf.mxu0  ;;  %11530 = vmatmul.mubr.f32.gmra.mxu0 %v18987_v0 }
 0xa59   : > { %v19632_v59 = vpop.f32.mrf.mxu1  ;;  %11715 = vmatmul.mubr.f32.gmra.mxu1 %v18940_v21  ;;  %11535 = vmatprep.mubr.f32.mxu0 %v22804_v5 }
 0xa5a   : > { %v19636_v56 = vpop.f32.mrf.mxu0  ;;  %11720 = vmatprep.mubr.f32.mxu1 %v22804_v5 }
 0xa5b   : > { %v19639_v63 = vpop.f32.mrf.mxu1 }
 0xa5c   : > { %v19641_v39 = vpop.f32.mrf.mxu0  ;;  %11538 = vmatmul.mubr.f32.gmra.mxu0 %v18999_v45 }
 0xa5d   : > { %v19644_v61 = vpop.f32.mrf.mxu1  ;;  %11724 = vmatmul.mubr.f32.gmra.mxu1 %v18977_v46  ;;  %11543 = vmatprep.mubr.f32.mxu0 %v22804_v5 }
 0xa5e   : > { %v19648_v0 = vpop.f32.mrf.mxu0  ;;  %11729 = vmatprep.mubr.f32.mxu1 %v22804_v5 }
 0xa5f   : > { %v19651_v21 = vpop.f32.mrf.mxu1 }
 0xa60   : > { %v19653_v40 = vpop.f32.mrf.mxu0  ;;  %11546 = vmatmul.mubr.f32.gmra.mxu0 %v19031_v3 }
 0xa61   : > { %v19656_v52 = vpop.f32.mrf.mxu1  ;;  %11733 = vmatmul.mubr.f32.gmra.mxu1 %v19006_v25  ;;  %11551 = vmatprep.mubr.f32.mxu0 %v22804_v5 }
 0xa62   : > { %v19660_v45 = vpop.f32.mrf.mxu0  ;;  %11738 = vmatprep.mubr.f32.mxu1 %v22804_v5 }
 0xa63   : > { %v19663_v46 = vpop.f32.mrf.mxu1 }
 0xa64   : > { %v19665_v28 = vpop.f32.mrf.mxu0  ;;  %11554 = vmatmul.mubr.f32.gmra.mxu0 %v19044_v13 }
 0xa65   : > { %v19668_v26 = vpop.f32.mrf.mxu1  ;;  %11742 = vmatmul.mubr.f32.gmra.mxu1 %v19020_v51  ;;  %11559 = vmatprep.mubr.f32.mxu0 %v22804_v5 }
 0xa66   : > { %v19672_v3 = vpop.f32.mrf.mxu0  ;;  %11747 = vmatprep.mubr.f32.mxu1 %v22804_v5 }
 0xa67   : > { %v19675_v25 = vpop.f32.mrf.mxu1 }
 0xa68   : > { %v19677_v30 = vpop.f32.mrf.mxu0  ;;  %11562 = vmatmul.mubr.f32.gmra.mxu0 %v19074_v53 }
 0xa69   : > { %v19680_v38 = vpop.f32.mrf.mxu1  ;;  %11751 = vmatmul.mubr.f32.gmra.mxu1 %v19050_v58  ;;  %11567 = vmatprep.mubr.f32.mxu0 %v22804_v5 }
 0xa6a   : > { %v19684_v13 = vpop.f32.mrf.mxu0  ;;  %11756 = vmatprep.mubr.f32.mxu1 %v22804_v5 }
 0xa6b   : > { %22937 = vst [vmem:[#allocation38_spill] sm:$0xff] %v19684_v13  ;;  %v19687_v51 = vpop.f32.mrf.mxu1 }
 0xa6c   : > { %v19689_v31 = vpop.f32.mrf.mxu0  ;;  %11570 = vmatmul.mubr.f32.gmra.mxu0 %v19099_v36 }
 0xa6d   : > { %22938 = vst [vmem:[#allocation109_spill] sm:$0xff] %v19689_v31  ;;  %v19692_v57 = vpop.f32.mrf.mxu1  ;;  %11760 = vmatmul.mubr.f32.gmra.mxu1 %v19066_v4  ;;  %11575 = vmatprep.mubr.f32.mxu0 %v22804_v5 }
 0xa6e   : > { %v19696_v53 = vpop.f32.mrf.mxu0  ;;  %11765 = vmatprep.mubr.f32.mxu1 %v22804_v5 }
 0xa6f   : > { %22939 = vst [vmem:[#allocation37_spill] sm:$0xff] %v19696_v53  ;;  %v19699_v58 = vpop.f32.mrf.mxu1 }
 0xa70   : > { %v19701_v41 = vpop.f32.mrf.mxu0  ;;  %11578 = vmatmul.mubr.f32.gmra.mxu0 %v19113_v33 }
 0xa71   : > { %22940 = vst [vmem:[#allocation42_spill] sm:$0xff] %v19701_v41  ;;  %v19704_v23 = vpop.f32.mrf.mxu1  ;;  %11769 = vmatmul.mubr.f32.gmra.mxu1 %v19096_v19  ;;  %11583 = vmatprep.mubr.f32.mxu0 %v22804_v5  ;;  %v22949_v41 = vld [vmem:[#allocation126_spill] sm:$0xff] }
 0xa72   : > { %22941 = vst [vmem:[#allocation27_spill] sm:$0xff] %v19704_v23  ;;  %v19708_v36 = vpop.f32.mrf.mxu0  ;;  %11774 = vmatprep.mubr.f32.mxu1 %v22804_v5 }
 0xa73   : > { %22942 = vst [vmem:[#allocation21_spill] sm:$0xff] %v19708_v36  ;;  %v19711_v4 = vpop.f32.mrf.mxu1 }
 0xa74   : > { %22943 = vst [vmem:[#allocation24_spill] sm:$0xff] %v19711_v4  ;;  %v19713_v48 = vpop.f32.mrf.mxu0  ;;  %11586 = vmatmul.mubr.f32.gmra.mxu0 %v19142_v12  ;;  %v22973_v4 = vld [vmem:[#allocation102_spill] sm:$0xff] }
 0xa75   : > { %22944 = vst [vmem:[#allocation39_spill] sm:$0xff] %v19713_v48  ;;  %v19716_v15 = vpop.f32.mrf.mxu1  ;;  %11778 = vmatmul.mubr.f32.gmra.mxu1 %v19120_v16  ;;  %11591 = vmatprep.mubr.f32.mxu0 %v22804_v5  ;;  %v22951_v48 = vld [vmem:[#allocation79_spill] sm:$0xff] }
 0xa76   : > { %22945 = vst [vmem:[#allocation35_spill] sm:$0xff] %v19716_v15  ;;  %v19720_v33 = vpop.f32.mrf.mxu0  ;;  %11783 = vmatprep.mubr.f32.mxu1 %v22804_v5  ;;  %v22955_v15 = vld [vmem:[#allocation72_spill] sm:$0xff] }
 0xa77   : > { %22946 = vst [vmem:[#allocation31_spill] sm:$0xff] %v19720_v33  ;;  %v19723_v19 = vpop.f32.mrf.mxu1 }
 0xa78   : > { %22947 = vst [vmem:[#allocation32_spill] sm:$0xff] %v19723_v19  ;;  %v19725_v36 = vpop.f32.mrf.mxu0  ;;  %11594 = vmatmul.mubr.f32.gmra.mxu0 %v22949_v41 }
 0xa79   : > { %22948 = vst [vmem:[#allocation30_spill] sm:$0xff] %v19725_v36  ;;  %v19728_v53 = vpop.f32.mrf.mxu1  ;;  %11787 = vmatmul.mubr.f32.gmra.mxu1 %v22951_v48  ;;  %11599 = vmatprep.mubr.f32.mxu0 %v22804_v5  ;;  %v22957_v36 = vld [vmem:[#allocation84_spill] sm:$0xff] }
 0xa7a   : > { %22950 = vst [vmem:[#allocation29_spill] sm:$0xff] %v19728_v53  ;;  %v19732_v12 = vpop.f32.mrf.mxu0  ;;  %11792 = vmatprep.mubr.f32.mxu1 %v22804_v5  ;;  %v22961_v53 = vld [vmem:[#allocation61_spill] sm:$0xff] }
 0xa7b   : > { %22952 = vst [vmem:[#allocation23_spill] sm:$0xff] %v19732_v12  ;;  %v19735_v16 = vpop.f32.mrf.mxu1 }
 0xa7c   : > { %22953 = vst [vmem:[#allocation34_spill] sm:$0xff] %v19735_v16  ;;  %v19737_v33 = vpop.f32.mrf.mxu0  ;;  %11602 = vmatmul.mubr.f32.gmra.mxu0 %v22955_v15 }
 0xa7d   : > { %22954 = vst [vmem:[#allocation103_spill] sm:$0xff] %v19737_v33  ;;  %v19740_v19 = vpop.f32.mrf.mxu1  ;;  %11796 = vmatmul.mubr.f32.gmra.mxu1 %v22957_v36  ;;  %11607 = vmatprep.mubr.f32.mxu0 %v22804_v5  ;;  %v22963_v33 = vld [vmem:[#allocation92_spill] sm:$0xff] }
 0xa7e   : > { %22956 = vst [vmem:[#allocation95_spill] sm:$0xff] %v19740_v19  ;;  %v19744_v41 = vpop.f32.mrf.mxu0  ;;  %11801 = vmatprep.mubr.f32.mxu1 %v22804_v5  ;;  %v22966_v19 = vld [vmem:[#allocation48_spill] sm:$0xff] }
 0xa7f   : > { %22958 = vst [vmem:[#allocation118_spill] sm:$0xff] %v19744_v41  ;;  %v19747_v48 = vpop.f32.mrf.mxu1 }
 0xa80   : > { %22959 = vst [vmem:[#allocation77_spill] sm:$0xff] %v19747_v48  ;;  %v19749_v12 = vpop.f32.mrf.mxu0  ;;  %11610 = vmatmul.mubr.f32.gmra.mxu0 %v22961_v53 }
 0xa81   : > { %22960 = vst [vmem:[#allocation93_spill] sm:$0xff] %v19749_v12  ;;  %v19752_v16 = vpop.f32.mrf.mxu1  ;;  %11805 = vmatmul.mubr.f32.gmra.mxu1 %v22963_v33  ;;  %11905 = vmatprep.mubr.f32.mxu0 %v22804_v5  ;;  %v22968_v12 = vld [vmem:[#allocation83_spill] sm:$0xff] }
 0xa82   : > { %22962 = vst [vmem:[#allocation91_spill] sm:$0xff] %v19752_v16  ;;  %v19756_v15 = vpop.f32.mrf.mxu0  ;;  %11810 = vmatprep.mubr.f32.mxu1 %v22804_v5 }
 0xa83   : > { %22964 = vst [vmem:[#allocation25_spill] sm:$0xff] %v19756_v15  ;;  %v19759_v36 = vpop.f32.mrf.mxu1  ;;  %v22970_v15 = vld [vmem:[#allocation63_spill] sm:$0xff] }
 0xa84   : > { %22965 = vst [vmem:[#allocation78_spill] sm:$0xff] %v19759_v36  ;;  %v10682_v41 = vpop.f32.mrf.mxu0  ;;  %11907 = vmatmul.mubr.f32.vlgmr.msra.gmra.mxu0 %v22966_v19  ;;  %v10266_v16 = vadd.f32 %v19560_v49, %v22970_v15  ;;  %v22971_v36 = vld [vmem:[#allocation125_spill] sm:$0xff]  ;;  %v22976_v49 = vld [vmem:[#allocation82_spill] sm:$0xff] }
 0xa85   : > { %v19762_v48 = vpop.f32.mrf.mxu1  ;;  %11814 = vmatmul.mubr.f32.gmra.mxu1 %v22968_v12  ;;  %11912 = vmatprep.mubr.f32.mxu0 %v22804_v5  ;;  %v22974_v12 = vld [vmem:[#allocation106_spill] sm:$0xff]  ;;  %v10274_v15 = vadd.f32 %v19578_v24, %v22976_v49 }
 0xa86   : > { %22967 = vst [vmem:[#allocation46_spill] sm:$0xff] %v19762_v48  ;;  %v10684_v53 = vpop.f32.mrf.mxu0  ;;  %11819 = vmatprep.mubr.f32.mxu1 %v22804_v5  ;;  %v10268_v48 = vadd.f32 %v19570_v42, %v22974_v12  ;;  %v10464_v31 = vadd.f32 %v19593_v11, %v10266_v16  ;;  %v22977_v42 = vld [vmem:[#allocation108_spill] sm:$0xff] }
 0xa87   : > { %v19767_v33 = vpop.f32.mrf.mxu1  ;;  %v10276_v11 = vadd.f32 %v19585_v1, %v22977_v42  ;;  %v10473_v16 = vadd.f32 %v19608_v20, %v10274_v15 }
 0xa88   : > { %22969 = vst [vmem:[#allocation101_spill] sm:$0xff] %v19767_v33  ;;  %v10689_v47 = vpop.f32.mrf.mxu0  ;;  %11914 = vmatmul.mubr.f32.gmra.mxu0 %v22971_v36  ;;  %v10683_v13 = vadd.f32 %v10682_v41, %v10464_v31  ;;  %v22978_v31 = vld [vmem:[#allocation76_spill] sm:$0xff] }
 0xa89   : > { %v19772_v50 = vpop.f32.mrf.mxu1  ;;  %11823 = vmatmul.mubr.f32.gmra.mxu1 %v22973_v4  ;;  %11919 = vmatprep.mubr.f32.mxu0 %v22804_v5  ;;  %v10475_v41 = vadd.f32 %v19615_v27, %v10276_v11 }
 0xa8a   : > { %22972 = vst [vmem:[#allocation98_spill] sm:$0xff] %v19772_v50  ;;  %v10691_v23 = vpop.f32.mrf.mxu0  ;;  %12086 = vmatprep.mubr.f32.mxu1 %v22804_v5  ;;  %v10466_v50 = vadd.f32 %v19602_v54, %v10268_v48  ;;  %v10282_v54 = vadd.f32 %v19590_v35, %v22978_v31  ;;  %v10690_v48 = vadd.f32 %v10689_v47, %v10473_v16 }
 0xa8b   : > { %v19781_v33 = vpop.f32.mrf.mxu1  ;;  %v10692_v20 = vadd.f32 %v10691_v23, %v10475_v41 }
 0xa8c   : > { %22975 = vst [vmem:[#allocation85_spill] sm:$0xff] %v19781_v33  ;;  %v10696_v4 = vpop.f32.mrf.mxu0  ;;  %11921 = vmatmul.mubr.f32.gmra.mxu0 %v22883_v44  ;;  %v10685_v12 = vadd.f32 %v10684_v53, %v10466_v50  ;;  %v10482_v47 = vadd.f32 %v19620_v55, %v10282_v54 }
 0xa8d   : > { %v10863_v2 = vpop.f32.mrf.mxu1  ;;  %12088 = vmatmul.mubr.f32.vlgmr.msra.gmra.mxu1 %v22966_v19  ;;  %11926 = vmatprep.mubr.f32.mxu0 %v22804_v5 }
 0xa8e   : > { %v10864_v33 = vadd.f32 %v10863_v2, %v10683_v13  ;;  %v10698_v9 = vpop.f32.mrf.mxu0  ;;  %12093 = vmatprep.mubr.f32.mxu1 %v22804_v5  ;;  %v22979_v2 = vld [vmem:[#allocation114_spill] sm:$0xff]  ;;  %v10697_v15 = vadd.f32 %v10696_v4, %v10482_v47 }
 0xa8f   : > { %v10865_v24 = vpop.f32.mrf.mxu1  ;;  %v10284_v35 = vadd.f32 %v19598_v18, %v22979_v2  ;;  %v22981_v18 = vld [vmem:[#allocation116_spill] sm:$0xff]  ;;  %v22984_v2 = vld [vmem:[#allocation127_spill] sm:$0xff] }
 0xa90   : > { %12199 = vst [vmem:[%s19796_s13] sm:$0xff] %v10864_v33  ;;  %v10866_v1 = vadd.f32 %v10865_v24, %v10685_v12  ;;  %v10703_v19 = vpop.f32.mrf.mxu0  ;;  %11928 = vmatmul.mubr.f32.gmra.mxu0 %v22884_v8  ;;  %v22980_v33 = vld [vmem:[#allocation90_spill] sm:$0xff]  ;;  %v10292_v55 = vadd.f32 %v19612_v17, %v22981_v18  ;;  %v22982_v24 = vld [vmem:[#allocation96_spill] sm:$0xff] }
 0xa91   : > { %v10870_v50 = vpop.f32.mrf.mxu1  ;;  %12095 = vmatmul.mubr.f32.gmra.mxu1 %v22971_v36  ;;  %11933 = vmatprep.mubr.f32.mxu0 %v22804_v5  ;;  %v10290_v49 = vadd.f32 %v19605_v32, %v22980_v33  ;;  %v10484_v36 = vadd.f32 %v19627_v43, %v10284_v35  ;;  %v10298_v31 = vadd.f32 %v19617_v22, %v22982_v24  ;;  %v22983_v17 = vld [vmem:[#allocation124_spill] sm:$0xff] }
 0xa92   : > { %12426 = vst [vmem:[%s19796_s13 + $0x80] sm:$0xff] %v10866_v1  ;;  %v10871_v27 = vadd.f32 %v10870_v50, %v10690_v48  ;;  %v10705_v13 = vpop.f32.mrf.mxu0  ;;  %12100 = vmatprep.mubr.f32.mxu1 %v22804_v5  ;;  %v10306_v35 = vadd.f32 %v19629_v62, %v22984_v2  ;;  %v22991_v2 = vld [vmem:[#allocation144_spill] sm:$0xff] }
 0xa93   : > { %v10872_v53 = vpop.f32.mrf.mxu1  ;;  %v10491_v16 = vadd.f32 %v19632_v59, %v10290_v49  ;;  %v10699_v32 = vadd.f32 %v10698_v9, %v10484_v36  ;;  %v10300_v59 = vadd.f32 %v19624_v6, %v22983_v17  ;;  %v10500_v1 = vadd.f32 %v19644_v61, %v10298_v31  ;;  %v22985_v61 = vld [vmem:[#allocation100_spill] sm:$0xff] }
 0xa94   : > { %12200 = vst [vmem:[%s19796_s13 + $0x8] sm:$0xff] %v10871_v27  ;;  %v10873_v42 = vadd.f32 %v10872_v53, %v10692_v20  ;;  %v10710_v11 = vpop.f32.mrf.mxu0  ;;  %11935 = vmatmul.mubr.f32.gmra.mxu0 %v22885_v37  ;;  %v10509_v53 = vadd.f32 %v19656_v52, %v10306_v35  ;;  %v22986_v36 = vld [vmem:[#allocation128_spill] sm:$0xff]  ;;  %v10338_v35 = vadd.f32 %v19677_v30, %v22991_v2 }
 0xa95   : > { %v10877_v23 = vpop.f32.mrf.mxu1  ;;  %12102 = vmatmul.mubr.f32.gmra.mxu1 %v22883_v44  ;;  %11940 = vmatprep.mubr.f32.mxu0 %v22804_v5  ;;  %v10493_v44 = vadd.f32 %v19639_v63, %v10292_v55  ;;  %v10704_v54 = vadd.f32 %v10703_v19, %v10491_v16  ;;  %v10711_v47 = vadd.f32 %v10710_v11, %v10500_v1  ;;  %v23013_v2 = vld [vmem:[#allocation80_spill] sm:$0xff] }
 0xa96   : > { %12427 = vst [vmem:[%s19796_s13 + $0x88] sm:$0xff] %v10873_v42  ;;  %v10878_v43 = vadd.f32 %v10877_v23, %v10697_v15  ;;  %v10712_v4 = vpop.f32.mrf.mxu0  ;;  %12107 = vmatprep.mubr.f32.mxu1 %v22804_v5  ;;  %v10314_v15 = vadd.f32 %v19641_v39, %v22986_v36  ;;  %v22998_v36 = vld [vmem:[#allocation24_spill] sm:$0xff] }
 0xa97   : > { %v10879_v12 = vpop.f32.mrf.mxu1  ;;  %v10706_v22 = vadd.f32 %v10705_v13, %v10493_v44  ;;  %v10308_v13 = vadd.f32 %v19636_v56, %v22985_v61  ;;  %v22987_v56 = vld [vmem:[#allocation104_spill] sm:$0xff]  ;;  %v22995_v61 = vld [vmem:[#allocation27_spill] sm:$0xff] }
 0xa98   : > { %12201 = vst [vmem:[%s19796_s13 + $0x10] sm:$0xff] %v10878_v43  ;;  %v10880_v41 = vadd.f32 %v10879_v12, %v10699_v32  ;;  %v10717_v48 = vpop.f32.mrf.mxu0  ;;  %11942 = vmatmul.mubr.f32.gmra.mxu0 %v22886_v34  ;;  %v10316_v18 = vadd.f32 %v19648_v0, %v22987_v56  ;;  %v10518_v55 = vadd.f32 %v19668_v26, %v10314_v15  ;;  %v22988_v43 = vld [vmem:[#allocation111_spill] sm:$0xff]  ;;  %v22989_v0 = vld [vmem:[#allocation112_spill] sm:$0xff]  ;;  %v23001_v56 = vld [vmem:[#allocation37_spill] sm:$0xff] }
 0xa99   : > { %v10884_v9 = vpop.f32.mrf.mxu1  ;;  %12109 = vmatmul.mubr.f32.gmra.mxu1 %v22884_v8  ;;  %11947 = vmatprep.mubr.f32.mxu0 %v22804_v5  ;;  %v10502_v8 = vadd.f32 %v19651_v21, %v10300_v59  ;;  %v10718_v42 = vadd.f32 %v10717_v48, %v10509_v53  ;;  %v10324_v44 = vadd.f32 %v19660_v45, %v22989_v0 }
 0xa9a   : > { %12428 = vst [vmem:[%s19796_s13 + $0x90] sm:$0xff] %v10880_v41  ;;  %v10885_v63 = vadd.f32 %v10884_v9, %v10704_v54  ;;  %v10719_v19 = vpop.f32.mrf.mxu0  ;;  %12114 = vmatprep.mubr.f32.mxu1 %v22804_v5  ;;  %v22990_v9 = vld [vmem:[#allocation107_spill] sm:$0xff]  ;;  %v10332_v45 = vadd.f32 %v19672_v3, %v19518_v10  ;;  %v22992_v10 = vld [vmem:[#allocation58_spill] sm:$0xff] }
 0xa9b   : > { %v10886_v50 = vpop.f32.mrf.mxu1  ;;  %v10713_v62 = vadd.f32 %v10712_v4, %v10502_v8  ;;  %v10322_v4 = vadd.f32 %v19653_v40, %v22988_v43  ;;  %v10330_v17 = vadd.f32 %v19665_v28, %v22990_v9  ;;  %v22993_v3 = vld [vmem:[#allocation146_spill] sm:$0xff] }
 0xa9c   : > { %12202 = vst [vmem:[%s19796_s13 + $0x18] sm:$0xff] %v10885_v63  ;;  %v10887_v20 = vadd.f32 %v10886_v50, %v10706_v22  ;;  %v10724_v27 = vpop.f32.mrf.mxu0  ;;  %11949 = vmatmul.mubr.f32.gmra.mxu0 %v22887_v29 }
 0xa9d   : > { %v10891_v6 = vpop.f32.mrf.mxu1  ;;  %12116 = vmatmul.mubr.f32.gmra.mxu1 %v22885_v37  ;;  %11954 = vmatprep.mubr.f32.mxu0 %v22804_v5  ;;  %v10511_v37 = vadd.f32 %v19663_v46, %v10308_v13  ;;  %v10725_v12 = vadd.f32 %v10724_v27, %v10518_v55  ;;  %v10527_v54 = vadd.f32 %v19680_v38, %v10322_v4  ;;  %v22994_v27 = vld [vmem:[#allocation38_spill] sm:$0xff]  ;;  %v23002_v55 = vld [vmem:[#allocation35_spill] sm:$0xff] }
 0xa9e   : > { %12429 = vst [vmem:[%s19796_s13 + $0x98] sm:$0xff] %v10887_v20  ;;  %v10892_v21 = vadd.f32 %v10891_v6, %v10711_v47  ;;  %v10726_v33 = vpop.f32.mrf.mxu0  ;;  %12121 = vmatprep.mubr.f32.mxu1 %v22804_v5  ;;  %v10536_v63 = vadd.f32 %v19692_v57, %v10330_v17  ;;  %v10340_v6 = vadd.f32 %v22994_v27, %v22993_v3  ;;  %v23003_v4 = vld [vmem:[#allocation142_spill] sm:$0xff] }
 0xa9f   : > { %v10893_v49 = vpop.f32.mrf.mxu1  ;;  %v10720_v39 = vadd.f32 %v10719_v19, %v10511_v37  ;;  %v10545_v13 = vadd.f32 %v22995_v61, %v10338_v35  ;;  %v23017_v61 = vld [vmem:[#allocation65_spill] sm:$0xff] }
 0xaa0   : > { %12203 = vst [vmem:[%s19796_s13 + $0x20] sm:$0xff] %v10892_v21  ;;  %v10894_v11 = vadd.f32 %v10893_v49, %v10713_v62  ;;  %v10731_v23 = vpop.f32.mrf.mxu0  ;;  %11956 = vmatmul.mubr.f32.gmra.mxu0 %v22888_v60  ;;  %v22996_v21 = vld [vmem:[#allocation145_spill] sm:$0xff] }
 0xaa1   : > { %v10898_v52 = vpop.f32.mrf.mxu1  ;;  %12123 = vmatmul.mubr.f32.gmra.mxu1 %v22886_v34  ;;  %11961 = vmatprep.mubr.f32.mxu0 %v22804_v5  ;;  %v10520_v34 = vadd.f32 %v19675_v25, %v10316_v18  ;;  %v10732_v59 = vadd.f32 %v10731_v23, %v10527_v54 }
 0xaa2   : > { %12430 = vst [vmem:[%s19796_s13 + $0xa0] sm:$0xff] %v10894_v11  ;;  %v10899_v46 = vadd.f32 %v10898_v52, %v10718_v42  ;;  %v10733_v16 = vpop.f32.mrf.mxu0  ;;  %12128 = vmatprep.mubr.f32.mxu1 %v22804_v5  ;;  %v22999_v11 = vld [vmem:[#allocation70_spill] sm:$0xff]  ;;  %v23000_v52 = vld [vmem:[#allocation143_spill] sm:$0xff] }
 0xaa3   : > { %v10900_v32 = vpop.f32.mrf.mxu1  ;;  %v10727_v40 = vadd.f32 %v10726_v33, %v10520_v34  ;;  %v22997_v33 = vld [vmem:[#allocation109_spill] sm:$0xff]  ;;  %v10348_v18 = vadd.f32 %v23001_v56, %v23000_v52  ;;  %v23004_v34 = vld [vmem:[#allocation42_spill] sm:$0xff] }
 0xaa4   : > { %12204 = vst [vmem:[%s19796_s13 + $0x28] sm:$0xff] %v10899_v46  ;;  %v10901_v24 = vadd.f32 %v10900_v32, %v10720_v39  ;;  %v10738_v31 = vpop.f32.mrf.mxu0  ;;  %11963 = vmatmul.mubr.f32.gmra.mxu0 %v22889_v14  ;;  %v10346_v49 = vadd.f32 %v22997_v33, %v22996_v21 }
 0xaa5   : > { %v10905_v26 = vpop.f32.mrf.mxu1  ;;  %12130 = vmatmul.mubr.f32.gmra.mxu1 %v22887_v29  ;;  %11968 = vmatprep.mubr.f32.mxu0 %v22804_v5  ;;  %v10529_v29 = vadd.f32 %v19687_v51, %v10324_v44  ;;  %v10739_v8 = vadd.f32 %v10738_v31, %v10536_v63  ;;  %v23006_v44 = vld [vmem:[#allocation136_spill] sm:$0xff]  ;;  %v23012_v63 = vld [vmem:[#allocation34_spill] sm:$0xff] }
 0xaa6   : > { %12431 = vst [vmem:[%s19796_s13 + $0xa8] sm:$0xff] %v10901_v24  ;;  %v10906_v25 = vadd.f32 %v10905_v26, %v10725_v12  ;;  %v10740_v41 = vpop.f32.mrf.mxu0  ;;  %12135 = vmatprep.mubr.f32.mxu1 %v22804_v5  ;;  %v10554_v39 = vadd.f32 %v23002_v55, %v10346_v49  ;;  %v10354_v12 = vadd.f32 %v23004_v34, %v23003_v4  ;;  %v23005_v24 = vld [vmem:[#allocation32_spill] sm:$0xff]  ;;  %v23020_v49 = vld [vmem:[#allocation67_spill] sm:$0xff]  ;;  %v23024_v55 = vld [vmem:[#allocation69_spill] sm:$0xff] }
 0xaa7   : > { %v10907_v48 = vpop.f32.mrf.mxu1  ;;  %v10734_v28 = vadd.f32 %v10733_v16, %v10529_v29 }
 0xaa8   : > { %12205 = vst [vmem:[%s19796_s13 + $0x30] sm:$0xff] %v10906_v25  ;;  %v10908_v1 = vadd.f32 %v10907_v48, %v10727_v40  ;;  %v10745_v22 = vpop.f32.mrf.mxu0  ;;  %11970 = vmatmul.mubr.f32.gmra.mxu0 %v19052_v7  ;;  %v23007_v40 = vld [vmem:[#allocation50_spill] sm:$0xff]  ;;  %v23008_v25 = vld [vmem:[#allocation21_spill] sm:$0xff] }
 0xaa9   : > { %v10912_v38 = vpop.f32.mrf.mxu1  ;;  %12137 = vmatmul.mubr.f32.gmra.mxu1 %v22888_v60  ;;  %11975 = vmatprep.mubr.f32.mxu0 %v22804_v5  ;;  %v10538_v60 = vadd.f32 %v19699_v58, %v10332_v45  ;;  %v10746_v15 = vadd.f32 %v10745_v22, %v10545_v13  ;;  %v23009_v48 = vld [vmem:[#allocation29_spill] sm:$0xff]  ;;  %v23018_v13 = vld [vmem:[#allocation30_spill] sm:$0xff] }
 0xaaa   : > { %12432 = vst [vmem:[%s19796_s13 + $0xb0] sm:$0xff] %v10908_v1  ;;  %v10913_v51 = vadd.f32 %v10912_v38, %v10732_v59  ;;  %v10747_v19 = vpop.f32.mrf.mxu0  ;;  %12142 = vmatprep.mubr.f32.mxu1 %v22804_v5  ;;  %v10563_v9 = vadd.f32 %v23009_v48, %v10354_v12  ;;  %v23010_v22 = vld [vmem:[#allocation41_spill] sm:$0xff]  ;;  %v23011_v38 = vld [vmem:[#allocation39_spill] sm:$0xff] }
 0xaab   : > { %v10914_v50 = vpop.f32.mrf.mxu1  ;;  %v10741_v30 = vadd.f32 %v10740_v41, %v10538_v60  ;;  %v10356_v41 = vadd.f32 %v23008_v25, %v23007_v40  ;;  %v10362_v45 = vadd.f32 %v23011_v38, %v23010_v22  ;;  %v23014_v60 = vld [vmem:[#allocation44_spill] sm:$0xff]  ;;  %v23027_v12 = vld [vmem:[#allocation81_spill] sm:$0xff] }
 0xaac   : > { %12206 = vst [vmem:[%s19796_s13 + $0x38] sm:$0xff] %v10913_v51  ;;  %v10915_v47 = vadd.f32 %v10914_v50, %v10734_v28  ;;  %v10752_v20 = vpop.f32.mrf.mxu0  ;;  %11977 = vmatmul.mubr.f32.gmra.mxu0 %v22992_v10  ;;  %v23031_v48 = vld [vmem:[#allocation121_spill] sm:$0xff] }
 0xaad   : > { %v10919_v57 = vpop.f32.mrf.mxu1  ;;  %12144 = vmatmul.mubr.f32.gmra.mxu1 %v22889_v14  ;;  %11982 = vmatprep.mubr.f32.mxu0 %v22804_v5  ;;  %v10547_v14 = vadd.f32 %v22998_v36, %v10340_v6  ;;  %v10753_v31 = vadd.f32 %v10752_v20, %v10554_v39  ;;  %v10565_v28 = vadd.f32 %v23012_v63, %v10356_v41  ;;  %v23016_v20 = vld [vmem:[#allocation95_spill] sm:$0xff] }
 0xaae   : > { %12433 = vst [vmem:[%s19796_s13 + $0xb8] sm:$0xff] %v10915_v47  ;;  %v10920_v58 = vadd.f32 %v10919_v57, %v10739_v8  ;;  %v10754_v53 = vpop.f32.mrf.mxu0  ;;  %12149 = vmatprep.mubr.f32.mxu1 %v22804_v5  ;;  %v23015_v8 = vld [vmem:[#allocation31_spill] sm:$0xff] }
 0xaaf   : > { %v10921_v62 = vpop.f32.mrf.mxu1  ;;  %v10748_v46 = vadd.f32 %v10747_v19, %v10547_v14  ;;  %v10364_v47 = vadd.f32 %v23015_v8, %v23014_v60  ;;  %v23021_v14 = vld [vmem:[#allocation54_spill] sm:$0xff]  ;;  %v23025_v39 = vld [vmem:[#allocation103_spill] sm:$0xff] }
 0xab0   : > { %12207 = vst [vmem:[%s19796_s13 + $0x40] sm:$0xff] %v10920_v58  ;;  %v10922_v37 = vadd.f32 %v10921_v62, %v10741_v30  ;;  %v10759_v42 = vpop.f32.mrf.mxu0  ;;  %11984 = vmatmul.mubr.f32.gmra.mxu0 %v22999_v11  ;;  %v10370_v30 = vadd.f32 %v23018_v13, %v23017_v61  ;;  %v23019_v58 = vld [vmem:[#allocation77_spill] sm:$0xff]  ;;  %v23034_v63 = vld [vmem:[#allocation71_spill] sm:$0xff] }
 0xab1   : > { %v10926_v23 = vpop.f32.mrf.mxu1  ;;  %12151 = vmatmul.mubr.f32.gmra.mxu1 %v19052_v7  ;;  %11989 = vmatprep.mubr.f32.mxu0 %v22804_v5  ;;  %v10556_v7 = vadd.f32 %v23005_v24, %v10348_v18  ;;  %v10760_v51 = vadd.f32 %v10759_v42, %v10563_v9  ;;  %v23023_v42 = vld [vmem:[#allocation91_spill] sm:$0xff]  ;;  %v23032_v9 = vld [vmem:[#allocation93_spill] sm:$0xff] }
 0xab2   : > { %12434 = vst [vmem:[%s19796_s13 + $0xc0] sm:$0xff] %v10922_v37  ;;  %v10927_v16 = vadd.f32 %v10926_v23, %v10746_v15  ;;  %v10761_v32 = vpop.f32.mrf.mxu0  ;;  %12156 = vmatprep.mubr.f32.mxu1 %v22804_v5  ;;  %v23022_v15 = vld [vmem:[#allocation23_spill] sm:$0xff] }
 0xab3   : > { %v10928_v43 = vpop.f32.mrf.mxu1  ;;  %v10755_v17 = vadd.f32 %v10754_v53, %v10556_v7  ;;  %v10762_v57 = vadd.f32 %v10761_v32, %v10565_v28  ;;  %v10574_v53 = vadd.f32 %v23019_v58, %v10364_v47  ;;  %v10372_v37 = vadd.f32 %v23022_v15, %v23021_v14  ;;  %v23028_v7 = vld [vmem:[#allocation62_spill] sm:$0xff]  ;;  %v23035_v28 = vld [vmem:[#allocation25_spill] sm:$0xff] }
 0xab4   : > { %12208 = vst [vmem:[%s19796_s13 + $0x48] sm:$0xff] %v10927_v16  ;;  %v10929_v26 = vadd.f32 %v10928_v43, %v10748_v46  ;;  %v10766_v0 = vpop.f32.mrf.mxu0  ;;  %11991 = vmatmul.mubr.f32.gmra.mxu0 %v23006_v44  ;;  %v10378_v46 = vadd.f32 %v23025_v39, %v23024_v55  ;;  %v23026_v16 = vld [vmem:[#allocation78_spill] sm:$0xff]  ;;  %v23037_v47 = vld [vmem:[#allocation85_spill] sm:$0xff] }
 0xab5   : > { %v10933_v54 = vpop.f32.mrf.mxu1  ;;  %12158 = vmatmul.mubr.f32.gmra.mxu1 %v22992_v10  ;;  %11996 = vmatprep.mubr.f32.mxu0 %v22804_v5  ;;  %v10572_v10 = vadd.f32 %v23016_v20, %v10362_v45  ;;  %v10583_v32 = vadd.f32 %v23026_v16, %v10372_v37 }
 0xab6   : > { %12435 = vst [vmem:[%s19796_s13 + $0xc8] sm:$0xff] %v10929_v26  ;;  %v10934_v29 = vadd.f32 %v10933_v54, %v10753_v31  ;;  %v10768_v59 = vpop.f32.mrf.mxu0  ;;  %12163 = vmatprep.mubr.f32.mxu1 %v22804_v5  ;;  %v23029_v31 = vld [vmem:[#allocation118_spill] sm:$0xff] }
 0xab7   : > { %v10935_v1 = vpop.f32.mrf.mxu1  ;;  %v10767_v62 = vadd.f32 %v10766_v0, %v10572_v10  ;;  %v10769_v23 = vadd.f32 %v10768_v59, %v10574_v53  ;;  %v10380_v26 = vadd.f32 %v23029_v31, %v23028_v7  ;;  %v23030_v0 = vld [vmem:[#allocation46_spill] sm:$0xff] }
 0xab8   : > { %12209 = vst [vmem:[%s19796_s13 + $0x50] sm:$0xff] %v10934_v29  ;;  %v10936_v19 = vadd.f32 %v10935_v1, %v10755_v17  ;;  %v10773_v50 = vpop.f32.mrf.mxu0  ;;  %11998 = vmatmul.mubr.f32.gmra.mxu0 %v23013_v2  ;;  %v10386_v17 = vadd.f32 %v23032_v9, %v23031_v48  ;;  %v23033_v29 = vld [vmem:[#allocation101_spill] sm:$0xff] }
 0xab9   : > { %v10940_v35 = vpop.f32.mrf.mxu1  ;;  %12165 = vmatmul.mubr.f32.gmra.mxu1 %v22999_v11  ;;  %12003 = vmatprep.mubr.f32.mxu0 %v22804_v5  ;;  %v10581_v11 = vadd.f32 %v23023_v42, %v10370_v30  ;;  %v10592_v59 = vadd.f32 %v23033_v29, %v10380_v26 }
 0xaba   : > { %12436 = vst [vmem:[%s19796_s13 + $0xd0] sm:$0xff] %v10936_v19  ;;  %v10941_v3 = vadd.f32 %v10940_v35, %v10760_v51  ;;  %v10775_v27 = vpop.f32.mrf.mxu0  ;;  %12170 = vmatprep.mubr.f32.mxu1 %v22804_v5  ;;  %v10388_v51 = vadd.f32 %v23035_v28, %v23034_v63  ;;  %v23036_v19 = vld [vmem:[#allocation98_spill] sm:$0xff] }
 0xabb   : > { %v10942_v6 = vpop.f32.mrf.mxu1  ;;  %v10774_v43 = vadd.f32 %v10773_v50, %v10581_v11  ;;  %v10776_v54 = vadd.f32 %v10775_v27, %v10583_v32  ;;  %v10599_v50 = vadd.f32 %v23036_v19, %v10386_v17 }
 0xabc   : > { %12210 = vst [vmem:[%s19796_s13 + $0x58] sm:$0xff] %v10941_v3  ;;  %v10943_v21 = vadd.f32 %v10942_v6, %v10762_v57  ;;  %v10780_v33 = vpop.f32.mrf.mxu0  ;;  %12005 = vmatmul.mubr.f32.gmra.mxu0 %v23020_v49  ;;  %v10601_v20 = vadd.f32 %v23037_v47, %v10388_v51 }
 0xabd   : > { %v10947_v36 = vpop.f32.mrf.mxu1  ;;  %12172 = vmatmul.mubr.f32.gmra.mxu1 %v23006_v44  ;;  %12010 = vmatprep.mubr.f32.mxu0 %v22804_v5  ;;  %v10590_v44 = vadd.f32 %v23030_v0, %v10378_v46 }
 0xabe   : > { %12437 = vst [vmem:[%s19796_s13 + $0xd8] sm:$0xff] %v10943_v21  ;;  %v10948_v52 = vadd.f32 %v10947_v36, %v10767_v62  ;;  %v10782_v56 = vpop.f32.mrf.mxu0  ;;  %12177 = vmatprep.mubr.f32.mxu1 %v22804_v5 }
 0xabf   : > { %v10949_v18 = vpop.f32.mrf.mxu1  ;;  %v10781_v1 = vadd.f32 %v10780_v33, %v10590_v44 }
 0xac0   : > { %12211 = vst [vmem:[%s19796_s13 + $0x60] sm:$0xff] %v10948_v52  ;;  %v10950_v4 = vadd.f32 %v10949_v18, %v10769_v23  ;;  %v10787_v34 = vpop.f32.mrf.mxu0  ;;  %12012 = vmatmul.mubr.f32.gmra.mxu0 %v23027_v12 }
 0xac1   : > { %v10954_v24 = vpop.f32.mrf.mxu1  ;;  %12179 = vmatmul.mubr.f32.gmra.mxu1 %v23013_v2  ;;  %v10783_v2 = vadd.f32 %v10782_v56, %v10592_v59  ;;  %v10788_v10 = vadd.f32 %v10787_v34, %v10599_v50 }
 0xac2   : > { %12438 = vst [vmem:[%s19796_s13 + $0xe0] sm:$0xff] %v10950_v4  ;;  %v10955_v40 = vadd.f32 %v10954_v24, %v10774_v43  ;;  %v10789_v25 = vpop.f32.mrf.mxu0  ;;  %12184 = vmatprep.mubr.f32.mxu1 %v22804_v5 }
 0xac3   : > { %v10956_v41 = vpop.f32.mrf.mxu1  ;;  %v10790_v6 = vadd.f32 %v10789_v25, %v10601_v20 }
 0xac4   : > { %12212 = vst [vmem:[%s19796_s13 + $0x68] sm:$0xff] %v10955_v40  ;;  %v10957_v22 = vadd.f32 %v10956_v41, %v10776_v54  ;;  %v11048_v38 = vpop.f32.mrf.mxu0 }
 0xac5   : > { %v10961_v45 = vpop.f32.mrf.mxu1  ;;  %12186 = vmatmul.mubr.f32.gmra.mxu1 %v23020_v49 }
 0xac6   : > { %12439 = vst [vmem:[%s19796_s13 + $0xe8] sm:$0xff] %v10957_v22  ;;  %v10962_v35 = vadd.f32 %v10961_v45, %v10781_v1  ;;  %v11050_v60 = vpop.f32.mrf.mxu0  ;;  %12191 = vmatprep.mubr.f32.mxu1 %v22804_v5 }
 0xac7   : > { %v10963_v8 = vpop.f32.mrf.mxu1 }
 0xac8   : > { %12213 = vst [vmem:[%s19796_s13 + $0x70] sm:$0xff] %v10962_v35  ;;  %v10964_v57 = vadd.f32 %v10963_v8, %v10783_v2  ;;  %v11059_v3 = vpop.f32.mrf.mxu0 }
 0xac9   : > { %v10968_v27 = vpop.f32.mrf.mxu1  ;;  %12193 = vmatmul.mubr.f32.gmra.mxu1 %v23027_v12 }
 0xaca   : > { %12440 = vst [vmem:[%s19796_s13 + $0xf0] sm:$0xff] %v10964_v57  ;;  %v10969_v61 = vadd.f32 %v10968_v27, %v10788_v10  ;;  %v11061_v13 = vpop.f32.mrf.mxu0 }
 0xacb   : > { %v10970_v30 = vpop.f32.mrf.mxu1 }
 0xacc   : > { %12214 = vst [vmem:[%s19796_s13 + $0x78] sm:$0xff] %v10969_v61  ;;  %v10971_v58 = vadd.f32 %v10970_v30, %v10790_v6  ;;  %v11070_v53 = vpop.f32.mrf.mxu0 }
 0xacd   : > { %v11305_v5 = vpop.f32.mrf.mxu1 }
 0xace   : > { %12441 = vst [vmem:[%s19796_s13 + $0xf8] sm:$0xff] %v10971_v58  ;;  %v19966_v62 = vadd.f32 %v11305_v5, %v11048_v38  ;;  %v11072_v21 = vpop.f32.mrf.mxu0 }
 0xacf   : > { %v11307_v33 = vpop.f32.mrf.mxu1 }
 0xad0   : > { %v19968_v49 = vadd.f32 %v11307_v33, %v11050_v60  ;;  %v11081_v36 = vpop.f32.mrf.mxu0 }
 0xad1   : > { %v11312_v14 = vpop.f32.mrf.mxu1 }
 0xad2   : > { %v19970_v15 = vadd.f32 %v11312_v14, %v11059_v3  ;;  %v11083_v37 = vpop.f32.mrf.mxu0 }
 0xad3   : > { %v11314_v42 = vpop.f32.mrf.mxu1 }
 0xad4   : > { %v19972_v11 = vadd.f32 %v11314_v42, %v11061_v13  ;;  %v11092_v23 = vpop.f32.mrf.mxu0 }
 0xad5   : > { %v11319_v52 = vpop.f32.mrf.mxu1 }
 0xad6   : > { %v19974_v56 = vadd.f32 %v11319_v52, %v11070_v53  ;;  %v11094_v18 = vpop.f32.mrf.mxu0 }
 0xad7   : > { %v11321_v55 = vpop.f32.mrf.mxu1 }
 0xad8   : > { %v19976_v39 = vadd.f32 %v11321_v55, %v11072_v21  ;;  %v11103_v46 = vpop.f32.mrf.mxu0 }
 0xad9   : > { %v11326_v16 = vpop.f32.mrf.mxu1 }
 0xada   : > { %v19978_v32 = vadd.f32 %v11326_v16, %v11081_v36  ;;  %v11105_v43 = vpop.f32.mrf.mxu0 }
 0xadb   : > { %v11328_v4 = vpop.f32.mrf.mxu1 }
 0xadc   : > { %v19980_v34 = vadd.f32 %v11328_v4, %v11083_v37  ;;  %v11114_v12 = vpop.f32.mrf.mxu0 }
 0xadd   : > { %v11333_v24 = vpop.f32.mrf.mxu1 }
 0xade   : > { %v19982_v7 = vadd.f32 %v11333_v24, %v11092_v23  ;;  %v11116_v31 = vpop.f32.mrf.mxu0 }
 0xadf   : > { %v11335_v26 = vpop.f32.mrf.mxu1 }
 0xae0   : > { %v19984_v0 = vadd.f32 %v11335_v26, %v11094_v18  ;;  %v11125_v44 = vpop.f32.mrf.mxu0 }
 0xae1   : > { %v11340_v54 = vpop.f32.mrf.mxu1 }
 0xae2   : > { %v19986_v40 = vadd.f32 %v11340_v54, %v11103_v46  ;;  %v11127_v25 = vpop.f32.mrf.mxu0 }
 0xae3   : > { %v11342_v41 = vpop.f32.mrf.mxu1 }
 0xae4   : > { %v19988_v48 = vadd.f32 %v11342_v41, %v11105_v43  ;;  %v11136_v9 = vpop.f32.mrf.mxu0 }
 0xae5   : > { %v11347_v17 = vpop.f32.mrf.mxu1 }
 0xae6   : > { %v19990_v29 = vadd.f32 %v11347_v17, %v11114_v12  ;;  %v11138_v59 = vpop.f32.mrf.mxu0 }
 0xae7   : > { %v11349_v1 = vpop.f32.mrf.mxu1 }
 0xae8   : > { %v19992_v22 = vadd.f32 %v11349_v1, %v11116_v31  ;;  %v11147_v38 = vpop.f32.mrf.mxu0 }
 0xae9   : > { %v11354_v45 = vpop.f32.mrf.mxu1 }
 0xaea   : > { %v19994_v63 = vadd.f32 %v11354_v45, %v11125_v44  ;;  %v11149_v28 = vpop.f32.mrf.mxu0 }
 0xaeb   : > { %v11356_v51 = vpop.f32.mrf.mxu1 }
 0xaec   : > { %v19996_v19 = vadd.f32 %v11356_v51, %v11127_v25  ;;  %v11158_v50 = vpop.f32.mrf.mxu0 }
 0xaed   : > { %v11361_v2 = vpop.f32.mrf.mxu1 }
 0xaee   : > { %v19998_v35 = vadd.f32 %v11361_v2, %v11136_v9  ;;  %v11160_v60 = vpop.f32.mrf.mxu0 }
 0xaef   : > { %v11363_v8 = vpop.f32.mrf.mxu1 }
 0xaf0   : > { %v20000_v47 = vadd.f32 %v11363_v8, %v11138_v59  ;;  %v11169_v20 = vpop.f32.mrf.mxu0 }
 0xaf1   : > { %v11368_v10 = vpop.f32.mrf.mxu1 }
 0xaf2   : > { %v20002_v57 = vadd.f32 %v11368_v10, %v11147_v38  ;;  %v11171_v3 = vpop.f32.mrf.mxu0 }
 0xaf3   : > { %v11370_v27 = vpop.f32.mrf.mxu1 }
 0xaf4   : > { %23038 = vst [vmem:[#allocation140_spill] sm:$0xff] %v20002_v57  ;;  %v20004_v6 = vadd.f32 %v11370_v27, %v11149_v28  ;;  %v11180_v61 = vpop.f32.mrf.mxu0 }
 0xaf5   : > { %v11375_v13 = vpop.f32.mrf.mxu1 }
 0xaf6   : > { %23039 = vst [vmem:[#allocation87_spill] sm:$0xff] %v20004_v6  ;;  %v20006_v30 = vadd.f32 %v11375_v13, %v11158_v50  ;;  %v11182_v58 = vpop.f32.mrf.mxu0 }
 0xaf7   : > { %v11377_v53 = vpop.f32.mrf.mxu1 }
 0xaf8   : > { %23040 = vst [vmem:[#allocation73_spill] sm:$0xff] %v20006_v30  ;;  %v20008_v5 = vadd.f32 %v11377_v53, %v11160_v60  ;;  %v11191_v21 = vpop.f32.mrf.mxu0 }
 0xaf9   : > { %v11382_v33 = vpop.f32.mrf.mxu1 }
 0xafa   : > { %23041 = vst [vmem:[#allocation89_spill] sm:$0xff] %v20008_v5  ;;  %v20010_v36 = vadd.f32 %v11382_v33, %v11169_v20  ;;  %v11193_v14 = vpop.f32.mrf.mxu0 }
 0xafb   : > { %v11384_v37 = vpop.f32.mrf.mxu1 }
 0xafc   : > { %23042 = vst [vmem:[#allocation122_spill] sm:$0xff] %v20010_v36  ;;  %v20012_v42 = vadd.f32 %v11384_v37, %v11171_v3  ;;  %v11202_v23 = vpop.f32.mrf.mxu0 }
 0xafd   : > { %v11389_v52 = vpop.f32.mrf.mxu1 }
 0xafe   : > { %23043 = vst [vmem:[#allocation115_spill] sm:$0xff] %v20012_v42  ;;  %v20014_v18 = vadd.f32 %v11389_v52, %v11180_v61  ;;  %v11204_v55 = vpop.f32.mrf.mxu0 }
 0xaff   : > { %v11391_v46 = vpop.f32.mrf.mxu1 }
 0xb00   : > { %23044 = vst [vmem:[#allocation137_spill] sm:$0xff] %v20014_v18  ;;  %v20016_v16 = vadd.f32 %v11391_v46, %v11182_v58  ;;  %v11213_v43 = vpop.f32.mrf.mxu0 }
 0xb01   : > { %v11396_v4 = vpop.f32.mrf.mxu1 }
 0xb02   : > { %23045 = vst [vmem:[#allocation94_spill] sm:$0xff] %v20016_v16  ;;  %v20018_v12 = vadd.f32 %v11396_v4, %v11191_v21  ;;  %v11215_v24 = vpop.f32.mrf.mxu0 }
 0xb03   : > { %v11398_v31 = vpop.f32.mrf.mxu1 }
 0xb04   : > { %23046 = vst [vmem:[#allocation139_spill] sm:$0xff] %v20018_v12  ;;  %v20020_v26 = vadd.f32 %v11398_v31, %v11193_v14  ;;  %v20022_v44 = vpop.f32.mrf.mxu0 }
 0xb05   : > { %v11403_v54 = vpop.f32.mrf.mxu1 }
 0xb06   : > { %23047 = vst [vmem:[#allocation97_spill] sm:$0xff] %v20020_v26  ;;  %v20024_v25 = vadd.f32 %v11403_v54, %v11202_v23  ;;  %v20026_v41 = vpop.f32.mrf.mxu0 }
 0xb07   : > { %v11405_v9 = vpop.f32.mrf.mxu1 }
 0xb08   : > { %23048 = vst [vmem:[#allocation33_spill] sm:$0xff] %v20024_v25  ;;  %v20028_v17 = vadd.f32 %v11405_v9, %v11204_v55  ;;  %v20030_v59 = vpop.f32.mrf.mxu0 }
 0xb09   : > { %v11410_v1 = vpop.f32.mrf.mxu1 }
 0xb0a   : > { %23049 = vst [vmem:[#allocation119_spill] sm:$0xff] %v20028_v17  ;;  %v20032_v38 = vadd.f32 %v11410_v1, %v11213_v43  ;;  %v20034_v45 = vpop.f32.mrf.mxu0 }
 0xb0b   : > { %v11412_v28 = vpop.f32.mrf.mxu1 }
 0xb0c   : > { %23050 = vst [vmem:[#allocation99_spill] sm:$0xff] %v20032_v38  ;;  %v20036_v51 = vadd.f32 %v11412_v28, %v11215_v24  ;;  %v20038_v50 = vpop.f32.mrf.mxu0 }
 0xb0d   : > { %v20040_v2 = vpop.f32.mrf.mxu1 }
 0xb0e   : > { %23051 = vst [vmem:[#allocation53_spill] sm:$0xff] %v20036_v51  ;;  %v20042_v60 = vpop.f32.mrf.mxu0 }
 0xb0f   : > { %v20044_v8 = vpop.f32.mrf.mxu1 }
 0xb10   : > { %v20046_v20 = vpop.f32.mrf.mxu0 }
 0xb11   : > { %v20048_v10 = vpop.f32.mrf.mxu1 }
 0xb12   : > { %v20050_v3 = vpop.f32.mrf.mxu0 }
 0xb13   : > { %v20052_v27 = vpop.f32.mrf.mxu1 }
 0xb14   : > { %v20054_v61 = vpop.f32.mrf.mxu0 }
 0xb15   : > { %v20056_v13 = vpop.f32.mrf.mxu1 }
 0xb16   : > { %v20058_v58 = vpop.f32.mrf.mxu0 }
 0xb17   : > { %v20060_v53 = vpop.f32.mrf.mxu1 }
 0xb18   : > { %v20062_v21 = vpop.f32.mrf.mxu0 }
 0xb19   : > { %v20064_v33 = vpop.f32.mrf.mxu1 }
 0xb1a   : > { %v20066_v14 = vpop.f32.mrf.mxu0 }
 0xb1b   : > { %v20068_v37 = vpop.f32.mrf.mxu1 }
 0xb1c   : > { %v20070_v23 = vpop.f32.mrf.mxu0 }
 0xb1d   : > { %v20072_v52 = vpop.f32.mrf.mxu1 }
 0xb1e   : > { %v20074_v55 = vpop.f32.mrf.mxu0 }
 0xb1f   : > { %v20076_v46 = vpop.f32.mrf.mxu1 }
 0xb20   : > { %v20078_v43 = vpop.f32.mrf.mxu0 }
 0xb21   : > { %v20080_v4 = vpop.f32.mrf.mxu1 }
 0xb22   : > { %v20082_v24 = vpop.f32.mrf.mxu0 }
 0xb23   : > { %v20084_v31 = vpop.f32.mrf.mxu1 }
 0xb24   : > { %v20086_v54 = vpop.f32.mrf.mxu0 }
 0xb25   : > { %v20088_v9 = vpop.f32.mrf.mxu1 }
 0xb26   : > { %v20090_v1 = vpop.f32.mrf.mxu0 }
 0xb27   : > { %23052 = vst [vmem:[#allocation86_spill] sm:$0xff] %v20090_v1  ;;  %v20092_v28 = vpop.f32.mrf.mxu1 }
 0xb28   : > { %v20094_v51 = vpop.f32.mrf.mxu0 }
 0xb29   : > { %23053 = vst [vmem:[#allocation120_spill] sm:$0xff] %v20094_v51  ;;  %v20096_v38 = vpop.f32.mrf.mxu1 }
 0xb2a   : > { %v20098_v17 = vpop.f32.mrf.mxu0 }
 0xb2b   : > { %23054 = vst [vmem:[#allocation123_spill] sm:$0xff] %v20098_v17  ;;  %v20100_v25 = vpop.f32.mrf.mxu1 }
 0xb2c   : > { %v20102_v26 = vpop.f32.mrf.mxu0 }
 0xb2d   : > { %23055 = vst [vmem:[#allocation141_spill] sm:$0xff] %v20102_v26  ;;  %v20104_v12 = vpop.f32.mrf.mxu1 }
 0xb2e   : > { %23056 = vst [vmem:[#allocation75_spill] sm:$0xff] %v20104_v12  ;;  %v20106_v16 = vpop.f32.mrf.mxu0 }
 0xb2f   : > { %23057 = vst [vmem:[#allocation105_spill] sm:$0xff] %v20106_v16  ;;  %v20108_v18 = vpop.f32.mrf.mxu1 }
 0xb30   : > { %23058 = vst [vmem:[#allocation26_spill] sm:$0xff] %v20108_v18  ;;  %v20110_v42 = vpop.f32.mrf.mxu0 }
 0xb31   : > { %23059 = vst [vmem:[#allocation110_spill] sm:$0xff] %v20110_v42  ;;  %v20112_v36 = vpop.f32.mrf.mxu1 }
 0xb32   : > { %23060 = vst [vmem:[#allocation88_spill] sm:$0xff] %v20112_v36  ;;  %v20114_v5 = vpop.f32.mrf.mxu0 }
 0xb33   : > { %23061 = vst [vmem:[#allocation138_spill] sm:$0xff] %v20114_v5  ;;  %v20116_v30 = vpop.f32.mrf.mxu1 }
 0xb34   : > { %23062 = vst [vmem:[#allocation117_spill] sm:$0xff] %v20116_v30  ;;  %v20118_v6 = vpop.f32.mrf.mxu0 }
 0xb35   : > { %23063 = vst [vmem:[#allocation47_spill] sm:$0xff] %v20118_v6  ;;  %v20120_v17 = vpop.f32.mrf.mxu1 }
 0xb36   : > { %23064 = vst [vmem:[#allocation57_spill] sm:$0xff] %v20120_v17  ;;  %v20122_v51 = vpop.f32.mrf.mxu0 }
 0xb37   : > { %23065 = vst [vmem:[#allocation22_spill] sm:$0xff] %v20122_v51  ;;  %v20124_v26 = vpop.f32.mrf.mxu1 }
 0xb38   : > { %23066 = vst [vmem:[#allocation52_spill] sm:$0xff] %v20124_v26  ;;  %v20126_v57 = vpop.f32.mrf.mxu0 }
 0xb39   : > { %23067 = vst [vmem:[#allocation28_spill] sm:$0xff] %v20126_v57  ;;  %v20128_v16 = vpop.f32.mrf.mxu1 }
 0xb3a   : > { %23068 = vst [vmem:[#allocation132_spill] sm:$0xff] %v20128_v16  ;;  %v20130_v18 = vpop.f32.mrf.mxu0 }
 0xb3b   : > { %23069 = vst [vmem:[#allocation43_spill] sm:$0xff] %v20130_v18  ;;  %v20132_v42 = vpop.f32.mrf.mxu1 }
 0xb3c   : > { %23070 = vst [vmem:[#allocation51_spill] sm:$0xff] %v20132_v42  ;;  %v20134_v36 = vpop.f32.mrf.mxu0 }
 0xb3d   : > { %23071 = vst [vmem:[#allocation131_spill] sm:$0xff] %v20134_v36  ;;  %v20136_v5 = vpop.f32.mrf.mxu1  ;;  %v11492_v36 = vadd.f32 %v20022_v44, %v19966_v62  ;;  %v11502_v44 = vadd.f32 %v20034_v45, %v19972_v11  ;;  %v11510_v11 = vadd.f32 %v20042_v60, %v19976_v39  ;;  %v11518_v39 = vadd.f32 %v20050_v3, %v19980_v34 }
 0xb3e   : > { %23072 = vst [vmem:[#allocation45_spill] sm:$0xff] %v20136_v5  ;;  %v20138_v30 = vpop.f32.mrf.mxu0  ;;  %v11526_v34 = vadd.f32 %v20058_v58, %v19984_v0  ;;  %v11534_v0 = vadd.f32 %v20066_v14, %v19988_v48  ;;  %v11542_v48 = vadd.f32 %v20074_v55, %v19992_v22  ;;  %v11550_v22 = vadd.f32 %v20082_v24, %v19996_v19  ;;  %v23083_v19 = vld [vmem:[#allocation86_spill] sm:$0xff]  ;;  %v23084_v24 = vld [vmem:[#allocation75_spill] sm:$0xff] }
 0xb3f   : > { %23073 = vst [vmem:[#allocation130_spill] sm:$0xff] %v20138_v30  ;;  %v20140_v6 = vpop.f32.mrf.mxu1 }
 0xb40   : > { %23074 = vst [vmem:[#allocation49_spill] sm:$0xff] %v20140_v6  ;;  %v20142_v17 = vpop.f32.mrf.mxu0 }
 0xb41   : > { %23075 = vst [vmem:[#allocation36_spill] sm:$0xff] %v20142_v17  ;;  %v20144_v51 = vpop.f32.mrf.mxu1  ;;  %v11494_v17 = vadd.f32 %v20026_v41, %v19968_v49 }
 0xb42   : > { %23076 = vst [vmem:[#allocation56_spill] sm:$0xff] %v20144_v51  ;;  %v20146_v26 = vpop.f32.mrf.mxu0  ;;  %v11690_v51 = vadd.f32 %v20040_v2, %v11492_v36 }
 0xb43   : > { %23077 = vst [vmem:[#allocation135_spill] sm:$0xff] %v20146_v26  ;;  %v20148_v57 = vpop.f32.mrf.mxu1 }
 0xb44   : > { %23078 = vst [vmem:[#allocation55_spill] sm:$0xff] %v20148_v57  ;;  %v11908_v16 = vpop.f32.mrf.mxu0 }
 0xb45   : > { %v20150_v18 = vpop.f32.mrf.mxu1  ;;  %v11909_v6 = vadd.f32 %v11908_v16, %v11690_v51 }
 0xb46   : > { %23079 = vst [vmem:[#allocation64_spill] sm:$0xff] %v20150_v18  ;;  %v11910_v42 = vpop.f32.mrf.mxu0  ;;  %v11500_v18 = vadd.f32 %v20030_v59, %v19970_v15  ;;  %v11701_v15 = vadd.f32 %v20052_v27, %v11502_v44 }
 0xb47   : > { %v20152_v12 = vpop.f32.mrf.mxu1 }
 0xb48   : > { %23080 = vst [vmem:[#allocation59_spill] sm:$0xff] %v20152_v12  ;;  %v11915_v30 = vpop.f32.mrf.mxu0  ;;  %v11692_v12 = vadd.f32 %v20044_v8, %v11494_v17  ;;  %v11699_v49 = vadd.f32 %v20048_v10, %v11500_v18 }
 0xb49   : > { %v20156_v5 = vpop.f32.mrf.mxu1 }
 0xb4a   : > { %23081 = vst [vmem:[#allocation68_spill] sm:$0xff] %v20156_v5  ;;  %v11917_v26 = vpop.f32.mrf.mxu0  ;;  %v11911_v41 = vadd.f32 %v11910_v42, %v11692_v12  ;;  %v11916_v17 = vadd.f32 %v11915_v30, %v11699_v49  ;;  %v11710_v30 = vadd.f32 %v20060_v53, %v11510_v11 }
 0xb4b   : > { %v20161_v57 = vpop.f32.mrf.mxu1 }
 0xb4c   : > { %23082 = vst [vmem:[#allocation129_spill] sm:$0xff] %v20161_v57  ;;  %v11922_v1 = vpop.f32.mrf.mxu0  ;;  %v11508_v57 = vadd.f32 %v20038_v50, %v19974_v56  ;;  %v11516_v56 = vadd.f32 %v20046_v20, %v19978_v32  ;;  %v11524_v32 = vadd.f32 %v20054_v61, %v19982_v7  ;;  %v11719_v20 = vadd.f32 %v20068_v37, %v11518_v39 }
 0xb4d   : > { %v12089_v62 = vpop.f32.mrf.mxu1  ;;  %v11532_v7 = vadd.f32 %v20062_v21, %v19986_v40  ;;  %v11728_v61 = vadd.f32 %v20076_v46, %v11526_v34  ;;  %v11540_v40 = vadd.f32 %v20070_v23, %v19990_v29  ;;  %v11737_v21 = vadd.f32 %v20084_v31, %v11534_v0 }
 0xb4e   : > { %v12090_v36 = vadd.f32 %v12089_v62, %v11909_v6  ;;  %v11924_v2 = vpop.f32.mrf.mxu0  ;;  %v11708_v18 = vadd.f32 %v20056_v13, %v11508_v57  ;;  %v11918_v6 = vadd.f32 %v11917_v26, %v11701_v15  ;;  %v11717_v57 = vadd.f32 %v20064_v33, %v11516_v56 }
 0xb4f   : > { %v12091_v5 = vpop.f32.mrf.mxu1  ;;  %v11925_v26 = vadd.f32 %v11924_v2, %v11710_v30  ;;  %v11726_v3 = vadd.f32 %v20072_v52, %v11524_v32  ;;  %v11735_v58 = vadd.f32 %v20080_v4, %v11532_v7  ;;  %v11744_v14 = vadd.f32 %v20088_v9, %v11540_v40 }
 0xb50   : > { %12442 = vst [vmem:[%s19796_s13 + $0x100] sm:$0xff] %v12090_v36  ;;  %v12092_v16 = vadd.f32 %v12091_v5, %v11911_v41  ;;  %v11929_v59 = vpop.f32.mrf.mxu0  ;;  %v11923_v5 = vadd.f32 %v11922_v1, %v11708_v18  ;;  %v11548_v29 = vadd.f32 %v20078_v43, %v19994_v63  ;;  %v11746_v23 = vadd.f32 %v20092_v28, %v11542_v48 }
 0xb51   : > { %v12096_v51 = vpop.f32.mrf.mxu1  ;;  %v11930_v53 = vadd.f32 %v11929_v59, %v11717_v57  ;;  %v11556_v63 = vadd.f32 %v20086_v54, %v19998_v35  ;;  %v11755_v43 = vadd.f32 %v20100_v25, %v11550_v22  ;;  %v23085_v35 = vld [vmem:[#allocation140_spill] sm:$0xff] }
 0xb52   : > { %12458 = vst [vmem:[%s19796_s13 + $0x180] sm:$0xff] %v12092_v16  ;;  %v12097_v42 = vadd.f32 %v12096_v51, %v11916_v17  ;;  %v11931_v12 = vpop.f32.mrf.mxu0  ;;  %v11753_v55 = vadd.f32 %v20096_v38, %v11548_v29  ;;  %v11558_v38 = vadd.f32 %v23083_v19, %v20000_v47  ;;  %v23086_v54 = vld [vmem:[#allocation120_spill] sm:$0xff]  ;;  %v23088_v47 = vld [vmem:[#allocation87_spill] sm:$0xff] }
 0xb53   : > { %v12098_v45 = vpop.f32.mrf.mxu1  ;;  %v11932_v33 = vadd.f32 %v11931_v12, %v11719_v20  ;;  %v11564_v25 = vadd.f32 %v23086_v54, %v23085_v35  ;;  %v23107_v35 = vld [vmem:[#allocation22_spill] sm:$0xff] }
 0xb54   : > { %12443 = vst [vmem:[%s19796_s13 + $0x108] sm:$0xff] %v12097_v42  ;;  %v12099_v50 = vadd.f32 %v12098_v45, %v11918_v6  ;;  %v11936_v8 = vpop.f32.mrf.mxu0 }
 0xb55   : > { %v12103_v10 = vpop.f32.mrf.mxu1  ;;  %v11937_v37 = vadd.f32 %v11936_v8, %v11726_v3 }
 0xb56   : > { %12459 = vst [vmem:[%s19796_s13 + $0x188] sm:$0xff] %v12099_v50  ;;  %v12104_v60 = vadd.f32 %v12103_v10, %v11923_v5  ;;  %v11938_v27 = vpop.f32.mrf.mxu0 }
 0xb57   : > { %v12105_v13 = vpop.f32.mrf.mxu1  ;;  %v11939_v52 = vadd.f32 %v11938_v27, %v11728_v61 }
 0xb58   : > { %12444 = vst [vmem:[%s19796_s13 + $0x110] sm:$0xff] %v12104_v60  ;;  %v12106_v1 = vadd.f32 %v12105_v13, %v11925_v26  ;;  %v11943_v62 = vpop.f32.mrf.mxu0  ;;  %v11762_v60 = vadd.f32 %v23084_v24, %v11556_v63 }
 0xb59   : > { %v12110_v44 = vpop.f32.mrf.mxu1  ;;  %v11944_v46 = vadd.f32 %v11943_v62, %v11735_v58  ;;  %v23093_v58 = vld [vmem:[#allocation117_spill] sm:$0xff] }
 0xb5a   : > { %12460 = vst [vmem:[%s19796_s13 + $0x190] sm:$0xff] %v12106_v1  ;;  %v12111_v49 = vadd.f32 %v12110_v44, %v11930_v53  ;;  %v11945_v41 = vpop.f32.mrf.mxu0  ;;  %v23087_v53 = vld [vmem:[#allocation26_spill] sm:$0xff] }
 0xb5b   : > { %v12112_v36 = vpop.f32.mrf.mxu1  ;;  %v11946_v4 = vadd.f32 %v11945_v41, %v11737_v21  ;;  %v11764_v1 = vadd.f32 %v23087_v53, %v11558_v38  ;;  %v23090_v41 = vld [vmem:[#allocation88_spill] sm:$0xff]  ;;  %v23094_v21 = vld [vmem:[#allocation89_spill] sm:$0xff]  ;;  %v23105_v38 = vld [vmem:[#allocation51_spill] sm:$0xff] }
 0xb5c   : > { %12445 = vst [vmem:[%s19796_s13 + $0x118] sm:$0xff] %v12111_v49  ;;  %v12113_v2 = vadd.f32 %v12112_v36, %v11932_v33  ;;  %v11950_v15 = vpop.f32.mrf.mxu0  ;;  %v23089_v33 = vld [vmem:[#allocation123_spill] sm:$0xff]  ;;  %v11771_v36 = vadd.f32 %v23090_v41, %v11564_v25  ;;  %v23108_v25 = vld [vmem:[#allocation45_spill] sm:$0xff] }
 0xb5d   : > { %v12117_v17 = vpop.f32.mrf.mxu1  ;;  %v11951_v31 = vadd.f32 %v11950_v15, %v11744_v14  ;;  %v11566_v49 = vadd.f32 %v23089_v33, %v23088_v47  ;;  %v23091_v15 = vld [vmem:[#allocation73_spill] sm:$0xff]  ;;  %v23110_v47 = vld [vmem:[#allocation28_spill] sm:$0xff] }
 0xb5e   : > { %12461 = vst [vmem:[%s19796_s13 + $0x198] sm:$0xff] %v12113_v2  ;;  %v12118_v16 = vadd.f32 %v12117_v17, %v11937_v37  ;;  %v11952_v59 = vpop.f32.mrf.mxu0  ;;  %v23092_v17 = vld [vmem:[#allocation141_spill] sm:$0xff] }
 0xb5f   : > { %v12119_v51 = vpop.f32.mrf.mxu1  ;;  %v11953_v9 = vadd.f32 %v11952_v59, %v11746_v23  ;;  %v11572_v0 = vadd.f32 %v23092_v17, %v23091_v15  ;;  %v23099_v23 = vld [vmem:[#allocation52_spill] sm:$0xff]  ;;  %v23113_v15 = vld [vmem:[#allocation43_spill] sm:$0xff] }
 0xb60   : > { %12446 = vst [vmem:[%s19796_s13 + $0x120] sm:$0xff] %v12118_v16  ;;  %v12120_v11 = vadd.f32 %v12119_v51, %v11939_v52  ;;  %v11957_v18 = vpop.f32.mrf.mxu0  ;;  %v11773_v52 = vadd.f32 %v23093_v58, %v11566_v49  ;;  %v23111_v49 = vld [vmem:[#allocation49_spill] sm:$0xff] }
 0xb61   : > { %v12124_v6 = vpop.f32.mrf.mxu1  ;;  %v11958_v28 = vadd.f32 %v11957_v18, %v11753_v55  ;;  %v23096_v18 = vld [vmem:[#allocation57_spill] sm:$0xff]  ;;  %v23100_v55 = vld [vmem:[#allocation115_spill] sm:$0xff] }
 0xb62   : > { %12462 = vst [vmem:[%s19796_s13 + $0x1a0] sm:$0xff] %v12120_v11  ;;  %v12125_v42 = vadd.f32 %v12124_v6, %v11944_v46  ;;  %v11959_v12 = vpop.f32.mrf.mxu0  ;;  %v23095_v46 = vld [vmem:[#allocation105_spill] sm:$0xff]  ;;  %v11780_v6 = vadd.f32 %v23096_v18, %v11572_v0  ;;  %v23114_v0 = vld [vmem:[#allocation56_spill] sm:$0xff] }
 0xb63   : > { %v12126_v45 = vpop.f32.mrf.mxu1  ;;  %v11960_v27 = vadd.f32 %v11959_v12, %v11755_v43  ;;  %v11574_v11 = vadd.f32 %v23095_v46, %v23094_v21  ;;  %v23097_v12 = vld [vmem:[#allocation122_spill] sm:$0xff]  ;;  %v23116_v21 = vld [vmem:[#allocation131_spill] sm:$0xff] }
 0xb64   : > { %12447 = vst [vmem:[%s19796_s13 + $0x128] sm:$0xff] %v12125_v42  ;;  %v12127_v56 = vadd.f32 %v12126_v45, %v11946_v4  ;;  %v11964_v30 = vpop.f32.mrf.mxu0  ;;  %v23098_v45 = vld [vmem:[#allocation110_spill] sm:$0xff] }
 0xb65   : > { %v12131_v5 = vpop.f32.mrf.mxu1  ;;  %v11965_v62 = vadd.f32 %v11964_v30, %v11762_v60  ;;  %v11580_v29 = vadd.f32 %v23098_v45, %v23097_v12  ;;  %v23120_v45 = vld [vmem:[#allocation64_spill] sm:$0xff] }
 0xb66   : > { %12463 = vst [vmem:[%s19796_s13 + $0x1a8] sm:$0xff] %v12127_v56  ;;  %v12132_v50 = vadd.f32 %v12131_v5, %v11951_v31  ;;  %v11966_v8 = vpop.f32.mrf.mxu0  ;;  %v11782_v31 = vadd.f32 %v23099_v23, %v11574_v11  ;;  %v23117_v11 = vld [vmem:[#allocation55_spill] sm:$0xff] }
 0xb67   : > { %v12133_v10 = vpop.f32.mrf.mxu1  ;;  %v11967_v7 = vadd.f32 %v11966_v8, %v11764_v1  ;;  %v23102_v8 = vld [vmem:[#allocation132_spill] sm:$0xff] }
 0xb68   : > { %12448 = vst [vmem:[%s19796_s13 + $0x130] sm:$0xff] %v12132_v50  ;;  %v12134_v39 = vadd.f32 %v12133_v10, %v11953_v9  ;;  %v11971_v57 = vpop.f32.mrf.mxu0  ;;  %v23101_v9 = vld [vmem:[#allocation138_spill] sm:$0xff]  ;;  %v11789_v10 = vadd.f32 %v23102_v8, %v11580_v29 }
 0xb69   : > { %v12138_v26 = vpop.f32.mrf.mxu1  ;;  %v11972_v16 = vadd.f32 %v11971_v57, %v11771_v36  ;;  %v11582_v50 = vadd.f32 %v23101_v9, %v23100_v55  ;;  %v23103_v57 = vld [vmem:[#allocation137_spill] sm:$0xff]  ;;  %v23123_v9 = vld [vmem:[#allocation59_spill] sm:$0xff] }
 0xb6a   : > { %12464 = vst [vmem:[%s19796_s13 + $0x1b0] sm:$0xff] %v12134_v39  ;;  %v12139_v13 = vadd.f32 %v12138_v26, %v11958_v28  ;;  %v11973_v32 = vpop.f32.mrf.mxu0  ;;  %v23104_v26 = vld [vmem:[#allocation47_spill] sm:$0xff] }
 0xb6b   : > { %v12140_v20 = vpop.f32.mrf.mxu1  ;;  %v11974_v48 = vadd.f32 %v11973_v32, %v11773_v52  ;;  %v11588_v19 = vadd.f32 %v23104_v26, %v23103_v57  ;;  %v11791_v24 = vadd.f32 %v23105_v38, %v11582_v50  ;;  %v23126_v57 = vld [vmem:[#allocation68_spill] sm:$0xff] }
 0xb6c   : > { %12449 = vst [vmem:[%s19796_s13 + $0x138] sm:$0xff] %v12139_v13  ;;  %v12141_v44 = vadd.f32 %v12140_v20, %v11960_v27  ;;  %v11978_v34 = vpop.f32.mrf.mxu0  ;;  %v23106_v20 = vld [vmem:[#allocation94_spill] sm:$0xff] }
 0xb6d   : > { %v12145_v3 = vpop.f32.mrf.mxu1  ;;  %v11979_v56 = vadd.f32 %v11978_v34, %v11780_v6  ;;  %v11590_v54 = vadd.f32 %v23107_v35, %v23106_v20  ;;  %v11798_v53 = vadd.f32 %v23108_v25, %v11588_v19 }
 0xb6e   : > { %12465 = vst [vmem:[%s19796_s13 + $0x1b8] sm:$0xff] %v12141_v44  ;;  %v12146_v61 = vadd.f32 %v12145_v3, %v11965_v62  ;;  %v11980_v37 = vpop.f32.mrf.mxu0  ;;  %v23109_v3 = vld [vmem:[#allocation139_spill] sm:$0xff] }
 0xb6f   : > { %v12147_v2 = vpop.f32.mrf.mxu1  ;;  %v11981_v63 = vadd.f32 %v11980_v37, %v11782_v31  ;;  %v11596_v33 = vadd.f32 %v23110_v47, %v23109_v3  ;;  %v11800_v41 = vadd.f32 %v23111_v49, %v11590_v54 }
 0xb70   : > { %12450 = vst [vmem:[%s19796_s13 + $0x140] sm:$0xff] %v12146_v61  ;;  %v12148_v59 = vadd.f32 %v12147_v2, %v11967_v7  ;;  %v11985_v51 = vpop.f32.mrf.mxu0  ;;  %v23112_v2 = vld [vmem:[#allocation97_spill] sm:$0xff] }
 0xb71   : > { %v12152_v40 = vpop.f32.mrf.mxu1  ;;  %v11986_v60 = vadd.f32 %v11985_v51, %v11789_v10  ;;  %v11598_v17 = vadd.f32 %v23113_v15, %v23112_v2  ;;  %v11807_v58 = vadd.f32 %v23114_v0, %v11596_v33 }
 0xb72   : > { %12466 = vst [vmem:[%s19796_s13 + $0x1c0] sm:$0xff] %v12148_v59  ;;  %v12153_v14 = vadd.f32 %v12152_v40, %v11972_v16  ;;  %v11987_v4 = vpop.f32.mrf.mxu0  ;;  %v23115_v40 = vld [vmem:[#allocation33_spill] sm:$0xff] }
 0xb73   : > { %v12154_v42 = vpop.f32.mrf.mxu1  ;;  %v11988_v1 = vadd.f32 %v11987_v4, %v11791_v24  ;;  %v11604_v46 = vadd.f32 %v23116_v21, %v23115_v40  ;;  %v11809_v18 = vadd.f32 %v23117_v11, %v11598_v17  ;;  %v23118_v4 = vld [vmem:[#allocation119_spill] sm:$0xff] }
 0xb74   : > { %12451 = vst [vmem:[%s19796_s13 + $0x148] sm:$0xff] %v12153_v14  ;;  %v12155_v30 = vadd.f32 %v12154_v42, %v11974_v48  ;;  %v11992_v5 = vpop.f32.mrf.mxu0  ;;  %v23119_v42 = vld [vmem:[#allocation130_spill] sm:$0xff] }
 0xb75   : > { %v12159_v22 = vpop.f32.mrf.mxu1  ;;  %v11993_v36 = vadd.f32 %v11992_v5, %v11798_v53  ;;  %v11606_v12 = vadd.f32 %v23119_v42, %v23118_v4  ;;  %v11816_v29 = vadd.f32 %v23120_v45, %v11604_v46  ;;  %v23121_v5 = vld [vmem:[#allocation99_spill] sm:$0xff] }
 0xb76   : > { %12467 = vst [vmem:[%s19796_s13 + $0x1c8] sm:$0xff] %v12155_v30  ;;  %v12160_v43 = vadd.f32 %v12159_v22, %v11979_v56  ;;  %v11994_v28 = vpop.f32.mrf.mxu0  ;;  %v23122_v22 = vld [vmem:[#allocation36_spill] sm:$0xff] }
 0xb77   : > { %v12161_v39 = vpop.f32.mrf.mxu1  ;;  %v11995_v52 = vadd.f32 %v11994_v28, %v11800_v41  ;;  %v11612_v55 = vadd.f32 %v23122_v22, %v23121_v5  ;;  %v11818_v50 = vadd.f32 %v23123_v9, %v11606_v12  ;;  %v23125_v28 = vld [vmem:[#allocation135_spill] sm:$0xff] }
 0xb78   : > { %12452 = vst [vmem:[%s19796_s13 + $0x150] sm:$0xff] %v12160_v43  ;;  %v12162_v27 = vadd.f32 %v12161_v39, %v11981_v63  ;;  %v11999_v13 = vpop.f32.mrf.mxu0  ;;  %v23124_v43 = vld [vmem:[#allocation53_spill] sm:$0xff] }
 0xb79   : > { %v12166_v32 = vpop.f32.mrf.mxu1  ;;  %v12000_v6 = vadd.f32 %v11999_v13, %v11807_v58  ;;  %v11614_v39 = vadd.f32 %v23125_v28, %v23124_v43  ;;  %v11825_v26 = vadd.f32 %v23126_v57, %v11612_v55 }
 0xb7a   : > { %12468 = vst [vmem:[%s19796_s13 + $0x1d0] sm:$0xff] %v12162_v27  ;;  %v12167_v62 = vadd.f32 %v12166_v32, %v11986_v60  ;;  %v12001_v44 = vpop.f32.mrf.mxu0  ;;  %v23127_v27 = vld [vmem:[#allocation129_spill] sm:$0xff] }
 0xb7b   : > { %v12168_v34 = vpop.f32.mrf.mxu1  ;;  %v12002_v23 = vadd.f32 %v12001_v44, %v11809_v18  ;;  %v11827_v13 = vadd.f32 %v23127_v27, %v11614_v39 }
 0xb7c   : > { %12453 = vst [vmem:[%s19796_s13 + $0x158] sm:$0xff] %v12167_v62  ;;  %v12169_v7 = vadd.f32 %v12168_v34, %v11988_v1  ;;  %v12006_v61 = vpop.f32.mrf.mxu0 }
 0xb7d   : > { %v12173_v37 = vpop.f32.mrf.mxu1  ;;  %v12007_v8 = vadd.f32 %v12006_v61, %v11816_v29 }
 0xb7e   : > { %12469 = vst [vmem:[%s19796_s13 + $0x1d8] sm:$0xff] %v12169_v7  ;;  %v12174_v16 = vadd.f32 %v12173_v37, %v11993_v36  ;;  %v12008_v59 = vpop.f32.mrf.mxu0 }
 0xb7f   : > { %v12175_v51 = vpop.f32.mrf.mxu1  ;;  %v12009_v19 = vadd.f32 %v12008_v59, %v11818_v50 }
 0xb80   : > { %12454 = vst [vmem:[%s19796_s13 + $0x160] sm:$0xff] %v12174_v16  ;;  %v12176_v48 = vadd.f32 %v12175_v51, %v11995_v52  ;;  %v12013_v56 = vpop.f32.mrf.mxu0 }
 0xb81   : > { %v12180_v14 = vpop.f32.mrf.mxu1  ;;  %v12014_v32 = vadd.f32 %v12013_v56, %v11825_v26 }
 0xb82   : > { %12470 = vst [vmem:[%s19796_s13 + $0x1e0] sm:$0xff] %v12176_v48  ;;  %v12181_v31 = vadd.f32 %v12180_v14, %v12000_v6  ;;  %v12015_v24 = vpop.f32.mrf.mxu0 }
 0xb83   : > { %v12182_v30 = vpop.f32.mrf.mxu1  ;;  %v12016_v54 = vadd.f32 %v12015_v24, %v11827_v13 }
 0xb84   : > { %12455 = vst [vmem:[%s19796_s13 + $0x168] sm:$0xff] %v12181_v31  ;;  %v12183_v10 = vadd.f32 %v12182_v30, %v12002_v23 }
 0xb85   : > { %v12187_v63 = vpop.f32.mrf.mxu1 }
 0xb86   : > { %12471 = vst [vmem:[%s19796_s13 + $0x1e8] sm:$0xff] %v12183_v10  ;;  %v12188_v38 = vadd.f32 %v12187_v63, %v12007_v8 }
 0xb87   : > { %v12189_v60 = vpop.f32.mrf.mxu1 }
 0xb88   : > { %12456 = vst [vmem:[%s19796_s13 + $0x170] sm:$0xff] %v12188_v38  ;;  %v12190_v20 = vadd.f32 %v12189_v60, %v12009_v19 }
 0xb89   : > { %v12194_v35 = vpop.f32.mrf.mxu1 }
 0xb8a   : > { %12472 = vst [vmem:[%s19796_s13 + $0x1f0] sm:$0xff] %v12190_v20  ;;  %v12195_v25 = vadd.f32 %v12194_v35, %v12014_v32 }
 0xb8b   : > { %v12196_v53 = vpop.f32.mrf.mxu1 }
 0xb8c   : > { %12457 = vst [vmem:[%s19796_s13 + $0x178] sm:$0xff] %v12195_v25  ;;  %v12197_v1 = vadd.f32 %v12196_v53, %v12016_v54 }
 0xb8e   : > { %12473 = vst [vmem:[%s19796_s13 + $0x1f8] sm:$0xff] %v12197_v1 }
 0xb8f   : > { %12910 = shalt.err (!%p12907_p2)
}
 0xb90   : > { %s12911_s21 = scalar_lea.hbm %s20289_s19, 8192  ;;  %s12915_s17 = scalar_lea.hbm %s23128_s12, 16384 }
 0xb91   : > { %p12912_p0 = scmp.ne.s32.totalorder %s20289_s19, %s12911_s21  ;;  %p12916_p10 = scmp.lt.s32.totalorder %s20289_s19, %s23128_s12 }
 0xb92   : > { %p12917_p6 = scmp.lt.s32.totalorder %s12915_s17, %s12911_s21 }
 0xb93   : > { %p12913_p8 = pnand %p12912_p0, %p23129_p9 }
 0xb94   : > { %p12918_p12 = por %p12917_p6, %p12916_p10 }
 0xb95   : > { %p12914_p11 = pneg %p12913_p8 }
 0xb97   : > { %p12919_p3 = pnand %p12918_p12, %p12914_p11 }
 0xb99   : > { %12922 = shalt.err (!%p12919_p3)
}
 0xb9a   : > { %s12985_s13 = smov 128   ;;  %s12986_s26 = smov 8  }
 0xb9b   : > { %12722 = dma.vmem_to_hbm [thread:$0]  (%p23129_p9), %s20291_s23, 8192, %s20289_s19, %s12267_s25, %s12985_s13, %s12985_s13, %s12986_s26  }
 0xb9c PF: > { %s23130_s16 = sld [smem:[#allocation16_spill]]  ;;  %p23133_p5 = scmp.ge.s32.totalorder %s12973_s24, 2 }
 0xb9d   : > { %s23131_s5 = sld [smem:[#allocation18_spill]] }
 0xba2   : > { %s12295_s6 = sand.u32 1, %s23130_s16  }
 0xba3   : > { %p23132_p13 = scmp.ne.s32.totalorder %s23131_s5, 0  ;;  %s12296_s29 = scalar_lea.sflag [#allocation4], %s12295_s6 }
 0xba5   : > { %p12739_p1 = pnand %p23133_p5, %p23132_p13 }
 0xba7   : > { %p12740_p4 = pneg %p12739_p1 }
 0xba9   : > { %12956 = dma.done.wait (%p12740_p4), %s12296_s29, 8192  }
 0xbaa   : > { %12958 = vsyncadd (%p12740_p4), %s12296_s29, 4294959104  ;;  %s23134_s24 = sld [smem:[#allocation19_spill]]  ;;  %s23137_s21 = smov %s12965_s22 }
 0xbab   : > { %s23135_s18 = sld [smem:[#allocation17_spill]] }
 0xbac   : > { %s23136_s23 = sld [smem:[#allocation20_spill]] }
 0xbb0   : > { %p29_p7 = scmp.ge.s32.totalorder %s23134_s24, 4  }
 0xbb1   : > { %s23138_s22 = smov %s23135_s18 }
 0xbb2   :  { %31 = sbr.rel (!%p29_p7) target bundleno = 13 (0xd), region = 143 }
 0xbb7   :  { %12301 = vsyncpa [#allocation3], 1 }
 0xbb8   :  { %12303 = vsyncpa [#allocation3 + $0x1], 1 }
 0xbb9   :  { %12304 = vsyncpa [#allocation6], 1 }
 0xbba   :  { %12306 = vsyncpa [#allocation6 + $0x1], 1 }
 0xbbb   :  { %12307 = vsyncpa [#allocation9], 1 }
 0xbbc   :  { %12308 = vsyncpa [#allocation4], 1 }
 0xbbd   :  { %12310 = vsyncpa [#allocation4 + $0x1], 1 }

</bundles_post_ra>
